<compile_context>
chip_gen: v6e
topology: v6e:2x2x1
jax: 0.10.0
libtpu: 0.0.40
codegen_flags: <defaults>
</compile_context>

<pallas_src>
import functools

import jax
import jax.numpy as jnp
from jax.experimental import pallas as pl
from jax.experimental.pallas import tpu as pltpu


# ----------------------------------------------------------------------------
# Pallas kernels
# ----------------------------------------------------------------------------
def _sum_all(a):
    """Full reduction of a 2-D tile to a [1, 1] value (lanes, then sublanes)."""
    return jnp.sum(jnp.sum(a, axis=1, keepdims=True), axis=0, keepdims=True)


def _conv1_gn_relu_kernel(x_ref, w_ref, b_ref, g_ref, be_ref, o_ref, *,
                          C, G, KH, KW, OH, OW, eps):
    """Conv2d(1, C, KHxKW, stride 1, VALID) + GroupNorm(G, C) + ReLU.

    x_ref : [B, H, W]      (VMEM) input image (Cin == 1)
    w_ref : [C*KH*KW]      (SMEM) conv1 weights, input Normalization folded in
    b_ref : [C]            (SMEM) conv1 bias,    input Normalization folded in
    g_ref / be_ref : [C]   (SMEM) GroupNorm affine params
    o_ref : [B, C, OH, OW] (VMEM)
    """
    cpg = C // G
    kk = KH * KW
    inv_n = 1.0 / float(cpg * OH * OW)
    B = x_ref.shape[0]
    for b in range(B):
        xb = x_ref[b]                                         # [H, W]
        # in-kernel "im2col": KH*KW shifted windows (contiguous slices only)
        taps = [xb[di:di + OH, dj:dj + OW]
                for di in range(KH) for dj in range(KW)]
        for g in range(G):
            planes, s1, s2 = [], None, None
            for cc in range(cpg):
                c = g * cpg + cc
                acc = taps[0] * w_ref[c * kk + 0]
                for k in range(1, kk):
                    acc = acc + taps[k] * w_ref[c * kk + k]
                acc = acc + b_ref[c]
                planes.append(acc)
                ps1 = _sum_all(acc)
                ps2 = _sum_all(acc * acc)
                s1 = ps1 if s1 is None else s1 + ps1
                s2 = ps2 if s2 is None else s2 + ps2
            mean = s1 * inv_n
            var = s2 * inv_n - mean * mean
            inv_std = jax.lax.rsqrt(var + eps)
            for cc in range(cpg):
                c = g * cpg + cc
                yn = (planes[cc] - mean) * (inv_std * g_ref[c]) + be_ref[c]
                o_ref[b, c, :, :] = jnp.maximum(yn, 0.0)


def _conv2_gn_head_kernel(p_ref, w2_ref, b2_ref, ga_ref, g2_ref, be2_ref,
                          wfc_ref, bfc_ref, o_ref, *, cpg, eps):
    """conv2-as-matmul + GroupNorm + ReLU + AdaptiveAvgPool2d((1,1)) + Linear.

    p_ref  : [B, OH*OW, K] (VMEM) im2col patches of padded layer-1 output, K=C*16
    w2_ref : [K, C], b2_ref: [1, C]
    ga_ref : [C, C]  within-group summation matrix (only read when cpg > 1)
    g2_ref / be2_ref : [1, C]   GroupNorm affine params
    wfc_ref: [C, ncls], bfc_ref: [1, ncls]
    o_ref  : [B, ncls]
    """
    B, HW, _ = p_ref.shape
    inv_n = 1.0 / float(cpg * HW)
    inv_hw = 1.0 / float(HW)
    for b in range(B):
        y = jnp.dot(p_ref[b], w2_ref[...],
                    preferred_element_type=jnp.float32) + b2_ref[...]   # [HW, C]
        s1 = jnp.sum(y, axis=0, keepdims=True)                          # [1, C]
        s2 = jnp.sum(y * y, axis=0, keepdims=True)                      # [1, C]
        if cpg > 1:   # groups span several channels: sum stats within group
            s1 = jnp.dot(s1, ga_ref[...], preferred_element_type=jnp.float32)
            s2 = jnp.dot(s2, ga_ref[...], preferred_element_type=jnp.float32)
        mean = s1 * inv_n
        var = s2 * inv_n - mean * mean
        scale = jax.lax.rsqrt(var + eps) * g2_ref[...]
        shift = be2_ref[...] - mean * scale
        h = jnp.maximum(y * scale + shift, 0.0)                         # [HW, C]
        pooled = jnp.sum(h, axis=0, keepdims=True) * inv_hw             # [1, C]
        o_ref[b:b + 1, :] = (jnp.dot(pooled, wfc_ref[...],
                                     preferred_element_type=jnp.float32)
                             + bfc_ref[...])


# ----------------------------------------------------------------------------
# Forward pass (2 pallas_calls + tiny XLA glue, all under one jit)
# ----------------------------------------------------------------------------
_VMEM = pl.BlockSpec(memory_space=pltpu.MemorySpace.VMEM)
_SMEM = pl.BlockSpec(memory_space=pltpu.MemorySpace.SMEM)


@jax.jit
def odenet_mnist_forward(x, params):
    """x: [B, 1, 28, 28] (NCHW like PyTorch).  Returns logits [B, 10]."""
    norm_mean, norm_std = 0.1307, 0.3081   # MNIST Normalization constants
    eps = 1e-5                             # PyTorch GroupNorm default
    B, Cin, H, W = x.shape
    w1 = params["w1"]
    C, _, KH1, KW1 = w1.shape
    OH1, OW1 = H - KH1 + 1, W - KW1 + 1
    G = min(32, C)                         # norm(dim) = GroupNorm(min(32, dim), dim)
    cpg = C // G

    # fold input Normalization into conv1:
    #   conv(w, (x - mu)/sig) + b == conv(w/sig, x) + (b - mu/sig * sum(w))
    w1m = w1.reshape(C, Cin * KH1 * KW1)
    w1f = (w1m / norm_std).reshape(-1)
    b1f = params["b1"] - (norm_mean / norm_std) * jnp.sum(w1m, axis=1)

    # ---- kernel 1: conv1 + GroupNorm + ReLU (im2col done in-kernel) ----
    h1 = pl.pallas_call(
        functools.partial(_conv1_gn_relu_kernel, C=C, G=G, KH=KH1, KW=KW1,
                          OH=OH1, OW=OW1, eps=eps),
        out_shape=jax.ShapeDtypeStruct((B, C, OH1, OW1), jnp.float32),
        in_specs=[_VMEM, _SMEM, _SMEM, _SMEM, _SMEM],
        out_specs=_VMEM,
    )(x.reshape(B, H, W), w1f, b1f, params["g1"], params["be1"])

    # ---- conv2 im2col glue (4x4, stride 2, pad 1): tiny, K = C*16 = 128 ----
    w2 = params["w2"]
    _, _, KH2, KW2 = w2.shape
    OH2 = (OH1 + 2 - KH2) // 2 + 1
    OW2 = (OW1 + 2 - KW2) // 2 + 1
    h1p = jnp.pad(h1, ((0, 0), (0, 0), (1, 1), (1, 1)))
    taps = [h1p[:, :, di:di + 2 * (OH2 - 1) + 1:2, dj:dj + 2 * (OW2 - 1) + 1:2]
            for di in range(KH2) for dj in range(KW2)]
    pm = jnp.stack(taps, axis=2)                       # [B, C, KH2*KW2, OH2, OW2]
    pm = pm.transpose(0, 3, 4, 1, 2)                   # [B, OH2, OW2, C, KH2*KW2]
    p2 = pm.reshape(B, OH2 * OW2, C * KH2 * KW2)       # [B, 169, 128]
    w2m = w2.reshape(C, C * KH2 * KW2).T               # OIHW -> (ci, kh, kw) columns

    # within-group summation matrix for GroupNorm stats (identity when cpg == 1)
    gid = jnp.arange(C) // cpg
    gmat = (gid[:, None] == gid[None, :]).astype(jnp.float32)

    ncls = params["w_fc"].shape[0]
    # TODO(synk): the odeblock feature layer is an external dependency
    # (odeblock.odefunc); it is treated as identity between conv2 and the head.
    logits = pl.pallas_call(
        functools.partial(_conv2_gn_head_kernel, cpg=cpg, eps=eps),
        out_shape=jax.ShapeDtypeStruct((B, ncls), jnp.float32),
        in_specs=[_VMEM] * 8,
        out_specs=_VMEM,
    )(p2, w2m, params["b2"].reshape(1, C), gmat,
      params["g2"].reshape(1, C), params["be2"].reshape(1, C),
      params["w_fc"].T, params["b_fc"].reshape(1, ncls))
    return logits


# ----------------------------------------------------------------------------
# Pure-JAX reference (for correctness check)
# ----------------------------------------------------------------------------
def _reference(x, params, norm_mean=0.1307, norm_std=0.3081, eps=1e-5):
    C = params["w1"].shape[0]
    G = min(32, C)

    def gn(h, gamma, beta):
        B, Cc, H, W = h.shape
        hg = h.reshape(B, G, Cc // G, H, W)
        m = hg.mean(axis=(2, 3, 4), keepdims=True)
        v = ((hg - m) ** 2).mean(axis=(2, 3, 4), keepdims=True)
        hn = ((hg - m) / jnp.sqrt(v + eps)).reshape(B, Cc, H, W)
        return hn * gamma.reshape(1, -1, 1, 1) + beta.reshape(1, -1, 1, 1)

    h = (x - norm_mean) / norm_std
    h = jax.lax.conv_general_dilated(h, params["w1"], (1, 1), "VALID",
                                     dimension_numbers=("NCHW", "OIHW", "NCHW"))
    h = h + params["b1"].reshape(1, -1, 1, 1)
    h = jax.nn.relu(gn(h, params["g1"], params["be1"]))
    h = jax.lax.conv_general_dilated(h, params["w2"], (2, 2), [(1, 1), (1, 1)],
                                     dimension_numbers=("NCHW", "OIHW", "NCHW"))
    h = h + params["b2"].reshape(1, -1, 1, 1)
    h = jax.nn.relu(gn(h, params["g2"], params["be2"]))
    pooled = h.mean(axis=(2, 3))          # AdaptiveAvgPool2d((1,1)) + Flatten
    return pooled @ params["w_fc"].T + params["b_fc"]


# ----------------------------------------------------------------------------
if __name__ == "__main__":
    hid_dim = 8        # odeblock.odefunc.in_dim
    B = 2
    key = jax.random.PRNGKey(0)
    ks = jax.random.split(key, 11)

    params = {
        # Conv2d(1, hid, 3, 1)
        "w1": 0.1 * jax.random.normal(ks[0], (hid_dim, 1, 3, 3), jnp.float32),
        "b1": 0.1 * jax.random.normal(ks[1], (hid_dim,), jnp.float32),
        # GroupNorm(min(32, hid), hid)
        "g1": 1.0 + 0.1 * jax.random.normal(ks[2], (hid_dim,), jnp.float32),
        "be1": 0.1 * jax.random.normal(ks[3], (hid_dim,), jnp.float32),
        # Conv2d(hid, hid, 4, 2, 1)
        "w2": 0.1 * jax.random.normal(ks[4], (hid_dim, hid_dim, 4, 4), jnp.float32),
        "b2": 0.1 * jax.random.normal(ks[5], (hid_dim,), jnp.float32),
        "g2": 1.0 + 0.1 * jax.random.normal(ks[6], (hid_dim,), jnp.float32),
        "be2": 0.1 * jax.random.normal(ks[7], (hid_dim,), jnp.float32),
        # Linear(hid, 10)
        "w_fc": 0.1 * jax.random.normal(ks[8], (10, hid_dim), jnp.float32),
        "b_fc": 0.1 * jax.random.normal(ks[9], (10,), jnp.float32),
    }

    # MNIST-shaped input: [B, 1, 28, 28] (NCHW)
    x = jax.random.normal(ks[10], (B, 1, 28, 28), jnp.float32)

    out = jax.block_until_ready(odenet_mnist_forward(x, params))
    assert out.shape == (B, 10), out.shape

    ref = _reference(x, params)
    err = float(jnp.max(jnp.abs(out - ref)))
    assert jnp.allclose(out, ref, atol=2e-3, rtol=2e-3), f"max abs err {err}"

    print("KERNEL_OK")
</pallas_src>

<mosaic_0001>
module attributes {stable_mosaic.version = 11 : i64} {
  func.func @_conv1_gn_relu_kernel(%arg0: memref<2x28x28xf32, #tpu.memory_space<vmem>>, %arg1: memref<72xf32, #tpu.memory_space<smem>>, %arg2: memref<8xf32, #tpu.memory_space<smem>>, %arg3: memref<8xf32, #tpu.memory_space<smem>>, %arg4: memref<8xf32, #tpu.memory_space<smem>>, %arg5: memref<2x8x26x26xf32, #tpu.memory_space<vmem>>) attributes {dimension_semantics = [], scalar_prefetch = 0 : i64, scratch_operands = 0 : i64, tpu.core_type = #tpu.core_type<tc>} {
    %c0 = arith.constant 0 : index
    %c0_0 = arith.constant 0 : index
    %c0_1 = arith.constant 0 : index
    %0 = vector.load %arg0[%c0, %c0_0, %c0_1] : memref<2x28x28xf32, #tpu.memory_space<vmem>>, vector<1x28x28xf32>
    %1 = vector.shape_cast %0 : vector<1x28x28xf32> to vector<28x28xf32>
    %2 = vector.extract_strided_slice %1 {offsets = [0, 0], sizes = [26, 26], strides = [1, 1]} : vector<28x28xf32> to vector<26x26xf32>
    %3 = vector.extract_strided_slice %1 {offsets = [0, 1], sizes = [26, 26], strides = [1, 1]} : vector<28x28xf32> to vector<26x26xf32>
    %4 = vector.extract_strided_slice %1 {offsets = [0, 2], sizes = [26, 26], strides = [1, 1]} : vector<28x28xf32> to vector<26x26xf32>
    %5 = vector.extract_strided_slice %1 {offsets = [1, 0], sizes = [26, 26], strides = [1, 1]} : vector<28x28xf32> to vector<26x26xf32>
    %6 = vector.extract_strided_slice %1 {offsets = [1, 1], sizes = [26, 26], strides = [1, 1]} : vector<28x28xf32> to vector<26x26xf32>
    %7 = vector.extract_strided_slice %1 {offsets = [1, 2], sizes = [26, 26], strides = [1, 1]} : vector<28x28xf32> to vector<26x26xf32>
    %8 = vector.extract_strided_slice %1 {offsets = [2, 0], sizes = [26, 26], strides = [1, 1]} : vector<28x28xf32> to vector<26x26xf32>
    %9 = vector.extract_strided_slice %1 {offsets = [2, 1], sizes = [26, 26], strides = [1, 1]} : vector<28x28xf32> to vector<26x26xf32>
    %10 = vector.extract_strided_slice %1 {offsets = [2, 2], sizes = [26, 26], strides = [1, 1]} : vector<28x28xf32> to vector<26x26xf32>
    %c0_2 = arith.constant 0 : index
    %11 = memref.load %arg1[%c0_2] : memref<72xf32, #tpu.memory_space<smem>>
    %12 = vector.broadcast %11 : f32 to vector<26x26xf32>
    %13 = arith.mulf %2, %12 : vector<26x26xf32>
    %c1 = arith.constant 1 : index
    %14 = memref.load %arg1[%c1] : memref<72xf32, #tpu.memory_space<smem>>
    %15 = vector.broadcast %14 : f32 to vector<26x26xf32>
    %16 = arith.mulf %3, %15 : vector<26x26xf32>
    %17 = arith.addf %13, %16 : vector<26x26xf32>
    %c2 = arith.constant 2 : index
    %18 = memref.load %arg1[%c2] : memref<72xf32, #tpu.memory_space<smem>>
    %19 = vector.broadcast %18 : f32 to vector<26x26xf32>
    %20 = arith.mulf %4, %19 : vector<26x26xf32>
    %21 = arith.addf %17, %20 : vector<26x26xf32>
    %c3 = arith.constant 3 : index
    %22 = memref.load %arg1[%c3] : memref<72xf32, #tpu.memory_space<smem>>
    %23 = vector.broadcast %22 : f32 to vector<26x26xf32>
    %24 = arith.mulf %5, %23 : vector<26x26xf32>
    %25 = arith.addf %21, %24 : vector<26x26xf32>
    %c4 = arith.constant 4 : index
    %26 = memref.load %arg1[%c4] : memref<72xf32, #tpu.memory_space<smem>>
    %27 = vector.broadcast %26 : f32 to vector<26x26xf32>
    %28 = arith.mulf %6, %27 : vector<26x26xf32>
    %29 = arith.addf %25, %28 : vector<26x26xf32>
    %c5 = arith.constant 5 : index
    %30 = memref.load %arg1[%c5] : memref<72xf32, #tpu.memory_space<smem>>
    %31 = vector.broadcast %30 : f32 to vector<26x26xf32>
    %32 = arith.mulf %7, %31 : vector<26x26xf32>
    %33 = arith.addf %29, %32 : vector<26x26xf32>
    %c6 = arith.constant 6 : index
    %34 = memref.load %arg1[%c6] : memref<72xf32, #tpu.memory_space<smem>>
    %35 = vector.broadcast %34 : f32 to vector<26x26xf32>
    %36 = arith.mulf %8, %35 : vector<26x26xf32>
    %37 = arith.addf %33, %36 : vector<26x26xf32>
    %c7 = arith.constant 7 : index
    %38 = memref.load %arg1[%c7] : memref<72xf32, #tpu.memory_space<smem>>
    %39 = vector.broadcast %38 : f32 to vector<26x26xf32>
    %40 = arith.mulf %9, %39 : vector<26x26xf32>
    %41 = arith.addf %37, %40 : vector<26x26xf32>
    %c8 = arith.constant 8 : index
    %42 = memref.load %arg1[%c8] : memref<72xf32, #tpu.memory_space<smem>>
    %43 = vector.broadcast %42 : f32 to vector<26x26xf32>
    %44 = arith.mulf %10, %43 : vector<26x26xf32>
    %45 = arith.addf %41, %44 : vector<26x26xf32>
    %c0_3 = arith.constant 0 : index
    %46 = memref.load %arg2[%c0_3] : memref<8xf32, #tpu.memory_space<smem>>
    %47 = vector.broadcast %46 : f32 to vector<26x26xf32>
    %48 = arith.addf %45, %47 : vector<26x26xf32>
    %cst = arith.constant dense<0.000000e+00> : vector<26xf32>
    %49 = vector.multi_reduction <add>, %48, %cst [1] : vector<26x26xf32> to vector<26xf32>
    %50 = vector.shape_cast %49 : vector<26xf32> to vector<26x1xf32>
    %cst_4 = arith.constant dense<0.000000e+00> : vector<1xf32>
    %51 = vector.multi_reduction <add>, %50, %cst_4 [0] : vector<26x1xf32> to vector<1xf32>
    %52 = vector.shape_cast %51 : vector<1xf32> to vector<1x1xf32>
    %53 = arith.mulf %48, %48 : vector<26x26xf32>
    %cst_5 = arith.constant dense<0.000000e+00> : vector<26xf32>
    %54 = vector.multi_reduction <add>, %53, %cst_5 [1] : vector<26x26xf32> to vector<26xf32>
    %55 = vector.shape_cast %54 : vector<26xf32> to vector<26x1xf32>
    %cst_6 = arith.constant dense<0.000000e+00> : vector<1xf32>
    %56 = vector.multi_reduction <add>, %55, %cst_6 [0] : vector<26x1xf32> to vector<1xf32>
    %57 = vector.shape_cast %56 : vector<1xf32> to vector<1x1xf32>
    %cst_7 = arith.constant 1.479290e-03 : f32
    %58 = vector.broadcast %cst_7 : f32 to vector<1x1xf32>
    %59 = arith.mulf %52, %58 : vector<1x1xf32>
    %cst_8 = arith.constant 1.479290e-03 : f32
    %60 = vector.broadcast %cst_8 : f32 to vector<1x1xf32>
    %61 = arith.mulf %57, %60 : vector<1x1xf32>
    %62 = arith.mulf %59, %59 : vector<1x1xf32>
    %63 = arith.subf %61, %62 : vector<1x1xf32>
    %cst_9 = arith.constant 9.99999974E-6 : f32
    %64 = vector.broadcast %cst_9 : f32 to vector<1x1xf32>
    %65 = arith.addf %63, %64 : vector<1x1xf32>
    %66 = math.rsqrt %65 : vector<1x1xf32>
    %67 = vector.broadcast %59 : vector<1x1xf32> to vector<26x26xf32>
    %68 = arith.subf %48, %67 : vector<26x26xf32>
    %c0_10 = arith.constant 0 : index
    %69 = memref.load %arg3[%c0_10] : memref<8xf32, #tpu.memory_space<smem>>
    %70 = vector.broadcast %69 : f32 to vector<1x1xf32>
    %71 = arith.mulf %66, %70 : vector<1x1xf32>
    %72 = vector.broadcast %71 : vector<1x1xf32> to vector<26x26xf32>
    %73 = arith.mulf %68, %72 : vector<26x26xf32>
    %c0_11 = arith.constant 0 : index
    %74 = memref.load %arg4[%c0_11] : memref<8xf32, #tpu.memory_space<smem>>
    %75 = vector.broadcast %74 : f32 to vector<26x26xf32>
    %76 = arith.addf %73, %75 : vector<26x26xf32>
    %cst_12 = arith.constant 0.000000e+00 : f32
    %77 = vector.broadcast %cst_12 : f32 to vector<26x26xf32>
    %78 = arith.maximumf %76, %77 : vector<26x26xf32>
    %c0_13 = arith.constant 0 : index
    %c0_14 = arith.constant 0 : index
    %c0_15 = arith.constant 0 : index
    %c0_16 = arith.constant 0 : index
    %79 = vector.load %arg5[%c0_13, %c0_14, %c0_15, %c0_16] : memref<2x8x26x26xf32, #tpu.memory_space<vmem>>, vector<1x1x26x26xf32>
    %80 = vector.shape_cast %79 : vector<1x1x26x26xf32> to vector<26x26xf32>
    %81 = vector.shape_cast %78 : vector<26x26xf32> to vector<1x1x26x26xf32>
    tpu.vector_store %arg5[%c0_13, %c0_14, %c0_15, %c0_16], %81 {strides = array<i32>} : memref<2x8x26x26xf32, #tpu.memory_space<vmem>>, vector<1x1x26x26xf32>,
    %c9 = arith.constant 9 : index
    %82 = memref.load %arg1[%c9] : memref<72xf32, #tpu.memory_space<smem>>
    %83 = vector.broadcast %82 : f32 to vector<26x26xf32>
    %84 = arith.mulf %2, %83 : vector<26x26xf32>
    %c10 = arith.constant 10 : index
    %85 = memref.load %arg1[%c10] : memref<72xf32, #tpu.memory_space<smem>>
    %86 = vector.broadcast %85 : f32 to vector<26x26xf32>
    %87 = arith.mulf %3, %86 : vector<26x26xf32>
    %88 = arith.addf %84, %87 : vector<26x26xf32>
    %c11 = arith.constant 11 : index
    %89 = memref.load %arg1[%c11] : memref<72xf32, #tpu.memory_space<smem>>
    %90 = vector.broadcast %89 : f32 to vector<26x26xf32>
    %91 = arith.mulf %4, %90 : vector<26x26xf32>
    %92 = arith.addf %88, %91 : vector<26x26xf32>
    %c12 = arith.constant 12 : index
    %93 = memref.load %arg1[%c12] : memref<72xf32, #tpu.memory_space<smem>>
    %94 = vector.broadcast %93 : f32 to vector<26x26xf32>
    %95 = arith.mulf %5, %94 : vector<26x26xf32>
    %96 = arith.addf %92, %95 : vector<26x26xf32>
    %c13 = arith.constant 13 : index
    %97 = memref.load %arg1[%c13] : memref<72xf32, #tpu.memory_space<smem>>
    %98 = vector.broadcast %97 : f32 to vector<26x26xf32>
    %99 = arith.mulf %6, %98 : vector<26x26xf32>
    %100 = arith.addf %96, %99 : vector<26x26xf32>
    %c14 = arith.constant 14 : index
    %101 = memref.load %arg1[%c14] : memref<72xf32, #tpu.memory_space<smem>>
    %102 = vector.broadcast %101 : f32 to vector<26x26xf32>
    %103 = arith.mulf %7, %102 : vector<26x26xf32>
    %104 = arith.addf %100, %103 : vector<26x26xf32>
    %c15 = arith.constant 15 : index
    %105 = memref.load %arg1[%c15] : memref<72xf32, #tpu.memory_space<smem>>
    %106 = vector.broadcast %105 : f32 to vector<26x26xf32>
    %107 = arith.mulf %8, %106 : vector<26x26xf32>
    %108 = arith.addf %104, %107 : vector<26x26xf32>
    %c16 = arith.constant 16 : index
    %109 = memref.load %arg1[%c16] : memref<72xf32, #tpu.memory_space<smem>>
    %110 = vector.broadcast %109 : f32 to vector<26x26xf32>
    %111 = arith.mulf %9, %110 : vector<26x26xf32>
    %112 = arith.addf %108, %111 : vector<26x26xf32>
    %c17 = arith.constant 17 : index
    %113 = memref.load %arg1[%c17] : memref<72xf32, #tpu.memory_space<smem>>
    %114 = vector.broadcast %113 : f32 to vector<26x26xf32>
    %115 = arith.mulf %10, %114 : vector<26x26xf32>
    %116 = arith.addf %112, %115 : vector<26x26xf32>
    %c1_17 = arith.constant 1 : index
    %117 = memref.load %arg2[%c1_17] : memref<8xf32, #tpu.memory_space<smem>>
    %118 = vector.broadcast %117 : f32 to vector<26x26xf32>
    %119 = arith.addf %116, %118 : vector<26x26xf32>
    %cst_18 = arith.constant dense<0.000000e+00> : vector<26xf32>
    %120 = vector.multi_reduction <add>, %119, %cst_18 [1] : vector<26x26xf32> to vector<26xf32>
    %121 = vector.shape_cast %120 : vector<26xf32> to vector<26x1xf32>
    %cst_19 = arith.constant dense<0.000000e+00> : vector<1xf32>
    %122 = vector.multi_reduction <add>, %121, %cst_19 [0] : vector<26x1xf32> to vector<1xf32>
    %123 = vector.shape_cast %122 : vector<1xf32> to vector<1x1xf32>
    %124 = arith.mulf %119, %119 : vector<26x26xf32>
    %cst_20 = arith.constant dense<0.000000e+00> : vector<26xf32>
    %125 = vector.multi_reduction <add>, %124, %cst_20 [1] : vector<26x26xf32> to vector<26xf32>
    %126 = vector.shape_cast %125 : vector<26xf32> to vector<26x1xf32>
    %cst_21 = arith.constant dense<0.000000e+00> : vector<1xf32>
    %127 = vector.multi_reduction <add>, %126, %cst_21 [0] : vector<26x1xf32> to vector<1xf32>
    %128 = vector.shape_cast %127 : vector<1xf32> to vector<1x1xf32>
    %cst_22 = arith.constant 1.479290e-03 : f32
    %129 = vector.broadcast %cst_22 : f32 to vector<1x1xf32>
    %130 = arith.mulf %123, %129 : vector<1x1xf32>
    %cst_23 = arith.constant 1.479290e-03 : f32
    %131 = vector.broadcast %cst_23 : f32 to vector<1x1xf32>
    %132 = arith.mulf %128, %131 : vector<1x1xf32>
    %133 = arith.mulf %130, %130 : vector<1x1xf32>
    %134 = arith.subf %132, %133 : vector<1x1xf32>
    %cst_24 = arith.constant 9.99999974E-6 : f32
    %135 = vector.broadcast %cst_24 : f32 to vector<1x1xf32>
    %136 = arith.addf %134, %135 : vector<1x1xf32>
    %137 = math.rsqrt %136 : vector<1x1xf32>
    %138 = vector.broadcast %130 : vector<1x1xf32> to vector<26x26xf32>
    %139 = arith.subf %119, %138 : vector<26x26xf32>
    %c1_25 = arith.constant 1 : index
    %140 = memref.load %arg3[%c1_25] : memref<8xf32, #tpu.memory_space<smem>>
    %141 = vector.broadcast %140 : f32 to vector<1x1xf32>
    %142 = arith.mulf %137, %141 : vector<1x1xf32>
    %143 = vector.broadcast %142 : vector<1x1xf32> to vector<26x26xf32>
    %144 = arith.mulf %139, %143 : vector<26x26xf32>
    %c1_26 = arith.constant 1 : index
    %145 = memref.load %arg4[%c1_26] : memref<8xf32, #tpu.memory_space<smem>>
    %146 = vector.broadcast %145 : f32 to vector<26x26xf32>
    %147 = arith.addf %144, %146 : vector<26x26xf32>
    %cst_27 = arith.constant 0.000000e+00 : f32
    %148 = vector.broadcast %cst_27 : f32 to vector<26x26xf32>
    %149 = arith.maximumf %147, %148 : vector<26x26xf32>
    %c0_28 = arith.constant 0 : index
    %c1_29 = arith.constant 1 : index
    %c0_30 = arith.constant 0 : index
    %c0_31 = arith.constant 0 : index
    %150 = vector.load %arg5[%c0_28, %c1_29, %c0_30, %c0_31] : memref<2x8x26x26xf32, #tpu.memory_space<vmem>>, vector<1x1x26x26xf32>
    %151 = vector.shape_cast %150 : vector<1x1x26x26xf32> to vector<26x26xf32>
    %152 = vector.shape_cast %149 : vector<26x26xf32> to vector<1x1x26x26xf32>
    tpu.vector_store %arg5[%c0_28, %c1_29, %c0_30, %c0_31], %152 {strides = array<i32>} : memref<2x8x26x26xf32, #tpu.memory_space<vmem>>, vector<1x1x26x26xf32>,
    %c18 = arith.constant 18 : index
    %153 = memref.load %arg1[%c18] : memref<72xf32, #tpu.memory_space<smem>>
    %154 = vector.broadcast %153 : f32 to vector<26x26xf32>
    %155 = arith.mulf %2, %154 : vector<26x26xf32>
    %c19 = arith.constant 19 : index
    %156 = memref.load %arg1[%c19] : memref<72xf32, #tpu.memory_space<smem>>
    %157 = vector.broadcast %156 : f32 to vector<26x26xf32>
    %158 = arith.mulf %3, %157 : vector<26x26xf32>
    %159 = arith.addf %155, %158 : vector<26x26xf32>
    %c20 = arith.constant 20 : index
    %160 = memref.load %arg1[%c20] : memref<72xf32, #tpu.memory_space<smem>>
    %161 = vector.broadcast %160 : f32 to vector<26x26xf32>
    %162 = arith.mulf %4, %161 : vector<26x26xf32>
    %163 = arith.addf %159, %162 : vector<26x26xf32>
    %c21 = arith.constant 21 : index
    %164 = memref.load %arg1[%c21] : memref<72xf32, #tpu.memory_space<smem>>
    %165 = vector.broadcast %164 : f32 to vector<26x26xf32>
    %166 = arith.mulf %5, %165 : vector<26x26xf32>
    %167 = arith.addf %163, %166 : vector<26x26xf32>
    %c22 = arith.constant 22 : index
    %168 = memref.load %arg1[%c22] : memref<72xf32, #tpu.memory_space<smem>>
    %169 = vector.broadcast %168 : f32 to vector<26x26xf32>
    %170 = arith.mulf %6, %169 : vector<26x26xf32>
    %171 = arith.addf %167, %170 : vector<26x26xf32>
    %c23 = arith.constant 23 : index
    %172 = memref.load %arg1[%c23] : memref<72xf32, #tpu.memory_space<smem>>
    %173 = vector.broadcast %172 : f32 to vector<26x26xf32>
    %174 = arith.mulf %7, %173 : vector<26x26xf32>
    %175 = arith.addf %171, %174 : vector<26x26xf32>
    %c24 = arith.constant 24 : index
    %176 = memref.load %arg1[%c24] : memref<72xf32, #tpu.memory_space<smem>>
    %177 = vector.broadcast %176 : f32 to vector<26x26xf32>
    %178 = arith.mulf %8, %177 : vector<26x26xf32>
    %179 = arith.addf %175, %178 : vector<26x26xf32>
    %c25 = arith.constant 25 : index
    %180 = memref.load %arg1[%c25] : memref<72xf32, #tpu.memory_space<smem>>
    %181 = vector.broadcast %180 : f32 to vector<26x26xf32>
    %182 = arith.mulf %9, %181 : vector<26x26xf32>
    %183 = arith.addf %179, %182 : vector<26x26xf32>
    %c26 = arith.constant 26 : index
    %184 = memref.load %arg1[%c26] : memref<72xf32, #tpu.memory_space<smem>>
    %185 = vector.broadcast %184 : f32 to vector<26x26xf32>
    %186 = arith.mulf %10, %185 : vector<26x26xf32>
    %187 = arith.addf %183, %186 : vector<26x26xf32>
    %c2_32 = arith.constant 2 : index
    %188 = memref.load %arg2[%c2_32] : memref<8xf32, #tpu.memory_space<smem>>
    %189 = vector.broadcast %188 : f32 to vector<26x26xf32>
    %190 = arith.addf %187, %189 : vector<26x26xf32>
    %cst_33 = arith.constant dense<0.000000e+00> : vector<26xf32>
    %191 = vector.multi_reduction <add>, %190, %cst_33 [1] : vector<26x26xf32> to vector<26xf32>
    %192 = vector.shape_cast %191 : vector<26xf32> to vector<26x1xf32>
    %cst_34 = arith.constant dense<0.000000e+00> : vector<1xf32>
    %193 = vector.multi_reduction <add>, %192, %cst_34 [0] : vector<26x1xf32> to vector<1xf32>
    %194 = vector.shape_cast %193 : vector<1xf32> to vector<1x1xf32>
    %195 = arith.mulf %190, %190 : vector<26x26xf32>
    %cst_35 = arith.constant dense<0.000000e+00> : vector<26xf32>
    %196 = vector.multi_reduction <add>, %195, %cst_35 [1] : vector<26x26xf32> to vector<26xf32>
    %197 = vector.shape_cast %196 : vector<26xf32> to vector<26x1xf32>
    %cst_36 = arith.constant dense<0.000000e+00> : vector<1xf32>
    %198 = vector.multi_reduction <add>, %197, %cst_36 [0] : vector<26x1xf32> to vector<1xf32>
    %199 = vector.shape_cast %198 : vector<1xf32> to vector<1x1xf32>
    %cst_37 = arith.constant 1.479290e-03 : f32
    %200 = vector.broadcast %cst_37 : f32 to vector<1x1xf32>
    %201 = arith.mulf %194, %200 : vector<1x1xf32>
    %cst_38 = arith.constant 1.479290e-03 : f32
    %202 = vector.broadcast %cst_38 : f32 to vector<1x1xf32>
    %203 = arith.mulf %199, %202 : vector<1x1xf32>
    %204 = arith.mulf %201, %201 : vector<1x1xf32>
    %205 = arith.subf %203, %204 : vector<1x1xf32>
    %cst_39 = arith.constant 9.99999974E-6 : f32
    %206 = vector.broadcast %cst_39 : f32 to vector<1x1xf32>
    %207 = arith.addf %205, %206 : vector<1x1xf32>
    %208 = math.rsqrt %207 : vector<1x1xf32>
    %209 = vector.broadcast %201 : vector<1x1xf32> to vector<26x26xf32>
    %210 = arith.subf %190, %209 : vector<26x26xf32>
    %c2_40 = arith.constant 2 : index
    %211 = memref.load %arg3[%c2_40] : memref<8xf32, #tpu.memory_space<smem>>
    %212 = vector.broadcast %211 : f32 to vector<1x1xf32>
    %213 = arith.mulf %208, %212 : vector<1x1xf32>
    %214 = vector.broadcast %213 : vector<1x1xf32> to vector<26x26xf32>
    %215 = arith.mulf %210, %214 : vector<26x26xf32>
    %c2_41 = arith.constant 2 : index
    %216 = memref.load %arg4[%c2_41] : memref<8xf32, #tpu.memory_space<smem>>
    %217 = vector.broadcast %216 : f32 to vector<26x26xf32>
    %218 = arith.addf %215, %217 : vector<26x26xf32>
    %cst_42 = arith.constant 0.000000e+00 : f32
    %219 = vector.broadcast %cst_42 : f32 to vector<26x26xf32>
    %220 = arith.maximumf %218, %219 : vector<26x26xf32>
    %c0_43 = arith.constant 0 : index
    %c2_44 = arith.constant 2 : index
    %c0_45 = arith.constant 0 : index
    %c0_46 = arith.constant 0 : index
    %221 = vector.load %arg5[%c0_43, %c2_44, %c0_45, %c0_46] : memref<2x8x26x26xf32, #tpu.memory_space<vmem>>, vector<1x1x26x26xf32>
    %222 = vector.shape_cast %221 : vector<1x1x26x26xf32> to vector<26x26xf32>
    %223 = vector.shape_cast %220 : vector<26x26xf32> to vector<1x1x26x26xf32>
    tpu.vector_store %arg5[%c0_43, %c2_44, %c0_45, %c0_46], %223 {strides = array<i32>} : memref<2x8x26x26xf32, #tpu.memory_space<vmem>>, vector<1x1x26x26xf32>,
    %c27 = arith.constant 27 : index
    %224 = memref.load %arg1[%c27] : memref<72xf32, #tpu.memory_space<smem>>
    %225 = vector.broadcast %224 : f32 to vector<26x26xf32>
    %226 = arith.mulf %2, %225 : vector<26x26xf32>
    %c28 = arith.constant 28 : index
    %227 = memref.load %arg1[%c28] : memref<72xf32, #tpu.memory_space<smem>>
    %228 = vector.broadcast %227 : f32 to vector<26x26xf32>
    %229 = arith.mulf %3, %228 : vector<26x26xf32>
    %230 = arith.addf %226, %229 : vector<26x26xf32>
    %c29 = arith.constant 29 : index
    %231 = memref.load %arg1[%c29] : memref<72xf32, #tpu.memory_space<smem>>
    %232 = vector.broadcast %231 : f32 to vector<26x26xf32>
    %233 = arith.mulf %4, %232 : vector<26x26xf32>
    %234 = arith.addf %230, %233 : vector<26x26xf32>
    %c30 = arith.constant 30 : index
    %235 = memref.load %arg1[%c30] : memref<72xf32, #tpu.memory_space<smem>>
    %236 = vector.broadcast %235 : f32 to vector<26x26xf32>
    %237 = arith.mulf %5, %236 : vector<26x26xf32>
    %238 = arith.addf %234, %237 : vector<26x26xf32>
    %c31 = arith.constant 31 : index
    %239 = memref.load %arg1[%c31] : memref<72xf32, #tpu.memory_space<smem>>
    %240 = vector.broadcast %239 : f32 to vector<26x26xf32>
    %241 = arith.mulf %6, %240 : vector<26x26xf32>
    %242 = arith.addf %238, %241 : vector<26x26xf32>
    %c32 = arith.constant 32 : index
    %243 = memref.load %arg1[%c32] : memref<72xf32, #tpu.memory_space<smem>>
    %244 = vector.broadcast %243 : f32 to vector<26x26xf32>
    %245 = arith.mulf %7, %244 : vector<26x26xf32>
    %246 = arith.addf %242, %245 : vector<26x26xf32>
    %c33 = arith.constant 33 : index
    %247 = memref.load %arg1[%c33] : memref<72xf32, #tpu.memory_space<smem>>
    %248 = vector.broadcast %247 : f32 to vector<26x26xf32>
    %249 = arith.mulf %8, %248 : vector<26x26xf32>
    %250 = arith.addf %246, %249 : vector<26x26xf32>
    %c34 = arith.constant 34 : index
    %251 = memref.load %arg1[%c34] : memref<72xf32, #tpu.memory_space<smem>>
    %252 = vector.broadcast %251 : f32 to vector<26x26xf32>
    %253 = arith.mulf %9, %252 : vector<26x26xf32>
    %254 = arith.addf %250, %253 : vector<26x26xf32>
    %c35 = arith.constant 35 : index
    %255 = memref.load %arg1[%c35] : memref<72xf32, #tpu.memory_space<smem>>
    %256 = vector.broadcast %255 : f32 to vector<26x26xf32>
    %257 = arith.mulf %10, %256 : vector<26x26xf32>
    %258 = arith.addf %254, %257 : vector<26x26xf32>
    %c3_47 = arith.constant 3 : index
    %259 = memref.load %arg2[%c3_47] : memref<8xf32, #tpu.memory_space<smem>>
    %260 = vector.broadcast %259 : f32 to vector<26x26xf32>
    %261 = arith.addf %258, %260 : vector<26x26xf32>
    %cst_48 = arith.constant dense<0.000000e+00> : vector<26xf32>
    %262 = vector.multi_reduction <add>, %261, %cst_48 [1] : vector<26x26xf32> to vector<26xf32>
    %263 = vector.shape_cast %262 : vector<26xf32> to vector<26x1xf32>
    %cst_49 = arith.constant dense<0.000000e+00> : vector<1xf32>
    %264 = vector.multi_reduction <add>, %263, %cst_49 [0] : vector<26x1xf32> to vector<1xf32>
    %265 = vector.shape_cast %264 : vector<1xf32> to vector<1x1xf32>
    %266 = arith.mulf %261, %261 : vector<26x26xf32>
    %cst_50 = arith.constant dense<0.000000e+00> : vector<26xf32>
    %267 = vector.multi_reduction <add>, %266, %cst_50 [1] : vector<26x26xf32> to vector<26xf32>
    %268 = vector.shape_cast %267 : vector<26xf32> to vector<26x1xf32>
    %cst_51 = arith.constant dense<0.000000e+00> : vector<1xf32>
    %269 = vector.multi_reduction <add>, %268, %cst_51 [0] : vector<26x1xf32> to vector<1xf32>
    %270 = vector.shape_cast %269 : vector<1xf32> to vector<1x1xf32>
    %cst_52 = arith.constant 1.479290e-03 : f32
    %271 = vector.broadcast %cst_52 : f32 to vector<1x1xf32>
    %272 = arith.mulf %265, %271 : vector<1x1xf32>
    %cst_53 = arith.constant 1.479290e-03 : f32
    %273 = vector.broadcast %cst_53 : f32 to vector<1x1xf32>
    %274 = arith.mulf %270, %273 : vector<1x1xf32>
    %275 = arith.mulf %272, %272 : vector<1x1xf32>
    %276 = arith.subf %274, %275 : vector<1x1xf32>
    %cst_54 = arith.constant 9.99999974E-6 : f32
    %277 = vector.broadcast %cst_54 : f32 to vector<1x1xf32>
    %278 = arith.addf %276, %277 : vector<1x1xf32>
    %279 = math.rsqrt %278 : vector<1x1xf32>
    %280 = vector.broadcast %272 : vector<1x1xf32> to vector<26x26xf32>
    %281 = arith.subf %261, %280 : vector<26x26xf32>
    %c3_55 = arith.constant 3 : index
    %282 = memref.load %arg3[%c3_55] : memref<8xf32, #tpu.memory_space<smem>>
    %283 = vector.broadcast %282 : f32 to vector<1x1xf32>
    %284 = arith.mulf %279, %283 : vector<1x1xf32>
    %285 = vector.broadcast %284 : vector<1x1xf32> to vector<26x26xf32>
    %286 = arith.mulf %281, %285 : vector<26x26xf32>
    %c3_56 = arith.constant 3 : index
    %287 = memref.load %arg4[%c3_56] : memref<8xf32, #tpu.memory_space<smem>>
    %288 = vector.broadcast %287 : f32 to vector<26x26xf32>
    %289 = arith.addf %286, %288 : vector<26x26xf32>
    %cst_57 = arith.constant 0.000000e+00 : f32
    %290 = vector.broadcast %cst_57 : f32 to vector<26x26xf32>
    %291 = arith.maximumf %289, %290 : vector<26x26xf32>
    %c0_58 = arith.constant 0 : index
    %c3_59 = arith.constant 3 : index
    %c0_60 = arith.constant 0 : index
    %c0_61 = arith.constant 0 : index
    %292 = vector.load %arg5[%c0_58, %c3_59, %c0_60, %c0_61] : memref<2x8x26x26xf32, #tpu.memory_space<vmem>>, vector<1x1x26x26xf32>
    %293 = vector.shape_cast %292 : vector<1x1x26x26xf32> to vector<26x26xf32>
    %294 = vector.shape_cast %291 : vector<26x26xf32> to vector<1x1x26x26xf32>
    tpu.vector_store %arg5[%c0_58, %c3_59, %c0_60, %c0_61], %294 {strides = array<i32>} : memref<2x8x26x26xf32, #tpu.memory_space<vmem>>, vector<1x1x26x26xf32>,
    %c36 = arith.constant 36 : index
    %295 = memref.load %arg1[%c36] : memref<72xf32, #tpu.memory_space<smem>>
    %296 = vector.broadcast %295 : f32 to vector<26x26xf32>
    %297 = arith.mulf %2, %296 : vector<26x26xf32>
    %c37 = arith.constant 37 : index
    %298 = memref.load %arg1[%c37] : memref<72xf32, #tpu.memory_space<smem>>
    %299 = vector.broadcast %298 : f32 to vector<26x26xf32>
    %300 = arith.mulf %3, %299 : vector<26x26xf32>
    %301 = arith.addf %297, %300 : vector<26x26xf32>
    %c38 = arith.constant 38 : index
    %302 = memref.load %arg1[%c38] : memref<72xf32, #tpu.memory_space<smem>>
    %303 = vector.broadcast %302 : f32 to vector<26x26xf32>
    %304 = arith.mulf %4, %303 : vector<26x26xf32>
    %305 = arith.addf %301, %304 : vector<26x26xf32>
    %c39 = arith.constant 39 : index
    %306 = memref.load %arg1[%c39] : memref<72xf32, #tpu.memory_space<smem>>
    %307 = vector.broadcast %306 : f32 to vector<26x26xf32>
    %308 = arith.mulf %5, %307 : vector<26x26xf32>
    %309 = arith.addf %305, %308 : vector<26x26xf32>
    %c40 = arith.constant 40 : index
    %310 = memref.load %arg1[%c40] : memref<72xf32, #tpu.memory_space<smem>>
    %311 = vector.broadcast %310 : f32 to vector<26x26xf32>
    %312 = arith.mulf %6, %311 : vector<26x26xf32>
    %313 = arith.addf %309, %312 : vector<26x26xf32>
    %c41 = arith.constant 41 : index
    %314 = memref.load %arg1[%c41] : memref<72xf32, #tpu.memory_space<smem>>
    %315 = vector.broadcast %314 : f32 to vector<26x26xf32>
    %316 = arith.mulf %7, %315 : vector<26x26xf32>
    %317 = arith.addf %313, %316 : vector<26x26xf32>
    %c42 = arith.constant 42 : index
    %318 = memref.load %arg1[%c42] : memref<72xf32, #tpu.memory_space<smem>>
    %319 = vector.broadcast %318 : f32 to vector<26x26xf32>
    %320 = arith.mulf %8, %319 : vector<26x26xf32>
    %321 = arith.addf %317, %320 : vector<26x26xf32>
    %c43 = arith.constant 43 : index
    %322 = memref.load %arg1[%c43] : memref<72xf32, #tpu.memory_space<smem>>
    %323 = vector.broadcast %322 : f32 to vector<26x26xf32>
    %324 = arith.mulf %9, %323 : vector<26x26xf32>
    %325 = arith.addf %321, %324 : vector<26x26xf32>
    %c44 = arith.constant 44 : index
    %326 = memref.load %arg1[%c44] : memref<72xf32, #tpu.memory_space<smem>>
    %327 = vector.broadcast %326 : f32 to vector<26x26xf32>
    %328 = arith.mulf %10, %327 : vector<26x26xf32>
    %329 = arith.addf %325, %328 : vector<26x26xf32>
    %c4_62 = arith.constant 4 : index
    %330 = memref.load %arg2[%c4_62] : memref<8xf32, #tpu.memory_space<smem>>
    %331 = vector.broadcast %330 : f32 to vector<26x26xf32>
    %332 = arith.addf %329, %331 : vector<26x26xf32>
    %cst_63 = arith.constant dense<0.000000e+00> : vector<26xf32>
    %333 = vector.multi_reduction <add>, %332, %cst_63 [1] : vector<26x26xf32> to vector<26xf32>
    %334 = vector.shape_cast %333 : vector<26xf32> to vector<26x1xf32>
    %cst_64 = arith.constant dense<0.000000e+00> : vector<1xf32>
    %335 = vector.multi_reduction <add>, %334, %cst_64 [0] : vector<26x1xf32> to vector<1xf32>
    %336 = vector.shape_cast %335 : vector<1xf32> to vector<1x1xf32>
    %337 = arith.mulf %332, %332 : vector<26x26xf32>
    %cst_65 = arith.constant dense<0.000000e+00> : vector<26xf32>
    %338 = vector.multi_reduction <add>, %337, %cst_65 [1] : vector<26x26xf32> to vector<26xf32>
    %339 = vector.shape_cast %338 : vector<26xf32> to vector<26x1xf32>
    %cst_66 = arith.constant dense<0.000000e+00> : vector<1xf32>
    %340 = vector.multi_reduction <add>, %339, %cst_66 [0] : vector<26x1xf32> to vector<1xf32>
    %341 = vector.shape_cast %340 : vector<1xf32> to vector<1x1xf32>
    %cst_67 = arith.constant 1.479290e-03 : f32
    %342 = vector.broadcast %cst_67 : f32 to vector<1x1xf32>
    %343 = arith.mulf %336, %342 : vector<1x1xf32>
    %cst_68 = arith.constant 1.479290e-03 : f32
    %344 = vector.broadcast %cst_68 : f32 to vector<1x1xf32>
    %345 = arith.mulf %341, %344 : vector<1x1xf32>
    %346 = arith.mulf %343, %343 : vector<1x1xf32>
    %347 = arith.subf %345, %346 : vector<1x1xf32>
    %cst_69 = arith.constant 9.99999974E-6 : f32
    %348 = vector.broadcast %cst_69 : f32 to vector<1x1xf32>
    %349 = arith.addf %347, %348 : vector<1x1xf32>
    %350 = math.rsqrt %349 : vector<1x1xf32>
    %351 = vector.broadcast %343 : vector<1x1xf32> to vector<26x26xf32>
    %352 = arith.subf %332, %351 : vector<26x26xf32>
    %c4_70 = arith.constant 4 : index
    %353 = memref.load %arg3[%c4_70] : memref<8xf32, #tpu.memory_space<smem>>
    %354 = vector.broadcast %353 : f32 to vector<1x1xf32>
    %355 = arith.mulf %350, %354 : vector<1x1xf32>
    %356 = vector.broadcast %355 : vector<1x1xf32> to vector<26x26xf32>
    %357 = arith.mulf %352, %356 : vector<26x26xf32>
    %c4_71 = arith.constant 4 : index
    %358 = memref.load %arg4[%c4_71] : memref<8xf32, #tpu.memory_space<smem>>
    %359 = vector.broadcast %358 : f32 to vector<26x26xf32>
    %360 = arith.addf %357, %359 : vector<26x26xf32>
    %cst_72 = arith.constant 0.000000e+00 : f32
    %361 = vector.broadcast %cst_72 : f32 to vector<26x26xf32>
    %362 = arith.maximumf %360, %361 : vector<26x26xf32>
    %c0_73 = arith.constant 0 : index
    %c4_74 = arith.constant 4 : index
    %c0_75 = arith.constant 0 : index
    %c0_76 = arith.constant 0 : index
    %363 = vector.load %arg5[%c0_73, %c4_74, %c0_75, %c0_76] : memref<2x8x26x26xf32, #tpu.memory_space<vmem>>, vector<1x1x26x26xf32>
    %364 = vector.shape_cast %363 : vector<1x1x26x26xf32> to vector<26x26xf32>
    %365 = vector.shape_cast %362 : vector<26x26xf32> to vector<1x1x26x26xf32>
    tpu.vector_store %arg5[%c0_73, %c4_74, %c0_75, %c0_76], %365 {strides = array<i32>} : memref<2x8x26x26xf32, #tpu.memory_space<vmem>>, vector<1x1x26x26xf32>,
    %c45 = arith.constant 45 : index
    %366 = memref.load %arg1[%c45] : memref<72xf32, #tpu.memory_space<smem>>
    %367 = vector.broadcast %366 : f32 to vector<26x26xf32>
    %368 = arith.mulf %2, %367 : vector<26x26xf32>
    %c46 = arith.constant 46 : index
    %369 = memref.load %arg1[%c46] : memref<72xf32, #tpu.memory_space<smem>>
    %370 = vector.broadcast %369 : f32 to vector<26x26xf32>
    %371 = arith.mulf %3, %370 : vector<26x26xf32>
    %372 = arith.addf %368, %371 : vector<26x26xf32>
    %c47 = arith.constant 47 : index
    %373 = memref.load %arg1[%c47] : memref<72xf32, #tpu.memory_space<smem>>
    %374 = vector.broadcast %373 : f32 to vector<26x26xf32>
    %375 = arith.mulf %4, %374 : vector<26x26xf32>
    %376 = arith.addf %372, %375 : vector<26x26xf32>
    %c48 = arith.constant 48 : index
    %377 = memref.load %arg1[%c48] : memref<72xf32, #tpu.memory_space<smem>>
    %378 = vector.broadcast %377 : f32 to vector<26x26xf32>
    %379 = arith.mulf %5, %378 : vector<26x26xf32>
    %380 = arith.addf %376, %379 : vector<26x26xf32>
    %c49 = arith.constant 49 : index
    %381 = memref.load %arg1[%c49] : memref<72xf32, #tpu.memory_space<smem>>
    %382 = vector.broadcast %381 : f32 to vector<26x26xf32>
    %383 = arith.mulf %6, %382 : vector<26x26xf32>
    %384 = arith.addf %380, %383 : vector<26x26xf32>
    %c50 = arith.constant 50 : index
    %385 = memref.load %arg1[%c50] : memref<72xf32, #tpu.memory_space<smem>>
    %386 = vector.broadcast %385 : f32 to vector<26x26xf32>
    %387 = arith.mulf %7, %386 : vector<26x26xf32>
    %388 = arith.addf %384, %387 : vector<26x26xf32>
    %c51 = arith.constant 51 : index
    %389 = memref.load %arg1[%c51] : memref<72xf32, #tpu.memory_space<smem>>
    %390 = vector.broadcast %389 : f32 to vector<26x26xf32>
    %391 = arith.mulf %8, %390 : vector<26x26xf32>
    %392 = arith.addf %388, %391 : vector<26x26xf32>
    %c52 = arith.constant 52 : index
    %393 = memref.load %arg1[%c52] : memref<72xf32, #tpu.memory_space<smem>>
    %394 = vector.broadcast %393 : f32 to vector<26x26xf32>
    %395 = arith.mulf %9, %394 : vector<26x26xf32>
    %396 = arith.addf %392, %395 : vector<26x26xf32>
    %c53 = arith.constant 53 : index
    %397 = memref.load %arg1[%c53] : memref<72xf32, #tpu.memory_space<smem>>
    %398 = vector.broadcast %397 : f32 to vector<26x26xf32>
    %399 = arith.mulf %10, %398 : vector<26x26xf32>
    %400 = arith.addf %396, %399 : vector<26x26xf32>
    %c5_77 = arith.constant 5 : index
    %401 = memref.load %arg2[%c5_77] : memref<8xf32, #tpu.memory_space<smem>>
    %402 = vector.broadcast %401 : f32 to vector<26x26xf32>
    %403 = arith.addf %400, %402 : vector<26x26xf32>
    %cst_78 = arith.constant dense<0.000000e+00> : vector<26xf32>
    %404 = vector.multi_reduction <add>, %403, %cst_78 [1] : vector<26x26xf32> to vector<26xf32>
    %405 = vector.shape_cast %404 : vector<26xf32> to vector<26x1xf32>
    %cst_79 = arith.constant dense<0.000000e+00> : vector<1xf32>
    %406 = vector.multi_reduction <add>, %405, %cst_79 [0] : vector<26x1xf32> to vector<1xf32>
    %407 = vector.shape_cast %406 : vector<1xf32> to vector<1x1xf32>
    %408 = arith.mulf %403, %403 : vector<26x26xf32>
    %cst_80 = arith.constant dense<0.000000e+00> : vector<26xf32>
    %409 = vector.multi_reduction <add>, %408, %cst_80 [1] : vector<26x26xf32> to vector<26xf32>
    %410 = vector.shape_cast %409 : vector<26xf32> to vector<26x1xf32>
    %cst_81 = arith.constant dense<0.000000e+00> : vector<1xf32>
    %411 = vector.multi_reduction <add>, %410, %cst_81 [0] : vector<26x1xf32> to vector<1xf32>
    %412 = vector.shape_cast %411 : vector<1xf32> to vector<1x1xf32>
    %cst_82 = arith.constant 1.479290e-03 : f32
    %413 = vector.broadcast %cst_82 : f32 to vector<1x1xf32>
    %414 = arith.mulf %407, %413 : vector<1x1xf32>
    %cst_83 = arith.constant 1.479290e-03 : f32
    %415 = vector.broadcast %cst_83 : f32 to vector<1x1xf32>
    %416 = arith.mulf %412, %415 : vector<1x1xf32>
    %417 = arith.mulf %414, %414 : vector<1x1xf32>
    %418 = arith.subf %416, %417 : vector<1x1xf32>
    %cst_84 = arith.constant 9.99999974E-6 : f32
    %419 = vector.broadcast %cst_84 : f32 to vector<1x1xf32>
    %420 = arith.addf %418, %419 : vector<1x1xf32>
    %421 = math.rsqrt %420 : vector<1x1xf32>
    %422 = vector.broadcast %414 : vector<1x1xf32> to vector<26x26xf32>
    %423 = arith.subf %403, %422 : vector<26x26xf32>
    %c5_85 = arith.constant 5 : index
    %424 = memref.load %arg3[%c5_85] : memref<8xf32, #tpu.memory_space<smem>>
    %425 = vector.broadcast %424 : f32 to vector<1x1xf32>
    %426 = arith.mulf %421, %425 : vector<1x1xf32>
    %427 = vector.broadcast %426 : vector<1x1xf32> to vector<26x26xf32>
    %428 = arith.mulf %423, %427 : vector<26x26xf32>
    %c5_86 = arith.constant 5 : index
    %429 = memref.load %arg4[%c5_86] : memref<8xf32, #tpu.memory_space<smem>>
    %430 = vector.broadcast %429 : f32 to vector<26x26xf32>
    %431 = arith.addf %428, %430 : vector<26x26xf32>
    %cst_87 = arith.constant 0.000000e+00 : f32
    %432 = vector.broadcast %cst_87 : f32 to vector<26x26xf32>
    %433 = arith.maximumf %431, %432 : vector<26x26xf32>
    %c0_88 = arith.constant 0 : index
    %c5_89 = arith.constant 5 : index
    %c0_90 = arith.constant 0 : index
    %c0_91 = arith.constant 0 : index
    %434 = vector.load %arg5[%c0_88, %c5_89, %c0_90, %c0_91] : memref<2x8x26x26xf32, #tpu.memory_space<vmem>>, vector<1x1x26x26xf32>
    %435 = vector.shape_cast %434 : vector<1x1x26x26xf32> to vector<26x26xf32>
    %436 = vector.shape_cast %433 : vector<26x26xf32> to vector<1x1x26x26xf32>
    tpu.vector_store %arg5[%c0_88, %c5_89, %c0_90, %c0_91], %436 {strides = array<i32>} : memref<2x8x26x26xf32, #tpu.memory_space<vmem>>, vector<1x1x26x26xf32>,
    %c54 = arith.constant 54 : index
    %437 = memref.load %arg1[%c54] : memref<72xf32, #tpu.memory_space<smem>>
    %438 = vector.broadcast %437 : f32 to vector<26x26xf32>
    %439 = arith.mulf %2, %438 : vector<26x26xf32>
    %c55 = arith.constant 55 : index
    %440 = memref.load %arg1[%c55] : memref<72xf32, #tpu.memory_space<smem>>
    %441 = vector.broadcast %440 : f32 to vector<26x26xf32>
    %442 = arith.mulf %3, %441 : vector<26x26xf32>
    %443 = arith.addf %439, %442 : vector<26x26xf32>
    %c56 = arith.constant 56 : index
    %444 = memref.load %arg1[%c56] : memref<72xf32, #tpu.memory_space<smem>>
    %445 = vector.broadcast %444 : f32 to vector<26x26xf32>
    %446 = arith.mulf %4, %445 : vector<26x26xf32>
    %447 = arith.addf %443, %446 : vector<26x26xf32>
    %c57 = arith.constant 57 : index
    %448 = memref.load %arg1[%c57] : memref<72xf32, #tpu.memory_space<smem>>
    %449 = vector.broadcast %448 : f32 to vector<26x26xf32>
    %450 = arith.mulf %5, %449 : vector<26x26xf32>
    %451 = arith.addf %447, %450 : vector<26x26xf32>
    %c58 = arith.constant 58 : index
    %452 = memref.load %arg1[%c58] : memref<72xf32, #tpu.memory_space<smem>>
    %453 = vector.broadcast %452 : f32 to vector<26x26xf32>
    %454 = arith.mulf %6, %453 : vector<26x26xf32>
    %455 = arith.addf %451, %454 : vector<26x26xf32>
    %c59 = arith.constant 59 : index
    %456 = memref.load %arg1[%c59] : memref<72xf32, #tpu.memory_space<smem>>
    %457 = vector.broadcast %456 : f32 to vector<26x26xf32>
    %458 = arith.mulf %7, %457 : vector<26x26xf32>
    %459 = arith.addf %455, %458 : vector<26x26xf32>
    %c60 = arith.constant 60 : index
    %460 = memref.load %arg1[%c60] : memref<72xf32, #tpu.memory_space<smem>>
    %461 = vector.broadcast %460 : f32 to vector<26x26xf32>
    %462 = arith.mulf %8, %461 : vector<26x26xf32>
    %463 = arith.addf %459, %462 : vector<26x26xf32>
    %c61 = arith.constant 61 : index
    %464 = memref.load %arg1[%c61] : memref<72xf32, #tpu.memory_space<smem>>
    %465 = vector.broadcast %464 : f32 to vector<26x26xf32>
    %466 = arith.mulf %9, %465 : vector<26x26xf32>
    %467 = arith.addf %463, %466 : vector<26x26xf32>
    %c62 = arith.constant 62 : index
    %468 = memref.load %arg1[%c62] : memref<72xf32, #tpu.memory_space<smem>>
    %469 = vector.broadcast %468 : f32 to vector<26x26xf32>
    %470 = arith.mulf %10, %469 : vector<26x26xf32>
    %471 = arith.addf %467, %470 : vector<26x26xf32>
    %c6_92 = arith.constant 6 : index
    %472 = memref.load %arg2[%c6_92] : memref<8xf32, #tpu.memory_space<smem>>
    %473 = vector.broadcast %472 : f32 to vector<26x26xf32>
    %474 = arith.addf %471, %473 : vector<26x26xf32>
    %cst_93 = arith.constant dense<0.000000e+00> : vector<26xf32>
    %475 = vector.multi_reduction <add>, %474, %cst_93 [1] : vector<26x26xf32> to vector<26xf32>
    %476 = vector.shape_cast %475 : vector<26xf32> to vector<26x1xf32>
    %cst_94 = arith.constant dense<0.000000e+00> : vector<1xf32>
    %477 = vector.multi_reduction <add>, %476, %cst_94 [0] : vector<26x1xf32> to vector<1xf32>
    %478 = vector.shape_cast %477 : vector<1xf32> to vector<1x1xf32>
    %479 = arith.mulf %474, %474 : vector<26x26xf32>
    %cst_95 = arith.constant dense<0.000000e+00> : vector<26xf32>
    %480 = vector.multi_reduction <add>, %479, %cst_95 [1] : vector<26x26xf32> to vector<26xf32>
    %481 = vector.shape_cast %480 : vector<26xf32> to vector<26x1xf32>
    %cst_96 = arith.constant dense<0.000000e+00> : vector<1xf32>
    %482 = vector.multi_reduction <add>, %481, %cst_96 [0] : vector<26x1xf32> to vector<1xf32>
    %483 = vector.shape_cast %482 : vector<1xf32> to vector<1x1xf32>
    %cst_97 = arith.constant 1.479290e-03 : f32
    %484 = vector.broadcast %cst_97 : f32 to vector<1x1xf32>
    %485 = arith.mulf %478, %484 : vector<1x1xf32>
    %cst_98 = arith.constant 1.479290e-03 : f32
    %486 = vector.broadcast %cst_98 : f32 to vector<1x1xf32>
    %487 = arith.mulf %483, %486 : vector<1x1xf32>
    %488 = arith.mulf %485, %485 : vector<1x1xf32>
    %489 = arith.subf %487, %488 : vector<1x1xf32>
    %cst_99 = arith.constant 9.99999974E-6 : f32
    %490 = vector.broadcast %cst_99 : f32 to vector<1x1xf32>
    %491 = arith.addf %489, %490 : vector<1x1xf32>
    %492 = math.rsqrt %491 : vector<1x1xf32>
    %493 = vector.broadcast %485 : vector<1x1xf32> to vector<26x26xf32>
    %494 = arith.subf %474, %493 : vector<26x26xf32>
    %c6_100 = arith.constant 6 : index
    %495 = memref.load %arg3[%c6_100] : memref<8xf32, #tpu.memory_space<smem>>
    %496 = vector.broadcast %495 : f32 to vector<1x1xf32>
    %497 = arith.mulf %492, %496 : vector<1x1xf32>
    %498 = vector.broadcast %497 : vector<1x1xf32> to vector<26x26xf32>
    %499 = arith.mulf %494, %498 : vector<26x26xf32>
    %c6_101 = arith.constant 6 : index
    %500 = memref.load %arg4[%c6_101] : memref<8xf32, #tpu.memory_space<smem>>
    %501 = vector.broadcast %500 : f32 to vector<26x26xf32>
    %502 = arith.addf %499, %501 : vector<26x26xf32>
    %cst_102 = arith.constant 0.000000e+00 : f32
    %503 = vector.broadcast %cst_102 : f32 to vector<26x26xf32>
    %504 = arith.maximumf %502, %503 : vector<26x26xf32>
    %c0_103 = arith.constant 0 : index
    %c6_104 = arith.constant 6 : index
    %c0_105 = arith.constant 0 : index
    %c0_106 = arith.constant 0 : index
    %505 = vector.load %arg5[%c0_103, %c6_104, %c0_105, %c0_106] : memref<2x8x26x26xf32, #tpu.memory_space<vmem>>, vector<1x1x26x26xf32>
    %506 = vector.shape_cast %505 : vector<1x1x26x26xf32> to vector<26x26xf32>
    %507 = vector.shape_cast %504 : vector<26x26xf32> to vector<1x1x26x26xf32>
    tpu.vector_store %arg5[%c0_103, %c6_104, %c0_105, %c0_106], %507 {strides = array<i32>} : memref<2x8x26x26xf32, #tpu.memory_space<vmem>>, vector<1x1x26x26xf32>,
    %c63 = arith.constant 63 : index
    %508 = memref.load %arg1[%c63] : memref<72xf32, #tpu.memory_space<smem>>
    %509 = vector.broadcast %508 : f32 to vector<26x26xf32>
    %510 = arith.mulf %2, %509 : vector<26x26xf32>
    %c64 = arith.constant 64 : index
    %511 = memref.load %arg1[%c64] : memref<72xf32, #tpu.memory_space<smem>>
    %512 = vector.broadcast %511 : f32 to vector<26x26xf32>
    %513 = arith.mulf %3, %512 : vector<26x26xf32>
    %514 = arith.addf %510, %513 : vector<26x26xf32>
    %c65 = arith.constant 65 : index
    %515 = memref.load %arg1[%c65] : memref<72xf32, #tpu.memory_space<smem>>
    %516 = vector.broadcast %515 : f32 to vector<26x26xf32>
    %517 = arith.mulf %4, %516 : vector<26x26xf32>
    %518 = arith.addf %514, %517 : vector<26x26xf32>
    %c66 = arith.constant 66 : index
    %519 = memref.load %arg1[%c66] : memref<72xf32, #tpu.memory_space<smem>>
    %520 = vector.broadcast %519 : f32 to vector<26x26xf32>
    %521 = arith.mulf %5, %520 : vector<26x26xf32>
    %522 = arith.addf %518, %521 : vector<26x26xf32>
    %c67 = arith.constant 67 : index
    %523 = memref.load %arg1[%c67] : memref<72xf32, #tpu.memory_space<smem>>
    %524 = vector.broadcast %523 : f32 to vector<26x26xf32>
    %525 = arith.mulf %6, %524 : vector<26x26xf32>
    %526 = arith.addf %522, %525 : vector<26x26xf32>
    %c68 = arith.constant 68 : index
    %527 = memref.load %arg1[%c68] : memref<72xf32, #tpu.memory_space<smem>>
    %528 = vector.broadcast %527 : f32 to vector<26x26xf32>
    %529 = arith.mulf %7, %528 : vector<26x26xf32>
    %530 = arith.addf %526, %529 : vector<26x26xf32>
    %c69 = arith.constant 69 : index
    %531 = memref.load %arg1[%c69] : memref<72xf32, #tpu.memory_space<smem>>
    %532 = vector.broadcast %531 : f32 to vector<26x26xf32>
    %533 = arith.mulf %8, %532 : vector<26x26xf32>
    %534 = arith.addf %530, %533 : vector<26x26xf32>
    %c70 = arith.constant 70 : index
    %535 = memref.load %arg1[%c70] : memref<72xf32, #tpu.memory_space<smem>>
    %536 = vector.broadcast %535 : f32 to vector<26x26xf32>
    %537 = arith.mulf %9, %536 : vector<26x26xf32>
    %538 = arith.addf %534, %537 : vector<26x26xf32>
    %c71 = arith.constant 71 : index
    %539 = memref.load %arg1[%c71] : memref<72xf32, #tpu.memory_space<smem>>
    %540 = vector.broadcast %539 : f32 to vector<26x26xf32>
    %541 = arith.mulf %10, %540 : vector<26x26xf32>
    %542 = arith.addf %538, %541 : vector<26x26xf32>
    %c7_107 = arith.constant 7 : index
    %543 = memref.load %arg2[%c7_107] : memref<8xf32, #tpu.memory_space<smem>>
    %544 = vector.broadcast %543 : f32 to vector<26x26xf32>
    %545 = arith.addf %542, %544 : vector<26x26xf32>
    %cst_108 = arith.constant dense<0.000000e+00> : vector<26xf32>
    %546 = vector.multi_reduction <add>, %545, %cst_108 [1] : vector<26x26xf32> to vector<26xf32>
    %547 = vector.shape_cast %546 : vector<26xf32> to vector<26x1xf32>
    %cst_109 = arith.constant dense<0.000000e+00> : vector<1xf32>
    %548 = vector.multi_reduction <add>, %547, %cst_109 [0] : vector<26x1xf32> to vector<1xf32>
    %549 = vector.shape_cast %548 : vector<1xf32> to vector<1x1xf32>
    %550 = arith.mulf %545, %545 : vector<26x26xf32>
    %cst_110 = arith.constant dense<0.000000e+00> : vector<26xf32>
    %551 = vector.multi_reduction <add>, %550, %cst_110 [1] : vector<26x26xf32> to vector<26xf32>
    %552 = vector.shape_cast %551 : vector<26xf32> to vector<26x1xf32>
    %cst_111 = arith.constant dense<0.000000e+00> : vector<1xf32>
    %553 = vector.multi_reduction <add>, %552, %cst_111 [0] : vector<26x1xf32> to vector<1xf32>
    %554 = vector.shape_cast %553 : vector<1xf32> to vector<1x1xf32>
    %cst_112 = arith.constant 1.479290e-03 : f32
    %555 = vector.broadcast %cst_112 : f32 to vector<1x1xf32>
    %556 = arith.mulf %549, %555 : vector<1x1xf32>
    %cst_113 = arith.constant 1.479290e-03 : f32
    %557 = vector.broadcast %cst_113 : f32 to vector<1x1xf32>
    %558 = arith.mulf %554, %557 : vector<1x1xf32>
    %559 = arith.mulf %556, %556 : vector<1x1xf32>
    %560 = arith.subf %558, %559 : vector<1x1xf32>
    %cst_114 = arith.constant 9.99999974E-6 : f32
    %561 = vector.broadcast %cst_114 : f32 to vector<1x1xf32>
    %562 = arith.addf %560, %561 : vector<1x1xf32>
    %563 = math.rsqrt %562 : vector<1x1xf32>
    %564 = vector.broadcast %556 : vector<1x1xf32> to vector<26x26xf32>
    %565 = arith.subf %545, %564 : vector<26x26xf32>
    %c7_115 = arith.constant 7 : index
    %566 = memref.load %arg3[%c7_115] : memref<8xf32, #tpu.memory_space<smem>>
    %567 = vector.broadcast %566 : f32 to vector<1x1xf32>
    %568 = arith.mulf %563, %567 : vector<1x1xf32>
    %569 = vector.broadcast %568 : vector<1x1xf32> to vector<26x26xf32>
    %570 = arith.mulf %565, %569 : vector<26x26xf32>
    %c7_116 = arith.constant 7 : index
    %571 = memref.load %arg4[%c7_116] : memref<8xf32, #tpu.memory_space<smem>>
    %572 = vector.broadcast %571 : f32 to vector<26x26xf32>
    %573 = arith.addf %570, %572 : vector<26x26xf32>
    %cst_117 = arith.constant 0.000000e+00 : f32
    %574 = vector.broadcast %cst_117 : f32 to vector<26x26xf32>
    %575 = arith.maximumf %573, %574 : vector<26x26xf32>
    %c0_118 = arith.constant 0 : index
    %c7_119 = arith.constant 7 : index
    %c0_120 = arith.constant 0 : index
    %c0_121 = arith.constant 0 : index
    %576 = vector.load %arg5[%c0_118, %c7_119, %c0_120, %c0_121] : memref<2x8x26x26xf32, #tpu.memory_space<vmem>>, vector<1x1x26x26xf32>
    %577 = vector.shape_cast %576 : vector<1x1x26x26xf32> to vector<26x26xf32>
    %578 = vector.shape_cast %575 : vector<26x26xf32> to vector<1x1x26x26xf32>
    tpu.vector_store %arg5[%c0_118, %c7_119, %c0_120, %c0_121], %578 {strides = array<i32>} : memref<2x8x26x26xf32, #tpu.memory_space<vmem>>, vector<1x1x26x26xf32>,
    %c1_122 = arith.constant 1 : index
    %c0_123 = arith.constant 0 : index
    %c0_124 = arith.constant 0 : index
    %579 = vector.load %arg0[%c1_122, %c0_123, %c0_124] : memref<2x28x28xf32, #tpu.memory_space<vmem>>, vector<1x28x28xf32>
    %580 = vector.shape_cast %579 : vector<1x28x28xf32> to vector<28x28xf32>
    %581 = vector.extract_strided_slice %580 {offsets = [0, 0], sizes = [26, 26], strides = [1, 1]} : vector<28x28xf32> to vector<26x26xf32>
    %582 = vector.extract_strided_slice %580 {offsets = [0, 1], sizes = [26, 26], strides = [1, 1]} : vector<28x28xf32> to vector<26x26xf32>
    %583 = vector.extract_strided_slice %580 {offsets = [0, 2], sizes = [26, 26], strides = [1, 1]} : vector<28x28xf32> to vector<26x26xf32>
    %584 = vector.extract_strided_slice %580 {offsets = [1, 0], sizes = [26, 26], strides = [1, 1]} : vector<28x28xf32> to vector<26x26xf32>
    %585 = vector.extract_strided_slice %580 {offsets = [1, 1], sizes = [26, 26], strides = [1, 1]} : vector<28x28xf32> to vector<26x26xf32>
    %586 = vector.extract_strided_slice %580 {offsets = [1, 2], sizes = [26, 26], strides = [1, 1]} : vector<28x28xf32> to vector<26x26xf32>
    %587 = vector.extract_strided_slice %580 {offsets = [2, 0], sizes = [26, 26], strides = [1, 1]} : vector<28x28xf32> to vector<26x26xf32>
    %588 = vector.extract_strided_slice %580 {offsets = [2, 1], sizes = [26, 26], strides = [1, 1]} : vector<28x28xf32> to vector<26x26xf32>
    %589 = vector.extract_strided_slice %580 {offsets = [2, 2], sizes = [26, 26], strides = [1, 1]} : vector<28x28xf32> to vector<26x26xf32>
    %c0_125 = arith.constant 0 : index
    %590 = memref.load %arg1[%c0_125] : memref<72xf32, #tpu.memory_space<smem>>
    %591 = vector.broadcast %590 : f32 to vector<26x26xf32>
    %592 = arith.mulf %581, %591 : vector<26x26xf32>
    %c1_126 = arith.constant 1 : index
    %593 = memref.load %arg1[%c1_126] : memref<72xf32, #tpu.memory_space<smem>>
    %594 = vector.broadcast %593 : f32 to vector<26x26xf32>
    %595 = arith.mulf %582, %594 : vector<26x26xf32>
    %596 = arith.addf %592, %595 : vector<26x26xf32>
    %c2_127 = arith.constant 2 : index
    %597 = memref.load %arg1[%c2_127] : memref<72xf32, #tpu.memory_space<smem>>
    %598 = vector.broadcast %597 : f32 to vector<26x26xf32>
    %599 = arith.mulf %583, %598 : vector<26x26xf32>
    %600 = arith.addf %596, %599 : vector<26x26xf32>
    %c3_128 = arith.constant 3 : index
    %601 = memref.load %arg1[%c3_128] : memref<72xf32, #tpu.memory_space<smem>>
    %602 = vector.broadcast %601 : f32 to vector<26x26xf32>
    %603 = arith.mulf %584, %602 : vector<26x26xf32>
    %604 = arith.addf %600, %603 : vector<26x26xf32>
    %c4_129 = arith.constant 4 : index
    %605 = memref.load %arg1[%c4_129] : memref<72xf32, #tpu.memory_space<smem>>
    %606 = vector.broadcast %605 : f32 to vector<26x26xf32>
    %607 = arith.mulf %585, %606 : vector<26x26xf32>
    %608 = arith.addf %604, %607 : vector<26x26xf32>
    %c5_130 = arith.constant 5 : index
    %609 = memref.load %arg1[%c5_130] : memref<72xf32, #tpu.memory_space<smem>>
    %610 = vector.broadcast %609 : f32 to vector<26x26xf32>
    %611 = arith.mulf %586, %610 : vector<26x26xf32>
    %612 = arith.addf %608, %611 : vector<26x26xf32>
    %c6_131 = arith.constant 6 : index
    %613 = memref.load %arg1[%c6_131] : memref<72xf32, #tpu.memory_space<smem>>
    %614 = vector.broadcast %613 : f32 to vector<26x26xf32>
    %615 = arith.mulf %587, %614 : vector<26x26xf32>
    %616 = arith.addf %612, %615 : vector<26x26xf32>
    %c7_132 = arith.constant 7 : index
    %617 = memref.load %arg1[%c7_132] : memref<72xf32, #tpu.memory_space<smem>>
    %618 = vector.broadcast %617 : f32 to vector<26x26xf32>
    %619 = arith.mulf %588, %618 : vector<26x26xf32>
    %620 = arith.addf %616, %619 : vector<26x26xf32>
    %c8_133 = arith.constant 8 : index
    %621 = memref.load %arg1[%c8_133] : memref<72xf32, #tpu.memory_space<smem>>
    %622 = vector.broadcast %621 : f32 to vector<26x26xf32>
    %623 = arith.mulf %589, %622 : vector<26x26xf32>
    %624 = arith.addf %620, %623 : vector<26x26xf32>
    %c0_134 = arith.constant 0 : index
    %625 = memref.load %arg2[%c0_134] : memref<8xf32, #tpu.memory_space<smem>>
    %626 = vector.broadcast %625 : f32 to vector<26x26xf32>
    %627 = arith.addf %624, %626 : vector<26x26xf32>
    %cst_135 = arith.constant dense<0.000000e+00> : vector<26xf32>
    %628 = vector.multi_reduction <add>, %627, %cst_135 [1] : vector<26x26xf32> to vector<26xf32>
    %629 = vector.shape_cast %628 : vector<26xf32> to vector<26x1xf32>
    %cst_136 = arith.constant dense<0.000000e+00> : vector<1xf32>
    %630 = vector.multi_reduction <add>, %629, %cst_136 [0] : vector<26x1xf32> to vector<1xf32>
    %631 = vector.shape_cast %630 : vector<1xf32> to vector<1x1xf32>
    %632 = arith.mulf %627, %627 : vector<26x26xf32>
    %cst_137 = arith.constant dense<0.000000e+00> : vector<26xf32>
    %633 = vector.multi_reduction <add>, %632, %cst_137 [1] : vector<26x26xf32> to vector<26xf32>
    %634 = vector.shape_cast %633 : vector<26xf32> to vector<26x1xf32>
    %cst_138 = arith.constant dense<0.000000e+00> : vector<1xf32>
    %635 = vector.multi_reduction <add>, %634, %cst_138 [0] : vector<26x1xf32> to vector<1xf32>
    %636 = vector.shape_cast %635 : vector<1xf32> to vector<1x1xf32>
    %cst_139 = arith.constant 1.479290e-03 : f32
    %637 = vector.broadcast %cst_139 : f32 to vector<1x1xf32>
    %638 = arith.mulf %631, %637 : vector<1x1xf32>
    %cst_140 = arith.constant 1.479290e-03 : f32
    %639 = vector.broadcast %cst_140 : f32 to vector<1x1xf32>
    %640 = arith.mulf %636, %639 : vector<1x1xf32>
    %641 = arith.mulf %638, %638 : vector<1x1xf32>
    %642 = arith.subf %640, %641 : vector<1x1xf32>
    %cst_141 = arith.constant 9.99999974E-6 : f32
    %643 = vector.broadcast %cst_141 : f32 to vector<1x1xf32>
    %644 = arith.addf %642, %643 : vector<1x1xf32>
    %645 = math.rsqrt %644 : vector<1x1xf32>
    %646 = vector.broadcast %638 : vector<1x1xf32> to vector<26x26xf32>
    %647 = arith.subf %627, %646 : vector<26x26xf32>
    %c0_142 = arith.constant 0 : index
    %648 = memref.load %arg3[%c0_142] : memref<8xf32, #tpu.memory_space<smem>>
    %649 = vector.broadcast %648 : f32 to vector<1x1xf32>
    %650 = arith.mulf %645, %649 : vector<1x1xf32>
    %651 = vector.broadcast %650 : vector<1x1xf32> to vector<26x26xf32>
    %652 = arith.mulf %647, %651 : vector<26x26xf32>
    %c0_143 = arith.constant 0 : index
    %653 = memref.load %arg4[%c0_143] : memref<8xf32, #tpu.memory_space<smem>>
    %654 = vector.broadcast %653 : f32 to vector<26x26xf32>
    %655 = arith.addf %652, %654 : vector<26x26xf32>
    %cst_144 = arith.constant 0.000000e+00 : f32
    %656 = vector.broadcast %cst_144 : f32 to vector<26x26xf32>
    %657 = arith.maximumf %655, %656 : vector<26x26xf32>
    %c1_145 = arith.constant 1 : index
    %c0_146 = arith.constant 0 : index
    %c0_147 = arith.constant 0 : index
    %c0_148 = arith.constant 0 : index
    %658 = vector.load %arg5[%c1_145, %c0_146, %c0_147, %c0_148] : memref<2x8x26x26xf32, #tpu.memory_space<vmem>>, vector<1x1x26x26xf32>
    %659 = vector.shape_cast %658 : vector<1x1x26x26xf32> to vector<26x26xf32>
    %660 = vector.shape_cast %657 : vector<26x26xf32> to vector<1x1x26x26xf32>
    tpu.vector_store %arg5[%c1_145, %c0_146, %c0_147, %c0_148], %660 {strides = array<i32>} : memref<2x8x26x26xf32, #tpu.memory_space<vmem>>, vector<1x1x26x26xf32>,
    %c9_149 = arith.constant 9 : index
    %661 = memref.load %arg1[%c9_149] : memref<72xf32, #tpu.memory_space<smem>>
    %662 = vector.broadcast %661 : f32 to vector<26x26xf32>
    %663 = arith.mulf %581, %662 : vector<26x26xf32>
    %c10_150 = arith.constant 10 : index
    %664 = memref.load %arg1[%c10_150] : memref<72xf32, #tpu.memory_space<smem>>
    %665 = vector.broadcast %664 : f32 to vector<26x26xf32>
    %666 = arith.mulf %582, %665 : vector<26x26xf32>
    %667 = arith.addf %663, %666 : vector<26x26xf32>
    %c11_151 = arith.constant 11 : index
    %668 = memref.load %arg1[%c11_151] : memref<72xf32, #tpu.memory_space<smem>>
    %669 = vector.broadcast %668 : f32 to vector<26x26xf32>
    %670 = arith.mulf %583, %669 : vector<26x26xf32>
    %671 = arith.addf %667, %670 : vector<26x26xf32>
    %c12_152 = arith.constant 12 : index
    %672 = memref.load %arg1[%c12_152] : memref<72xf32, #tpu.memory_space<smem>>
    %673 = vector.broadcast %672 : f32 to vector<26x26xf32>
    %674 = arith.mulf %584, %673 : vector<26x26xf32>
    %675 = arith.addf %671, %674 : vector<26x26xf32>
    %c13_153 = arith.constant 13 : index
    %676 = memref.load %arg1[%c13_153] : memref<72xf32, #tpu.memory_space<smem>>
    %677 = vector.broadcast %676 : f32 to vector<26x26xf32>
    %678 = arith.mulf %585, %677 : vector<26x26xf32>
    %679 = arith.addf %675, %678 : vector<26x26xf32>
    %c14_154 = arith.constant 14 : index
    %680 = memref.load %arg1[%c14_154] : memref<72xf32, #tpu.memory_space<smem>>
    %681 = vector.broadcast %680 : f32 to vector<26x26xf32>
    %682 = arith.mulf %586, %681 : vector<26x26xf32>
    %683 = arith.addf %679, %682 : vector<26x26xf32>
    %c15_155 = arith.constant 15 : index
    %684 = memref.load %arg1[%c15_155] : memref<72xf32, #tpu.memory_space<smem>>
    %685 = vector.broadcast %684 : f32 to vector<26x26xf32>
    %686 = arith.mulf %587, %685 : vector<26x26xf32>
    %687 = arith.addf %683, %686 : vector<26x26xf32>
    %c16_156 = arith.constant 16 : index
    %688 = memref.load %arg1[%c16_156] : memref<72xf32, #tpu.memory_space<smem>>
    %689 = vector.broadcast %688 : f32 to vector<26x26xf32>
    %690 = arith.mulf %588, %689 : vector<26x26xf32>
    %691 = arith.addf %687, %690 : vector<26x26xf32>
    %c17_157 = arith.constant 17 : index
    %692 = memref.load %arg1[%c17_157] : memref<72xf32, #tpu.memory_space<smem>>
    %693 = vector.broadcast %692 : f32 to vector<26x26xf32>
    %694 = arith.mulf %589, %693 : vector<26x26xf32>
    %695 = arith.addf %691, %694 : vector<26x26xf32>
    %c1_158 = arith.constant 1 : index
    %696 = memref.load %arg2[%c1_158] : memref<8xf32, #tpu.memory_space<smem>>
    %697 = vector.broadcast %696 : f32 to vector<26x26xf32>
    %698 = arith.addf %695, %697 : vector<26x26xf32>
    %cst_159 = arith.constant dense<0.000000e+00> : vector<26xf32>
    %699 = vector.multi_reduction <add>, %698, %cst_159 [1] : vector<26x26xf32> to vector<26xf32>
    %700 = vector.shape_cast %699 : vector<26xf32> to vector<26x1xf32>
    %cst_160 = arith.constant dense<0.000000e+00> : vector<1xf32>
    %701 = vector.multi_reduction <add>, %700, %cst_160 [0] : vector<26x1xf32> to vector<1xf32>
    %702 = vector.shape_cast %701 : vector<1xf32> to vector<1x1xf32>
    %703 = arith.mulf %698, %698 : vector<26x26xf32>
    %cst_161 = arith.constant dense<0.000000e+00> : vector<26xf32>
    %704 = vector.multi_reduction <add>, %703, %cst_161 [1] : vector<26x26xf32> to vector<26xf32>
    %705 = vector.shape_cast %704 : vector<26xf32> to vector<26x1xf32>
    %cst_162 = arith.constant dense<0.000000e+00> : vector<1xf32>
    %706 = vector.multi_reduction <add>, %705, %cst_162 [0] : vector<26x1xf32> to vector<1xf32>
    %707 = vector.shape_cast %706 : vector<1xf32> to vector<1x1xf32>
    %cst_163 = arith.constant 1.479290e-03 : f32
    %708 = vector.broadcast %cst_163 : f32 to vector<1x1xf32>
    %709 = arith.mulf %702, %708 : vector<1x1xf32>
    %cst_164 = arith.constant 1.479290e-03 : f32
    %710 = vector.broadcast %cst_164 : f32 to vector<1x1xf32>
    %711 = arith.mulf %707, %710 : vector<1x1xf32>
    %712 = arith.mulf %709, %709 : vector<1x1xf32>
    %713 = arith.subf %711, %712 : vector<1x1xf32>
    %cst_165 = arith.constant 9.99999974E-6 : f32
    %714 = vector.broadcast %cst_165 : f32 to vector<1x1xf32>
    %715 = arith.addf %713, %714 : vector<1x1xf32>
    %716 = math.rsqrt %715 : vector<1x1xf32>
    %717 = vector.broadcast %709 : vector<1x1xf32> to vector<26x26xf32>
    %718 = arith.subf %698, %717 : vector<26x26xf32>
    %c1_166 = arith.constant 1 : index
    %719 = memref.load %arg3[%c1_166] : memref<8xf32, #tpu.memory_space<smem>>
    %720 = vector.broadcast %719 : f32 to vector<1x1xf32>
    %721 = arith.mulf %716, %720 : vector<1x1xf32>
    %722 = vector.broadcast %721 : vector<1x1xf32> to vector<26x26xf32>
    %723 = arith.mulf %718, %722 : vector<26x26xf32>
    %c1_167 = arith.constant 1 : index
    %724 = memref.load %arg4[%c1_167] : memref<8xf32, #tpu.memory_space<smem>>
    %725 = vector.broadcast %724 : f32 to vector<26x26xf32>
    %726 = arith.addf %723, %725 : vector<26x26xf32>
    %cst_168 = arith.constant 0.000000e+00 : f32
    %727 = vector.broadcast %cst_168 : f32 to vector<26x26xf32>
    %728 = arith.maximumf %726, %727 : vector<26x26xf32>
    %c1_169 = arith.constant 1 : index
    %c1_170 = arith.constant 1 : index
    %c0_171 = arith.constant 0 : index
    %c0_172 = arith.constant 0 : index
    %729 = vector.load %arg5[%c1_169, %c1_170, %c0_171, %c0_172] : memref<2x8x26x26xf32, #tpu.memory_space<vmem>>, vector<1x1x26x26xf32>
    %730 = vector.shape_cast %729 : vector<1x1x26x26xf32> to vector<26x26xf32>
    %731 = vector.shape_cast %728 : vector<26x26xf32> to vector<1x1x26x26xf32>
    tpu.vector_store %arg5[%c1_169, %c1_170, %c0_171, %c0_172], %731 {strides = array<i32>} : memref<2x8x26x26xf32, #tpu.memory_space<vmem>>, vector<1x1x26x26xf32>,
    %c18_173 = arith.constant 18 : index
    %732 = memref.load %arg1[%c18_173] : memref<72xf32, #tpu.memory_space<smem>>
    %733 = vector.broadcast %732 : f32 to vector<26x26xf32>
    %734 = arith.mulf %581, %733 : vector<26x26xf32>
    %c19_174 = arith.constant 19 : index
    %735 = memref.load %arg1[%c19_174] : memref<72xf32, #tpu.memory_space<smem>>
    %736 = vector.broadcast %735 : f32 to vector<26x26xf32>
    %737 = arith.mulf %582, %736 : vector<26x26xf32>
    %738 = arith.addf %734, %737 : vector<26x26xf32>
    %c20_175 = arith.constant 20 : index
    %739 = memref.load %arg1[%c20_175] : memref<72xf32, #tpu.memory_space<smem>>
    %740 = vector.broadcast %739 : f32 to vector<26x26xf32>
    %741 = arith.mulf %583, %740 : vector<26x26xf32>
    %742 = arith.addf %738, %741 : vector<26x26xf32>
    %c21_176 = arith.constant 21 : index
    %743 = memref.load %arg1[%c21_176] : memref<72xf32, #tpu.memory_space<smem>>
    %744 = vector.broadcast %743 : f32 to vector<26x26xf32>
    %745 = arith.mulf %584, %744 : vector<26x26xf32>
    %746 = arith.addf %742, %745 : vector<26x26xf32>
    %c22_177 = arith.constant 22 : index
    %747 = memref.load %arg1[%c22_177] : memref<72xf32, #tpu.memory_space<smem>>
    %748 = vector.broadcast %747 : f32 to vector<26x26xf32>
    %749 = arith.mulf %585, %748 : vector<26x26xf32>
    %750 = arith.addf %746, %749 : vector<26x26xf32>
    %c23_178 = arith.constant 23 : index
    %751 = memref.load %arg1[%c23_178] : memref<72xf32, #tpu.memory_space<smem>>
    %752 = vector.broadcast %751 : f32 to vector<26x26xf32>
    %753 = arith.mulf %586, %752 : vector<26x26xf32>
    %754 = arith.addf %750, %753 : vector<26x26xf32>
    %c24_179 = arith.constant 24 : index
    %755 = memref.load %arg1[%c24_179] : memref<72xf32, #tpu.memory_space<smem>>
    %756 = vector.broadcast %755 : f32 to vector<26x26xf32>
    %757 = arith.mulf %587, %756 : vector<26x26xf32>
    %758 = arith.addf %754, %757 : vector<26x26xf32>
    %c25_180 = arith.constant 25 : index
    %759 = memref.load %arg1[%c25_180] : memref<72xf32, #tpu.memory_space<smem>>
    %760 = vector.broadcast %759 : f32 to vector<26x26xf32>
    %761 = arith.mulf %588, %760 : vector<26x26xf32>
    %762 = arith.addf %758, %761 : vector<26x26xf32>
    %c26_181 = arith.constant 26 : index
    %763 = memref.load %arg1[%c26_181] : memref<72xf32, #tpu.memory_space<smem>>
    %764 = vector.broadcast %763 : f32 to vector<26x26xf32>
    %765 = arith.mulf %589, %764 : vector<26x26xf32>
    %766 = arith.addf %762, %765 : vector<26x26xf32>
    %c2_182 = arith.constant 2 : index
    %767 = memref.load %arg2[%c2_182] : memref<8xf32, #tpu.memory_space<smem>>
    %768 = vector.broadcast %767 : f32 to vector<26x26xf32>
    %769 = arith.addf %766, %768 : vector<26x26xf32>
    %cst_183 = arith.constant dense<0.000000e+00> : vector<26xf32>
    %770 = vector.multi_reduction <add>, %769, %cst_183 [1] : vector<26x26xf32> to vector<26xf32>
    %771 = vector.shape_cast %770 : vector<26xf32> to vector<26x1xf32>
    %cst_184 = arith.constant dense<0.000000e+00> : vector<1xf32>
    %772 = vector.multi_reduction <add>, %771, %cst_184 [0] : vector<26x1xf32> to vector<1xf32>
    %773 = vector.shape_cast %772 : vector<1xf32> to vector<1x1xf32>
    %774 = arith.mulf %769, %769 : vector<26x26xf32>
    %cst_185 = arith.constant dense<0.000000e+00> : vector<26xf32>
    %775 = vector.multi_reduction <add>, %774, %cst_185 [1] : vector<26x26xf32> to vector<26xf32>
    %776 = vector.shape_cast %775 : vector<26xf32> to vector<26x1xf32>
    %cst_186 = arith.constant dense<0.000000e+00> : vector<1xf32>
    %777 = vector.multi_reduction <add>, %776, %cst_186 [0] : vector<26x1xf32> to vector<1xf32>
    %778 = vector.shape_cast %777 : vector<1xf32> to vector<1x1xf32>
    %cst_187 = arith.constant 1.479290e-03 : f32
    %779 = vector.broadcast %cst_187 : f32 to vector<1x1xf32>
    %780 = arith.mulf %773, %779 : vector<1x1xf32>
    %cst_188 = arith.constant 1.479290e-03 : f32
    %781 = vector.broadcast %cst_188 : f32 to vector<1x1xf32>
    %782 = arith.mulf %778, %781 : vector<1x1xf32>
    %783 = arith.mulf %780, %780 : vector<1x1xf32>
    %784 = arith.subf %782, %783 : vector<1x1xf32>
    %cst_189 = arith.constant 9.99999974E-6 : f32
    %785 = vector.broadcast %cst_189 : f32 to vector<1x1xf32>
    %786 = arith.addf %784, %785 : vector<1x1xf32>
    %787 = math.rsqrt %786 : vector<1x1xf32>
    %788 = vector.broadcast %780 : vector<1x1xf32> to vector<26x26xf32>
    %789 = arith.subf %769, %788 : vector<26x26xf32>
    %c2_190 = arith.constant 2 : index
    %790 = memref.load %arg3[%c2_190] : memref<8xf32, #tpu.memory_space<smem>>
    %791 = vector.broadcast %790 : f32 to vector<1x1xf32>
    %792 = arith.mulf %787, %791 : vector<1x1xf32>
    %793 = vector.broadcast %792 : vector<1x1xf32> to vector<26x26xf32>
    %794 = arith.mulf %789, %793 : vector<26x26xf32>
    %c2_191 = arith.constant 2 : index
    %795 = memref.load %arg4[%c2_191] : memref<8xf32, #tpu.memory_space<smem>>
    %796 = vector.broadcast %795 : f32 to vector<26x26xf32>
    %797 = arith.addf %794, %796 : vector<26x26xf32>
    %cst_192 = arith.constant 0.000000e+00 : f32
    %798 = vector.broadcast %cst_192 : f32 to vector<26x26xf32>
    %799 = arith.maximumf %797, %798 : vector<26x26xf32>
    %c1_193 = arith.constant 1 : index
    %c2_194 = arith.constant 2 : index
    %c0_195 = arith.constant 0 : index
    %c0_196 = arith.constant 0 : index
    %800 = vector.load %arg5[%c1_193, %c2_194, %c0_195, %c0_196] : memref<2x8x26x26xf32, #tpu.memory_space<vmem>>, vector<1x1x26x26xf32>
    %801 = vector.shape_cast %800 : vector<1x1x26x26xf32> to vector<26x26xf32>
    %802 = vector.shape_cast %799 : vector<26x26xf32> to vector<1x1x26x26xf32>
    tpu.vector_store %arg5[%c1_193, %c2_194, %c0_195, %c0_196], %802 {strides = array<i32>} : memref<2x8x26x26xf32, #tpu.memory_space<vmem>>, vector<1x1x26x26xf32>,
    %c27_197 = arith.constant 27 : index
    %803 = memref.load %arg1[%c27_197] : memref<72xf32, #tpu.memory_space<smem>>
    %804 = vector.broadcast %803 : f32 to vector<26x26xf32>
    %805 = arith.mulf %581, %804 : vector<26x26xf32>
    %c28_198 = arith.constant 28 : index
    %806 = memref.load %arg1[%c28_198] : memref<72xf32, #tpu.memory_space<smem>>
    %807 = vector.broadcast %806 : f32 to vector<26x26xf32>
    %808 = arith.mulf %582, %807 : vector<26x26xf32>
    %809 = arith.addf %805, %808 : vector<26x26xf32>
    %c29_199 = arith.constant 29 : index
    %810 = memref.load %arg1[%c29_199] : memref<72xf32, #tpu.memory_space<smem>>
    %811 = vector.broadcast %810 : f32 to vector<26x26xf32>
    %812 = arith.mulf %583, %811 : vector<26x26xf32>
    %813 = arith.addf %809, %812 : vector<26x26xf32>
    %c30_200 = arith.constant 30 : index
    %814 = memref.load %arg1[%c30_200] : memref<72xf32, #tpu.memory_space<smem>>
    %815 = vector.broadcast %814 : f32 to vector<26x26xf32>
    %816 = arith.mulf %584, %815 : vector<26x26xf32>
    %817 = arith.addf %813, %816 : vector<26x26xf32>
    %c31_201 = arith.constant 31 : index
    %818 = memref.load %arg1[%c31_201] : memref<72xf32, #tpu.memory_space<smem>>
    %819 = vector.broadcast %818 : f32 to vector<26x26xf32>
    %820 = arith.mulf %585, %819 : vector<26x26xf32>
    %821 = arith.addf %817, %820 : vector<26x26xf32>
    %c32_202 = arith.constant 32 : index
    %822 = memref.load %arg1[%c32_202] : memref<72xf32, #tpu.memory_space<smem>>
    %823 = vector.broadcast %822 : f32 to vector<26x26xf32>
    %824 = arith.mulf %586, %823 : vector<26x26xf32>
    %825 = arith.addf %821, %824 : vector<26x26xf32>
    %c33_203 = arith.constant 33 : index
    %826 = memref.load %arg1[%c33_203] : memref<72xf32, #tpu.memory_space<smem>>
    %827 = vector.broadcast %826 : f32 to vector<26x26xf32>
    %828 = arith.mulf %587, %827 : vector<26x26xf32>
    %829 = arith.addf %825, %828 : vector<26x26xf32>
    %c34_204 = arith.constant 34 : index
    %830 = memref.load %arg1[%c34_204] : memref<72xf32, #tpu.memory_space<smem>>
    %831 = vector.broadcast %830 : f32 to vector<26x26xf32>
    %832 = arith.mulf %588, %831 : vector<26x26xf32>
    %833 = arith.addf %829, %832 : vector<26x26xf32>
    %c35_205 = arith.constant 35 : index
    %834 = memref.load %arg1[%c35_205] : memref<72xf32, #tpu.memory_space<smem>>
    %835 = vector.broadcast %834 : f32 to vector<26x26xf32>
    %836 = arith.mulf %589, %835 : vector<26x26xf32>
    %837 = arith.addf %833, %836 : vector<26x26xf32>
    %c3_206 = arith.constant 3 : index
    %838 = memref.load %arg2[%c3_206] : memref<8xf32, #tpu.memory_space<smem>>
    %839 = vector.broadcast %838 : f32 to vector<26x26xf32>
    %840 = arith.addf %837, %839 : vector<26x26xf32>
    %cst_207 = arith.constant dense<0.000000e+00> : vector<26xf32>
    %841 = vector.multi_reduction <add>, %840, %cst_207 [1] : vector<26x26xf32> to vector<26xf32>
    %842 = vector.shape_cast %841 : vector<26xf32> to vector<26x1xf32>
    %cst_208 = arith.constant dense<0.000000e+00> : vector<1xf32>
    %843 = vector.multi_reduction <add>, %842, %cst_208 [0] : vector<26x1xf32> to vector<1xf32>
    %844 = vector.shape_cast %843 : vector<1xf32> to vector<1x1xf32>
    %845 = arith.mulf %840, %840 : vector<26x26xf32>
    %cst_209 = arith.constant dense<0.000000e+00> : vector<26xf32>
    %846 = vector.multi_reduction <add>, %845, %cst_209 [1] : vector<26x26xf32> to vector<26xf32>
    %847 = vector.shape_cast %846 : vector<26xf32> to vector<26x1xf32>
    %cst_210 = arith.constant dense<0.000000e+00> : vector<1xf32>
    %848 = vector.multi_reduction <add>, %847, %cst_210 [0] : vector<26x1xf32> to vector<1xf32>
    %849 = vector.shape_cast %848 : vector<1xf32> to vector<1x1xf32>
    %cst_211 = arith.constant 1.479290e-03 : f32
    %850 = vector.broadcast %cst_211 : f32 to vector<1x1xf32>
    %851 = arith.mulf %844, %850 : vector<1x1xf32>
    %cst_212 = arith.constant 1.479290e-03 : f32
    %852 = vector.broadcast %cst_212 : f32 to vector<1x1xf32>
    %853 = arith.mulf %849, %852 : vector<1x1xf32>
    %854 = arith.mulf %851, %851 : vector<1x1xf32>
    %855 = arith.subf %853, %854 : vector<1x1xf32>
    %cst_213 = arith.constant 9.99999974E-6 : f32
    %856 = vector.broadcast %cst_213 : f32 to vector<1x1xf32>
    %857 = arith.addf %855, %856 : vector<1x1xf32>
    %858 = math.rsqrt %857 : vector<1x1xf32>
    %859 = vector.broadcast %851 : vector<1x1xf32> to vector<26x26xf32>
    %860 = arith.subf %840, %859 : vector<26x26xf32>
    %c3_214 = arith.constant 3 : index
    %861 = memref.load %arg3[%c3_214] : memref<8xf32, #tpu.memory_space<smem>>
    %862 = vector.broadcast %861 : f32 to vector<1x1xf32>
    %863 = arith.mulf %858, %862 : vector<1x1xf32>
    %864 = vector.broadcast %863 : vector<1x1xf32> to vector<26x26xf32>
    %865 = arith.mulf %860, %864 : vector<26x26xf32>
    %c3_215 = arith.constant 3 : index
    %866 = memref.load %arg4[%c3_215] : memref<8xf32, #tpu.memory_space<smem>>
    %867 = vector.broadcast %866 : f32 to vector<26x26xf32>
    %868 = arith.addf %865, %867 : vector<26x26xf32>
    %cst_216 = arith.constant 0.000000e+00 : f32
    %869 = vector.broadcast %cst_216 : f32 to vector<26x26xf32>
    %870 = arith.maximumf %868, %869 : vector<26x26xf32>
    %c1_217 = arith.constant 1 : index
    %c3_218 = arith.constant 3 : index
    %c0_219 = arith.constant 0 : index
    %c0_220 = arith.constant 0 : index
    %871 = vector.load %arg5[%c1_217, %c3_218, %c0_219, %c0_220] : memref<2x8x26x26xf32, #tpu.memory_space<vmem>>, vector<1x1x26x26xf32>
    %872 = vector.shape_cast %871 : vector<1x1x26x26xf32> to vector<26x26xf32>
    %873 = vector.shape_cast %870 : vector<26x26xf32> to vector<1x1x26x26xf32>
    tpu.vector_store %arg5[%c1_217, %c3_218, %c0_219, %c0_220], %873 {strides = array<i32>} : memref<2x8x26x26xf32, #tpu.memory_space<vmem>>, vector<1x1x26x26xf32>,
    %c36_221 = arith.constant 36 : index
    %874 = memref.load %arg1[%c36_221] : memref<72xf32, #tpu.memory_space<smem>>
    %875 = vector.broadcast %874 : f32 to vector<26x26xf32>
    %876 = arith.mulf %581, %875 : vector<26x26xf32>
    %c37_222 = arith.constant 37 : index
    %877 = memref.load %arg1[%c37_222] : memref<72xf32, #tpu.memory_space<smem>>
    %878 = vector.broadcast %877 : f32 to vector<26x26xf32>
    %879 = arith.mulf %582, %878 : vector<26x26xf32>
    %880 = arith.addf %876, %879 : vector<26x26xf32>
    %c38_223 = arith.constant 38 : index
    %881 = memref.load %arg1[%c38_223] : memref<72xf32, #tpu.memory_space<smem>>
    %882 = vector.broadcast %881 : f32 to vector<26x26xf32>
    %883 = arith.mulf %583, %882 : vector<26x26xf32>
    %884 = arith.addf %880, %883 : vector<26x26xf32>
    %c39_224 = arith.constant 39 : index
    %885 = memref.load %arg1[%c39_224] : memref<72xf32, #tpu.memory_space<smem>>
    %886 = vector.broadcast %885 : f32 to vector<26x26xf32>
    %887 = arith.mulf %584, %886 : vector<26x26xf32>
    %888 = arith.addf %884, %887 : vector<26x26xf32>
    %c40_225 = arith.constant 40 : index
    %889 = memref.load %arg1[%c40_225] : memref<72xf32, #tpu.memory_space<smem>>
    %890 = vector.broadcast %889 : f32 to vector<26x26xf32>
    %891 = arith.mulf %585, %890 : vector<26x26xf32>
    %892 = arith.addf %888, %891 : vector<26x26xf32>
    %c41_226 = arith.constant 41 : index
    %893 = memref.load %arg1[%c41_226] : memref<72xf32, #tpu.memory_space<smem>>
    %894 = vector.broadcast %893 : f32 to vector<26x26xf32>
    %895 = arith.mulf %586, %894 : vector<26x26xf32>
    %896 = arith.addf %892, %895 : vector<26x26xf32>
    %c42_227 = arith.constant 42 : index
    %897 = memref.load %arg1[%c42_227] : memref<72xf32, #tpu.memory_space<smem>>
    %898 = vector.broadcast %897 : f32 to vector<26x26xf32>
    %899 = arith.mulf %587, %898 : vector<26x26xf32>
    %900 = arith.addf %896, %899 : vector<26x26xf32>
    %c43_228 = arith.constant 43 : index
    %901 = memref.load %arg1[%c43_228] : memref<72xf32, #tpu.memory_space<smem>>
    %902 = vector.broadcast %901 : f32 to vector<26x26xf32>
    %903 = arith.mulf %588, %902 : vector<26x26xf32>
    %904 = arith.addf %900, %903 : vector<26x26xf32>
    %c44_229 = arith.constant 44 : index
    %905 = memref.load %arg1[%c44_229] : memref<72xf32, #tpu.memory_space<smem>>
    %906 = vector.broadcast %905 : f32 to vector<26x26xf32>
    %907 = arith.mulf %589, %906 : vector<26x26xf32>
    %908 = arith.addf %904, %907 : vector<26x26xf32>
    %c4_230 = arith.constant 4 : index
    %909 = memref.load %arg2[%c4_230] : memref<8xf32, #tpu.memory_space<smem>>
    %910 = vector.broadcast %909 : f32 to vector<26x26xf32>
    %911 = arith.addf %908, %910 : vector<26x26xf32>
    %cst_231 = arith.constant dense<0.000000e+00> : vector<26xf32>
    %912 = vector.multi_reduction <add>, %911, %cst_231 [1] : vector<26x26xf32> to vector<26xf32>
    %913 = vector.shape_cast %912 : vector<26xf32> to vector<26x1xf32>
    %cst_232 = arith.constant dense<0.000000e+00> : vector<1xf32>
    %914 = vector.multi_reduction <add>, %913, %cst_232 [0] : vector<26x1xf32> to vector<1xf32>
    %915 = vector.shape_cast %914 : vector<1xf32> to vector<1x1xf32>
    %916 = arith.mulf %911, %911 : vector<26x26xf32>
    %cst_233 = arith.constant dense<0.000000e+00> : vector<26xf32>
    %917 = vector.multi_reduction <add>, %916, %cst_233 [1] : vector<26x26xf32> to vector<26xf32>
    %918 = vector.shape_cast %917 : vector<26xf32> to vector<26x1xf32>
    %cst_234 = arith.constant dense<0.000000e+00> : vector<1xf32>
    %919 = vector.multi_reduction <add>, %918, %cst_234 [0] : vector<26x1xf32> to vector<1xf32>
    %920 = vector.shape_cast %919 : vector<1xf32> to vector<1x1xf32>
    %cst_235 = arith.constant 1.479290e-03 : f32
    %921 = vector.broadcast %cst_235 : f32 to vector<1x1xf32>
    %922 = arith.mulf %915, %921 : vector<1x1xf32>
    %cst_236 = arith.constant 1.479290e-03 : f32
    %923 = vector.broadcast %cst_236 : f32 to vector<1x1xf32>
    %924 = arith.mulf %920, %923 : vector<1x1xf32>
    %925 = arith.mulf %922, %922 : vector<1x1xf32>
    %926 = arith.subf %924, %925 : vector<1x1xf32>
    %cst_237 = arith.constant 9.99999974E-6 : f32
    %927 = vector.broadcast %cst_237 : f32 to vector<1x1xf32>
    %928 = arith.addf %926, %927 : vector<1x1xf32>
    %929 = math.rsqrt %928 : vector<1x1xf32>
    %930 = vector.broadcast %922 : vector<1x1xf32> to vector<26x26xf32>
    %931 = arith.subf %911, %930 : vector<26x26xf32>
    %c4_238 = arith.constant 4 : index
    %932 = memref.load %arg3[%c4_238] : memref<8xf32, #tpu.memory_space<smem>>
    %933 = vector.broadcast %932 : f32 to vector<1x1xf32>
    %934 = arith.mulf %929, %933 : vector<1x1xf32>
    %935 = vector.broadcast %934 : vector<1x1xf32> to vector<26x26xf32>
    %936 = arith.mulf %931, %935 : vector<26x26xf32>
    %c4_239 = arith.constant 4 : index
    %937 = memref.load %arg4[%c4_239] : memref<8xf32, #tpu.memory_space<smem>>
    %938 = vector.broadcast %937 : f32 to vector<26x26xf32>
    %939 = arith.addf %936, %938 : vector<26x26xf32>
    %cst_240 = arith.constant 0.000000e+00 : f32
    %940 = vector.broadcast %cst_240 : f32 to vector<26x26xf32>
    %941 = arith.maximumf %939, %940 : vector<26x26xf32>
    %c1_241 = arith.constant 1 : index
    %c4_242 = arith.constant 4 : index
    %c0_243 = arith.constant 0 : index
    %c0_244 = arith.constant 0 : index
    %942 = vector.load %arg5[%c1_241, %c4_242, %c0_243, %c0_244] : memref<2x8x26x26xf32, #tpu.memory_space<vmem>>, vector<1x1x26x26xf32>
    %943 = vector.shape_cast %942 : vector<1x1x26x26xf32> to vector<26x26xf32>
    %944 = vector.shape_cast %941 : vector<26x26xf32> to vector<1x1x26x26xf32>
    tpu.vector_store %arg5[%c1_241, %c4_242, %c0_243, %c0_244], %944 {strides = array<i32>} : memref<2x8x26x26xf32, #tpu.memory_space<vmem>>, vector<1x1x26x26xf32>,
    %c45_245 = arith.constant 45 : index
    %945 = memref.load %arg1[%c45_245] : memref<72xf32, #tpu.memory_space<smem>>
    %946 = vector.broadcast %945 : f32 to vector<26x26xf32>
    %947 = arith.mulf %581, %946 : vector<26x26xf32>
    %c46_246 = arith.constant 46 : index
    %948 = memref.load %arg1[%c46_246] : memref<72xf32, #tpu.memory_space<smem>>
    %949 = vector.broadcast %948 : f32 to vector<26x26xf32>
    %950 = arith.mulf %582, %949 : vector<26x26xf32>
    %951 = arith.addf %947, %950 : vector<26x26xf32>
    %c47_247 = arith.constant 47 : index
    %952 = memref.load %arg1[%c47_247] : memref<72xf32, #tpu.memory_space<smem>>
    %953 = vector.broadcast %952 : f32 to vector<26x26xf32>
    %954 = arith.mulf %583, %953 : vector<26x26xf32>
    %955 = arith.addf %951, %954 : vector<26x26xf32>
    %c48_248 = arith.constant 48 : index
    %956 = memref.load %arg1[%c48_248] : memref<72xf32, #tpu.memory_space<smem>>
    %957 = vector.broadcast %956 : f32 to vector<26x26xf32>
    %958 = arith.mulf %584, %957 : vector<26x26xf32>
    %959 = arith.addf %955, %958 : vector<26x26xf32>
    %c49_249 = arith.constant 49 : index
    %960 = memref.load %arg1[%c49_249] : memref<72xf32, #tpu.memory_space<smem>>
    %961 = vector.broadcast %960 : f32 to vector<26x26xf32>
    %962 = arith.mulf %585, %961 : vector<26x26xf32>
    %963 = arith.addf %959, %962 : vector<26x26xf32>
    %c50_250 = arith.constant 50 : index
    %964 = memref.load %arg1[%c50_250] : memref<72xf32, #tpu.memory_space<smem>>
    %965 = vector.broadcast %964 : f32 to vector<26x26xf32>
    %966 = arith.mulf %586, %965 : vector<26x26xf32>
    %967 = arith.addf %963, %966 : vector<26x26xf32>
    %c51_251 = arith.constant 51 : index
    %968 = memref.load %arg1[%c51_251] : memref<72xf32, #tpu.memory_space<smem>>
    %969 = vector.broadcast %968 : f32 to vector<26x26xf32>
    %970 = arith.mulf %587, %969 : vector<26x26xf32>
    %971 = arith.addf %967, %970 : vector<26x26xf32>
    %c52_252 = arith.constant 52 : index
    %972 = memref.load %arg1[%c52_252] : memref<72xf32, #tpu.memory_space<smem>>
    %973 = vector.broadcast %972 : f32 to vector<26x26xf32>
    %974 = arith.mulf %588, %973 : vector<26x26xf32>
    %975 = arith.addf %971, %974 : vector<26x26xf32>
    %c53_253 = arith.constant 53 : index
    %976 = memref.load %arg1[%c53_253] : memref<72xf32, #tpu.memory_space<smem>>
    %977 = vector.broadcast %976 : f32 to vector<26x26xf32>
    %978 = arith.mulf %589, %977 : vector<26x26xf32>
    %979 = arith.addf %975, %978 : vector<26x26xf32>
    %c5_254 = arith.constant 5 : index
    %980 = memref.load %arg2[%c5_254] : memref<8xf32, #tpu.memory_space<smem>>
    %981 = vector.broadcast %980 : f32 to vector<26x26xf32>
    %982 = arith.addf %979, %981 : vector<26x26xf32>
    %cst_255 = arith.constant dense<0.000000e+00> : vector<26xf32>
    %983 = vector.multi_reduction <add>, %982, %cst_255 [1] : vector<26x26xf32> to vector<26xf32>
    %984 = vector.shape_cast %983 : vector<26xf32> to vector<26x1xf32>
    %cst_256 = arith.constant dense<0.000000e+00> : vector<1xf32>
    %985 = vector.multi_reduction <add>, %984, %cst_256 [0] : vector<26x1xf32> to vector<1xf32>
    %986 = vector.shape_cast %985 : vector<1xf32> to vector<1x1xf32>
    %987 = arith.mulf %982, %982 : vector<26x26xf32>
    %cst_257 = arith.constant dense<0.000000e+00> : vector<26xf32>
    %988 = vector.multi_reduction <add>, %987, %cst_257 [1] : vector<26x26xf32> to vector<26xf32>
    %989 = vector.shape_cast %988 : vector<26xf32> to vector<26x1xf32>
    %cst_258 = arith.constant dense<0.000000e+00> : vector<1xf32>
    %990 = vector.multi_reduction <add>, %989, %cst_258 [0] : vector<26x1xf32> to vector<1xf32>
    %991 = vector.shape_cast %990 : vector<1xf32> to vector<1x1xf32>
    %cst_259 = arith.constant 1.479290e-03 : f32
    %992 = vector.broadcast %cst_259 : f32 to vector<1x1xf32>
    %993 = arith.mulf %986, %992 : vector<1x1xf32>
    %cst_260 = arith.constant 1.479290e-03 : f32
    %994 = vector.broadcast %cst_260 : f32 to vector<1x1xf32>
    %995 = arith.mulf %991, %994 : vector<1x1xf32>
    %996 = arith.mulf %993, %993 : vector<1x1xf32>
    %997 = arith.subf %995, %996 : vector<1x1xf32>
    %cst_261 = arith.constant 9.99999974E-6 : f32
    %998 = vector.broadcast %cst_261 : f32 to vector<1x1xf32>
    %999 = arith.addf %997, %998 : vector<1x1xf32>
    %1000 = math.rsqrt %999 : vector<1x1xf32>
    %1001 = vector.broadcast %993 : vector<1x1xf32> to vector<26x26xf32>
    %1002 = arith.subf %982, %1001 : vector<26x26xf32>
    %c5_262 = arith.constant 5 : index
    %1003 = memref.load %arg3[%c5_262] : memref<8xf32, #tpu.memory_space<smem>>
    %1004 = vector.broadcast %1003 : f32 to vector<1x1xf32>
    %1005 = arith.mulf %1000, %1004 : vector<1x1xf32>
    %1006 = vector.broadcast %1005 : vector<1x1xf32> to vector<26x26xf32>
    %1007 = arith.mulf %1002, %1006 : vector<26x26xf32>
    %c5_263 = arith.constant 5 : index
    %1008 = memref.load %arg4[%c5_263] : memref<8xf32, #tpu.memory_space<smem>>
    %1009 = vector.broadcast %1008 : f32 to vector<26x26xf32>
    %1010 = arith.addf %1007, %1009 : vector<26x26xf32>
    %cst_264 = arith.constant 0.000000e+00 : f32
    %1011 = vector.broadcast %cst_264 : f32 to vector<26x26xf32>
    %1012 = arith.maximumf %1010, %1011 : vector<26x26xf32>
    %c1_265 = arith.constant 1 : index
    %c5_266 = arith.constant 5 : index
    %c0_267 = arith.constant 0 : index
    %c0_268 = arith.constant 0 : index
    %1013 = vector.load %arg5[%c1_265, %c5_266, %c0_267, %c0_268] : memref<2x8x26x26xf32, #tpu.memory_space<vmem>>, vector<1x1x26x26xf32>
    %1014 = vector.shape_cast %1013 : vector<1x1x26x26xf32> to vector<26x26xf32>
    %1015 = vector.shape_cast %1012 : vector<26x26xf32> to vector<1x1x26x26xf32>
    tpu.vector_store %arg5[%c1_265, %c5_266, %c0_267, %c0_268], %1015 {strides = array<i32>} : memref<2x8x26x26xf32, #tpu.memory_space<vmem>>, vector<1x1x26x26xf32>,
    %c54_269 = arith.constant 54 : index
    %1016 = memref.load %arg1[%c54_269] : memref<72xf32, #tpu.memory_space<smem>>
    %1017 = vector.broadcast %1016 : f32 to vector<26x26xf32>
    %1018 = arith.mulf %581, %1017 : vector<26x26xf32>
    %c55_270 = arith.constant 55 : index
    %1019 = memref.load %arg1[%c55_270] : memref<72xf32, #tpu.memory_space<smem>>
    %1020 = vector.broadcast %1019 : f32 to vector<26x26xf32>
    %1021 = arith.mulf %582, %1020 : vector<26x26xf32>
    %1022 = arith.addf %1018, %1021 : vector<26x26xf32>
    %c56_271 = arith.constant 56 : index
    %1023 = memref.load %arg1[%c56_271] : memref<72xf32, #tpu.memory_space<smem>>
    %1024 = vector.broadcast %1023 : f32 to vector<26x26xf32>
    %1025 = arith.mulf %583, %1024 : vector<26x26xf32>
    %1026 = arith.addf %1022, %1025 : vector<26x26xf32>
    %c57_272 = arith.constant 57 : index
    %1027 = memref.load %arg1[%c57_272] : memref<72xf32, #tpu.memory_space<smem>>
    %1028 = vector.broadcast %1027 : f32 to vector<26x26xf32>
    %1029 = arith.mulf %584, %1028 : vector<26x26xf32>
    %1030 = arith.addf %1026, %1029 : vector<26x26xf32>
    %c58_273 = arith.constant 58 : index
    %1031 = memref.load %arg1[%c58_273] : memref<72xf32, #tpu.memory_space<smem>>
    %1032 = vector.broadcast %1031 : f32 to vector<26x26xf32>
    %1033 = arith.mulf %585, %1032 : vector<26x26xf32>
    %1034 = arith.addf %1030, %1033 : vector<26x26xf32>
    %c59_274 = arith.constant 59 : index
    %1035 = memref.load %arg1[%c59_274] : memref<72xf32, #tpu.memory_space<smem>>
    %1036 = vector.broadcast %1035 : f32 to vector<26x26xf32>
    %1037 = arith.mulf %586, %1036 : vector<26x26xf32>
    %1038 = arith.addf %1034, %1037 : vector<26x26xf32>
    %c60_275 = arith.constant 60 : index
    %1039 = memref.load %arg1[%c60_275] : memref<72xf32, #tpu.memory_space<smem>>
    %1040 = vector.broadcast %1039 : f32 to vector<26x26xf32>
    %1041 = arith.mulf %587, %1040 : vector<26x26xf32>
    %1042 = arith.addf %1038, %1041 : vector<26x26xf32>
    %c61_276 = arith.constant 61 : index
    %1043 = memref.load %arg1[%c61_276] : memref<72xf32, #tpu.memory_space<smem>>
    %1044 = vector.broadcast %1043 : f32 to vector<26x26xf32>
    %1045 = arith.mulf %588, %1044 : vector<26x26xf32>
    %1046 = arith.addf %1042, %1045 : vector<26x26xf32>
    %c62_277 = arith.constant 62 : index
    %1047 = memref.load %arg1[%c62_277] : memref<72xf32, #tpu.memory_space<smem>>
    %1048 = vector.broadcast %1047 : f32 to vector<26x26xf32>
    %1049 = arith.mulf %589, %1048 : vector<26x26xf32>
    %1050 = arith.addf %1046, %1049 : vector<26x26xf32>
    %c6_278 = arith.constant 6 : index
    %1051 = memref.load %arg2[%c6_278] : memref<8xf32, #tpu.memory_space<smem>>
    %1052 = vector.broadcast %1051 : f32 to vector<26x26xf32>
    %1053 = arith.addf %1050, %1052 : vector<26x26xf32>
    %cst_279 = arith.constant dense<0.000000e+00> : vector<26xf32>
    %1054 = vector.multi_reduction <add>, %1053, %cst_279 [1] : vector<26x26xf32> to vector<26xf32>
    %1055 = vector.shape_cast %1054 : vector<26xf32> to vector<26x1xf32>
    %cst_280 = arith.constant dense<0.000000e+00> : vector<1xf32>
    %1056 = vector.multi_reduction <add>, %1055, %cst_280 [0] : vector<26x1xf32> to vector<1xf32>
    %1057 = vector.shape_cast %1056 : vector<1xf32> to vector<1x1xf32>
    %1058 = arith.mulf %1053, %1053 : vector<26x26xf32>
    %cst_281 = arith.constant dense<0.000000e+00> : vector<26xf32>
    %1059 = vector.multi_reduction <add>, %1058, %cst_281 [1] : vector<26x26xf32> to vector<26xf32>
    %1060 = vector.shape_cast %1059 : vector<26xf32> to vector<26x1xf32>
    %cst_282 = arith.constant dense<0.000000e+00> : vector<1xf32>
    %1061 = vector.multi_reduction <add>, %1060, %cst_282 [0] : vector<26x1xf32> to vector<1xf32>
    %1062 = vector.shape_cast %1061 : vector<1xf32> to vector<1x1xf32>
    %cst_283 = arith.constant 1.479290e-03 : f32
    %1063 = vector.broadcast %cst_283 : f32 to vector<1x1xf32>
    %1064 = arith.mulf %1057, %1063 : vector<1x1xf32>
    %cst_284 = arith.constant 1.479290e-03 : f32
    %1065 = vector.broadcast %cst_284 : f32 to vector<1x1xf32>
    %1066 = arith.mulf %1062, %1065 : vector<1x1xf32>
    %1067 = arith.mulf %1064, %1064 : vector<1x1xf32>
    %1068 = arith.subf %1066, %1067 : vector<1x1xf32>
    %cst_285 = arith.constant 9.99999974E-6 : f32
    %1069 = vector.broadcast %cst_285 : f32 to vector<1x1xf32>
    %1070 = arith.addf %1068, %1069 : vector<1x1xf32>
    %1071 = math.rsqrt %1070 : vector<1x1xf32>
    %1072 = vector.broadcast %1064 : vector<1x1xf32> to vector<26x26xf32>
    %1073 = arith.subf %1053, %1072 : vector<26x26xf32>
    %c6_286 = arith.constant 6 : index
    %1074 = memref.load %arg3[%c6_286] : memref<8xf32, #tpu.memory_space<smem>>
    %1075 = vector.broadcast %1074 : f32 to vector<1x1xf32>
    %1076 = arith.mulf %1071, %1075 : vector<1x1xf32>
    %1077 = vector.broadcast %1076 : vector<1x1xf32> to vector<26x26xf32>
    %1078 = arith.mulf %1073, %1077 : vector<26x26xf32>
    %c6_287 = arith.constant 6 : index
    %1079 = memref.load %arg4[%c6_287] : memref<8xf32, #tpu.memory_space<smem>>
    %1080 = vector.broadcast %1079 : f32 to vector<26x26xf32>
    %1081 = arith.addf %1078, %1080 : vector<26x26xf32>
    %cst_288 = arith.constant 0.000000e+00 : f32
    %1082 = vector.broadcast %cst_288 : f32 to vector<26x26xf32>
    %1083 = arith.maximumf %1081, %1082 : vector<26x26xf32>
    %c1_289 = arith.constant 1 : index
    %c6_290 = arith.constant 6 : index
    %c0_291 = arith.constant 0 : index
    %c0_292 = arith.constant 0 : index
    %1084 = vector.load %arg5[%c1_289, %c6_290, %c0_291, %c0_292] : memref<2x8x26x26xf32, #tpu.memory_space<vmem>>, vector<1x1x26x26xf32>
    %1085 = vector.shape_cast %1084 : vector<1x1x26x26xf32> to vector<26x26xf32>
    %1086 = vector.shape_cast %1083 : vector<26x26xf32> to vector<1x1x26x26xf32>
    tpu.vector_store %arg5[%c1_289, %c6_290, %c0_291, %c0_292], %1086 {strides = array<i32>} : memref<2x8x26x26xf32, #tpu.memory_space<vmem>>, vector<1x1x26x26xf32>,
    %c63_293 = arith.constant 63 : index
    %1087 = memref.load %arg1[%c63_293] : memref<72xf32, #tpu.memory_space<smem>>
    %1088 = vector.broadcast %1087 : f32 to vector<26x26xf32>
    %1089 = arith.mulf %581, %1088 : vector<26x26xf32>
    %c64_294 = arith.constant 64 : index
    %1090 = memref.load %arg1[%c64_294] : memref<72xf32, #tpu.memory_space<smem>>
    %1091 = vector.broadcast %1090 : f32 to vector<26x26xf32>
    %1092 = arith.mulf %582, %1091 : vector<26x26xf32>
    %1093 = arith.addf %1089, %1092 : vector<26x26xf32>
    %c65_295 = arith.constant 65 : index
    %1094 = memref.load %arg1[%c65_295] : memref<72xf32, #tpu.memory_space<smem>>
    %1095 = vector.broadcast %1094 : f32 to vector<26x26xf32>
    %1096 = arith.mulf %583, %1095 : vector<26x26xf32>
    %1097 = arith.addf %1093, %1096 : vector<26x26xf32>
    %c66_296 = arith.constant 66 : index
    %1098 = memref.load %arg1[%c66_296] : memref<72xf32, #tpu.memory_space<smem>>
    %1099 = vector.broadcast %1098 : f32 to vector<26x26xf32>
    %1100 = arith.mulf %584, %1099 : vector<26x26xf32>
    %1101 = arith.addf %1097, %1100 : vector<26x26xf32>
    %c67_297 = arith.constant 67 : index
    %1102 = memref.load %arg1[%c67_297] : memref<72xf32, #tpu.memory_space<smem>>
    %1103 = vector.broadcast %1102 : f32 to vector<26x26xf32>
    %1104 = arith.mulf %585, %1103 : vector<26x26xf32>
    %1105 = arith.addf %1101, %1104 : vector<26x26xf32>
    %c68_298 = arith.constant 68 : index
    %1106 = memref.load %arg1[%c68_298] : memref<72xf32, #tpu.memory_space<smem>>
    %1107 = vector.broadcast %1106 : f32 to vector<26x26xf32>
    %1108 = arith.mulf %586, %1107 : vector<26x26xf32>
    %1109 = arith.addf %1105, %1108 : vector<26x26xf32>
    %c69_299 = arith.constant 69 : index
    %1110 = memref.load %arg1[%c69_299] : memref<72xf32, #tpu.memory_space<smem>>
    %1111 = vector.broadcast %1110 : f32 to vector<26x26xf32>
    %1112 = arith.mulf %587, %1111 : vector<26x26xf32>
    %1113 = arith.addf %1109, %1112 : vector<26x26xf32>
    %c70_300 = arith.constant 70 : index
    %1114 = memref.load %arg1[%c70_300] : memref<72xf32, #tpu.memory_space<smem>>
    %1115 = vector.broadcast %1114 : f32 to vector<26x26xf32>
    %1116 = arith.mulf %588, %1115 : vector<26x26xf32>
    %1117 = arith.addf %1113, %1116 : vector<26x26xf32>
    %c71_301 = arith.constant 71 : index
    %1118 = memref.load %arg1[%c71_301] : memref<72xf32, #tpu.memory_space<smem>>
    %1119 = vector.broadcast %1118 : f32 to vector<26x26xf32>
    %1120 = arith.mulf %589, %1119 : vector<26x26xf32>
    %1121 = arith.addf %1117, %1120 : vector<26x26xf32>
    %c7_302 = arith.constant 7 : index
    %1122 = memref.load %arg2[%c7_302] : memref<8xf32, #tpu.memory_space<smem>>
    %1123 = vector.broadcast %1122 : f32 to vector<26x26xf32>
    %1124 = arith.addf %1121, %1123 : vector<26x26xf32>
    %cst_303 = arith.constant dense<0.000000e+00> : vector<26xf32>
    %1125 = vector.multi_reduction <add>, %1124, %cst_303 [1] : vector<26x26xf32> to vector<26xf32>
    %1126 = vector.shape_cast %1125 : vector<26xf32> to vector<26x1xf32>
    %cst_304 = arith.constant dense<0.000000e+00> : vector<1xf32>
    %1127 = vector.multi_reduction <add>, %1126, %cst_304 [0] : vector<26x1xf32> to vector<1xf32>
    %1128 = vector.shape_cast %1127 : vector<1xf32> to vector<1x1xf32>
    %1129 = arith.mulf %1124, %1124 : vector<26x26xf32>
    %cst_305 = arith.constant dense<0.000000e+00> : vector<26xf32>
    %1130 = vector.multi_reduction <add>, %1129, %cst_305 [1] : vector<26x26xf32> to vector<26xf32>
    %1131 = vector.shape_cast %1130 : vector<26xf32> to vector<26x1xf32>
    %cst_306 = arith.constant dense<0.000000e+00> : vector<1xf32>
    %1132 = vector.multi_reduction <add>, %1131, %cst_306 [0] : vector<26x1xf32> to vector<1xf32>
    %1133 = vector.shape_cast %1132 : vector<1xf32> to vector<1x1xf32>
    %cst_307 = arith.constant 1.479290e-03 : f32
    %1134 = vector.broadcast %cst_307 : f32 to vector<1x1xf32>
    %1135 = arith.mulf %1128, %1134 : vector<1x1xf32>
    %cst_308 = arith.constant 1.479290e-03 : f32
    %1136 = vector.broadcast %cst_308 : f32 to vector<1x1xf32>
    %1137 = arith.mulf %1133, %1136 : vector<1x1xf32>
    %1138 = arith.mulf %1135, %1135 : vector<1x1xf32>
    %1139 = arith.subf %1137, %1138 : vector<1x1xf32>
    %cst_309 = arith.constant 9.99999974E-6 : f32
    %1140 = vector.broadcast %cst_309 : f32 to vector<1x1xf32>
    %1141 = arith.addf %1139, %1140 : vector<1x1xf32>
    %1142 = math.rsqrt %1141 : vector<1x1xf32>
    %1143 = vector.broadcast %1135 : vector<1x1xf32> to vector<26x26xf32>
    %1144 = arith.subf %1124, %1143 : vector<26x26xf32>
    %c7_310 = arith.constant 7 : index
    %1145 = memref.load %arg3[%c7_310] : memref<8xf32, #tpu.memory_space<smem>>
    %1146 = vector.broadcast %1145 : f32 to vector<1x1xf32>
    %1147 = arith.mulf %1142, %1146 : vector<1x1xf32>
    %1148 = vector.broadcast %1147 : vector<1x1xf32> to vector<26x26xf32>
    %1149 = arith.mulf %1144, %1148 : vector<26x26xf32>
    %c7_311 = arith.constant 7 : index
    %1150 = memref.load %arg4[%c7_311] : memref<8xf32, #tpu.memory_space<smem>>
    %1151 = vector.broadcast %1150 : f32 to vector<26x26xf32>
    %1152 = arith.addf %1149, %1151 : vector<26x26xf32>
    %cst_312 = arith.constant 0.000000e+00 : f32
    %1153 = vector.broadcast %cst_312 : f32 to vector<26x26xf32>
    %1154 = arith.maximumf %1152, %1153 : vector<26x26xf32>
    %c1_313 = arith.constant 1 : index
    %c7_314 = arith.constant 7 : index
    %c0_315 = arith.constant 0 : index
    %c0_316 = arith.constant 0 : index
    %1155 = vector.load %arg5[%c1_313, %c7_314, %c0_315, %c0_316] : memref<2x8x26x26xf32, #tpu.memory_space<vmem>>, vector<1x1x26x26xf32>
    %1156 = vector.shape_cast %1155 : vector<1x1x26x26xf32> to vector<26x26xf32>
    %1157 = vector.shape_cast %1154 : vector<26x26xf32> to vector<1x1x26x26xf32>
    tpu.vector_store %arg5[%c1_313, %c7_314, %c0_315, %c0_316], %1157 {strides = array<i32>} : memref<2x8x26x26xf32, #tpu.memory_space<vmem>>, vector<1x1x26x26xf32>,
    return
  }
}

module attributes {stable_mosaic.version = 11 : i64} {
  func.func @_conv2_gn_head_kernel(%arg0: memref<2x169x128xf32, #tpu.memory_space<vmem>>, %arg1: memref<128x8xf32, #tpu.memory_space<vmem>>, %arg2: memref<1x8xf32, #tpu.memory_space<vmem>>, %arg3: memref<8x8xf32, #tpu.memory_space<vmem>>, %arg4: memref<1x8xf32, #tpu.memory_space<vmem>>, %arg5: memref<1x8xf32, #tpu.memory_space<vmem>>, %arg6: memref<8x10xf32, #tpu.memory_space<vmem>>, %arg7: memref<1x10xf32, #tpu.memory_space<vmem>>, %arg8: memref<2x10xf32, #tpu.memory_space<vmem>>) attributes {dimension_semantics = [], scalar_prefetch = 0 : i64, scratch_operands = 0 : i64, tpu.core_type = #tpu.core_type<tc>} {
    %c0 = arith.constant 0 : index
    %c0_0 = arith.constant 0 : index
    %c0_1 = arith.constant 0 : index
    %0 = vector.load %arg0[%c0, %c0_0, %c0_1] : memref<2x169x128xf32, #tpu.memory_space<vmem>>, vector<1x169x128xf32>
    %1 = vector.shape_cast %0 : vector<1x169x128xf32> to vector<169x128xf32>
    %c0_2 = arith.constant 0 : index
    %c0_3 = arith.constant 0 : index
    %2 = vector.load %arg1[%c0_2, %c0_3] : memref<128x8xf32, #tpu.memory_space<vmem>>, vector<128x8xf32>
    %cst = arith.constant dense<0.000000e+00> : vector<169x8xf32>
    %3 = tpu.matmul %1, %2, %cst {dimension_numbers = #tpu.dot_dimension_numbers<[1], [0], [0], [1], [0, 0, 1, 1], [], []>} : vector<169x128xf32>, vector<128x8xf32>, vector<169x8xf32> -> vector<169x8xf32>
    %c0_4 = arith.constant 0 : index
    %c0_5 = arith.constant 0 : index
    %4 = vector.load %arg2[%c0_4, %c0_5] : memref<1x8xf32, #tpu.memory_space<vmem>>, vector<1x8xf32>
    %5 = vector.broadcast %4 : vector<1x8xf32> to vector<169x8xf32>
    %6 = arith.addf %3, %5 : vector<169x8xf32>
    %cst_6 = arith.constant dense<0.000000e+00> : vector<8xf32>
    %7 = vector.multi_reduction <add>, %6, %cst_6 [0] : vector<169x8xf32> to vector<8xf32>
    %8 = vector.shape_cast %7 : vector<8xf32> to vector<1x8xf32>
    %9 = arith.mulf %6, %6 : vector<169x8xf32>
    %cst_7 = arith.constant dense<0.000000e+00> : vector<8xf32>
    %10 = vector.multi_reduction <add>, %9, %cst_7 [0] : vector<169x8xf32> to vector<8xf32>
    %11 = vector.shape_cast %10 : vector<8xf32> to vector<1x8xf32>
    %cst_8 = arith.constant 5.917160e-03 : f32
    %12 = vector.broadcast %cst_8 : f32 to vector<1x8xf32>
    %13 = arith.mulf %8, %12 : vector<1x8xf32>
    %cst_9 = arith.constant 5.917160e-03 : f32
    %14 = vector.broadcast %cst_9 : f32 to vector<1x8xf32>
    %15 = arith.mulf %11, %14 : vector<1x8xf32>
    %16 = arith.mulf %13, %13 : vector<1x8xf32>
    %17 = arith.subf %15, %16 : vector<1x8xf32>
    %cst_10 = arith.constant 9.99999974E-6 : f32
    %18 = vector.broadcast %cst_10 : f32 to vector<1x8xf32>
    %19 = arith.addf %17, %18 : vector<1x8xf32>
    %20 = math.rsqrt %19 : vector<1x8xf32>
    %c0_11 = arith.constant 0 : index
    %c0_12 = arith.constant 0 : index
    %21 = vector.load %arg4[%c0_11, %c0_12] : memref<1x8xf32, #tpu.memory_space<vmem>>, vector<1x8xf32>
    %22 = arith.mulf %20, %21 : vector<1x8xf32>
    %c0_13 = arith.constant 0 : index
    %c0_14 = arith.constant 0 : index
    %23 = vector.load %arg5[%c0_13, %c0_14] : memref<1x8xf32, #tpu.memory_space<vmem>>, vector<1x8xf32>
    %24 = arith.mulf %13, %22 : vector<1x8xf32>
    %25 = arith.subf %23, %24 : vector<1x8xf32>
    %26 = vector.broadcast %22 : vector<1x8xf32> to vector<169x8xf32>
    %27 = arith.mulf %6, %26 : vector<169x8xf32>
    %28 = vector.broadcast %25 : vector<1x8xf32> to vector<169x8xf32>
    %29 = arith.addf %27, %28 : vector<169x8xf32>
    %cst_15 = arith.constant 0.000000e+00 : f32
    %30 = vector.broadcast %cst_15 : f32 to vector<169x8xf32>
    %31 = arith.maximumf %29, %30 : vector<169x8xf32>
    %cst_16 = arith.constant dense<0.000000e+00> : vector<8xf32>
    %32 = vector.multi_reduction <add>, %31, %cst_16 [0] : vector<169x8xf32> to vector<8xf32>
    %33 = vector.shape_cast %32 : vector<8xf32> to vector<1x8xf32>
    %cst_17 = arith.constant 5.917160e-03 : f32
    %34 = vector.broadcast %cst_17 : f32 to vector<1x8xf32>
    %35 = arith.mulf %33, %34 : vector<1x8xf32>
    %c0_18 = arith.constant 0 : index
    %c0_19 = arith.constant 0 : index
    %36 = vector.load %arg6[%c0_18, %c0_19] : memref<8x10xf32, #tpu.memory_space<vmem>>, vector<8x10xf32>
    %cst_20 = arith.constant dense<0.000000e+00> : vector<1x10xf32>
    %37 = tpu.matmul %35, %36, %cst_20 {dimension_numbers = #tpu.dot_dimension_numbers<[1], [0], [0], [1], [0, 0, 1, 1], [], []>} : vector<1x8xf32>, vector<8x10xf32>, vector<1x10xf32> -> vector<1x10xf32>
    %c0_21 = arith.constant 0 : index
    %c0_22 = arith.constant 0 : index
    %38 = vector.load %arg7[%c0_21, %c0_22] : memref<1x10xf32, #tpu.memory_space<vmem>>, vector<1x10xf32>
    %39 = arith.addf %37, %38 : vector<1x10xf32>
    %c0_23 = arith.constant 0 : index
    %c0_24 = arith.constant 0 : index
    %40 = vector.load %arg8[%c0_23, %c0_24] : memref<2x10xf32, #tpu.memory_space<vmem>>, vector<1x10xf32>
    tpu.vector_store %arg8[%c0_23, %c0_24], %39 {strides = array<i32>} : memref<2x10xf32, #tpu.memory_space<vmem>>, vector<1x10xf32>,
    %c1 = arith.constant 1 : index
    %c0_25 = arith.constant 0 : index
    %c0_26 = arith.constant 0 : index
    %41 = vector.load %arg0[%c1, %c0_25, %c0_26] : memref<2x169x128xf32, #tpu.memory_space<vmem>>, vector<1x169x128xf32>
    %42 = vector.shape_cast %41 : vector<1x169x128xf32> to vector<169x128xf32>
    %c0_27 = arith.constant 0 : index
    %c0_28 = arith.constant 0 : index
    %43 = vector.load %arg1[%c0_27, %c0_28] : memref<128x8xf32, #tpu.memory_space<vmem>>, vector<128x8xf32>
    %cst_29 = arith.constant dense<0.000000e+00> : vector<169x8xf32>
    %44 = tpu.matmul %42, %43, %cst_29 {dimension_numbers = #tpu.dot_dimension_numbers<[1], [0], [0], [1], [0, 0, 1, 1], [], []>} : vector<169x128xf32>, vector<128x8xf32>, vector<169x8xf32> -> vector<169x8xf32>
    %c0_30 = arith.constant 0 : index
    %c0_31 = arith.constant 0 : index
    %45 = vector.load %arg2[%c0_30, %c0_31] : memref<1x8xf32, #tpu.memory_space<vmem>>, vector<1x8xf32>
    %46 = vector.broadcast %45 : vector<1x8xf32> to vector<169x8xf32>
    %47 = arith.addf %44, %46 : vector<169x8xf32>
    %cst_32 = arith.constant dense<0.000000e+00> : vector<8xf32>
    %48 = vector.multi_reduction <add>, %47, %cst_32 [0] : vector<169x8xf32> to vector<8xf32>
    %49 = vector.shape_cast %48 : vector<8xf32> to vector<1x8xf32>
    %50 = arith.mulf %47, %47 : vector<169x8xf32>
    %cst_33 = arith.constant dense<0.000000e+00> : vector<8xf32>
    %51 = vector.multi_reduction <add>, %50, %cst_33 [0] : vector<169x8xf32> to vector<8xf32>
    %52 = vector.shape_cast %51 : vector<8xf32> to vector<1x8xf32>
    %cst_34 = arith.constant 5.917160e-03 : f32
    %53 = vector.broadcast %cst_34 : f32 to vector<1x8xf32>
    %54 = arith.mulf %49, %53 : vector<1x8xf32>
    %cst_35 = arith.constant 5.917160e-03 : f32
    %55 = vector.broadcast %cst_35 : f32 to vector<1x8xf32>
    %56 = arith.mulf %52, %55 : vector<1x8xf32>
    %57 = arith.mulf %54, %54 : vector<1x8xf32>
    %58 = arith.subf %56, %57 : vector<1x8xf32>
    %cst_36 = arith.constant 9.99999974E-6 : f32
    %59 = vector.broadcast %cst_36 : f32 to vector<1x8xf32>
    %60 = arith.addf %58, %59 : vector<1x8xf32>
    %61 = math.rsqrt %60 : vector<1x8xf32>
    %c0_37 = arith.constant 0 : index
    %c0_38 = arith.constant 0 : index
    %62 = vector.load %arg4[%c0_37, %c0_38] : memref<1x8xf32, #tpu.memory_space<vmem>>, vector<1x8xf32>
    %63 = arith.mulf %61, %62 : vector<1x8xf32>
    %c0_39 = arith.constant 0 : index
    %c0_40 = arith.constant 0 : index
    %64 = vector.load %arg5[%c0_39, %c0_40] : memref<1x8xf32, #tpu.memory_space<vmem>>, vector<1x8xf32>
    %65 = arith.mulf %54, %63 : vector<1x8xf32>
    %66 = arith.subf %64, %65 : vector<1x8xf32>
    %67 = vector.broadcast %63 : vector<1x8xf32> to vector<169x8xf32>
    %68 = arith.mulf %47, %67 : vector<169x8xf32>
    %69 = vector.broadcast %66 : vector<1x8xf32> to vector<169x8xf32>
    %70 = arith.addf %68, %69 : vector<169x8xf32>
    %cst_41 = arith.constant 0.000000e+00 : f32
    %71 = vector.broadcast %cst_41 : f32 to vector<169x8xf32>
    %72 = arith.maximumf %70, %71 : vector<169x8xf32>
    %cst_42 = arith.constant dense<0.000000e+00> : vector<8xf32>
    %73 = vector.multi_reduction <add>, %72, %cst_42 [0] : vector<169x8xf32> to vector<8xf32>
    %74 = vector.shape_cast %73 : vector<8xf32> to vector<1x8xf32>
    %cst_43 = arith.constant 5.917160e-03 : f32
    %75 = vector.broadcast %cst_43 : f32 to vector<1x8xf32>
    %76 = arith.mulf %74, %75 : vector<1x8xf32>
    %c0_44 = arith.constant 0 : index
    %c0_45 = arith.constant 0 : index
    %77 = vector.load %arg6[%c0_44, %c0_45] : memref<8x10xf32, #tpu.memory_space<vmem>>, vector<8x10xf32>
    %cst_46 = arith.constant dense<0.000000e+00> : vector<1x10xf32>
    %78 = tpu.matmul %76, %77, %cst_46 {dimension_numbers = #tpu.dot_dimension_numbers<[1], [0], [0], [1], [0, 0, 1, 1], [], []>} : vector<1x8xf32>, vector<8x10xf32>, vector<1x10xf32> -> vector<1x10xf32>
    %c0_47 = arith.constant 0 : index
    %c0_48 = arith.constant 0 : index
    %79 = vector.load %arg7[%c0_47, %c0_48] : memref<1x10xf32, #tpu.memory_space<vmem>>, vector<1x10xf32>
    %80 = arith.addf %78, %79 : vector<1x10xf32>
    %c1_49 = arith.constant 1 : index
    %c0_50 = arith.constant 0 : index
    %81 = vector.load %arg8[%c1_49, %c0_50] : memref<2x10xf32, #tpu.memory_space<vmem>>, vector<1x10xf32>
    tpu.vector_store %arg8[%c1_49, %c0_50], %80 {strides = array<i32>} : memref<2x10xf32, #tpu.memory_space<vmem>>, vector<1x10xf32>,
    return
  }
}

</mosaic_0001>

<bundles_post_ra>
// kernel: odenet_mnist_forward.2
= control target key start
LH: loop header
LB: loop body
LE: loop exit
PB: predicated region body
PF: predicated region fallthrough
CT: control target
= control target key end

     0   :  { %10 = vsyncpa [#allocation4], 0  ;;  %s8439_s0 = inlined_call_operand.vmem [shape: f32[2,28,28], index: 0, kind: input, shape index: {}]   ;;  %s8440_s1 = inlined_call_operand.vmem [shape: f32[72], index: 1, kind: input, shape index: {}]   ;;  %s8441_s2 = inlined_call_operand.vmem [shape: f32[8], index: 2, kind: input, shape index: {}]   ;;  %s8442_s3 = inlined_call_operand.hbm [shape: f32[8], index: 3, kind: input, shape index: {}]   ;;  %s8443_s4 = inlined_call_operand.hbm [shape: f32[8], index: 4, kind: input, shape index: {}]   ;;  %s8444_s5 = inlined_call_operand.vmem [shape: f32[2,8,26,26], index: 5, kind: output, shape index: {}]  }
   0x1   :  { %11 = vsyncpa [#allocation6], 0 }
   0x2   :  { %12 = vsyncpa [#allocation3], 0  ;;  %s22_s20 = sshll.u32 %s8440_s1, 4  ;;  %s23_s20 = int_to_ptr.vmem [resolvable:$true] %s22_s20 }
   0x3   :  { %13 = vsyncpa [#allocation9], 0  ;;  %s32_s23 = sshll.u32 %s8441_s2, 4  ;;  %s5612_s24 = scalar_lea.vmem %s23_s20, 16  ;;  %s33_s23 = int_to_ptr.vmem [resolvable:$true] %s32_s23 }
   0x4   :  { %p5613_p0 = scmp.ne.s32.totalorder %s23_s20, %s5612_s24  ;;  %p5617_p1 = scmp.lt.s32.totalorder %s23_s20, %s23_s20 }
   0x5   :  { %p5618_p2 = scmp.lt.s32.totalorder %s5612_s24, %s5612_s24 }
   0x7   :  { %p5619_p3 = por %p5618_p2, %p5617_p1 }
   0x9   :  { %p5620_p4 = pnand %p5619_p3, %p5613_p0 }
   0xb   :  { %5623 = shalt.err (!%p5620_p4)
}
   0xc   :  { %s5660_s25 = smov [#allocation2]   ;;  %s5624_s26 = scalar_lea.vmem %s33_s23, 16 }
   0xd   :  { %25 = dma.vmem_to_smem %s23_s20, 16, %s5660_s25, [#allocation4]  }
   0xe   :  { %p5625_p5 = scmp.ne.s32.totalorder %s33_s23, %s5624_s26  ;;  %p5629_p6 = scmp.lt.s32.totalorder %s33_s23, %s33_s23 }
   0xf   :  { %p5630_p7 = scmp.lt.s32.totalorder %s5624_s26, %s5624_s26 }
  0x11   :  { %p5631_p8 = por %p5630_p7, %p5629_p6 }
  0x13   :  { %p5632_p9 = pnand %p5631_p8, %p5625_p5 }
  0x15   :  { %5635 = shalt.err (!%p5632_p9)
}
  0x16   :  { %s5661_s1 = smov [#allocation5]   ;;  %s5662_s2 = smov [#allocation7]  }
  0x17   :  { %35 = dma.vmem_to_smem %s33_s23, 16, %s5661_s1, [#allocation6]  }
  0x18   :  { %43 = dma.hbm_to_smem %s8442_s3, 16, %s5662_s2, [#allocation3]  }
  0x19   :  { %s5663_s29 = smov [#allocation8]  }
  0x1a   :  { %51 = dma.hbm_to_smem %s8443_s4, 16, %s5663_s29, [#allocation9]  }
  0x1b   :  { %5652 = dma.done.wait [#allocation4], 16  }
  0x1c   :  { %5653 = vsyncadd [#allocation4], 4294967280 }
  0x1d   :  { %5654 = dma.done.wait [#allocation6], 16  }
  0x1e   :  { %5655 = vsyncadd [#allocation6], 4294967280 }
  0x1f   :  { %5656 = dma.done.wait [#allocation3], 16  }
  0x20   :  { %5657 = vsyncadd [#allocation3], 4294967280 }
  0x21   :  { %5658 = dma.done.wait [#allocation9], 16  }
  0x22   :  { %5659 = vsyncadd [#allocation9], 4294967280 }
  0x23   :  { %64 = sfence }
  0x24   :  { %s5302_s7 = sld [smem:[#allocation2 + $0x1]]  ;;  %v5711_v0 = vld [vmem:[%s8439_s0 + $0x10] sm:$0xff]  ;;  %v5716_v1 = vld [vmem:[%s8439_s0] sm:$0xff]  ;;  %v5721_v3 = vld [vmem:[%s8439_s0 + $0x18] sm:$0xf]  ;;  %s5664_s16 = smov 127  }
  0x25   :  { %s5303_s8 = sld [smem:[#allocation2 + $0x2]]  ;;  %v5726_v4 = vld [vmem:[%s8439_s0 + $0x8] sm:$0xff]  ;;  %s5665_s18 = smov 126   ;;  %vm137_vm0 = vcmask 1046528   ;;  %vm229_vm1 = vcmask 1045504   ;;  %vm317_vm2 = vcmask 211968  }
  0x26   :  { %s5305_s9 = sld [smem:[#allocation2 + $0x4]]  ;;  %vm327_vm3 = vcmask 205824   ;;  %vm333_vm4 = vcmask 1041408  }
  0x27   :  { %s5306_s17 = sld [smem:[#allocation2 + $0x5]] }
  0x28   :  { %s5308_s19 = sld [smem:[#allocation2 + $0x7]] }
  0x29   :  { %s5309_s20 = sld [smem:[#allocation2 + $0x8]] }
  0x2a   :  { %v76_v2 = vstv %s5302_s7  ;;  %s5311_s21 = sld [smem:[#allocation2 + $0xa]] }
  0x2b   :  { %v79_v5 = vmul.f32 %v76_v2, %v5711_v0  ;;  %v77_v6 = vmul.f32 %v76_v2, %v5716_v1  ;;  %v80_v7 = vmul.f32 %v76_v2, %v5721_v3  ;;  %v78_v8 = vmul.f32 %v76_v2, %v5726_v4  ;;  %s5312_s22 = sld [smem:[#allocation2 + $0xb]] }
  0x2c   :  { %v102_v9 = vstv %s5303_s8  ;;  %v154_v10 = vstv %s5305_s9  ;;  %s5314_s23 = sld [smem:[#allocation2 + $0xd]] }
  0x2d   :  { %89 = vrot.lane.b32.xlu1 %v79_v5, %s5664_s16  ;;  %85 = vrot.lane.b32.xlu0 %v77_v6, %s5664_s16  ;;  %v104_v11 = vmul.f32 %v102_v9, %v5726_v4  ;;  %v103_v12 = vmul.f32 %v102_v9, %v5716_v1  ;;  %v156_v13 = vmul.f32 %v154_v10, %v5726_v4  ;;  %v187_v18 = vstv %s5306_s17  ;;  %s5315_s24 = sld [smem:[#allocation2 + $0xe]] }
  0x2e   :  { %v157_v14 = vmul.f32 %v154_v10, %v5711_v0  ;;  %v155_v15 = vmul.f32 %v154_v10, %v5716_v1  ;;  %v106_v16 = vmul.f32 %v102_v9, %v5721_v3  ;;  %v105_v17 = vmul.f32 %v102_v9, %v5711_v0  ;;  %s5317_s25 = sld [smem:[#allocation2 + $0x10]] }
  0x2f   :  { %v164_v19 = vrot.slane %v156_v13, 1  ;;  %v158_v22 = vmul.f32 %v154_v10, %v5721_v3  ;;  %v189_v23 = vmul.f32 %v187_v18, %v5726_v4  ;;  %v190_v24 = vmul.f32 %v187_v18, %v5711_v0  ;;  %s5304_s26 = sld [smem:[#allocation2 + $0x3]] }
  0x30   :  { %v166_v20 = vrot.slane %v157_v14, 1  ;;  %v163_v21 = vrot.slane %v155_v15, 1  ;;  %v188_v28 = vmul.f32 %v187_v18, %v5716_v1  ;;  %v191_v31 = vmul.f32 %v187_v18, %v5721_v3  ;;  %s69_s1 = sld [smem:[#allocation2]] }
  0x31   :  { %91 = vrot.lane.b32.xlu1 %v80_v7, %s5664_s16  ;;  %87 = vrot.lane.b32.xlu0 %v78_v8, %s5664_s16  ;;  %v168_v27 = vrot.slane %v158_v22, 1  ;;  %v197_v29 = vrot.slane %v189_v23, 1  ;;  %v199_v30 = vrot.slane %v190_v24, 1  ;;  %v246_v34 = vstv %s5308_s19  ;;  %s5307_s2 = sld [smem:[#allocation2 + $0x6]] }
  0x32   :  { %v167_v25 = vsel %vm137_vm0, %v164_v19, %v166_v20  ;;  %v165_v26 = vsel %vm137_vm0, %v163_v21, %v164_v19  ;;  %v196_v33 = vrot.slane %v188_v28, 1  ;;  %v201_v36 = vrot.slane %v191_v31, 1  ;;  %s311_s27 = sld [smem:[#allocation5]] }
  0x33   :  { %v169_v32 = vsel %vm137_vm0, %v166_v20, %v168_v27  ;;  %v200_v35 = vsel %vm137_vm0, %v197_v29, %v199_v30  ;;  %v248_v38 = vmul.f32 %v246_v34, %v5726_v4  ;;  %v249_v39 = vmul.f32 %v246_v34, %v5711_v0  ;;  %s5318_s28 = sld [smem:[#allocation2 + $0x11]] }
  0x34   :  { %v198_v37 = vsel %vm137_vm0, %v196_v33, %v197_v29  ;;  %v247_v40 = vmul.f32 %v246_v34, %v5716_v1  ;;  %v202_v41 = vsel %vm137_vm0, %v199_v30, %v201_v36  ;;  %v250_v42 = vmul.f32 %v246_v34, %v5721_v3  ;;  %s5310_s29 = sld [smem:[#allocation2 + $0x9]] }
  0x35   :  { %113 = vrot.lane.b32.xlu1 %v104_v11, %s5665_s18  ;;  %111 = vrot.lane.b32.xlu0 %v103_v12, %s5665_s18  ;;  %v256_v43 = vrot.slane %v248_v38, 2  ;;  %v258_v44 = vrot.slane %v249_v39, 2  ;;  %v279_v46 = vstv %s5309_s20  ;;  %v406_v62 = vstv %s5311_s21  ;;  %s5313_s30 = sld [smem:[#allocation2 + $0xc]] }
  0x36   :  { %v255_v45 = vrot.slane %v247_v40, 2  ;;  %v260_v47 = vrot.slane %v250_v42, 2  ;;  %v281_v48 = vmul.f32 %v279_v46, %v5726_v4  ;;  %v282_v51 = vmul.f32 %v279_v46, %v5711_v0  ;;  %s5316_s6 = sld [smem:[#allocation2 + $0xf]] }
  0x37   :  { %v259_v49 = vsel %vm229_vm1, %v256_v43, %v258_v44  ;;  %v280_v52 = vmul.f32 %v279_v46, %v5716_v1  ;;  %v283_v53 = vmul.f32 %v279_v46, %v5721_v3  ;;  %v407_v63 = vmul.f32 %v406_v62, %v5716_v1  ;;  %s5319_s7 = sld [smem:[#allocation5 + $0x1]] }
  0x38   :  { %v257_v50 = vsel %vm229_vm1, %v255_v45, %v256_v43  ;;  %v261_v54 = vsel %vm229_vm1, %v258_v44, %v260_v47  ;;  %v289_v55 = vrot.slane %v281_v48, 2  ;;  %v291_v56 = vrot.slane %v282_v51, 2  ;;  %s5327_s8 = sld [smem:[#allocation2 + $0x13]] }
  0x39   :  { %117 = vrot.lane.b32.xlu1 %v106_v16, %s5665_s18  ;;  %115 = vrot.lane.b32.xlu0 %v105_v17, %s5665_s18  ;;  %v288_v57 = vrot.slane %v280_v52, 2  ;;  %v293_v60 = vrot.slane %v283_v53, 2  ;;  %v408_v2 = vmul.f32 %v406_v62, %v5726_v4  ;;  %v432_v5 = vstv %s5312_s22  ;;  %s378_s9 = sld [smem:[#allocation7]] }
  0x3a   :  { %v292_v58 = vsel %vm229_vm1, %v289_v55, %v291_v56  ;;  %v483_v6 = vstv %s5314_s23  ;;  %v409_v7 = vmul.f32 %v406_v62, %v5711_v0  ;;  %v433_v8 = vmul.f32 %v432_v5, %v5716_v1  ;;  %s5328_s10 = sld [smem:[#allocation2 + $0x14]] }
  0x3b   :  { %v290_v59 = vsel %vm229_vm1, %v288_v57, %v289_v55  ;;  %v294_v61 = vsel %vm229_vm1, %v291_v56, %v293_v60  ;;  %v484_v9 = vmul.f32 %v483_v6, %v5716_v1  ;;  %v485_v10 = vmul.f32 %v483_v6, %v5726_v4  ;;  %s385_s11 = sld [smem:[#allocation8]] }
  0x3c   :  { %v410_v11 = vmul.f32 %v406_v62, %v5721_v3  ;;  %v435_v12 = vmul.f32 %v432_v5, %v5711_v0  ;;  %v487_v15 = vmul.f32 %v483_v6, %v5721_v3  ;;  %v516_v16 = vstv %s5315_s24  ;;  %s5330_s3 = sld [smem:[#allocation2 + $0x16]] }
  0x3d   :  { %172 = vrot.lane.b32.xlu1 %v167_v25, %s5664_s16  ;;  %170 = vrot.lane.b32.xlu0 %v165_v26, %s5664_s16  ;;  %v492_v13 = vrot.slane %v484_v9, 1  ;;  %v493_v14 = vrot.slane %v485_v10, 1  ;;  %v486_v17 = vmul.f32 %v483_v6, %v5711_v0  ;;  %v434_v18 = vmul.f32 %v432_v5, %v5726_v4  ;;  %s5331_s12 = sld [smem:[#allocation2 + $0x17]] }
  0x3e   :  { %v497_v20 = vrot.slane %v487_v15, 1  ;;  %v517_v21 = vmul.f32 %v516_v16, %v5716_v1  ;;  %v518_v22 = vmul.f32 %v516_v16, %v5726_v4  ;;  %v436_v24 = vmul.f32 %v432_v5, %v5721_v3  ;;  %s5333_s22 = sld [smem:[#allocation2 + $0x19]] }
  0x3f   :  { %v494_v19 = vsel %vm137_vm0, %v492_v13, %v493_v14  ;;  %v495_v23 = vrot.slane %v486_v17, 1  ;;  %v520_v28 = vmul.f32 %v516_v16, %v5721_v3  ;;  %v574_v29 = vstv %s5317_s25  ;;  %s5334_s23 = sld [smem:[#allocation2 + $0x1a]] }
  0x40   :  { %v525_v26 = vrot.slane %v517_v21, 1  ;;  %v519_v30 = vmul.f32 %v516_v16, %v5711_v0  ;;  %v575_v34 = vmul.f32 %v574_v29, %v5716_v1  ;;  %v578_v40 = vmul.f32 %v574_v29, %v5721_v3  ;;  %s5343_s19 = sld [smem:[#allocation2 + $0x1c]] }
  0x41   :  { %176 = vrot.lane.b32.xlu1 %v168_v27, %s5664_s16  ;;  %174 = vrot.lane.b32.xlu0 %v169_v32, %s5664_s16  ;;  %v498_v25 = vsel %vm137_vm0, %v495_v23, %v497_v20  ;;  %v526_v27 = vrot.slane %v518_v22, 1  ;;  %v496_v31 = vsel %vm137_vm0, %v493_v14, %v495_v23  ;;  %v530_v33 = vrot.slane %v520_v28, 1  ;;  %s5344_s20 = sld [smem:[#allocation2 + $0x1d]] }
  0x42   :  { %v583_v38 = vrot.slane %v575_v34, 2  ;;  %v588_v44 = vrot.slane %v578_v40, 2  ;;  %v128_v56 = vstv %s5304_s26  ;;  %v70_v57 = vstv %s69_s1  ;;  %s5346_s21 = sld [smem:[#allocation2 + $0x1f]] }
  0x43   :  { %v527_v32 = vsel %vm137_vm0, %v525_v26, %v526_v27  ;;  %v129_v62 = vmul.f32 %v128_v56, %v5716_v1  ;;  %v74_v14 = vmul.f32 %v70_v57, %v5721_v3  ;;  %s5350_s24 = sld [smem:[#allocation2 + $0x23]] }
  0x44   :  { %s5345_s25 = sld [smem:[#allocation2 + $0x1e]] }
  0x45   :  { %205 = vrot.lane.b32.xlu1 %v200_v35, %s5665_s18  ;;  %203 = vrot.lane.b32.xlu0 %v198_v37, %s5665_s18  ;;  %v576_v35 = vmul.f32 %v574_v29, %v5726_v4  ;;  %v138_v10 = vrot.slane %v129_v62, 1  ;;  %s5342_s26 = sld [smem:[#allocation2 + $0x1b]] }
  0x46   :  { %s5348_s1 = sld [smem:[#allocation2 + $0x21]] }
  0x47   :  { %v584_v39 = vrot.slane %v576_v35, 2  ;;  %s5362_s4 = sld [smem:[#allocation2 + $0x28]] }
  0x48   :  { %s5363_s13 = sld [smem:[#allocation2 + $0x29]] }
  0x49   :  { %209 = vrot.lane.b32.xlu1 %v201_v36, %s5665_s18  ;;  %207 = vrot.lane.b32.xlu0 %v202_v41, %s5665_s18  ;;  %v528_v36 = vrot.slane %v519_v30, 1  ;;  %v577_v41 = vmul.f32 %v574_v29, %v5711_v0  ;;  %v585_v43 = vsel %vm229_vm1, %v583_v38, %v584_v39  ;;  %s5365_s14 = sld [smem:[#allocation2 + $0x2b]] }
  0x4a   :  { %s5366_s15 = sld [smem:[#allocation2 + $0x2c]] }
  0x4b   :  { %v531_v37 = vsel %vm137_vm0, %v528_v36, %v530_v33  ;;  %v529_v42 = vsel %vm137_vm0, %v526_v27, %v528_v36  ;;  %v586_v45 = vrot.slane %v577_v41, 2  ;;  %s5382_s17 = sld [smem:[#allocation2 + $0x35]] }
  0x4d   :  { %264 = vrot.lane.b32.xlu1 %v259_v49, %s5664_s16  ;;  %262 = vrot.lane.b32.xlu0 %v257_v50, %s5664_s16  ;;  %v589_v46 = vsel %vm229_vm1, %v586_v45, %v588_v44 }
  0x51   :  { %268 = vrot.lane.b32.xlu1 %v260_v47, %s5664_s16  ;;  %266 = vrot.lane.b32.xlu0 %v261_v54, %s5664_s16  ;;  %v587_v47 = vsel %vm229_vm1, %v584_v39, %v586_v45 }
  0x55   :  { %297 = vrot.lane.b32.xlu1 %v292_v58, %s5665_s18  ;;  %295 = vrot.lane.b32.xlu0 %v290_v59, %s5665_s18 }
  0x59   :  { %301 = vrot.lane.b32.xlu1 %v293_v60, %s5665_s18  ;;  %299 = vrot.lane.b32.xlu0 %v294_v61, %s5665_s18  ;;  %v130_v60 = vmul.f32 %v128_v56, %v5726_v4  ;;  %v131_v61 = vmul.f32 %v128_v56, %v5711_v0 }
  0x5b   :  { %v141_v9 = vrot.slane %v131_v61, 1  ;;  %v312_v61 = vstv %s311_s27  ;;  %s5337_s27 = sld [smem:[#allocation8 + $0x2]] }
  0x5d   :  { %415 = vrot.lane.b32.xlu1 %v407_v63, %s5664_s16  ;;  %417 = vrot.lane.b32.xlu0 %v408_v2, %s5664_s16  ;;  %v71_v63 = vmul.f32 %v70_v57, %v5716_v1  ;;  %v72_v2 = vmul.f32 %v70_v57, %v5726_v4 }
  0x61   :  { %419 = vrot.lane.b32.xlu1 %v409_v7, %s5664_s16  ;;  %441 = vrot.lane.b32.xlu0 %v433_v8, %s5665_s18  ;;  %v220_v7 = vstv %s5307_s2  ;;  %v139_v8 = vrot.slane %v130_v60, 1  ;;  %s6222_s2 = sld [smem:[#allocation7 + $0x2]] }
  0x62   :  { %v223_v21 = vmul.f32 %v220_v7, %v5711_v0  ;;  %v224_v30 = vmul.f32 %v220_v7, %v5721_v3 }
  0x63   :  { %v142_v22 = vsel %vm137_vm0, %v139_v8, %v141_v9  ;;  %v140_v23 = vsel %vm137_vm0, %v138_v10, %v139_v8 }
  0x65   :  { %421 = vrot.lane.b32.xlu1 %v410_v11, %s5664_s16  ;;  %445 = vrot.lane.b32.xlu0 %v435_v12, %s5665_s18  ;;  %v132_v11 = vmul.f32 %v128_v56, %v5721_v3  ;;  %v73_v12 = vmul.f32 %v70_v57, %v5711_v0 }
  0x69   :  { %443 = vrot.lane.b32.xlu1 %v434_v18, %s5665_s18  ;;  %499 = vrot.lane.b32.xlu0 %v494_v19, %s5664_s16 }
  0x6d   :  { %447 = vrot.lane.b32.xlu1 %v436_v24, %s5665_s18  ;;  %503 = vrot.lane.b32.xlu0 %v498_v25, %s5664_s16  ;;  %v143_v24 = vrot.slane %v132_v11, 1  ;;  %v221_v25 = vmul.f32 %v220_v7, %v5716_v1 }
  0x6f   :  { %v144_v35 = vsel %vm137_vm0, %v141_v9, %v143_v24  ;;  %v230_v38 = vrot.slane %v221_v25, 2 }
  0x71   :  { %501 = vrot.lane.b32.xlu1 %v496_v31, %s5664_s16  ;;  %532 = vrot.lane.b32.xlu0 %v527_v32, %s5665_s18 }
  0x75   :  { %505 = vrot.lane.b32.xlu1 %v497_v20, %s5664_s16  ;;  %536 = vrot.lane.b32.xlu0 %v531_v37, %s5665_s18  ;;  %v222_v20 = vmul.f32 %v220_v7, %v5726_v4  ;;  %v233_v37 = vrot.slane %v223_v21, 2 }
  0x77   :  { %v231_v36 = vrot.slane %v222_v20, 2 }
  0x79   :  { %534 = vrot.lane.b32.xlu1 %v529_v42, %s5665_s18  ;;  %590 = vrot.lane.b32.xlu0 %v585_v43, %s5664_s16 }
  0x7d   :  { %538 = vrot.lane.b32.xlu1 %v530_v33, %s5665_s18  ;;  %594 = vrot.lane.b32.xlu0 %v589_v46, %s5664_s16 }
  0x81   :  { %592 = vrot.lane.b32.xlu1 %v587_v47, %s5664_s16  ;;  %v234_v47 = vsel %vm229_vm1, %v231_v36, %v233_v37 }
  0x85   :  { %596 = vrot.lane.b32.xlu1 %v588_v44, %s5664_s16 }
  0x9f   :  { %v90_v48 = vpop.permute.xlu1 %89  ;;  %v86_v49 = vpop.permute.xlu0 %85 }
  0xa0   :  { %v97_v13 = vadd.f32 %v86_v49, %v71_v63  ;;  %v99_v26 = vadd.f32 %v90_v48, %v73_v12  ;;  %v232_v48 = vsel %vm229_vm1, %v230_v38, %v231_v36  ;;  %v235_v49 = vrot.slane %v224_v30, 2 }
  0xa3   :  { %v92_v50 = vpop.permute.xlu1 %91  ;;  %v88_v51 = vpop.permute.xlu0 %87 }
  0xa4   :  { %v98_v15 = vadd.f32 %v88_v51, %v72_v2  ;;  %v100_v27 = vadd.f32 %v92_v50, %v74_v14 }
  0xa7   :  { %v114_v52 = vpop.permute.xlu1 %113  ;;  %v112_v53 = vpop.permute.xlu0 %111 }
  0xa8   :  { %v124_v18 = vadd.f32 %v114_v52, %v98_v15  ;;  %v123_v19 = vadd.f32 %v112_v53, %v97_v13 }
  0xaa   :  { %v150_v33 = vadd.f32 %v142_v22, %v124_v18  ;;  %v149_v34 = vadd.f32 %v140_v23, %v123_v19 }
  0xab   :  { %v118_v54 = vpop.permute.xlu1 %117  ;;  %v116_v55 = vpop.permute.xlu0 %115 }
  0xac   :  { %v126_v31 = vadd.f32 %v118_v54, %v100_v27  ;;  %v125_v32 = vadd.f32 %v116_v55, %v99_v26 }
  0xae   :  { %v152_v43 = vadd.f32 %v143_v24, %v126_v31  ;;  %v151_v44 = vadd.f32 %v144_v35, %v125_v32 }
  0xaf   :  { %v173_v58 = vpop.permute.xlu1 %172  ;;  %v171_v59 = vpop.permute.xlu0 %170 }
  0xb0   :  { %v183_v39 = vadd.f32 %v173_v58, %v150_v33  ;;  %v182_v40 = vadd.f32 %v171_v59, %v149_v34  ;;  %v236_v58 = vsel %vm229_vm1, %v233_v37, %v235_v49 }
  0xb3   :  { %v177_v5 = vpop.permute.xlu1 %176  ;;  %v175_v6 = vpop.permute.xlu0 %174 }
  0xb4   :  { %v185_v50 = vadd.f32 %v177_v5, %v152_v43  ;;  %v184_v51 = vadd.f32 %v175_v6, %v151_v44 }
  0xb7   :  { %v206_v16 = vpop.permute.xlu1 %205  ;;  %v204_v17 = vpop.permute.xlu0 %203 }
  0xb8   :  { %v216_v45 = vadd.f32 %v206_v16, %v183_v39  ;;  %v215_v46 = vadd.f32 %v204_v17, %v182_v40 }
  0xba   :  { %v242_v56 = vadd.f32 %v234_v47, %v216_v45  ;;  %v241_v57 = vadd.f32 %v232_v48, %v215_v46 }
  0xbb   :  { %v210_v28 = vpop.permute.xlu1 %209  ;;  %v208_v29 = vpop.permute.xlu0 %207 }
  0xbc   :  { %v218_v54 = vadd.f32 %v210_v28, %v185_v50  ;;  %v217_v55 = vadd.f32 %v208_v29, %v184_v51  ;;  %v607_v29 = vstv %s5318_s28  ;;  %s5351_s28 = sld [smem:[#allocation5 + $0x3]] }
  0xbd   :  { %v609_v30 = vmul.f32 %v607_v29, %v5726_v4  ;;  %v610_v31 = vmul.f32 %v607_v29, %v5711_v0  ;;  %v611_v35 = vmul.f32 %v607_v29, %v5721_v3  ;;  %v608_v38 = vmul.f32 %v607_v29, %v5716_v1 }
  0xbe   :  { %v244_v2 = vadd.f32 %v235_v49, %v218_v54  ;;  %v243_v7 = vadd.f32 %v236_v58, %v217_v55  ;;  %v400_v55 = vstv %s5310_s29  ;;  %s5367_s29 = sld [smem:[#allocation5 + $0x4]] }
  0xbf   :  { %v265_v41 = vpop.permute.xlu1 %264  ;;  %v263_v42 = vpop.permute.xlu0 %262  ;;  %v617_v33 = vrot.slane %v609_v30, 2  ;;  %v619_v34 = vrot.slane %v610_v31, 2  ;;  %v621_v37 = vrot.slane %v611_v35, 2  ;;  %v616_v39 = vrot.slane %v608_v38, 2 }
  0xc0   :  { %v275_v59 = vadd.f32 %v265_v41, %v242_v56  ;;  %v274_v60 = vadd.f32 %v263_v42, %v241_v57  ;;  %v458_v57 = vstv %s5313_s30  ;;  %v402_v58 = vmul.f32 %v400_v55, %v5726_v4  ;;  %s5329_s30 = sld [smem:[#allocation2 + $0x15]] }
  0xc1   :  { %v620_v36 = vsel %vm229_vm1, %v617_v33, %v619_v34  ;;  %v618_v40 = vsel %vm229_vm1, %v616_v39, %v617_v33  ;;  %v622_v41 = vsel %vm229_vm1, %v619_v34, %v621_v37 }
  0xc3   :  { %v269_v52 = vpop.permute.xlu1 %268  ;;  %v267_v53 = vpop.permute.xlu0 %266 }
  0xc4   :  { %v277_v5 = vadd.f32 %v269_v52, %v244_v2  ;;  %v276_v6 = vadd.f32 %v267_v53, %v243_v7 }
  0xc7   :  { %v298_v62 = vpop.permute.xlu1 %297  ;;  %v296_v63 = vpop.permute.xlu0 %295 }
  0xc8   :  { %v308_v8 = vadd.f32 %v298_v62, %v275_v59  ;;  %v307_v9 = vadd.f32 %v296_v63, %v274_v60  ;;  %v460_v59 = vmul.f32 %v458_v57, %v5726_v4  ;;  %v461_v60 = vmul.f32 %v458_v57, %v5711_v0 }
  0xca   :  { %v5855_v10 = vadd.f32 %v312_v61, %v308_v8  ;;  %v5857_v11 = vadd.f32 %v312_v61, %v307_v9  ;;  %v468_v2 = vrot.slane %v460_v59, 1  ;;  %v470_v7 = vrot.slane %v461_v60, 1 }
  0xcb   :  { %v302_v12 = vpop.permute.xlu1 %301  ;;  %v300_v13 = vpop.permute.xlu0 %299  ;;  %v401_v9 = vmul.f32 %v400_v55, %v5716_v1 }
  0xcc   :  { %v310_v14 = vadd.f32 %v302_v12, %v277_v5  ;;  %v309_v15 = vadd.f32 %v300_v13, %v276_v6  ;;  %v321_v16 = vsel %vm317_vm2, %v5855_v10, 0.0  ;;  %v318_v17 = vsel %vm317_vm2, %v5857_v11, 0.0 }
  0xcd   :  { %322 = vadd.xlane.f32.xlu1 %v321_v16  ;;  %319 = vadd.xlane.f32.xlu0 %v318_v17  ;;  %v342_v18 = vmul.f32 %v5857_v11, %v5857_v11  ;;  %v343_v26 = vmul.f32 %v5855_v10, %v5855_v10  ;;  %v459_v6 = vmul.f32 %v458_v57, %v5716_v1 }
  0xce   :  { %v5865_v19 = vadd.f32 %v312_v61, %v309_v15  ;;  %v5867_v20 = vadd.f32 %v312_v61, %v310_v14  ;;  %v471_v12 = vsel %vm137_vm0, %v468_v2, %v470_v7  ;;  %v549_v14 = vstv %s5316_s6  ;;  %s5326_s6 = sld [smem:[#allocation2 + $0x12]] }
  0xcf   :  { %v346_v21 = vsel %vm317_vm2, %v342_v18, 0.0  ;;  %v349_v27 = vsel %vm317_vm2, %v343_v26, 0.0  ;;  %v416_v42 = vpop.permute.xlu1 %415  ;;  %v418_v44 = vpop.permute.xlu0 %417  ;;  %v404_v15 = vmul.f32 %v400_v55, %v5721_v3  ;;  %v403_v17 = vmul.f32 %v400_v55, %v5711_v0 }
  0xd0   :  { %v324_v22 = vsel %vm317_vm2, %v5865_v19, 0.0  ;;  %v344_v23 = vmul.f32 %v5865_v19, %v5865_v19  ;;  %v328_v25 = vsel %vm327_vm3, %v5867_v20, 0.0  ;;  %v345_v28 = vmul.f32 %v5867_v20, %v5867_v20 }
  0xd1   :  { %347 = vadd.xlane.f32.xlu1 %v346_v21  ;;  %325 = vadd.xlane.f32.xlu0 %v324_v22  ;;  %v428_v63 = vadd.f32 %v418_v44, %v402_v58  ;;  %v427_v16 = vadd.f32 %v416_v42, %v401_v9  ;;  %v467_v21 = vrot.slane %v459_v6, 1  ;;  %v462_v22 = vmul.f32 %v458_v57, %v5721_v3 }
  0xd2   :  { %v352_v24 = vsel %vm317_vm2, %v344_v23, 0.0  ;;  %v355_v32 = vsel %vm327_vm3, %v345_v28, 0.0  ;;  %v551_v23 = vmul.f32 %v549_v14, %v5726_v4  ;;  %v550_v42 = vmul.f32 %v549_v14, %v5716_v1 }
  0xd3   :  { %v420_v43 = vpop.permute.xlu1 %419  ;;  %v442_v46 = vpop.permute.xlu0 %441  ;;  %v469_v31 = vsel %vm137_vm0, %v467_v21, %v468_v2 }
  0xd4   :  { %v429_v28 = vadd.f32 %v420_v43, %v403_v17  ;;  %v453_v29 = vadd.f32 %v442_v46, %v427_v16  ;;  %v559_v33 = vrot.slane %v551_v23, 2  ;;  %v558_v58 = vrot.slane %v550_v42, 2 }
  0xd5   :  { %353 = vadd.xlane.f32.xlu1 %v352_v24  ;;  %329 = vadd.xlane.f32.xlu0 %v328_v25  ;;  %v552_v24 = vmul.f32 %v549_v14, %v5711_v0 }
  0xd6   :  { %v478_v39 = vadd.f32 %v469_v31, %v453_v29 }
  0xd7   :  { %v422_v45 = vpop.permute.xlu1 %421  ;;  %v446_v48 = vpop.permute.xlu0 %445  ;;  %v561_v34 = vrot.slane %v552_v24, 2 }
  0xd8   :  { %v455_v38 = vadd.f32 %v446_v48, %v429_v28  ;;  %v553_v48 = vmul.f32 %v549_v14, %v5721_v3 }
  0xd9   :  { %350 = vadd.xlane.f32.xlu0 %v349_v27  ;;  %v430_v27 = vadd.f32 %v422_v45, %v404_v15  ;;  %v562_v44 = vsel %vm229_vm1, %v559_v33, %v561_v34  ;;  %v640_v15 = vstv %s5319_s7  ;;  %s5332_s7 = sld [smem:[#allocation2 + $0x18]] }
  0xda   :  { %v563_v6 = vrot.slane %v553_v48, 2 }
  0xdb   :  { %v444_v47 = vpop.permute.xlu1 %443  ;;  %v500_v50 = vpop.permute.xlu0 %499 }
  0xdc   :  { %v454_v5 = vadd.f32 %v444_v47, %v428_v63 }
  0xdd   :  { %356 = vadd.xlane.f32.xlu0 %v355_v32  ;;  %v472_v32 = vrot.slane %v462_v22, 1 }
  0xde   :  { %v479_v18 = vadd.f32 %v471_v12, %v454_v5 }
  0xdf   :  { %v448_v49 = vpop.permute.xlu1 %447  ;;  %v5894_v52 = vpop.permute.xlu0 %503 }
  0xe3   :  { %v502_v51 = vpop.permute.xlu1 %501  ;;  %v5898_v54 = vpop.permute.xlu0 %532 }
  0xe4   :  { %v512_v30 = vadd.f32 %v502_v51, %v479_v18  ;;  %v511_v51 = vadd.f32 %v500_v50, %v478_v39  ;;  %v560_v50 = vsel %vm229_vm1, %v558_v58, %v559_v33 }
  0xe6   :  { %625 = vrot.lane.b32.xlu1 %v620_v36, %s5665_s18  ;;  %v544_v9 = vadd.f32 %v5898_v54, %v511_v51  ;;  %v564_v54 = vsel %vm229_vm1, %v561_v34, %v563_v6 }
  0xe7   :  { %v5896_v53 = vpop.permute.xlu1 %505  ;;  %v5903_v61 = vpop.permute.xlu0 %536 }
  0xe8   :  { %v569_v23 = vadd.f32 %v560_v50, %v544_v9 }
  0xea   :  { %629 = vrot.lane.b32.xlu1 %v621_v37, %s5665_s18  ;;  %v456_v37 = vadd.f32 %v448_v49, %v430_v27 }
  0xeb   :  { %v535_v56 = vpop.permute.xlu1 %534  ;;  %v5907_v8 = vpop.permute.xlu0 %590 }
  0xec   :  { %v481_v46 = vadd.f32 %v472_v32, %v456_v37 }
  0xee   :  { %v514_v63 = vadd.f32 %v5896_v53, %v481_v46 }
  0xef   :  { %v5905_v62 = vpop.permute.xlu1 %538  ;;  %v5917_v25 = vpop.permute.xlu0 %594 }
  0xf0   :  { %v547_v21 = vadd.f32 %v5905_v62, %v514_v63  ;;  %v602_v62 = vadd.f32 %v5907_v8, %v569_v23 }
  0xf3   :  { %623 = vrot.lane.b32.xlu0 %v618_v40, %s5665_s18  ;;  %v593_v13 = vpop.permute.xlu1 %592  ;;  %v545_v40 = vadd.f32 %v535_v56, %v512_v30  ;;  %v572_v30 = vadd.f32 %v563_v6, %v547_v21 }
  0xf5   :  { %v570_v57 = vadd.f32 %v562_v44, %v545_v40 }
  0xf7   :  { %627 = vrot.lane.b32.xlu0 %v622_v41, %s5665_s18  ;;  %v5919_v26 = vpop.permute.xlu1 %596  ;;  %v473_v41 = vsel %vm137_vm0, %v470_v7, %v472_v32  ;;  %v603_v5 = vadd.f32 %v593_v13, %v570_v57 }
  0xf8   :  { %v480_v55 = vadd.f32 %v473_v41, %v455_v38  ;;  %v605_v34 = vadd.f32 %v5919_v26, %v572_v30 }
  0xfa   :  { %v513_v7 = vadd.f32 %v5894_v52, %v480_v55 }
  0xfc   :  { %v546_v53 = vadd.f32 %v5903_v61, %v513_v7 }
  0xfe   :  { %v571_v61 = vadd.f32 %v564_v54, %v546_v53  ;;  %v758_v53 = vstv %s5328_s10  ;;  %s5335_s10 = sld [smem:[#allocation5 + $0x2]] }
 0x100   :  { %v604_v40 = vadd.f32 %v5917_v25, %v571_v61 }
 0x156   :  { %v323_v35 = vpop.xlane.xlu1 %322  ;;  %v320_v36 = vpop.xlane.xlu0 %319 }
 0x157   :  { %v331_v47 = vadd.f32 %v323_v35, %v320_v36 }
 0x15a   :  { %v348_v43 = vpop.xlane.xlu1 %347  ;;  %v326_v45 = vpop.xlane.xlu0 %325 }
 0x15b   :  { %v332_v49 = vadd.f32 %v331_v47, %v326_v45 }
 0x15e   :  { %v354_v56 = vpop.xlane.xlu1 %353  ;;  %v330_v59 = vpop.xlane.xlu0 %329 }
 0x15f   :  { %v334_v60 = vsel %vm333_vm4, %v330_v59, 0.0 }
 0x160   :  { %v335_v2 = vadd.f32 %v334_v60, %v332_v49 }
 0x162   :  { %v336_v12 = vrot.slane %v335_v2, 4  ;;  %v626_v16 = vpop.permute.xlu1 %625  ;;  %v351_v14 = vpop.xlane.xlu0 %350 }
 0x163   :  { %v636_v17 = vadd.f32 %v626_v16, %v603_v5  ;;  %v358_v18 = vadd.f32 %v351_v14, %v348_v43 }
 0x164   :  { %v337_v22 = vadd.f32 %v336_v12, %v335_v2 }
 0x165   :  { %v5933_v24 = vadd.f32 %v640_v15, %v636_v17  ;;  %v359_v52 = vadd.f32 %v358_v18, %v354_v56  ;;  %v379_v17 = vstv %s378_s9  ;;  %s5321_s9 = sld [smem:[#allocation8 + $0x1]] }
 0x166   :  { %v338_v13 = vrot.slane %v337_v22, 2  ;;  %v357_v27 = vpop.xlane.xlu0 %356  ;;  %v630_v37 = vpop.permute.xlu1 %629 }
 0x167   :  { %v360_v28 = vsel %vm333_vm4, %v357_v27, 0.0  ;;  %v648_v29 = vsel %vm317_vm2, %v5933_v24, 0.0  ;;  %v638_v42 = vadd.f32 %v630_v37, %v605_v34  ;;  %v668_v7 = vmul.f32 %v5933_v24, %v5933_v24 }
 0x168   :  { %v339_v31 = vadd.f32 %v338_v13, %v337_v22  ;;  %v361_v32 = vadd.f32 %v360_v28, %v359_v52  ;;  %649 = vadd.xlane.f32.xlu1 %v648_v29  ;;  %v386_v27 = vstv %s385_s11  ;;  %v809_v28 = vstv %s5330_s3  ;;  %s5359_s3 = sld [smem:[#allocation2 + $0x25]] }
 0x169   :  { %v5951_v25 = vadd.f32 %v640_v15, %v638_v42  ;;  %v674_v50 = vsel %vm317_vm2, %v668_v7, 0.0  ;;  %v6034_v7 = vld [vmem:[%s8439_s0 + $0x10] sm:$0xff]  ;;  %s5398_s11 = sld [smem:[#allocation2 + $0x3e]] }
 0x16a   :  { %v362_v33 = vrot.slane %v361_v32, 4  ;;  %v624_v35 = vpop.permute.xlu0 %623  ;;  %v340_v36 = vrot.slane %v339_v31, 1 }
 0x16b   :  { %v635_v38 = vadd.f32 %v624_v35, %v602_v62  ;;  %v654_v2 = vsel %vm327_vm3, %v5951_v25, 0.0  ;;  %v670_v6 = vmul.f32 %v5951_v25, %v5951_v25 }
 0x16c   :  { %v363_v39 = vadd.f32 %v362_v33, %v361_v32  ;;  %v341_v45 = vadd.f32 %v340_v36, %v339_v31 }
 0x16d   :  { %v5942_v41 = vadd.f32 %v640_v15, %v635_v38  ;;  %v680_v12 = vsel %vm327_vm3, %v670_v6, 0.0 }
 0x16e   :  { %v364_v44 = vrot.slane %v363_v39, 2  ;;  %v628_v43 = vpop.permute.xlu0 %627  ;;  %v368_v57 = vmul.f32 0.00147929, %v341_v45  ;;  %v810_v45 = vmul.f32 %v809_v28, %v5716_v1 }
 0x16f   :  { %v637_v46 = vadd.f32 %v628_v43, %v604_v40  ;;  %v645_v8 = vsel %vm317_vm2, %v5942_v41, 0.0  ;;  %v667_v47 = vmul.f32 %v5942_v41, %v5942_v41  ;;  %v759_v43 = vmul.f32 %v758_v53, %v5716_v1 }
 0x170   :  { %646 = vadd.xlane.f32.xlu0 %v645_v8  ;;  %v365_v51 = vadd.f32 %v364_v44, %v363_v39  ;;  %v370_v60 = vmul.f32 %v368_v57, %v368_v57  ;;  %v374_v21 = vsub.f32 %v5857_v11, %v368_v57  ;;  %v375_v23 = vsub.f32 %v5855_v10, %v368_v57 }
 0x171   :  { %v5948_v55 = vadd.f32 %v640_v15, %v637_v46  ;;  %v671_v26 = vsel %vm317_vm2, %v667_v47, 0.0  ;;  %v732_v15 = vstv %s5327_s8  ;;  %v376_v52 = vsub.f32 %v5865_v19, %v368_v57  ;;  %s6083_s8 = sld [smem:[#allocation7 + $0x1]] }
 0x172   :  { %672 = vadd.xlane.f32.xlu1 %v671_v26  ;;  %v366_v58 = vrot.slane %v365_v51, 1  ;;  %v733_v16 = vmul.f32 %v732_v15, %v5716_v1  ;;  %v735_v14 = vmul.f32 %v732_v15, %v5711_v0  ;;  %v736_v22 = vmul.f32 %v732_v15, %v5721_v3 }
 0x173   :  { %v651_v48 = vsel %vm317_vm2, %v5948_v55, 0.0  ;;  %v669_v49 = vmul.f32 %v5948_v55, %v5948_v55  ;;  %v377_v54 = vsub.f32 %v5867_v20, %v368_v57  ;;  %v760_v11 = vmul.f32 %v758_v53, %v5726_v4 }
 0x174   :  { %652 = vadd.xlane.f32.xlu0 %v651_v48  ;;  %v367_v56 = vadd.f32 %v366_v58, %v365_v51  ;;  %v811_v19 = vmul.f32 %v809_v28, %v5726_v4  ;;  %v812_v20 = vmul.f32 %v809_v28, %v5711_v0  ;;  %v734_v34 = vmul.f32 %v732_v15, %v5726_v4 }
 0x175   :  { %v677_v59 = vsel %vm317_vm2, %v669_v49, 0.0  ;;  %v762_v39 = vmul.f32 %v758_v53, %v5721_v3  ;;  %v842_v44 = vstv %s5331_s12  ;;  %v813_v46 = vmul.f32 %v809_v28, %v5721_v3  ;;  %v6015_v3 = vld [vmem:[%s8439_s0] sm:$0xff]  ;;  %s5360_s12 = sld [smem:[#allocation2 + $0x26]] }
 0x176   :  { %678 = vadd.xlane.f32.xlu1 %v677_v59  ;;  %v369_v63 = vmul.f32 0.00147929, %v367_v56  ;;  %v819_v40 = vrot.slane %v811_v19, 1  ;;  %v821_v42 = vrot.slane %v812_v20, 1  ;;  %v844_v47 = vmul.f32 %v842_v44, %v5726_v4  ;;  %v6021_v4 = vld [vmem:[%s8439_s0 + $0x18] sm:$0xf] }
 0x177   :  { %v845_v51 = vmul.f32 %v842_v44, %v5711_v0  ;;  %v761_v26 = vmul.f32 %v758_v53, %v5711_v0  ;;  %v818_v57 = vrot.slane %v810_v45, 1  ;;  %v823_v58 = vrot.slane %v813_v46, 1 }
 0x178   :  { %655 = vadd.xlane.f32.xlu0 %v654_v2  ;;  %v371_v9 = vsub.f32 %v369_v63, %v370_v60  ;;  %v822_v8 = vsel %vm137_vm0, %v819_v40, %v821_v42  ;;  %v852_v48 = vrot.slane %v844_v47, 1  ;;  %v900_v56 = vstv %s5333_s22  ;;  %v6028_v63 = vld [vmem:[%s8439_s0 + $0x8] sm:$0xff]  ;;  %s5347_s22 = sld [smem:[#allocation2 + $0x20]] }
 0x179   :  { %v854_v49 = vrot.slane %v845_v51, 1  ;;  %v820_v1 = vsel %vm137_vm0, %v818_v57, %v819_v40  ;;  %v843_v0 = vmul.f32 %v6015_v3, %v842_v44  ;;  %v846_v59 = vmul.f32 %v6021_v4, %v842_v44 }
 0x17a   :  { %v372_v5 = vadd.f32 1e-05, %v371_v9  ;;  %v902_v2 = vmul.f32 %v6028_v63, %v900_v56  ;;  %v903_v9 = vmul.f32 %v6034_v7, %v900_v56 }
 0x17b   :  { %v855_v60 = vsel %vm137_vm0, %v852_v48, %v854_v49  ;;  %v856_v6 = vrot.slane %v846_v59, 1 }
 0x17c   :  { %675 = vadd.xlane.f32.xlu0 %v674_v50  ;;  %5556 = vrsqrt.f32 %v372_v5  ;;  %v824_v5 = vsel %vm137_vm0, %v821_v42, %v823_v58  ;;  %v851_v50 = vrot.slane %v843_v0, 1  ;;  %v912_v15 = vrot.slane %v903_v9, 2 }
 0x180   :  { %681 = vadd.xlane.f32.xlu0 %v680_v12  ;;  %v910_v12 = vrot.slane %v902_v2, 2 }
 0x187   :  { %741 = vrot.lane.b32.xlu1 %v733_v16, %s5664_s16  ;;  %v933_v16 = vstv %s5334_s23  ;;  %s5349_s23 = sld [smem:[#allocation2 + $0x22]] }
 0x188   :  { %v936_v53 = vmul.f32 %v6034_v7, %v933_v16 }
 0x189   :  { %v5557_v18 = vpop.eup %5556 }
 0x18a   :  { %v380_v13 = vmul.f32 %v5557_v18, %v379_v17  ;;  %v901_v17 = vmul.f32 %v6015_v3, %v900_v56  ;;  %v904_v18 = vmul.f32 %v6021_v4, %v900_v56 }
 0x18b   :  { %745 = vrot.lane.b32.xlu1 %v735_v14, %s5664_s16  ;;  %v853_v14 = vsel %vm137_vm0, %v851_v50, %v852_v48 }
 0x18c   :  { %v381_v29 = vmul.f32 %v380_v13, %v374_v21  ;;  %v382_v30 = vmul.f32 %v380_v13, %v375_v23  ;;  %v383_v31 = vmul.f32 %v380_v13, %v376_v52  ;;  %v384_v32 = vmul.f32 %v380_v13, %v377_v54 }
 0x18d   :  { %v913_v21 = vsel %vm229_vm1, %v910_v12, %v912_v15  ;;  %v857_v23 = vsel %vm137_vm0, %v854_v49, %v856_v6  ;;  %v909_v52 = vrot.slane %v901_v17, 2  ;;  %v914_v54 = vrot.slane %v904_v18, 2 }
 0x18e   :  { %v387_v62 = vadd.f32 %v386_v27, %v381_v29  ;;  %v388_v61 = vadd.f32 %v386_v27, %v382_v30  ;;  %v389_v33 = vadd.f32 %v386_v27, %v383_v31  ;;  %v390_v10 = vadd.f32 %v386_v27, %v384_v32 }
 0x18f   :  { %747 = vrot.lane.b32.xlu1 %v736_v22, %s5664_s16  ;;  %v935_v22 = vmul.f32 %v6028_v63, %v933_v16  ;;  %v945_v27 = vrot.slane %v936_v53, 2  ;;  %v911_v28 = vsel %vm229_vm1, %v909_v52, %v910_v12  ;;  %v934_v29 = vmul.f32 %v6015_v3, %v933_v16 }
 0x190   :  { %v391_v35 = vmax.f32 %v387_v62, 0.0  ;;  %v392_v36 = vmax.f32 %v388_v61, 0.0  ;;  %v393_v37 = vmax.f32 %v389_v33, 0.0  ;;  %v394_v38 = vmax.f32 %v390_v10, 0.0 }
 0x191   :  { %v943_v13 = vrot.slane %v935_v22, 2  ;;  %v937_v30 = vmul.f32 %v6021_v4, %v933_v16  ;;  %v915_v32 = vsel %vm229_vm1, %v912_v15, %v914_v54  ;;  %v726_v18 = vstv %s5326_s6  ;;  %s5391_s6 = sld [smem:[#allocation2 + $0x37]] }
 0x192   :  { %395 = vst.msk [vmem:[%s8444_s5] sm:$0xff] %vm317_vm2, %v391_v35  ;;  %396 = vst.msk [vmem:[%s8444_s5 + $0x8] sm:$0xff] %vm317_vm2, %v392_v36  ;;  %v728_v22 = vmul.f32 %v6028_v63, %v726_v18 }
 0x193   :  { %397 = vst.msk [vmem:[%s8444_s5 + $0x10] sm:$0xff] %vm317_vm2, %v393_v37  ;;  %769 = vrot.lane.b32.xlu1 %v760_v11, %s5665_s18  ;;  %v946_v31 = vsel %vm229_vm1, %v943_v13, %v945_v27  ;;  %v942_v11 = vrot.slane %v934_v29, 2  ;;  %v947_v62 = vrot.slane %v937_v30, 2  ;;  %v727_v30 = vmul.f32 %v6015_v3, %v726_v18 }
 0x194   :  { %398 = vst.msk [vmem:[%s8444_s5 + $0x18] sm:$0x3] %vm327_vm3, %v394_v38 }
 0x195   :  { %v944_v61 = vsel %vm229_vm1, %v942_v11, %v943_v13  ;;  %v948_v33 = vsel %vm229_vm1, %v945_v27, %v947_v62 }
 0x196   :  { %743 = vrot.lane.b32.xlu0 %v734_v34, %s5664_s16 }
 0x197   :  { %773 = vrot.lane.b32.xlu1 %v762_v39, %s5665_s18 }
 0x19a   :  { %767 = vrot.lane.b32.xlu0 %v759_v43, %s5665_s18 }
 0x19b   :  { %827 = vrot.lane.b32.xlu1 %v822_v8, %s5664_s16 }
 0x19e   :  { %771 = vrot.lane.b32.xlu0 %v761_v26, %s5665_s18 }
 0x19f   :  { %831 = vrot.lane.b32.xlu1 %v823_v58, %s5664_s16 }
 0x1a2   :  { %825 = vrot.lane.b32.xlu0 %v820_v1, %s5664_s16 }
 0x1a3   :  { %860 = vrot.lane.b32.xlu1 %v855_v60, %s5665_s18 }
 0x1a6   :  { %829 = vrot.lane.b32.xlu0 %v824_v5, %s5664_s16 }
 0x1a7   :  { %864 = vrot.lane.b32.xlu1 %v856_v6, %s5665_s18 }
 0x1aa   :  { %858 = vrot.lane.b32.xlu0 %v853_v14, %s5665_s18  ;;  %v784_v14 = vstv %s5329_s30  ;;  %s5427_s30 = sld [smem:[#allocation2 + $0x2]] }
 0x1ab   :  { %918 = vrot.lane.b32.xlu1 %v913_v21, %s5664_s16  ;;  %v787_v13 = vmul.f32 %v6034_v7, %v784_v14  ;;  %v785_v29 = vmul.f32 %v6015_v3, %v784_v14 }
 0x1ae   :  { %862 = vrot.lane.b32.xlu0 %v857_v23, %s5665_s18 }
 0x1af   :  { %922 = vrot.lane.b32.xlu1 %v914_v54, %s5664_s16  ;;  %v786_v54 = vmul.f32 %v6028_v63, %v784_v14 }
 0x1b2   :  { %916 = vrot.lane.b32.xlu0 %v911_v28, %s5664_s16 }
 0x1b3   :  { %951 = vrot.lane.b32.xlu1 %v946_v31, %s5665_s18 }
 0x1b6   :  { %920 = vrot.lane.b32.xlu0 %v915_v32, %s5664_s16 }
 0x1b7   :  { %955 = vrot.lane.b32.xlu1 %v947_v62, %s5665_s18  ;;  %v794_v62 = vrot.slane %v786_v54, 1 }
 0x1ba   :  { %949 = vrot.lane.b32.xlu0 %v944_v61, %s5665_s18  ;;  %v796_v61 = vrot.slane %v787_v13, 1  ;;  %v711_v13 = vstv %s5321_s9  ;;  %s5395_s9 = sld [smem:[#allocation2 + $0x3b]] }
 0x1be   :  { %953 = vrot.lane.b32.xlu0 %v948_v33, %s5665_s18  ;;  %v788_v33 = vmul.f32 %v6021_v4, %v784_v14 }
 0x1f1   :  { %v650_v10 = vpop.xlane.xlu1 %649 }
 0x1f9   :  { %v647_v19 = vpop.xlane.xlu0 %646 }
 0x1fa   :  { %v657_v36 = vadd.f32 %v650_v10, %v647_v19  ;;  %v729_v10 = vmul.f32 %v6034_v7, %v726_v18  ;;  %v730_v19 = vmul.f32 %v6021_v4, %v726_v18 }
 0x1fb   :  { %v673_v20 = vpop.xlane.xlu1 %672 }
 0x1fd   :  { %v653_v35 = vpop.xlane.xlu0 %652 }
 0x1fe   :  { %v658_v38 = vadd.f32 %v657_v36, %v653_v35  ;;  %v875_v35 = vstv %s5332_s7  ;;  %v793_v36 = vrot.slane %v785_v29, 1  ;;  %s5392_s7 = sld [smem:[#allocation2 + $0x38]] }
 0x1ff   :  { %v679_v37 = vpop.xlane.xlu1 %678 }
 0x201   :  { %v656_v34 = vpop.xlane.xlu0 %655 }
 0x202   :  { %v659_v39 = vsel %vm333_vm4, %v656_v34, 0.0 }
 0x203   :  { %v660_v40 = vadd.f32 %v659_v39, %v658_v38  ;;  %v742_v42 = vpop.permute.xlu1 %741  ;;  %v797_v39 = vsel %vm137_vm0, %v794_v62, %v796_v61 }
 0x205   :  { %v661_v44 = vrot.slane %v660_v40, 4  ;;  %v676_v43 = vpop.xlane.xlu0 %675 }
 0x206   :  { %v683_v45 = vadd.f32 %v676_v43, %v673_v20  ;;  %v878_v43 = vmul.f32 %v6034_v7, %v875_v35 }
 0x207   :  { %v662_v46 = vadd.f32 %v661_v44, %v660_v40  ;;  %v746_v8 = vpop.permute.xlu1 %745  ;;  %v798_v40 = vrot.slane %v788_v33, 1  ;;  %v877_v44 = vmul.f32 %v6028_v63, %v875_v35 }
 0x208   :  { %v684_v47 = vadd.f32 %v683_v45, %v679_v37  ;;  %v753_v37 = vadd.f32 %v742_v42, %v727_v30  ;;  %v755_v45 = vadd.f32 %v746_v8, %v729_v10  ;;  %v876_v42 = vmul.f32 %v6015_v3, %v875_v35 }
 0x209   :  { %v663_v51 = vrot.slane %v662_v46, 2  ;;  %v682_v26 = vpop.xlane.xlu0 %681  ;;  %v887_v8 = vrot.slane %v878_v43, 2 }
 0x20a   :  { %v685_v57 = vsel %vm333_vm4, %v682_v26, 0.0  ;;  %v795_v26 = vsel %vm137_vm0, %v793_v36, %v794_v62 }
 0x20b   :  { %v664_v58 = vadd.f32 %v663_v51, %v662_v46  ;;  %v686_v48 = vadd.f32 %v685_v57, %v684_v47  ;;  %v748_v49 = vpop.permute.xlu1 %747  ;;  %v879_v57 = vmul.f32 %v6021_v4, %v875_v35  ;;  %v966_v35 = vstv %s5335_s10  ;;  %s5397_s10 = sld [smem:[#allocation2 + $0x3d]] }
 0x20c   :  { %v756_v46 = vadd.f32 %v748_v49, %v730_v19 }
 0x20d   :  { %v687_v56 = vrot.slane %v686_v48, 4  ;;  %v744_v1 = vpop.permute.xlu0 %743  ;;  %v665_v0 = vrot.slane %v664_v58, 1 }
 0x20e   :  { %v754_v31 = vadd.f32 %v744_v1, %v728_v22  ;;  %v799_v1 = vsel %vm137_vm0, %v796_v61, %v798_v40 }
 0x20f   :  { %v688_v59 = vadd.f32 %v687_v56, %v686_v48  ;;  %v770_v60 = vpop.permute.xlu1 %769  ;;  %v666_v5 = vadd.f32 %v665_v0, %v664_v58  ;;  %v885_v0 = vrot.slane %v877_v44, 2 }
 0x210   :  { %v780_v38 = vadd.f32 %v770_v60, %v754_v31 }
 0x211   :  { %v689_v2 = vrot.slane %v688_v59, 2  ;;  %v768_v9 = vpop.permute.xlu0 %767  ;;  %v6068_v15 = vmul.f32 0.00147929, %v666_v5  ;;  %v889_v5 = vrot.slane %v879_v57, 2 }
 0x212   :  { %v779_v47 = vadd.f32 %v768_v9, %v753_v37  ;;  %v805_v48 = vadd.f32 %v797_v39, %v780_v38  ;;  %v884_v9 = vrot.slane %v876_v42, 2 }
 0x213   :  { %v774_v50 = vpop.permute.xlu1 %773  ;;  %v690_v6 = vadd.f32 %v689_v2, %v688_v59  ;;  %v695_v23 = vmul.f32 %v6068_v15, %v6068_v15  ;;  %v699_v29 = vsub.f32 %v5942_v41, %v6068_v15  ;;  %v700_v62 = vsub.f32 %v5933_v24, %v6068_v15 }
 0x214   :  { %v782_v59 = vadd.f32 %v774_v50, %v756_v46  ;;  %v804_v49 = vadd.f32 %v795_v26, %v779_v47  ;;  %v886_v50 = vsel %vm229_vm1, %v884_v9, %v885_v0  ;;  %v702_v61 = vsub.f32 %v5951_v25, %v6068_v15 }
 0x215   :  { %v772_v12 = vpop.permute.xlu0 %771  ;;  %v691_v16 = vrot.slane %v690_v6, 1 }
 0x216   :  { %v781_v58 = vadd.f32 %v772_v12, %v755_v45  ;;  %v888_v12 = vsel %vm229_vm1, %v885_v0, %v887_v8  ;;  %v807_v22 = vadd.f32 %v798_v40, %v782_v59 }
 0x217   :  { %v828_v17 = vpop.permute.xlu1 %827  ;;  %v692_v21 = vadd.f32 %v691_v16, %v690_v6 }
 0x218   :  { %v838_v60 = vadd.f32 %v828_v17, %v805_v48  ;;  %v806_v16 = vadd.f32 %v799_v1, %v781_v58  ;;  %v890_v17 = vsel %vm229_vm1, %v887_v8, %v889_v5 }
 0x219   :  { %v826_v53 = vpop.permute.xlu0 %825  ;;  %v694_v52 = vmul.f32 0.00147929, %v692_v21  ;;  %v704_v21 = vstv %s6083_s8  ;;  %s5394_s8 = sld [smem:[#allocation2 + $0x3a]] }
 0x21a   :  { %v837_v6 = vadd.f32 %v826_v53, %v804_v49 }
 0x21b   :  { %v832_v27 = vpop.permute.xlu1 %831  ;;  %v696_v28 = vsub.f32 %v694_v52, %v695_v23 }
 0x21c   :  { %v840_v53 = vadd.f32 %v832_v27, %v807_v22 }
 0x21d   :  { %v830_v32 = vpop.permute.xlu0 %829  ;;  %v697_v11 = vadd.f32 1e-05, %v696_v28 }
 0x21e   :  { %v839_v23 = vadd.f32 %v830_v32, %v806_v16  ;;  %v701_v32 = vsub.f32 %v5948_v55, %v6068_v15 }
 0x21f   :  { %v861_v20 = vpop.permute.xlu1 %860  ;;  %5558 = vrsqrt.f32 %v697_v11 }
 0x220   :  { %v871_v14 = vadd.f32 %v861_v20, %v838_v60 }
 0x221   :  { %v859_v34 = vpop.permute.xlu0 %858 }
 0x222   :  { %v870_v52 = vadd.f32 %v859_v34, %v837_v6  ;;  %v896_v31 = vadd.f32 %v888_v12, %v871_v14 }
 0x223   :  { %v865_v51 = vpop.permute.xlu1 %864 }
 0x224   :  { %v873_v10 = vadd.f32 %v865_v51, %v840_v53  ;;  %v895_v20 = vadd.f32 %v886_v50, %v870_v52  ;;  %v1058_v52 = vstv %s5343_s19  ;;  %s5377_s19 = sld [smem:[#allocation2 + $0x30]] }
 0x225   :  { %v863_v56 = vpop.permute.xlu0 %862  ;;  %v1062_v50 = vmul.f32 %v6021_v4, %v1058_v52 }
 0x226   :  { %v872_v30 = vadd.f32 %v863_v56, %v839_v23  ;;  %v898_v46 = vadd.f32 %v889_v5, %v873_v10 }
 0x227   :  { %v919_v2 = vpop.permute.xlu1 %918 }
 0x228   :  { %v929_v19 = vadd.f32 %v919_v2, %v896_v31  ;;  %v897_v39 = vadd.f32 %v890_v17, %v872_v30  ;;  %v1084_v17 = vstv %s5344_s20  ;;  %v1060_v31 = vmul.f32 %v6028_v63, %v1058_v52  ;;  %s5374_s20 = sld [smem:[#allocation2 + $0x2d]] }
 0x229   :  { %v917_v18 = vpop.permute.xlu0 %916 }
 0x22a   :  { %v928_v34 = vadd.f32 %v917_v18, %v895_v20 }
 0x22b   :  { %v923_v54 = vpop.permute.xlu1 %922 }
 0x22c   :  { %v5559_v28 = vpop.eup %5558  ;;  %v931_v48 = vadd.f32 %v923_v54, %v898_v46  ;;  %v1059_v54 = vmul.f32 %v6015_v3, %v1058_v52 }
 0x22d   :  { %v921_v11 = vpop.permute.xlu0 %920  ;;  %v705_v33 = vmul.f32 %v5559_v28, %v704_v21  ;;  %v1135_v28 = vstv %s5346_s21  ;;  %s5380_s21 = sld [smem:[#allocation2 + $0x33]] }
 0x22e   :  { %v930_v25 = vadd.f32 %v921_v11, %v897_v39  ;;  %v1137_v53 = vmul.f32 %v6028_v63, %v1135_v28  ;;  %v1138_v30 = vmul.f32 %v6034_v7, %v1135_v28  ;;  %v1088_v11 = vmul.f32 %v6021_v4, %v1084_v17 }
 0x22f   :  { %v952_v36 = vpop.permute.xlu1 %951  ;;  %v706_v41 = vmul.f32 %v705_v33, %v699_v29  ;;  %v707_v27 = vmul.f32 %v705_v33, %v700_v62  ;;  %v708_v37 = vmul.f32 %v705_v33, %v701_v32  ;;  %v709_v38 = vmul.f32 %v705_v33, %v702_v61 }
 0x230   :  { %v962_v40 = vadd.f32 %v952_v36, %v929_v19  ;;  %v1086_v29 = vmul.f32 %v6028_v63, %v1084_v17  ;;  %v1145_v62 = vrot.slane %v1137_v53, 1  ;;  %v1147_v32 = vrot.slane %v1138_v30, 1 }
 0x231   :  { %v950_v24 = vpop.permute.xlu0 %949  ;;  %v712_v44 = vadd.f32 %v711_v13, %v706_v41  ;;  %v713_v43 = vadd.f32 %v711_v13, %v707_v27  ;;  %v714_v55 = vadd.f32 %v711_v13, %v708_v37  ;;  %v715_v45 = vadd.f32 %v711_v13, %v709_v38 }
 0x232   :  { %v6101_v15 = vadd.f32 %v966_v35, %v962_v40  ;;  %v961_v47 = vadd.f32 %v950_v24, %v928_v34  ;;  %v1061_v13 = vmul.f32 %v6034_v7, %v1058_v52  ;;  %v1168_v61 = vstv %s5347_s22  ;;  %s6520_s22 = sld [smem:[#allocation7 + $0x4]] }
 0x233   :  { %v716_v51 = vmax.f32 %v712_v44, 0.0  ;;  %v717_v26 = vmax.f32 %v713_v43, 0.0  ;;  %v718_v42 = vmax.f32 %v714_v55, 0.0  ;;  %v719_v57 = vmax.f32 %v715_v45, 0.0  ;;  %v956_v58 = vpop.permute.xlu1 %955 }
 0x234   :  { %v6103_v56 = vadd.f32 %v966_v35, %v961_v47  ;;  %v974_v1 = vsel %vm317_vm2, %v6101_v15, 0.0  ;;  %v964_v59 = vadd.f32 %v956_v58, %v931_v48  ;;  %v994_v12 = vmul.f32 %v6101_v15, %v6101_v15 }
 0x235   :  { %v954_v0 = vpop.permute.xlu0 %953  ;;  %5322 = vst.msk [vmem:[%s8444_s5 + $0x20] sm:$0xff] %vm317_vm2, %v716_v51  ;;  %5323 = vst.msk [vmem:[%s8444_s5 + $0x28] sm:$0xff] %vm317_vm2, %v717_v26  ;;  %975 = vadd.xlane.f32.xlu1 %v974_v1  ;;  %v1085_v33 = vmul.f32 %v6015_v3, %v1084_v17  ;;  %v1136_v10 = vmul.f32 %v6015_v3, %v1135_v28  ;;  %v1139_v19 = vmul.f32 %v6021_v4, %v1135_v28 }
 0x236   :  { %5324 = vst.msk [vmem:[%s8444_s5 + $0x30] sm:$0xff] %vm317_vm2, %v718_v42  ;;  %v963_v8 = vadd.f32 %v954_v0, %v930_v25  ;;  %v971_v60 = vsel %vm317_vm2, %v6103_v56, 0.0  ;;  %v993_v49 = vmul.f32 %v6103_v56, %v6103_v56  ;;  %v6134_v16 = vadd.f32 %v966_v35, %v964_v59 }
 0x237   :  { %5325 = vst.msk [vmem:[%s8444_s5 + $0x38] sm:$0x3] %vm327_vm3, %v719_v57  ;;  %972 = vadd.xlane.f32.xlu0 %v971_v60  ;;  %v1000_v21 = vsel %vm317_vm2, %v994_v12, 0.0  ;;  %v1148_v20 = vsel %vm137_vm0, %v1145_v62, %v1147_v32  ;;  %v1171_v36 = vmul.f32 %v6034_v7, %v1168_v61  ;;  %v1087_v41 = vmul.f32 %v6034_v7, %v1084_v17 }
 0x238   :  { %v6127_v2 = vadd.f32 %v966_v35, %v963_v8  ;;  %v997_v9 = vsel %vm317_vm2, %v993_v49, 0.0  ;;  %v980_v18 = vsel %vm327_vm3, %v6134_v16, 0.0  ;;  %v996_v22 = vmul.f32 %v6134_v16, %v6134_v16 }
 0x239   :  { %998 = vadd.xlane.f32.xlu1 %v997_v9  ;;  %v1170_v35 = vmul.f32 %v6028_v63, %v1168_v61  ;;  %v1144_v27 = vrot.slane %v1136_v10, 1  ;;  %v1149_v37 = vrot.slane %v1139_v19, 1  ;;  %v1180_v34 = vrot.slane %v1171_v36, 1 }
 0x23a   :  { %v977_v5 = vsel %vm317_vm2, %v6127_v2, 0.0  ;;  %v995_v6 = vmul.f32 %v6127_v2, %v6127_v2  ;;  %v1006_v23 = vsel %vm327_vm3, %v996_v22, 0.0  ;;  %v1226_v39 = vstv %s5349_s23  ;;  %s5369_s23 = sld [smem:[#allocation8 + $0x4]] }
 0x23b   :  { %978 = vadd.xlane.f32.xlu0 %v977_v5  ;;  %v1178_v38 = vrot.slane %v1170_v35, 1  ;;  %v1146_v40 = vsel %vm137_vm0, %v1144_v27, %v1145_v62  ;;  %v1169_v24 = vmul.f32 %v6015_v3, %v1168_v61  ;;  %v1172_v44 = vmul.f32 %v6021_v4, %v1168_v61 }
 0x23c   :  { %v1003_v14 = vsel %vm317_vm2, %v995_v6, 0.0  ;;  %v1228_v55 = vmul.f32 %v6028_v63, %v1226_v39  ;;  %v1229_v45 = vmul.f32 %v6034_v7, %v1226_v39  ;;  %v1150_v46 = vsel %vm137_vm0, %v1147_v32, %v1149_v37 }
 0x23d   :  { %1004 = vadd.xlane.f32.xlu1 %v1003_v14  ;;  %v1181_v43 = vsel %vm137_vm0, %v1178_v38, %v1180_v34  ;;  %v1177_v25 = vrot.slane %v1169_v24, 1  ;;  %v1182_v47 = vrot.slane %v1172_v44, 1  ;;  %v1259_v42 = vstv %s5350_s24  ;;  %s5383_s24 = sld [smem:[#allocation5 + $0x5]] }
 0x23e   :  { %v1236_v51 = vrot.slane %v1228_v55, 2  ;;  %v1238_v26 = vrot.slane %v1229_v45, 2  ;;  %v1227_v58 = vmul.f32 %v6015_v3, %v1226_v39  ;;  %v1230_v48 = vmul.f32 %v6021_v4, %v1226_v39 }
 0x23f   :  { %981 = vadd.xlane.f32.xlu0 %v980_v18  ;;  %v1179_v57 = vsel %vm137_vm0, %v1177_v25, %v1178_v38  ;;  %v1261_v0 = vmul.f32 %v6028_v63, %v1259_v42  ;;  %v1262_v8 = vmul.f32 %v6034_v7, %v1259_v42  ;;  %v1183_v59 = vsel %vm137_vm0, %v1180_v34, %v1182_v47 }
 0x240   :  { %v1239_v1 = vsel %vm229_vm1, %v1236_v51, %v1238_v26  ;;  %v1235_v60 = vrot.slane %v1227_v58, 2  ;;  %v1240_v49 = vrot.slane %v1230_v48, 2  ;;  %v1260_v14 = vmul.f32 %v6015_v3, %v1259_v42 }
 0x241   :  { %v1269_v9 = vrot.slane %v1261_v0, 2  ;;  %v1271_v5 = vrot.slane %v1262_v8, 2  ;;  %v1263_v18 = vmul.f32 %v6021_v4, %v1259_v42  ;;  %v1052_v48 = vstv %s5342_s26  ;;  %s5361_s26 = sld [smem:[#allocation2 + $0x27]] }
 0x242   :  { %v1237_v6 = vsel %vm229_vm1, %v1235_v60, %v1236_v51  ;;  %v1268_v22 = vrot.slane %v1260_v14, 2  ;;  %v1054_v0 = vmul.f32 %v6028_v63, %v1052_v48 }
 0x243   :  { %1001 = vadd.xlane.f32.xlu0 %v1000_v21  ;;  %v1272_v12 = vsel %vm229_vm1, %v1269_v9, %v1271_v5  ;;  %v1241_v21 = vsel %vm229_vm1, %v1238_v26, %v1240_v49 }
 0x244   :  { %v1270_v52 = vsel %vm229_vm1, %v1268_v22, %v1269_v9 }
 0x247   :  { %1007 = vadd.xlane.f32.xlu0 %v1006_v23  ;;  %v1273_v23 = vrot.slane %v1263_v18, 2  ;;  %v1053_v18 = vmul.f32 %v6015_v3, %v1052_v48 }
 0x24e   :  { %1067 = vrot.lane.b32.xlu1 %v1059_v54, %s5664_s16  ;;  %v1274_v54 = vsel %vm229_vm1, %v1271_v5, %v1273_v23 }
 0x252   :  { %1071 = vrot.lane.b32.xlu1 %v1061_v13, %s5664_s16 }
 0x256   :  { %1073 = vrot.lane.b32.xlu1 %v1062_v50, %s5664_s16 }
 0x25a   :  { %1095 = vrot.lane.b32.xlu1 %v1086_v29, %s5665_s18 }
 0x25d   :  { %1069 = vrot.lane.b32.xlu0 %v1060_v31, %s5664_s16 }
 0x25e   :  { %1099 = vrot.lane.b32.xlu1 %v1088_v11, %s5665_s18 }
 0x261   :  { %1093 = vrot.lane.b32.xlu0 %v1085_v33, %s5665_s18 }
 0x262   :  { %1153 = vrot.lane.b32.xlu1 %v1148_v20, %s5664_s16 }
 0x265   :  { %1097 = vrot.lane.b32.xlu0 %v1087_v41, %s5665_s18 }
 0x266   :  { %1157 = vrot.lane.b32.xlu1 %v1149_v37, %s5664_s16 }
 0x269   :  { %1151 = vrot.lane.b32.xlu0 %v1146_v40, %s5664_s16 }
 0x26a   :  { %1186 = vrot.lane.b32.xlu1 %v1181_v43, %s5665_s18 }
 0x26d   :  { %1155 = vrot.lane.b32.xlu0 %v1150_v46, %s5664_s16 }
 0x26e   :  { %1190 = vrot.lane.b32.xlu1 %v1182_v47, %s5665_s18 }
 0x271   :  { %1184 = vrot.lane.b32.xlu0 %v1179_v57, %s5665_s18  ;;  %v1110_v57 = vstv %s5345_s25  ;;  %s5399_s25 = sld [smem:[#allocation5 + $0x6]] }
 0x272   :  { %1244 = vrot.lane.b32.xlu1 %v1239_v1, %s5664_s16  ;;  %v1113_v9 = vmul.f32 %v6034_v7, %v1110_v57  ;;  %v1111_v14 = vmul.f32 %v6015_v3, %v1110_v57 }
 0x275   :  { %1188 = vrot.lane.b32.xlu0 %v1183_v59, %s5665_s18 }
 0x276   :  { %1248 = vrot.lane.b32.xlu1 %v1240_v49, %s5664_s16  ;;  %v1112_v49 = vmul.f32 %v6028_v63, %v1110_v57 }
 0x279   :  { %1242 = vrot.lane.b32.xlu0 %v1237_v6, %s5664_s16 }
 0x27a   :  { %1277 = vrot.lane.b32.xlu1 %v1272_v12, %s5665_s18 }
 0x27d   :  { %1246 = vrot.lane.b32.xlu0 %v1241_v21, %s5664_s16 }
 0x27e   :  { %1281 = vrot.lane.b32.xlu1 %v1273_v23, %s5665_s18  ;;  %v1120_v23 = vrot.slane %v1112_v49, 1 }
 0x281   :  { %1275 = vrot.lane.b32.xlu0 %v1270_v52, %s5665_s18  ;;  %v1122_v52 = vrot.slane %v1113_v9, 1  ;;  %v1037_v9 = vstv %s5337_s27  ;;  %s6381_s27 = sld [smem:[#allocation7 + $0x3]] }
 0x285   :  { %1279 = vrot.lane.b32.xlu0 %v1274_v54, %s5665_s18  ;;  %v1114_v54 = vmul.f32 %v6021_v4, %v1110_v57 }
 0x2be   :  { %v976_v13 = vpop.xlane.xlu1 %975 }
 0x2c0   :  { %v973_v50 = vpop.xlane.xlu0 %972 }
 0x2c1   :  { %v983_v29 = vadd.f32 %v976_v13, %v973_v50  ;;  %v1055_v13 = vmul.f32 %v6034_v7, %v1052_v48  ;;  %v1056_v50 = vmul.f32 %v6021_v4, %v1052_v48 }
 0x2c2   :  { %v999_v17 = vpop.xlane.xlu1 %998 }
 0x2c4   :  { %v979_v28 = vpop.xlane.xlu0 %978 }
 0x2c5   :  { %v984_v30 = vadd.f32 %v983_v29, %v979_v28  ;;  %v1201_v28 = vstv %s5348_s1  ;;  %v1119_v29 = vrot.slane %v1111_v14, 1  ;;  %s5358_s1 = sld [smem:[#allocation2 + $0x24]] }
 0x2c6   :  { %v1005_v53 = vpop.xlane.xlu1 %1004 }
 0x2c8   :  { %v982_v31 = vpop.xlane.xlu0 %981 }
 0x2c9   :  { %v985_v11 = vsel %vm333_vm4, %v982_v31, 0.0 }
 0x2ca   :  { %v986_v62 = vadd.f32 %v985_v11, %v984_v30  ;;  %v1068_v32 = vpop.permute.xlu1 %1067  ;;  %v1123_v11 = vsel %vm137_vm0, %v1120_v23, %v1122_v52 }
 0x2cc   :  { %v987_v61 = vrot.slane %v986_v62, 4  ;;  %v1002_v33 = vpop.xlane.xlu0 %1001 }
 0x2cd   :  { %v1009_v10 = vadd.f32 %v1002_v33, %v999_v17  ;;  %v1204_v33 = vmul.f32 %v6034_v7, %v1201_v28 }
 0x2ce   :  { %v988_v19 = vadd.f32 %v987_v61, %v986_v62  ;;  %v1072_v20 = vpop.permute.xlu1 %1071  ;;  %v1124_v62 = vrot.slane %v1114_v54, 1  ;;  %v1203_v61 = vmul.f32 %v6028_v63, %v1201_v28 }
 0x2cf   :  { %v1010_v35 = vadd.f32 %v1009_v10, %v1005_v53  ;;  %v1079_v53 = vadd.f32 %v1068_v32, %v1053_v18  ;;  %v1081_v10 = vadd.f32 %v1072_v20, %v1055_v13  ;;  %v1202_v32 = vmul.f32 %v6015_v3, %v1201_v28 }
 0x2d0   :  { %v989_v36 = vrot.slane %v988_v19, 2  ;;  %v1008_v41 = vpop.xlane.xlu0 %1007  ;;  %v1213_v20 = vrot.slane %v1204_v33, 2 }
 0x2d1   :  { %v1011_v27 = vsel %vm333_vm4, %v1008_v41, 0.0  ;;  %v1121_v41 = vsel %vm137_vm0, %v1119_v29, %v1120_v23 }
 0x2d2   :  { %v990_v37 = vadd.f32 %v989_v36, %v988_v19  ;;  %v1012_v38 = vadd.f32 %v1011_v27, %v1010_v35  ;;  %v1074_v34 = vpop.permute.xlu1 %1073  ;;  %v1205_v27 = vmul.f32 %v6021_v4, %v1201_v28  ;;  %v1292_v28 = vstv %s5351_s28  ;;  %s5353_s28 = sld [smem:[#allocation8 + $0x3]] }
 0x2d3   :  { %v1082_v19 = vadd.f32 %v1074_v34, %v1056_v50 }
 0x2d4   :  { %v1013_v39 = vrot.slane %v1012_v38, 4  ;;  %v1070_v40 = vpop.permute.xlu0 %1069  ;;  %v991_v24 = vrot.slane %v990_v37, 1 }
 0x2d5   :  { %v1080_v12 = vadd.f32 %v1070_v40, %v1054_v0  ;;  %v1125_v40 = vsel %vm137_vm0, %v1122_v52, %v1124_v62 }
 0x2d6   :  { %v1014_v44 = vadd.f32 %v1013_v39, %v1012_v38  ;;  %v1096_v43 = vpop.permute.xlu1 %1095  ;;  %v992_v46 = vadd.f32 %v991_v24, %v990_v37  ;;  %v1211_v24 = vrot.slane %v1203_v61, 2 }
 0x2d7   :  { %v1106_v30 = vadd.f32 %v1096_v43, %v1080_v12 }
 0x2d8   :  { %v1015_v55 = vrot.slane %v1014_v44, 2  ;;  %v1094_v45 = vpop.permute.xlu0 %1093  ;;  %v6207_v26 = vmul.f32 0.00147929, %v992_v46  ;;  %v1215_v46 = vrot.slane %v1205_v27, 2 }
 0x2d9   :  { %v1105_v35 = vadd.f32 %v1094_v45, %v1079_v53  ;;  %v1131_v38 = vadd.f32 %v1123_v11, %v1106_v30  ;;  %v1210_v45 = vrot.slane %v1202_v32, 2 }
 0x2da   :  { %v1100_v25 = vpop.permute.xlu1 %1099  ;;  %v1016_v47 = vadd.f32 %v1015_v55, %v1014_v44  ;;  %v1021_v59 = vmul.f32 %v6207_v26, %v6207_v26  ;;  %v1025_v14 = vsub.f32 %v6103_v56, %v6207_v26  ;;  %v1026_v23 = vsub.f32 %v6101_v15, %v6207_v26 }
 0x2db   :  { %v1108_v44 = vadd.f32 %v1100_v25, %v1082_v19  ;;  %v1130_v34 = vadd.f32 %v1121_v41, %v1105_v35  ;;  %v1212_v25 = vsel %vm229_vm1, %v1210_v45, %v1211_v24  ;;  %v1028_v52 = vsub.f32 %v6134_v16, %v6207_v26 }
 0x2dc   :  { %v1098_v51 = vpop.permute.xlu0 %1097  ;;  %v1017_v42 = vrot.slane %v1016_v47, 1 }
 0x2dd   :  { %v1107_v37 = vadd.f32 %v1098_v51, %v1081_v10  ;;  %v1214_v51 = vsel %vm229_vm1, %v1211_v24, %v1213_v20  ;;  %v1133_v0 = vadd.f32 %v1124_v62, %v1108_v44 }
 0x2de   :  { %v1154_v58 = vpop.permute.xlu1 %1153  ;;  %v1018_v1 = vadd.f32 %v1017_v42, %v1016_v47 }
 0x2df   :  { %v1164_v43 = vadd.f32 %v1154_v58, %v1131_v38  ;;  %v1132_v42 = vadd.f32 %v1125_v40, %v1107_v37  ;;  %v1216_v58 = vsel %vm229_vm1, %v1213_v20, %v1215_v46 }
 0x2e0   :  { %v1152_v8 = vpop.permute.xlu0 %1151  ;;  %v1020_v60 = vmul.f32 0.00147929, %v1018_v1  ;;  %v1030_v1 = vstv %s6222_s2  ;;  %s5364_s2 = sld [smem:[#allocation2 + $0x2a]] }
 0x2e1   :  { %v1163_v47 = vadd.f32 %v1152_v8, %v1130_v34 }
 0x2e2   :  { %v1158_v5 = vpop.permute.xlu1 %1157  ;;  %v1022_v6 = vsub.f32 %v1020_v60, %v1021_v59 }
 0x2e3   :  { %v1166_v8 = vadd.f32 %v1158_v5, %v1133_v0 }
 0x2e4   :  { %v1156_v21 = vpop.permute.xlu0 %1155  ;;  %v1023_v22 = vadd.f32 1e-05, %v1022_v6 }
 0x2e5   :  { %v1165_v59 = vadd.f32 %v1156_v21, %v1132_v42  ;;  %v1027_v21 = vsub.f32 %v6127_v2, %v6207_v26 }
 0x2e6   :  { %v1187_v17 = vpop.permute.xlu1 %1186  ;;  %5560 = vrsqrt.f32 %v1023_v22 }
 0x2e7   :  { %v1197_v57 = vadd.f32 %v1187_v17, %v1164_v43 }
 0x2e8   :  { %v1185_v31 = vpop.permute.xlu0 %1184 }
 0x2e9   :  { %v1196_v60 = vadd.f32 %v1185_v31, %v1163_v47  ;;  %v1222_v12 = vadd.f32 %v1214_v51, %v1197_v57 }
 0x2ea   :  { %v1191_v36 = vpop.permute.xlu1 %1190 }
 0x2eb   :  { %v1199_v13 = vadd.f32 %v1191_v36, %v1166_v8  ;;  %v1221_v17 = vadd.f32 %v1212_v25, %v1196_v60  ;;  %v1384_v60 = vstv %s5359_s3  ;;  %s5414_s3 = sld [smem:[#allocation2 + $0x47]] }
 0x2ec   :  { %v1189_v39 = vpop.permute.xlu0 %1188  ;;  %v1388_v25 = vmul.f32 %v6021_v4, %v1384_v60 }
 0x2ed   :  { %v1198_v18 = vadd.f32 %v1189_v39, %v1165_v59  ;;  %v1224_v19 = vadd.f32 %v1215_v46, %v1199_v13 }
 0x2ee   :  { %v1245_v55 = vpop.permute.xlu1 %1244 }
 0x2ef   :  { %v1255_v50 = vadd.f32 %v1245_v55, %v1222_v12  ;;  %v1223_v11 = vadd.f32 %v1216_v58, %v1198_v18  ;;  %v1410_v58 = vstv %s5360_s12  ;;  %v1386_v12 = vmul.f32 %v6028_v63, %v1384_v60  ;;  %s5375_s12 = sld [smem:[#allocation2 + $0x2e]] }
 0x2f0   :  { %v1243_v48 = vpop.permute.xlu0 %1242 }
 0x2f1   :  { %v1254_v31 = vadd.f32 %v1243_v48, %v1221_v17 }
 0x2f2   :  { %v1249_v49 = vpop.permute.xlu1 %1248 }
 0x2f3   :  { %v5561_v6 = vpop.eup %5560  ;;  %v1257_v38 = vadd.f32 %v1249_v49, %v1224_v19  ;;  %v1385_v49 = vmul.f32 %v6015_v3, %v1384_v60 }
 0x2f4   :  { %v1247_v22 = vpop.permute.xlu0 %1246  ;;  %v1031_v54 = vmul.f32 %v5561_v6, %v1030_v1  ;;  %v1461_v6 = vstv %s5362_s4  ;;  %s5376_s4 = sld [smem:[#allocation2 + $0x2f]] }
 0x2f5   :  { %v1256_v16 = vadd.f32 %v1247_v22, %v1223_v11  ;;  %v1463_v8 = vmul.f32 %v6028_v63, %v1461_v6  ;;  %v1464_v18 = vmul.f32 %v6034_v7, %v1461_v6  ;;  %v1414_v22 = vmul.f32 %v6021_v4, %v1410_v58 }
 0x2f6   :  { %v1278_v29 = vpop.permute.xlu1 %1277  ;;  %v1032_v56 = vmul.f32 %v1031_v54, %v1025_v14  ;;  %v1033_v5 = vmul.f32 %v1031_v54, %v1026_v23  ;;  %v1034_v53 = vmul.f32 %v1031_v54, %v1027_v21  ;;  %v1035_v30 = vmul.f32 %v1031_v54, %v1028_v52 }
 0x2f7   :  { %v1288_v62 = vadd.f32 %v1278_v29, %v1255_v50  ;;  %v1412_v14 = vmul.f32 %v6028_v63, %v1410_v58  ;;  %v1471_v23 = vrot.slane %v1463_v8, 1  ;;  %v1473_v21 = vrot.slane %v1464_v18, 1 }
 0x2f8   :  { %v1276_v15 = vpop.permute.xlu0 %1275  ;;  %v1038_v61 = vadd.f32 %v1037_v9, %v1032_v56  ;;  %v1039_v33 = vadd.f32 %v1037_v9, %v1033_v5  ;;  %v1040_v2 = vadd.f32 %v1037_v9, %v1034_v53  ;;  %v1041_v10 = vadd.f32 %v1037_v9, %v1035_v30 }
 0x2f9   :  { %v6240_v26 = vadd.f32 %v1292_v28, %v1288_v62  ;;  %v1287_v35 = vadd.f32 %v1276_v15, %v1254_v31  ;;  %v1387_v9 = vmul.f32 %v6034_v7, %v1384_v60  ;;  %v1494_v52 = vstv %s5363_s13  ;;  %s5378_s13 = sld [smem:[#allocation2 + $0x31]] }
 0x2fa   :  { %v1042_v36 = vmax.f32 %v1038_v61, 0.0  ;;  %v1043_v41 = vmax.f32 %v1039_v33, 0.0  ;;  %v1044_v32 = vmax.f32 %v1040_v2, 0.0  ;;  %v1045_v27 = vmax.f32 %v1041_v10, 0.0  ;;  %v1282_v37 = vpop.permute.xlu1 %1281  ;;  %v6326_v61 = vld [vmem:[%s8439_s0 + $0x8] sm:$0xff]  ;;  %v6332_v2 = vld [vmem:[%s8439_s0 + $0x10] sm:$0xff] }
 0x2fb   :  { %v6242_v39 = vadd.f32 %v1292_v28, %v1287_v35  ;;  %v1300_v40 = vsel %vm317_vm2, %v6240_v26, 0.0  ;;  %v1290_v44 = vadd.f32 %v1282_v37, %v1257_v38  ;;  %v1320_v51 = vmul.f32 %v6240_v26, %v6240_v26 }
 0x2fc   :  { %v1280_v24 = vpop.permute.xlu0 %1279  ;;  %5338 = vst.msk [vmem:[%s8444_s5 + $0x40] sm:$0xff] %vm317_vm2, %v1042_v36  ;;  %5339 = vst.msk [vmem:[%s8444_s5 + $0x48] sm:$0xff] %vm317_vm2, %v1043_v41  ;;  %1301 = vadd.xlane.f32.xlu1 %v1300_v40  ;;  %v1411_v54 = vmul.f32 %v6015_v3, %v1410_v58  ;;  %v1462_v13 = vmul.f32 %v6015_v3, %v1461_v6  ;;  %v1465_v50 = vmul.f32 %v6021_v4, %v1461_v6  ;;  %v6313_v4 = vld [vmem:[%s8439_s0] sm:$0xff] }
 0x2fd   :  { %5340 = vst.msk [vmem:[%s8444_s5 + $0x50] sm:$0xff] %vm317_vm2, %v1044_v32  ;;  %v1289_v20 = vadd.f32 %v1280_v24, %v1256_v16  ;;  %v1297_v43 = vsel %vm317_vm2, %v6242_v39, 0.0  ;;  %v1319_v34 = vmul.f32 %v6242_v39, %v6242_v39  ;;  %v6273_v42 = vadd.f32 %v1292_v28, %v1290_v44 }
 0x2fe   :  { %5341 = vst.msk [vmem:[%s8444_s5 + $0x58] sm:$0x3] %vm327_vm3, %v1045_v27  ;;  %1298 = vadd.xlane.f32.xlu0 %v1297_v43  ;;  %v1326_v1 = vsel %vm317_vm2, %v1320_v51, 0.0  ;;  %v1474_v17 = vsel %vm137_vm0, %v1471_v23, %v1473_v21  ;;  %v1497_v29 = vmul.f32 %v6034_v7, %v1494_v52  ;;  %v1413_v56 = vmul.f32 %v6034_v7, %v1410_v58  ;;  %v6319_v7 = vld [vmem:[%s8439_s0 + $0x18] sm:$0xf] }
 0x2ff   :  { %v6266_v55 = vadd.f32 %v1292_v28, %v1289_v20  ;;  %v1323_v45 = vsel %vm317_vm2, %v1319_v34, 0.0  ;;  %v1306_v48 = vsel %vm327_vm3, %v6273_v42, 0.0  ;;  %v1322_v0 = vmul.f32 %v6273_v42, %v6273_v42 }
 0x300   :  { %1324 = vadd.xlane.f32.xlu1 %v1323_v45  ;;  %v1496_v28 = vmul.f32 %v6028_v63, %v1494_v52  ;;  %v1470_v5 = vrot.slane %v1462_v13, 1  ;;  %v1475_v53 = vrot.slane %v1465_v50, 1  ;;  %v1506_v31 = vrot.slane %v1497_v29, 1 }
 0x301   :  { %v1303_v46 = vsel %vm317_vm2, %v6266_v55, 0.0  ;;  %v1321_v47 = vmul.f32 %v6266_v55, %v6266_v55  ;;  %v1332_v59 = vsel %vm327_vm3, %v1322_v0, 0.0  ;;  %v1552_v11 = vstv %s5365_s14  ;;  %s5379_s14 = sld [smem:[#allocation2 + $0x32]] }
 0x302   :  { %1304 = vadd.xlane.f32.xlu0 %v1303_v46  ;;  %v1504_v30 = vrot.slane %v1496_v28, 1  ;;  %v1472_v3 = vsel %vm137_vm0, %v1470_v5, %v1471_v23  ;;  %v1495_v63 = vmul.f32 %v6313_v4, %v1494_v52  ;;  %v1498_v62 = vmul.f32 %v6319_v7, %v1494_v52 }
 0x303   :  { %v1329_v57 = vsel %vm317_vm2, %v1321_v47, 0.0  ;;  %v1554_v33 = vmul.f32 %v6326_v61, %v1552_v11  ;;  %v1555_v10 = vmul.f32 %v6332_v2, %v1552_v11  ;;  %v1476_v19 = vsel %vm137_vm0, %v1473_v21, %v1475_v53 }
 0x304   :  { %1330 = vadd.xlane.f32.xlu1 %v1329_v57  ;;  %v1507_v15 = vsel %vm137_vm0, %v1504_v30, %v1506_v31  ;;  %v1503_v16 = vrot.slane %v1495_v63, 1  ;;  %v1508_v35 = vrot.slane %v1498_v62, 1  ;;  %v1585_v32 = vstv %s5366_s15  ;;  %s5381_s15 = sld [smem:[#allocation2 + $0x34]] }
 0x305   :  { %v1562_v36 = vrot.slane %v1554_v33, 2  ;;  %v1564_v41 = vrot.slane %v1555_v10, 2  ;;  %v1553_v37 = vmul.f32 %v6313_v4, %v1552_v11  ;;  %v1556_v38 = vmul.f32 %v6319_v7, %v1552_v11 }
 0x306   :  { %1307 = vadd.xlane.f32.xlu0 %v1306_v48  ;;  %v1505_v27 = vsel %vm137_vm0, %v1503_v16, %v1504_v30  ;;  %v1587_v24 = vmul.f32 %v6326_v61, %v1585_v32  ;;  %v1588_v20 = vmul.f32 %v6332_v2, %v1585_v32  ;;  %v1509_v44 = vsel %vm137_vm0, %v1506_v31, %v1508_v35 }
 0x307   :  { %v1565_v40 = vsel %vm229_vm1, %v1562_v36, %v1564_v41  ;;  %v1561_v43 = vrot.slane %v1553_v37, 2  ;;  %v1566_v34 = vrot.slane %v1556_v38, 2  ;;  %v1586_v57 = vmul.f32 %v6313_v4, %v1585_v32 }
 0x308   :  { %v1595_v45 = vrot.slane %v1587_v24, 2  ;;  %v1597_v46 = vrot.slane %v1588_v20, 2  ;;  %v1589_v48 = vmul.f32 %v6319_v7, %v1585_v32  ;;  %v1378_v38 = vstv %s5358_s1  ;;  %s5426_s1 = sld [smem:[#allocation2 + $0x1]] }
 0x309   :  { %v1563_v47 = vsel %vm229_vm1, %v1561_v43, %v1562_v36  ;;  %v1594_v0 = vrot.slane %v1586_v57, 2  ;;  %v1380_v24 = vmul.f32 %v6326_v61, %v1378_v38 }
 0x30a   :  { %1327 = vadd.xlane.f32.xlu0 %v1326_v1  ;;  %v1598_v51 = vsel %vm229_vm1, %v1595_v45, %v1597_v46  ;;  %v1567_v1 = vsel %vm229_vm1, %v1564_v41, %v1566_v34 }
 0x30b   :  { %v1596_v60 = vsel %vm229_vm1, %v1594_v0, %v1595_v45 }
 0x30e   :  { %1333 = vadd.xlane.f32.xlu0 %v1332_v59  ;;  %v1599_v59 = vrot.slane %v1589_v48, 2  ;;  %v1379_v48 = vmul.f32 %v6313_v4, %v1378_v38 }
 0x315   :  { %1393 = vrot.lane.b32.xlu1 %v1385_v49, %s5664_s16  ;;  %v1600_v49 = vsel %vm229_vm1, %v1597_v46, %v1599_v59 }
 0x319   :  { %1397 = vrot.lane.b32.xlu1 %v1387_v9, %s5664_s16 }
 0x31d   :  { %1399 = vrot.lane.b32.xlu1 %v1388_v25, %s5664_s16 }
 0x321   :  { %1421 = vrot.lane.b32.xlu1 %v1412_v14, %s5665_s18 }
 0x324   :  { %1395 = vrot.lane.b32.xlu0 %v1386_v12, %s5664_s16 }
 0x325   :  { %1425 = vrot.lane.b32.xlu1 %v1414_v22, %s5665_s18 }
 0x328   :  { %1419 = vrot.lane.b32.xlu0 %v1411_v54, %s5665_s18 }
 0x329   :  { %1479 = vrot.lane.b32.xlu1 %v1474_v17, %s5664_s16 }
 0x32c   :  { %1423 = vrot.lane.b32.xlu0 %v1413_v56, %s5665_s18 }
 0x32d   :  { %1483 = vrot.lane.b32.xlu1 %v1475_v53, %s5664_s16 }
 0x330   :  { %1477 = vrot.lane.b32.xlu0 %v1472_v3, %s5664_s16 }
 0x331   :  { %1512 = vrot.lane.b32.xlu1 %v1507_v15, %s5665_s18 }
 0x334   :  { %1481 = vrot.lane.b32.xlu0 %v1476_v19, %s5664_s16 }
 0x335   :  { %1516 = vrot.lane.b32.xlu1 %v1508_v35, %s5665_s18 }
 0x338   :  { %1510 = vrot.lane.b32.xlu0 %v1505_v27, %s5665_s18  ;;  %v1436_v27 = vstv %s5361_s26  ;;  %s5477_s26 = sld [smem:[#allocation2 + $0x22]] }
 0x339   :  { %1570 = vrot.lane.b32.xlu1 %v1565_v40, %s5664_s16  ;;  %v1439_v45 = vmul.f32 %v6332_v2, %v1436_v27  ;;  %v1437_v57 = vmul.f32 %v6313_v4, %v1436_v27 }
 0x33c   :  { %1514 = vrot.lane.b32.xlu0 %v1509_v44, %s5665_s18 }
 0x33d   :  { %1574 = vrot.lane.b32.xlu1 %v1566_v34, %s5664_s16  ;;  %v1438_v34 = vmul.f32 %v6326_v61, %v1436_v27 }
 0x340   :  { %1568 = vrot.lane.b32.xlu0 %v1563_v47, %s5664_s16 }
 0x341   :  { %1603 = vrot.lane.b32.xlu1 %v1598_v51, %s5665_s18 }
 0x344   :  { %1572 = vrot.lane.b32.xlu0 %v1567_v1, %s5664_s16 }
 0x345   :  { %1607 = vrot.lane.b32.xlu1 %v1599_v59, %s5665_s18  ;;  %v1446_v59 = vrot.slane %v1438_v34, 1 }
 0x348   :  { %1601 = vrot.lane.b32.xlu0 %v1596_v60, %s5665_s18  ;;  %v1448_v60 = vrot.slane %v1439_v45, 1  ;;  %v1363_v45 = vstv %s5353_s28  ;;  %s5442_s28 = sld [smem:[#allocation2 + $0xd]] }
 0x34c   :  { %1605 = vrot.lane.b32.xlu0 %v1600_v49, %s5665_s18  ;;  %v1440_v49 = vmul.f32 %v6319_v7, %v1436_v27 }
 0x385   :  { %v1302_v9 = vpop.xlane.xlu1 %1301 }
 0x387   :  { %v1299_v25 = vpop.xlane.xlu0 %1298 }
 0x388   :  { %v1309_v14 = vadd.f32 %v1302_v9, %v1299_v25  ;;  %v1381_v9 = vmul.f32 %v6332_v2, %v1378_v38  ;;  %v1382_v25 = vmul.f32 %v6319_v7, %v1378_v38 }
 0x389   :  { %v1325_v58 = vpop.xlane.xlu1 %1324 }
 0x38b   :  { %v1305_v6 = vpop.xlane.xlu0 %1304 }
 0x38c   :  { %v1310_v18 = vadd.f32 %v1309_v14, %v1305_v6  ;;  %v1527_v6 = vstv %s5364_s2  ;;  %v1445_v14 = vrot.slane %v1437_v57, 1  ;;  %s5439_s2 = sld [smem:[#allocation2 + $0xa]] }
 0x38d   :  { %v1331_v8 = vpop.xlane.xlu1 %1330 }
 0x38f   :  { %v1308_v12 = vpop.xlane.xlu0 %1307 }
 0x390   :  { %v1311_v22 = vsel %vm333_vm4, %v1308_v12, 0.0 }
 0x391   :  { %v1312_v23 = vadd.f32 %v1311_v22, %v1310_v18  ;;  %v1394_v21 = vpop.permute.xlu1 %1393  ;;  %v1449_v22 = vsel %vm137_vm0, %v1446_v59, %v1448_v60 }
 0x393   :  { %v1313_v52 = vrot.slane %v1312_v23, 4  ;;  %v1328_v54 = vpop.xlane.xlu0 %1327 }
 0x394   :  { %v1335_v13 = vadd.f32 %v1328_v54, %v1325_v58  ;;  %v1530_v54 = vmul.f32 %v6332_v2, %v1527_v6 }
 0x395   :  { %v1314_v50 = vadd.f32 %v1313_v52, %v1312_v23  ;;  %v1398_v17 = vpop.permute.xlu1 %1397  ;;  %v1450_v23 = vrot.slane %v1440_v49, 1  ;;  %v1529_v52 = vmul.f32 %v6326_v61, %v1527_v6 }
 0x396   :  { %v1336_v28 = vadd.f32 %v1335_v13, %v1331_v8  ;;  %v1405_v8 = vadd.f32 %v1394_v21, %v1379_v48  ;;  %v1407_v13 = vadd.f32 %v1398_v17, %v1381_v9  ;;  %v1528_v21 = vmul.f32 %v6313_v4, %v1527_v6 }
 0x397   :  { %v1315_v29 = vrot.slane %v1314_v50, 2  ;;  %v1334_v56 = vpop.xlane.xlu0 %1333  ;;  %v1539_v17 = vrot.slane %v1530_v54, 2 }
 0x398   :  { %v1337_v5 = vsel %vm333_vm4, %v1334_v56, 0.0  ;;  %v1447_v56 = vsel %vm137_vm0, %v1445_v14, %v1446_v59 }
 0x399   :  { %v1316_v53 = vadd.f32 %v1315_v29, %v1314_v50  ;;  %v1338_v30 = vadd.f32 %v1337_v5, %v1336_v28  ;;  %v1400_v31 = vpop.permute.xlu1 %1399  ;;  %v1531_v5 = vmul.f32 %v6319_v7, %v1527_v6  ;;  %v1618_v6 = vstv %s5367_s29  ;;  %s5443_s29 = sld [smem:[#allocation2 + $0xe]] }
 0x39a   :  { %v1408_v50 = vadd.f32 %v1400_v31, %v1382_v25 }
 0x39b   :  { %v1339_v11 = vrot.slane %v1338_v30, 4  ;;  %v1396_v3 = vpop.permute.xlu0 %1395  ;;  %v1317_v63 = vrot.slane %v1316_v53, 1 }
 0x39c   :  { %v1406_v51 = vadd.f32 %v1396_v3, %v1380_v24  ;;  %v1451_v3 = vsel %vm137_vm0, %v1448_v60, %v1450_v23 }
 0x39d   :  { %v1340_v62 = vadd.f32 %v1339_v11, %v1338_v30  ;;  %v1422_v15 = vpop.permute.xlu1 %1421  ;;  %v1318_v19 = vadd.f32 %v1317_v63, %v1316_v53  ;;  %v1537_v63 = vrot.slane %v1529_v52, 2 }
 0x39e   :  { %v1432_v18 = vadd.f32 %v1422_v15, %v1406_v51 }
 0x39f   :  { %v1341_v33 = vrot.slane %v1340_v62, 2  ;;  %v1420_v10 = vpop.permute.xlu0 %1419  ;;  %v6366_v41 = vmul.f32 0.00147929, %v1318_v19  ;;  %v1541_v19 = vrot.slane %v1531_v5, 2 }
 0x3a0   :  { %v1431_v28 = vadd.f32 %v1420_v10, %v1405_v8  ;;  %v1457_v30 = vadd.f32 %v1449_v22, %v1432_v18  ;;  %v1536_v10 = vrot.slane %v1528_v21, 2 }
 0x3a1   :  { %v1426_v16 = vpop.permute.xlu1 %1425  ;;  %v1342_v35 = vadd.f32 %v1341_v33, %v1340_v62  ;;  %v1347_v44 = vmul.f32 %v6366_v41, %v6366_v41  ;;  %v1351_v57 = vsub.f32 %v6242_v39, %v6366_v41  ;;  %v1352_v59 = vsub.f32 %v6240_v26, %v6366_v41 }
 0x3a2   :  { %v1434_v62 = vadd.f32 %v1426_v16, %v1408_v50  ;;  %v1456_v31 = vadd.f32 %v1447_v56, %v1431_v28  ;;  %v1538_v16 = vsel %vm229_vm1, %v1536_v10, %v1537_v63  ;;  %v1354_v60 = vsub.f32 %v6273_v42, %v6366_v41 }
 0x3a3   :  { %v1424_v36 = vpop.permute.xlu0 %1423  ;;  %v1343_v32 = vrot.slane %v1342_v35, 1 }
 0x3a4   :  { %v1433_v53 = vadd.f32 %v1424_v36, %v1407_v13  ;;  %v1540_v36 = vsel %vm229_vm1, %v1537_v63, %v1539_v17  ;;  %v1459_v24 = vadd.f32 %v1450_v23, %v1434_v62 }
 0x3a5   :  { %v1480_v37 = vpop.permute.xlu1 %1479  ;;  %v1344_v40 = vadd.f32 %v1343_v32, %v1342_v35 }
 0x3a6   :  { %v1490_v15 = vadd.f32 %v1480_v37, %v1457_v30  ;;  %v1458_v32 = vadd.f32 %v1451_v3, %v1433_v53  ;;  %v1542_v37 = vsel %vm229_vm1, %v1539_v17, %v1541_v19 }
 0x3a7   :  { %v1478_v20 = vpop.permute.xlu0 %1477  ;;  %v1346_v43 = vmul.f32 0.00147929, %v1344_v40  ;;  %v1356_v40 = vstv %s6381_s27  ;;  %s5440_s27 = sld [smem:[#allocation2 + $0xb]] }
 0x3a8   :  { %v1489_v35 = vadd.f32 %v1478_v20, %v1456_v31 }
 0x3a9   :  { %v1484_v46 = vpop.permute.xlu1 %1483  ;;  %v1348_v47 = vsub.f32 %v1346_v43, %v1347_v44 }
 0x3aa   :  { %v1492_v20 = vadd.f32 %v1484_v46, %v1459_v24 }
 0x3ab   :  { %v1482_v1 = vpop.permute.xlu0 %1481  ;;  %v1349_v0 = vadd.f32 1e-05, %v1348_v47 }
 0x3ac   :  { %v1491_v44 = vadd.f32 %v1482_v1, %v1458_v32  ;;  %v1353_v1 = vsub.f32 %v6266_v55, %v6366_v41 }
 0x3ad   :  { %v1513_v58 = vpop.permute.xlu1 %1512  ;;  %5562 = vrsqrt.f32 %v1349_v0 }
 0x3ae   :  { %v1523_v27 = vadd.f32 %v1513_v58, %v1490_v15 }
 0x3af   :  { %v1511_v12 = vpop.permute.xlu0 %1510 }
 0x3b0   :  { %v1522_v43 = vadd.f32 %v1511_v12, %v1489_v35  ;;  %v1548_v51 = vadd.f32 %v1540_v36, %v1523_v27 }
 0x3b1   :  { %v1517_v29 = vpop.permute.xlu1 %1516 }
 0x3b2   :  { %v1525_v9 = vadd.f32 %v1517_v29, %v1492_v20  ;;  %v1547_v58 = vadd.f32 %v1538_v16, %v1522_v43  ;;  %v1710_v43 = vstv %s5375_s12  ;;  %s5409_s12 = sld [smem:[#allocation2 + $0x42]] }
 0x3b3   :  { %v1515_v11 = vpop.permute.xlu0 %1514  ;;  %v1714_v16 = vmul.f32 %v6319_v7, %v1710_v43 }
 0x3b4   :  { %v1524_v48 = vadd.f32 %v1515_v11, %v1491_v44  ;;  %v1550_v50 = vadd.f32 %v1541_v19, %v1525_v9 }
 0x3b5   :  { %v1571_v33 = vpop.permute.xlu1 %1570 }
 0x3b6   :  { %v1581_v25 = vadd.f32 %v1571_v33, %v1548_v51  ;;  %v1549_v22 = vadd.f32 %v1542_v37, %v1524_v48  ;;  %v1736_v37 = vstv %s5376_s4  ;;  %v1712_v51 = vmul.f32 %v6326_v61, %v1710_v43  ;;  %s5406_s4 = sld [smem:[#allocation2 + $0x3f]] }
 0x3b7   :  { %v1569_v38 = vpop.permute.xlu0 %1568 }
 0x3b8   :  { %v1580_v12 = vadd.f32 %v1569_v38, %v1547_v58 }
 0x3b9   :  { %v1575_v34 = vpop.permute.xlu1 %1574 }
 0x3ba   :  { %v5563_v47 = vpop.eup %5562  ;;  %v1583_v30 = vadd.f32 %v1575_v34, %v1550_v50  ;;  %v1711_v34 = vmul.f32 %v6313_v4, %v1710_v43 }
 0x3bb   :  { %v1573_v0 = vpop.permute.xlu0 %1572  ;;  %v1357_v49 = vmul.f32 %v5563_v47, %v1356_v40  ;;  %v1787_v47 = vstv %s5378_s13  ;;  %s5412_s13 = sld [smem:[#allocation2 + $0x45]] }
 0x3bc   :  { %v1582_v42 = vadd.f32 %v1573_v0, %v1549_v22  ;;  %v1789_v20 = vmul.f32 %v6326_v61, %v1787_v47  ;;  %v1790_v48 = vmul.f32 %v6332_v2, %v1787_v47  ;;  %v1740_v0 = vmul.f32 %v6319_v7, %v1736_v37 }
 0x3bd   :  { %v1604_v14 = vpop.permute.xlu1 %1603  ;;  %v1358_v39 = vmul.f32 %v1357_v49, %v1351_v57  ;;  %v1359_v46 = vmul.f32 %v1357_v49, %v1352_v59  ;;  %v1360_v8 = vmul.f32 %v1357_v49, %v1353_v1  ;;  %v1361_v18 = vmul.f32 %v1357_v49, %v1354_v60 }
 0x3be   :  { %v1614_v23 = vadd.f32 %v1604_v14, %v1581_v25  ;;  %v1738_v57 = vmul.f32 %v6326_v61, %v1736_v37  ;;  %v1797_v59 = vrot.slane %v1789_v20, 1  ;;  %v1799_v1 = vrot.slane %v1790_v48, 1 }
 0x3bf   :  { %v1602_v26 = vpop.permute.xlu0 %1601  ;;  %v1364_v52 = vadd.f32 %v1363_v45, %v1358_v39  ;;  %v1365_v54 = vadd.f32 %v1363_v45, %v1359_v46  ;;  %v1366_v55 = vadd.f32 %v1363_v45, %v1360_v8  ;;  %v1367_v13 = vadd.f32 %v1363_v45, %v1361_v18 }
 0x3c0   :  { %v6399_v41 = vadd.f32 %v1618_v6, %v1614_v23  ;;  %v1613_v28 = vadd.f32 %v1602_v26, %v1580_v12  ;;  %v1713_v45 = vmul.f32 %v6332_v2, %v1710_v43  ;;  %v1820_v60 = vstv %s5379_s14  ;;  %s6818_s14 = sld [smem:[#allocation7 + $0x6]] }
 0x3c1   :  { %v1368_v29 = vmax.f32 %v1364_v52, 0.0  ;;  %v1369_v56 = vmax.f32 %v1365_v54, 0.0  ;;  %v1370_v21 = vmax.f32 %v1366_v55, 0.0  ;;  %v1371_v5 = vmax.f32 %v1367_v13, 0.0  ;;  %v1608_v53 = vpop.permute.xlu1 %1607 }
 0x3c2   :  { %v6401_v11 = vadd.f32 %v1618_v6, %v1613_v28  ;;  %v1626_v3 = vsel %vm317_vm2, %v6399_v41, 0.0  ;;  %v1616_v62 = vadd.f32 %v1608_v53, %v1583_v30  ;;  %v1646_v36 = vmul.f32 %v6399_v41, %v6399_v41 }
 0x3c3   :  { %v1606_v63 = vpop.permute.xlu0 %1605  ;;  %5354 = vst.msk [vmem:[%s8444_s5 + $0x60] sm:$0xff] %vm317_vm2, %v1368_v29  ;;  %5355 = vst.msk [vmem:[%s8444_s5 + $0x68] sm:$0xff] %vm317_vm2, %v1369_v56  ;;  %1627 = vadd.xlane.f32.xlu1 %v1626_v3  ;;  %v1737_v49 = vmul.f32 %v6313_v4, %v1736_v37  ;;  %v1788_v9 = vmul.f32 %v6313_v4, %v1787_v47  ;;  %v1791_v25 = vmul.f32 %v6319_v7, %v1787_v47 }
 0x3c4   :  { %5356 = vst.msk [vmem:[%s8444_s5 + $0x70] sm:$0xff] %vm317_vm2, %v1370_v21  ;;  %v1615_v17 = vadd.f32 %v1606_v63, %v1582_v42  ;;  %v1623_v15 = vsel %vm317_vm2, %v6401_v11, 0.0  ;;  %v1645_v31 = vmul.f32 %v6401_v11, %v6401_v11  ;;  %v6432_v32 = vadd.f32 %v1618_v6, %v1616_v62 }
 0x3c5   :  { %5357 = vst.msk [vmem:[%s8444_s5 + $0x78] sm:$0x3] %vm327_vm3, %v1371_v5  ;;  %1624 = vadd.xlane.f32.xlu0 %v1623_v15  ;;  %v1652_v40 = vsel %vm317_vm2, %v1646_v36, 0.0  ;;  %v1800_v58 = vsel %vm137_vm0, %v1797_v59, %v1799_v1  ;;  %v1823_v14 = vmul.f32 %v6332_v2, %v1820_v60  ;;  %v1739_v39 = vmul.f32 %v6332_v2, %v1736_v37 }
 0x3c6   :  { %v6425_v33 = vadd.f32 %v1618_v6, %v1615_v17  ;;  %v1649_v10 = vsel %vm317_vm2, %v1645_v31, 0.0  ;;  %v1632_v38 = vsel %vm327_vm3, %v6432_v32, 0.0  ;;  %v1648_v24 = vmul.f32 %v6432_v32, %v6432_v32 }
 0x3c7   :  { %1650 = vadd.xlane.f32.xlu1 %v1649_v10  ;;  %v1822_v6 = vmul.f32 %v6326_v61, %v1820_v60  ;;  %v1796_v46 = vrot.slane %v1788_v9, 1  ;;  %v1801_v8 = vrot.slane %v1791_v25, 1  ;;  %v1832_v12 = vrot.slane %v1823_v14, 1 }
 0x3c8   :  { %v1629_v19 = vsel %vm317_vm2, %v6425_v33, 0.0  ;;  %v1647_v35 = vmul.f32 %v6425_v33, %v6425_v33  ;;  %v1658_v44 = vsel %vm327_vm3, %v1648_v24, 0.0  ;;  %v1878_v22 = vstv %s5381_s15  ;;  %s5401_s15 = sld [smem:[#allocation8 + $0x6]] }
 0x3c9   :  { %1630 = vadd.xlane.f32.xlu0 %v1629_v19  ;;  %v1830_v18 = vrot.slane %v1822_v6, 1  ;;  %v1798_v23 = vsel %vm137_vm0, %v1796_v46, %v1797_v59  ;;  %v1821_v26 = vmul.f32 %v6313_v4, %v1820_v60  ;;  %v1824_v52 = vmul.f32 %v6319_v7, %v1820_v60 }
 0x3ca   :  { %v1655_v27 = vsel %vm317_vm2, %v1647_v35, 0.0  ;;  %v1880_v55 = vmul.f32 %v6326_v61, %v1878_v22  ;;  %v1881_v13 = vmul.f32 %v6332_v2, %v1878_v22  ;;  %v1802_v50 = vsel %vm137_vm0, %v1799_v1, %v1801_v8 }
 0x3cb   :  { %1656 = vadd.xlane.f32.xlu1 %v1655_v27  ;;  %v1833_v54 = vsel %vm137_vm0, %v1830_v18, %v1832_v12  ;;  %v1829_v42 = vrot.slane %v1821_v26, 1  ;;  %v1834_v28 = vrot.slane %v1824_v52, 1  ;;  %v1911_v21 = vstv %s5382_s17  ;;  %s5415_s17 = sld [smem:[#allocation5 + $0x7]] }
 0x3cc   :  { %v1888_v29 = vrot.slane %v1880_v55, 2  ;;  %v1890_v56 = vrot.slane %v1881_v13, 2  ;;  %v1879_v53 = vmul.f32 %v6313_v4, %v1878_v22  ;;  %v1882_v30 = vmul.f32 %v6319_v7, %v1878_v22 }
 0x3cd   :  { %1633 = vadd.xlane.f32.xlu0 %v1632_v38  ;;  %v1831_v5 = vsel %vm137_vm0, %v1829_v42, %v1830_v18  ;;  %v1913_v63 = vmul.f32 %v6326_v61, %v1911_v21  ;;  %v1914_v17 = vmul.f32 %v6332_v2, %v1911_v21  ;;  %v1835_v62 = vsel %vm137_vm0, %v1832_v12, %v1834_v28 }
 0x3ce   :  { %v1891_v3 = vsel %vm229_vm1, %v1888_v29, %v1890_v56  ;;  %v1887_v15 = vrot.slane %v1879_v53, 2  ;;  %v1892_v31 = vrot.slane %v1882_v30, 2  ;;  %v1912_v27 = vmul.f32 %v6313_v4, %v1911_v21 }
 0x3cf   :  { %v1921_v10 = vrot.slane %v1913_v63, 2  ;;  %v1923_v19 = vrot.slane %v1914_v17, 2  ;;  %v1915_v38 = vmul.f32 %v6319_v7, %v1911_v21  ;;  %v1704_v30 = vstv %s5374_s20  ;;  %s5393_s20 = sld [smem:[#allocation2 + $0x39]] }
 0x3d0   :  { %v1889_v35 = vsel %vm229_vm1, %v1887_v15, %v1888_v29  ;;  %v1920_v24 = vrot.slane %v1912_v27, 2  ;;  %v1706_v63 = vmul.f32 %v6326_v61, %v1704_v30 }
 0x3d1   :  { %1653 = vadd.xlane.f32.xlu0 %v1652_v40  ;;  %v1924_v36 = vsel %vm229_vm1, %v1921_v10, %v1923_v19  ;;  %v1893_v40 = vsel %vm229_vm1, %v1890_v56, %v1892_v31 }
 0x3d2   :  { %v1922_v43 = vsel %vm229_vm1, %v1920_v24, %v1921_v10 }
 0x3d5   :  { %1659 = vadd.xlane.f32.xlu0 %v1658_v44  ;;  %v1925_v44 = vrot.slane %v1915_v38, 2  ;;  %v1705_v38 = vmul.f32 %v6313_v4, %v1704_v30 }
 0x3dc   :  { %1719 = vrot.lane.b32.xlu1 %v1711_v34, %s5664_s16  ;;  %v1926_v34 = vsel %vm229_vm1, %v1923_v19, %v1925_v44 }
 0x3e0   :  { %1723 = vrot.lane.b32.xlu1 %v1713_v45, %s5664_s16 }
 0x3e4   :  { %1725 = vrot.lane.b32.xlu1 %v1714_v16, %s5664_s16 }
 0x3e8   :  { %1747 = vrot.lane.b32.xlu1 %v1738_v57, %s5665_s18 }
 0x3eb   :  { %1721 = vrot.lane.b32.xlu0 %v1712_v51, %s5664_s16 }
 0x3ec   :  { %1751 = vrot.lane.b32.xlu1 %v1740_v0, %s5665_s18 }
 0x3ef   :  { %1745 = vrot.lane.b32.xlu0 %v1737_v49, %s5665_s18 }
 0x3f0   :  { %1805 = vrot.lane.b32.xlu1 %v1800_v58, %s5664_s16 }
 0x3f3   :  { %1749 = vrot.lane.b32.xlu0 %v1739_v39, %s5665_s18 }
 0x3f4   :  { %1809 = vrot.lane.b32.xlu1 %v1801_v8, %s5664_s16 }
 0x3f7   :  { %1803 = vrot.lane.b32.xlu0 %v1798_v23, %s5664_s16 }
 0x3f8   :  { %1838 = vrot.lane.b32.xlu1 %v1833_v54, %s5665_s18 }
 0x3fb   :  { %1807 = vrot.lane.b32.xlu0 %v1802_v50, %s5664_s16 }
 0x3fc   :  { %1842 = vrot.lane.b32.xlu1 %v1834_v28, %s5665_s18 }
 0x3ff   :  { %1836 = vrot.lane.b32.xlu0 %v1831_v5, %s5665_s18  ;;  %v1762_v5 = vstv %s5377_s19  ;;  %s2926_s19 = sld [smem:[#allocation5]] }
 0x400   :  { %1896 = vrot.lane.b32.xlu1 %v1891_v3, %s5664_s16  ;;  %v1765_v10 = vmul.f32 %v6332_v2, %v1762_v5  ;;  %v1763_v27 = vmul.f32 %v6313_v4, %v1762_v5 }
 0x403   :  { %1840 = vrot.lane.b32.xlu0 %v1835_v62, %s5665_s18 }
 0x404   :  { %1900 = vrot.lane.b32.xlu1 %v1892_v31, %s5664_s16  ;;  %v1764_v31 = vmul.f32 %v6326_v61, %v1762_v5 }
 0x407   :  { %1894 = vrot.lane.b32.xlu0 %v1889_v35, %s5664_s16 }
 0x408   :  { %1929 = vrot.lane.b32.xlu1 %v1924_v36, %s5665_s18 }
 0x40b   :  { %1898 = vrot.lane.b32.xlu0 %v1893_v40, %s5664_s16 }
 0x40c   :  { %1933 = vrot.lane.b32.xlu1 %v1925_v44, %s5665_s18  ;;  %v1772_v44 = vrot.slane %v1764_v31, 1 }
 0x40f   :  { %1927 = vrot.lane.b32.xlu0 %v1922_v43, %s5665_s18  ;;  %v1774_v43 = vrot.slane %v1765_v10, 1  ;;  %v1689_v10 = vstv %s5369_s23  ;;  %s6679_s23 = sld [smem:[#allocation7 + $0x5]] }
 0x413   :  { %1931 = vrot.lane.b32.xlu0 %v1926_v34, %s5665_s18  ;;  %v1766_v34 = vmul.f32 %v6319_v7, %v1762_v5 }
 0x44c   :  { %v1628_v45 = vpop.xlane.xlu1 %1627 }
 0x44e   :  { %v1625_v16 = vpop.xlane.xlu0 %1624 }
 0x44f   :  { %v1635_v57 = vadd.f32 %v1628_v45, %v1625_v16  ;;  %v1707_v45 = vmul.f32 %v6332_v2, %v1704_v30  ;;  %v1708_v16 = vmul.f32 %v6319_v7, %v1704_v30 }
 0x450   :  { %v1651_v37 = vpop.xlane.xlu1 %1650 }
 0x452   :  { %v1631_v47 = vpop.xlane.xlu0 %1630 }
 0x453   :  { %v1636_v48 = vadd.f32 %v1635_v57, %v1631_v47  ;;  %v1853_v47 = vstv %s5380_s21  ;;  %v1771_v57 = vrot.slane %v1763_v27, 1  ;;  %s5390_s21 = sld [smem:[#allocation2 + $0x36]] }
 0x454   :  { %v1657_v20 = vpop.xlane.xlu1 %1656 }
 0x456   :  { %v1634_v51 = vpop.xlane.xlu0 %1633 }
 0x457   :  { %v1637_v0 = vsel %vm333_vm4, %v1634_v51, 0.0 }
 0x458   :  { %v1638_v59 = vadd.f32 %v1637_v0, %v1636_v48  ;;  %v1720_v1 = vpop.permute.xlu1 %1719  ;;  %v1775_v0 = vsel %vm137_vm0, %v1772_v44, %v1774_v43 }
 0x45a   :  { %v1639_v60 = vrot.slane %v1638_v59, 4  ;;  %v1654_v49 = vpop.xlane.xlu0 %1653 }
 0x45b   :  { %v1661_v9 = vadd.f32 %v1654_v49, %v1651_v37  ;;  %v1856_v49 = vmul.f32 %v6332_v2, %v1853_v47 }
 0x45c   :  { %v1640_v25 = vadd.f32 %v1639_v60, %v1638_v59  ;;  %v1724_v58 = vpop.permute.xlu1 %1723  ;;  %v1776_v59 = vrot.slane %v1766_v34, 1  ;;  %v1855_v60 = vmul.f32 %v6326_v61, %v1853_v47 }
 0x45d   :  { %v1662_v6 = vadd.f32 %v1661_v9, %v1657_v20  ;;  %v1731_v20 = vadd.f32 %v1720_v1, %v1705_v38  ;;  %v1733_v9 = vadd.f32 %v1724_v58, %v1707_v45  ;;  %v1854_v1 = vmul.f32 %v6313_v4, %v1853_v47 }
 0x45e   :  { %v1641_v14 = vrot.slane %v1640_v25, 2  ;;  %v1660_v39 = vpop.xlane.xlu0 %1659  ;;  %v1865_v58 = vrot.slane %v1856_v49, 2 }
 0x45f   :  { %v1663_v46 = vsel %vm333_vm4, %v1660_v39, 0.0  ;;  %v1773_v39 = vsel %vm137_vm0, %v1771_v57, %v1772_v44 }
 0x460   :  { %v1642_v8 = vadd.f32 %v1641_v14, %v1640_v25  ;;  %v1664_v18 = vadd.f32 %v1663_v46, %v1662_v6  ;;  %v1726_v12 = vpop.permute.xlu1 %1725  ;;  %v1857_v46 = vmul.f32 %v6319_v7, %v1853_v47  ;;  %v1944_v47 = vstv %s5383_s24  ;;  %s5385_s24 = sld [smem:[#allocation8 + $0x5]] }
 0x461   :  { %v1734_v25 = vadd.f32 %v1726_v12, %v1708_v16 }
 0x462   :  { %v1665_v22 = vrot.slane %v1664_v18, 4  ;;  %v1722_v23 = vpop.permute.xlu0 %1721  ;;  %v1643_v26 = vrot.slane %v1642_v8, 1 }
 0x463   :  { %v1732_v36 = vadd.f32 %v1722_v23, %v1706_v63  ;;  %v1777_v23 = vsel %vm137_vm0, %v1774_v43, %v1776_v59 }
 0x464   :  { %v1666_v52 = vadd.f32 %v1665_v22, %v1664_v18  ;;  %v1748_v54 = vpop.permute.xlu1 %1747  ;;  %v1644_v50 = vadd.f32 %v1643_v26, %v1642_v8  ;;  %v1863_v26 = vrot.slane %v1855_v60, 2 }
 0x465   :  { %v1758_v48 = vadd.f32 %v1748_v54, %v1732_v36 }
 0x466   :  { %v1667_v55 = vrot.slane %v1666_v52, 2  ;;  %v1746_v13 = vpop.permute.xlu0 %1745  ;;  %v6505_v56 = vmul.f32 0.00147929, %v1644_v50  ;;  %v1867_v50 = vrot.slane %v1857_v46, 2 }
 0x467   :  { %v1757_v6 = vadd.f32 %v1746_v13, %v1731_v20  ;;  %v1783_v18 = vadd.f32 %v1775_v0, %v1758_v48  ;;  %v1862_v13 = vrot.slane %v1854_v1, 2 }
 0x468   :  { %v1752_v42 = vpop.permute.xlu1 %1751  ;;  %v1668_v28 = vadd.f32 %v1667_v55, %v1666_v52  ;;  %v1673_v62 = vmul.f32 %v6505_v56, %v6505_v56  ;;  %v1677_v27 = vsub.f32 %v6401_v11, %v6505_v56  ;;  %v1678_v44 = vsub.f32 %v6399_v41, %v6505_v56 }
 0x469   :  { %v1760_v52 = vadd.f32 %v1752_v42, %v1734_v25  ;;  %v1782_v12 = vadd.f32 %v1773_v39, %v1757_v6  ;;  %v1864_v42 = vsel %vm229_vm1, %v1862_v13, %v1863_v26  ;;  %v1680_v43 = vsub.f32 %v6432_v32, %v6505_v56 }
 0x46a   :  { %v1750_v29 = vpop.permute.xlu0 %1749  ;;  %v1669_v21 = vrot.slane %v1668_v28, 1 }
 0x46b   :  { %v1759_v8 = vadd.f32 %v1750_v29, %v1733_v9  ;;  %v1866_v29 = vsel %vm229_vm1, %v1863_v26, %v1865_v58  ;;  %v1785_v63 = vadd.f32 %v1776_v59, %v1760_v52 }
 0x46c   :  { %v1806_v53 = vpop.permute.xlu1 %1805  ;;  %v1670_v3 = vadd.f32 %v1669_v21, %v1668_v28 }
 0x46d   :  { %v1816_v54 = vadd.f32 %v1806_v53, %v1783_v18  ;;  %v1784_v21 = vadd.f32 %v1777_v23, %v1759_v8  ;;  %v1868_v53 = vsel %vm229_vm1, %v1865_v58, %v1867_v50 }
 0x46e   :  { %v1804_v17 = vpop.permute.xlu0 %1803  ;;  %v1672_v15 = vmul.f32 0.00147929, %v1670_v3  ;;  %v1682_v3 = vstv %s6520_s22  ;;  %s5396_s22 = sld [smem:[#allocation2 + $0x3c]] }
 0x46f   :  { %v1815_v28 = vadd.f32 %v1804_v17, %v1782_v12 }
 0x470   :  { %v1810_v19 = vpop.permute.xlu1 %1809  ;;  %v1674_v35 = vsub.f32 %v1672_v15, %v1673_v62 }
 0x471   :  { %v1818_v17 = vadd.f32 %v1810_v19, %v1785_v63 }
 0x472   :  { %v1808_v40 = vpop.permute.xlu0 %1807  ;;  %v1675_v24 = vadd.f32 1e-05, %v1674_v35 }
 0x473   :  { %v1817_v62 = vadd.f32 %v1808_v40, %v1784_v21  ;;  %v1679_v40 = vsub.f32 %v6425_v33, %v6505_v56 }
 0x474   :  { %v1839_v37 = vpop.permute.xlu1 %1838  ;;  %5564 = vrsqrt.f32 %v1675_v24 }
 0x475   :  { %v1849_v5 = vadd.f32 %v1839_v37, %v1816_v54 }
 0x476   :  { %v1837_v51 = vpop.permute.xlu0 %1836 }
 0x477   :  { %v1848_v15 = vadd.f32 %v1837_v51, %v1815_v28  ;;  %v1874_v36 = vadd.f32 %v1866_v29, %v1849_v5 }
 0x478   :  { %v1843_v14 = vpop.permute.xlu1 %1842 }
 0x479   :  { %v1851_v45 = vadd.f32 %v1843_v14, %v1818_v17  ;;  %v1873_v37 = vadd.f32 %v1864_v42, %v1848_v15  ;;  %v2036_v15 = vstv %s5391_s6  ;;  %s5429_s6 = sld [smem:[#allocation2 + $0x4]] }
 0x47a   :  { %v1841_v22 = vpop.permute.xlu0 %1840  ;;  %v2040_v42 = vmul.f32 %v6319_v7, %v2036_v15 }
 0x47b   :  { %v1850_v38 = vadd.f32 %v1841_v22, %v1817_v62  ;;  %v1876_v25 = vadd.f32 %v1867_v50, %v1851_v45 }
 0x47c   :  { %v1897_v55 = vpop.permute.xlu1 %1896 }
 0x47d   :  { %v1907_v16 = vadd.f32 %v1897_v55, %v1874_v36  ;;  %v1875_v0 = vadd.f32 %v1868_v53, %v1850_v38  ;;  %v2062_v53 = vstv %s5392_s7  ;;  %v2038_v36 = vmul.f32 %v6326_v61, %v2036_v15  ;;  %s5407_s7 = sld [smem:[#allocation2 + $0x40]] }
 0x47e   :  { %v1895_v30 = vpop.permute.xlu0 %1894 }
 0x47f   :  { %v1906_v51 = vadd.f32 %v1895_v30, %v1873_v37 }
 0x480   :  { %v1901_v31 = vpop.permute.xlu1 %1900 }
 0x481   :  { %v5565_v35 = vpop.eup %5564  ;;  %v1909_v18 = vadd.f32 %v1901_v31, %v1876_v25  ;;  %v2037_v31 = vmul.f32 %v6313_v4, %v2036_v15 }
 0x482   :  { %v1899_v24 = vpop.permute.xlu0 %1898  ;;  %v1683_v34 = vmul.f32 %v5565_v35, %v1682_v3  ;;  %v2113_v35 = vstv %s5394_s8  ;;  %s5408_s8 = sld [smem:[#allocation2 + $0x41]] }
 0x483   :  { %v1908_v32 = vadd.f32 %v1899_v24, %v1875_v0  ;;  %v2115_v17 = vmul.f32 %v6326_v61, %v2113_v35  ;;  %v2116_v38 = vmul.f32 %v6332_v2, %v2113_v35  ;;  %v2066_v24 = vmul.f32 %v6319_v7, %v2062_v53 }
 0x484   :  { %v1930_v57 = vpop.permute.xlu1 %1929  ;;  %v1684_v11 = vmul.f32 %v1683_v34, %v1677_v27  ;;  %v1685_v19 = vmul.f32 %v1683_v34, %v1678_v44  ;;  %v1686_v20 = vmul.f32 %v1683_v34, %v1679_v40  ;;  %v1687_v48 = vmul.f32 %v1683_v34, %v1680_v43 }
 0x485   :  { %v1940_v59 = vadd.f32 %v1930_v57, %v1907_v16  ;;  %v2064_v27 = vmul.f32 %v6326_v61, %v2062_v53  ;;  %v2123_v44 = vrot.slane %v2115_v17, 1  ;;  %v2125_v40 = vrot.slane %v2116_v38, 1 }
 0x486   :  { %v1928_v41 = vpop.permute.xlu0 %1927  ;;  %v1690_v60 = vadd.f32 %v1689_v10, %v1684_v11  ;;  %v1691_v49 = vadd.f32 %v1689_v10, %v1685_v19  ;;  %v1692_v33 = vadd.f32 %v1689_v10, %v1686_v20  ;;  %v1693_v9 = vadd.f32 %v1689_v10, %v1687_v48 }
 0x487   :  { %v6538_v56 = vadd.f32 %v1944_v47, %v1940_v59  ;;  %v1939_v6 = vadd.f32 %v1928_v41, %v1906_v51  ;;  %v2039_v10 = vmul.f32 %v6332_v2, %v2036_v15  ;;  %v2146_v43 = vstv %s5395_s9  ;;  %s5410_s9 = sld [smem:[#allocation2 + $0x43]] }
 0x488   :  { %v1694_v14 = vmax.f32 %v1690_v60, 0.0  ;;  %v1695_v39 = vmax.f32 %v1691_v49, 0.0  ;;  %v1696_v1 = vmax.f32 %v1692_v33, 0.0  ;;  %v1697_v46 = vmax.f32 %v1693_v9, 0.0  ;;  %v1934_v8 = vpop.permute.xlu1 %1933  ;;  %v6624_v60 = vld [vmem:[%s8439_s0 + $0x8] sm:$0xff]  ;;  %v6630_v33 = vld [vmem:[%s8439_s0 + $0x10] sm:$0xff] }
 0x489   :  { %v6540_v22 = vadd.f32 %v1944_v47, %v1939_v6  ;;  %v1952_v23 = vsel %vm317_vm2, %v6538_v56, 0.0  ;;  %v1942_v52 = vadd.f32 %v1934_v8, %v1909_v18  ;;  %v1972_v29 = vmul.f32 %v6538_v56, %v6538_v56 }
 0x48a   :  { %v1932_v26 = vpop.permute.xlu0 %1931  ;;  %5370 = vst.msk [vmem:[%s8444_s5 + $0x80] sm:$0xff] %vm317_vm2, %v1694_v14  ;;  %5371 = vst.msk [vmem:[%s8444_s5 + $0x88] sm:$0xff] %vm317_vm2, %v1695_v39  ;;  %1953 = vadd.xlane.f32.xlu1 %v1952_v23  ;;  %v2063_v34 = vmul.f32 %v6313_v4, %v2062_v53  ;;  %v2114_v45 = vmul.f32 %v6313_v4, %v2113_v35  ;;  %v2117_v16 = vmul.f32 %v6319_v7, %v2113_v35  ;;  %v6611_v7 = vld [vmem:[%s8439_s0] sm:$0xff] }
 0x48b   :  { %5372 = vst.msk [vmem:[%s8444_s5 + $0x90] sm:$0xff] %vm317_vm2, %v1696_v1  ;;  %v1941_v58 = vadd.f32 %v1932_v26, %v1908_v32  ;;  %v1949_v54 = vsel %vm317_vm2, %v6540_v22, 0.0  ;;  %v1971_v12 = vmul.f32 %v6540_v22, %v6540_v22  ;;  %v6571_v21 = vadd.f32 %v1944_v47, %v1942_v52 }
 0x48c   :  { %5373 = vst.msk [vmem:[%s8444_s5 + $0x98] sm:$0x3] %vm327_vm3, %v1697_v46  ;;  %1950 = vadd.xlane.f32.xlu0 %v1949_v54  ;;  %v1978_v3 = vsel %vm317_vm2, %v1972_v29, 0.0  ;;  %v2126_v37 = vsel %vm137_vm0, %v2123_v44, %v2125_v40  ;;  %v2149_v57 = vmul.f32 %v6332_v2, %v2146_v43  ;;  %v2065_v11 = vmul.f32 %v6332_v2, %v2062_v53  ;;  %v6617_v2 = vld [vmem:[%s8439_s0 + $0x18] sm:$0xf] }
 0x48d   :  { %v6564_v55 = vadd.f32 %v1944_v47, %v1941_v58  ;;  %v1975_v13 = vsel %vm317_vm2, %v1971_v12, 0.0  ;;  %v1958_v30 = vsel %vm327_vm3, %v6571_v21, 0.0  ;;  %v1974_v63 = vmul.f32 %v6571_v21, %v6571_v21 }
 0x48e   :  { %1976 = vadd.xlane.f32.xlu1 %v1975_v13  ;;  %v2148_v47 = vmul.f32 %v6326_v61, %v2146_v43  ;;  %v2122_v19 = vrot.slane %v2114_v45, 1  ;;  %v2127_v20 = vrot.slane %v2117_v16, 1  ;;  %v2158_v51 = vrot.slane %v2149_v57, 1 }
 0x48f   :  { %v1955_v50 = vsel %vm317_vm2, %v6564_v55, 0.0  ;;  %v1973_v28 = vmul.f32 %v6564_v55, %v6564_v55  ;;  %v1984_v62 = vsel %vm327_vm3, %v1974_v63, 0.0  ;;  %v2204_v0 = vstv %s5397_s10  ;;  %s5411_s10 = sld [smem:[#allocation2 + $0x44]] }
 0x490   :  { %1956 = vadd.xlane.f32.xlu0 %v1955_v50  ;;  %v2156_v48 = vrot.slane %v2148_v47, 1  ;;  %v2124_v4 = vsel %vm137_vm0, %v2122_v19, %v2123_v44  ;;  %v2147_v61 = vmul.f32 %v6611_v7, %v2146_v43  ;;  %v2150_v59 = vmul.f32 %v6617_v2, %v2146_v43 }
 0x491   :  { %v1981_v5 = vsel %vm317_vm2, %v1973_v28, 0.0  ;;  %v2206_v49 = vmul.f32 %v6624_v60, %v2204_v0  ;;  %v2207_v9 = vmul.f32 %v6630_v33, %v2204_v0  ;;  %v2128_v25 = vsel %vm137_vm0, %v2125_v40, %v2127_v20 }
 0x492   :  { %1982 = vadd.xlane.f32.xlu1 %v1981_v5  ;;  %v2159_v41 = vsel %vm137_vm0, %v2156_v48, %v2158_v51  ;;  %v2155_v32 = vrot.slane %v2147_v61, 1  ;;  %v2160_v6 = vrot.slane %v2150_v59, 1  ;;  %v2237_v1 = vstv %s5398_s11  ;;  %s5413_s11 = sld [smem:[#allocation2 + $0x46]] }
 0x493   :  { %v2214_v14 = vrot.slane %v2206_v49, 2  ;;  %v2216_v39 = vrot.slane %v2207_v9, 2  ;;  %v2205_v8 = vmul.f32 %v6611_v7, %v2204_v0  ;;  %v2208_v18 = vmul.f32 %v6617_v2, %v2204_v0 }
 0x494   :  { %1959 = vadd.xlane.f32.xlu0 %v1958_v30  ;;  %v2157_v46 = vsel %vm137_vm0, %v2155_v32, %v2156_v48  ;;  %v2239_v26 = vmul.f32 %v6624_v60, %v2237_v1  ;;  %v2240_v58 = vmul.f32 %v6630_v33, %v2237_v1  ;;  %v2161_v52 = vsel %vm137_vm0, %v2158_v51, %v2160_v6 }
 0x495   :  { %v2217_v23 = vsel %vm229_vm1, %v2214_v14, %v2216_v39  ;;  %v2213_v54 = vrot.slane %v2205_v8, 2  ;;  %v2218_v12 = vrot.slane %v2208_v18, 2  ;;  %v2238_v5 = vmul.f32 %v6611_v7, %v2237_v1 }
 0x496   :  { %v2247_v13 = vrot.slane %v2239_v26, 2  ;;  %v2249_v50 = vrot.slane %v2240_v58, 2  ;;  %v2241_v30 = vmul.f32 %v6617_v2, %v2237_v1  ;;  %v2030_v18 = vstv %s5390_s21  ;;  %s5455_s21 = sld [smem:[#allocation2 + $0x13]] }
 0x497   :  { %v2215_v28 = vsel %vm229_vm1, %v2213_v54, %v2214_v14  ;;  %v2246_v63 = vrot.slane %v2238_v5, 2  ;;  %v2032_v26 = vmul.f32 %v6624_v60, %v2030_v18 }
 0x498   :  { %1979 = vadd.xlane.f32.xlu0 %v1978_v3  ;;  %v2250_v29 = vsel %vm229_vm1, %v2247_v13, %v2249_v50  ;;  %v2219_v3 = vsel %vm229_vm1, %v2216_v39, %v2218_v12 }
 0x499   :  { %v2248_v15 = vsel %vm229_vm1, %v2246_v63, %v2247_v13 }
 0x49c   :  { %1985 = vadd.xlane.f32.xlu0 %v1984_v62  ;;  %v2251_v62 = vrot.slane %v2241_v30, 2  ;;  %v2031_v30 = vmul.f32 %v6611_v7, %v2030_v18 }
 0x4a3   :  { %2045 = vrot.lane.b32.xlu1 %v2037_v31, %s5664_s16  ;;  %v2252_v31 = vsel %vm229_vm1, %v2249_v50, %v2251_v62 }
 0x4a7   :  { %2049 = vrot.lane.b32.xlu1 %v2039_v10, %s5664_s16 }
 0x4ab   :  { %2051 = vrot.lane.b32.xlu1 %v2040_v42, %s5664_s16 }
 0x4af   :  { %2073 = vrot.lane.b32.xlu1 %v2064_v27, %s5665_s18 }
 0x4b2   :  { %2047 = vrot.lane.b32.xlu0 %v2038_v36, %s5664_s16 }
 0x4b3   :  { %2077 = vrot.lane.b32.xlu1 %v2066_v24, %s5665_s18 }
 0x4b6   :  { %2071 = vrot.lane.b32.xlu0 %v2063_v34, %s5665_s18 }
 0x4b7   :  { %2131 = vrot.lane.b32.xlu1 %v2126_v37, %s5664_s16 }
 0x4ba   :  { %2075 = vrot.lane.b32.xlu0 %v2065_v11, %s5665_s18 }
 0x4bb   :  { %2135 = vrot.lane.b32.xlu1 %v2127_v20, %s5664_s16 }
 0x4be   :  { %2129 = vrot.lane.b32.xlu0 %v2124_v4, %s5664_s16 }
 0x4bf   :  { %2164 = vrot.lane.b32.xlu1 %v2159_v41, %s5665_s18 }
 0x4c2   :  { %2133 = vrot.lane.b32.xlu0 %v2128_v25, %s5664_s16 }
 0x4c3   :  { %2168 = vrot.lane.b32.xlu1 %v2160_v6, %s5665_s18 }
 0x4c6   :  { %2162 = vrot.lane.b32.xlu0 %v2157_v46, %s5665_s18  ;;  %v2088_v46 = vstv %s5393_s20  ;;  %s5507_s20 = sld [smem:[#allocation2 + $0x32]] }
 0x4c7   :  { %2222 = vrot.lane.b32.xlu1 %v2217_v23, %s5664_s16  ;;  %v2091_v13 = vmul.f32 %v6630_v33, %v2088_v46  ;;  %v2089_v5 = vmul.f32 %v6611_v7, %v2088_v46 }
 0x4ca   :  { %2166 = vrot.lane.b32.xlu0 %v2161_v52, %s5665_s18 }
 0x4cb   :  { %2226 = vrot.lane.b32.xlu1 %v2218_v12, %s5664_s16  ;;  %v2090_v12 = vmul.f32 %v6624_v60, %v2088_v46 }
 0x4ce   :  { %2220 = vrot.lane.b32.xlu0 %v2215_v28, %s5664_s16 }
 0x4cf   :  { %2255 = vrot.lane.b32.xlu1 %v2250_v29, %s5665_s18 }
 0x4d2   :  { %2224 = vrot.lane.b32.xlu0 %v2219_v3, %s5664_s16 }
 0x4d3   :  { %2259 = vrot.lane.b32.xlu1 %v2251_v62, %s5665_s18  ;;  %v2098_v62 = vrot.slane %v2090_v12, 1 }
 0x4d6   :  { %2253 = vrot.lane.b32.xlu0 %v2248_v15, %s5665_s18  ;;  %v2100_v15 = vrot.slane %v2091_v13, 1  ;;  %v2015_v13 = vstv %s5385_s24  ;;  %s5456_s24 = sld [smem:[#allocation2 + $0x14]] }
 0x4da   :  { %2257 = vrot.lane.b32.xlu0 %v2252_v31, %s5665_s18  ;;  %v2092_v31 = vmul.f32 %v6617_v2, %v2088_v46 }
 0x513   :  { %v1954_v10 = vpop.xlane.xlu1 %1953 }
 0x515   :  { %v1951_v42 = vpop.xlane.xlu0 %1950 }
 0x516   :  { %v1961_v27 = vadd.f32 %v1954_v10, %v1951_v42  ;;  %v2033_v10 = vmul.f32 %v6630_v33, %v2030_v18  ;;  %v2034_v42 = vmul.f32 %v6617_v2, %v2030_v18 }
 0x517   :  { %v1977_v53 = vpop.xlane.xlu1 %1976 }
 0x519   :  { %v1957_v35 = vpop.xlane.xlu0 %1956 }
 0x51a   :  { %v1962_v38 = vadd.f32 %v1961_v27, %v1957_v35  ;;  %v2179_v35 = vstv %s5396_s22  ;;  %v2097_v27 = vrot.slane %v2089_v5, 1  ;;  %s5471_s22 = sld [smem:[#allocation2 + $0x1c]] }
 0x51b   :  { %v1983_v17 = vpop.xlane.xlu1 %1982 }
 0x51d   :  { %v1960_v36 = vpop.xlane.xlu0 %1959 }
 0x51e   :  { %v1963_v24 = vsel %vm333_vm4, %v1960_v36, 0.0 }
 0x51f   :  { %v1964_v44 = vadd.f32 %v1963_v24, %v1962_v38  ;;  %v2046_v40 = vpop.permute.xlu1 %2045  ;;  %v2101_v24 = vsel %vm137_vm0, %v2098_v62, %v2100_v15 }
 0x521   :  { %v1965_v43 = vrot.slane %v1964_v44, 4  ;;  %v1980_v34 = vpop.xlane.xlu0 %1979 }
 0x522   :  { %v1987_v45 = vadd.f32 %v1980_v34, %v1977_v53  ;;  %v2182_v34 = vmul.f32 %v6630_v33, %v2179_v35 }
 0x523   :  { %v1966_v16 = vadd.f32 %v1965_v43, %v1964_v44  ;;  %v2050_v37 = vpop.permute.xlu1 %2049  ;;  %v2102_v44 = vrot.slane %v2092_v31, 1  ;;  %v2181_v43 = vmul.f32 %v6624_v60, %v2179_v35 }
 0x524   :  { %v1988_v47 = vadd.f32 %v1987_v45, %v1983_v17  ;;  %v2057_v17 = vadd.f32 %v2046_v40, %v2031_v30  ;;  %v2059_v45 = vadd.f32 %v2050_v37, %v2033_v10  ;;  %v2180_v40 = vmul.f32 %v6611_v7, %v2179_v35 }
 0x525   :  { %v1967_v57 = vrot.slane %v1966_v16, 2  ;;  %v1986_v11 = vpop.xlane.xlu0 %1985  ;;  %v2191_v37 = vrot.slane %v2182_v34, 2 }
 0x526   :  { %v1989_v19 = vsel %vm333_vm4, %v1986_v11, 0.0  ;;  %v2099_v11 = vsel %vm137_vm0, %v2097_v27, %v2098_v62 }
 0x527   :  { %v1968_v20 = vadd.f32 %v1967_v57, %v1966_v16  ;;  %v1990_v48 = vadd.f32 %v1989_v19, %v1988_v47  ;;  %v2052_v51 = vpop.permute.xlu1 %2051  ;;  %v2183_v19 = vmul.f32 %v6617_v2, %v2179_v35  ;;  %v2270_v35 = vstv %s5399_s25  ;;  %s5458_s25 = sld [smem:[#allocation2 + $0x16]] }
 0x528   :  { %v2060_v16 = vadd.f32 %v2052_v51, %v2034_v42 }
 0x529   :  { %v1991_v0 = vrot.slane %v1990_v48, 4  ;;  %v2048_v4 = vpop.permute.xlu0 %2047  ;;  %v1969_v61 = vrot.slane %v1968_v20, 1 }
 0x52a   :  { %v2058_v29 = vadd.f32 %v2048_v4, %v2032_v26  ;;  %v2103_v4 = vsel %vm137_vm0, %v2100_v15, %v2102_v44 }
 0x52b   :  { %v1992_v59 = vadd.f32 %v1991_v0, %v1990_v48  ;;  %v2074_v41 = vpop.permute.xlu1 %2073  ;;  %v1970_v25 = vadd.f32 %v1969_v61, %v1968_v20  ;;  %v2189_v61 = vrot.slane %v2181_v43, 2 }
 0x52c   :  { %v2084_v38 = vadd.f32 %v2074_v41, %v2058_v29 }
 0x52d   :  { %v1993_v49 = vrot.slane %v1992_v59, 2  ;;  %v2072_v9 = vpop.permute.xlu0 %2071  ;;  %v6664_v39 = vmul.f32 0.00147929, %v1970_v25  ;;  %v2193_v25 = vrot.slane %v2183_v19, 2 }
 0x52e   :  { %v2083_v47 = vadd.f32 %v2072_v9, %v2057_v17  ;;  %v2109_v48 = vadd.f32 %v2101_v24, %v2084_v38  ;;  %v2188_v9 = vrot.slane %v2180_v40, 2 }
 0x52f   :  { %v2078_v32 = vpop.permute.xlu1 %2077  ;;  %v1994_v6 = vadd.f32 %v1993_v49, %v1992_v59  ;;  %v1999_v52 = vmul.f32 %v6664_v39, %v6664_v39  ;;  %v2003_v5 = vsub.f32 %v6540_v22, %v6664_v39  ;;  %v2004_v62 = vsub.f32 %v6538_v56, %v6664_v39 }
 0x530   :  { %v2086_v59 = vadd.f32 %v2078_v32, %v2060_v16  ;;  %v2108_v51 = vadd.f32 %v2099_v11, %v2083_v47  ;;  %v2190_v32 = vsel %vm229_vm1, %v2188_v9, %v2189_v61  ;;  %v2006_v15 = vsub.f32 %v6571_v21, %v6664_v39 }
 0x531   :  { %v2076_v14 = vpop.permute.xlu0 %2075  ;;  %v1995_v1 = vrot.slane %v1994_v6, 1 }
 0x532   :  { %v2085_v20 = vadd.f32 %v2076_v14, %v2059_v45  ;;  %v2192_v14 = vsel %vm229_vm1, %v2189_v61, %v2191_v37  ;;  %v2111_v26 = vadd.f32 %v2102_v44, %v2086_v59 }
 0x533   :  { %v2132_v8 = vpop.permute.xlu1 %2131  ;;  %v1996_v23 = vadd.f32 %v1995_v1, %v1994_v6 }
 0x534   :  { %v2142_v41 = vadd.f32 %v2132_v8, %v2109_v48  ;;  %v2110_v1 = vadd.f32 %v2103_v4, %v2085_v20  ;;  %v2194_v8 = vsel %vm229_vm1, %v2191_v37, %v2193_v25 }
 0x535   :  { %v2130_v58 = vpop.permute.xlu0 %2129  ;;  %v1998_v54 = vmul.f32 0.00147929, %v1996_v23  ;;  %v2008_v23 = vstv %s6679_s23  ;;  %s5472_s23 = sld [smem:[#allocation2 + $0x1d]] }
 0x536   :  { %v2141_v6 = vadd.f32 %v2130_v58, %v2108_v51 }
 0x537   :  { %v2136_v50 = vpop.permute.xlu1 %2135  ;;  %v2000_v28 = vsub.f32 %v1998_v54, %v1999_v52 }
 0x538   :  { %v2144_v58 = vadd.f32 %v2136_v50, %v2111_v26 }
 0x539   :  { %v2134_v3 = vpop.permute.xlu0 %2133  ;;  %v2001_v63 = vadd.f32 1e-05, %v2000_v28 }
 0x53a   :  { %v2143_v52 = vadd.f32 %v2134_v3, %v2110_v1  ;;  %v2005_v3 = vsub.f32 %v6564_v55, %v6664_v39 }
 0x53b   :  { %v2165_v53 = vpop.permute.xlu1 %2164  ;;  %5566 = vrsqrt.f32 %v2001_v63 }
 0x53c   :  { %v2175_v46 = vadd.f32 %v2165_v53, %v2142_v41 }
 0x53d   :  { %v2163_v36 = vpop.permute.xlu0 %2162 }
 0x53e   :  { %v2174_v54 = vadd.f32 %v2163_v36, %v2141_v6  ;;  %v2200_v29 = vadd.f32 %v2192_v14, %v2175_v46 }
 0x53f   :  { %v2169_v57 = vpop.permute.xlu1 %2168 }
 0x540   :  { %v2177_v10 = vadd.f32 %v2169_v57, %v2144_v58  ;;  %v2199_v53 = vadd.f32 %v2190_v32, %v2174_v54  ;;  %v2362_v54 = vstv %s5407_s7  ;;  %s5441_s7 = sld [smem:[#allocation2 + $0xc]] }
 0x541   :  { %v2167_v0 = vpop.permute.xlu0 %2166  ;;  %v2366_v32 = vmul.f32 %v6617_v2, %v2362_v54 }
 0x542   :  { %v2176_v30 = vadd.f32 %v2167_v0, %v2143_v52  ;;  %v2202_v16 = vadd.f32 %v2193_v25, %v2177_v10 }
 0x543   :  { %v2223_v49 = vpop.permute.xlu1 %2222 }
 0x544   :  { %v2233_v42 = vadd.f32 %v2223_v49, %v2200_v29  ;;  %v2201_v24 = vadd.f32 %v2194_v8, %v2176_v30  ;;  %v2388_v8 = vstv %s5408_s8  ;;  %v2364_v29 = vmul.f32 %v6624_v60, %v2362_v54  ;;  %s5438_s8 = sld [smem:[#allocation2 + $0x9]] }
 0x545   :  { %v2221_v18 = vpop.permute.xlu0 %2220 }
 0x546   :  { %v2232_v36 = vadd.f32 %v2221_v18, %v2199_v53 }
 0x547   :  { %v2227_v12 = vpop.permute.xlu1 %2226 }
 0x548   :  { %v5567_v28 = vpop.eup %5566  ;;  %v2235_v48 = vadd.f32 %v2227_v12, %v2202_v16  ;;  %v2363_v12 = vmul.f32 %v6611_v7, %v2362_v54 }
 0x549   :  { %v2225_v63 = vpop.permute.xlu0 %2224  ;;  %v2009_v31 = vmul.f32 %v5567_v28, %v2008_v23  ;;  %v2439_v28 = vstv %s5410_s9  ;;  %s5430_s9 = sld [smem:[#allocation2 + $0x5]] }
 0x54a   :  { %v2234_v21 = vadd.f32 %v2225_v63, %v2201_v24  ;;  %v2441_v58 = vmul.f32 %v6624_v60, %v2439_v28  ;;  %v2442_v30 = vmul.f32 %v6630_v33, %v2439_v28  ;;  %v2392_v63 = vmul.f32 %v6617_v2, %v2388_v8 }
 0x54b   :  { %v2256_v27 = vpop.permute.xlu1 %2255  ;;  %v2010_v22 = vmul.f32 %v2009_v31, %v2003_v5  ;;  %v2011_v50 = vmul.f32 %v2009_v31, %v2004_v62  ;;  %v2012_v17 = vmul.f32 %v2009_v31, %v2005_v3  ;;  %v2013_v38 = vmul.f32 %v2009_v31, %v2006_v15 }
 0x54c   :  { %v2266_v44 = vadd.f32 %v2256_v27, %v2233_v42  ;;  %v2390_v5 = vmul.f32 %v6624_v60, %v2388_v8  ;;  %v2449_v62 = vrot.slane %v2441_v58, 1  ;;  %v2451_v3 = vrot.slane %v2442_v30, 1 }
 0x54d   :  { %v2254_v56 = vpop.permute.xlu0 %2253  ;;  %v2016_v43 = vadd.f32 %v2015_v13, %v2010_v22  ;;  %v2017_v34 = vadd.f32 %v2015_v13, %v2011_v50  ;;  %v2018_v55 = vadd.f32 %v2015_v13, %v2012_v17  ;;  %v2019_v45 = vadd.f32 %v2015_v13, %v2013_v38 }
 0x54e   :  { %v6697_v39 = vadd.f32 %v2270_v35, %v2266_v44  ;;  %v2265_v47 = vadd.f32 %v2254_v56, %v2232_v36  ;;  %v2365_v13 = vmul.f32 %v6630_v33, %v2362_v54  ;;  %v2472_v15 = vstv %s5411_s10  ;;  %s7116_s10 = sld [smem:[#allocation7]] }
 0x54f   :  { %v2020_v57 = vmax.f32 %v2016_v43, 0.0  ;;  %v2021_v11 = vmax.f32 %v2017_v34, 0.0  ;;  %v2022_v40 = vmax.f32 %v2018_v55, 0.0  ;;  %v2023_v19 = vmax.f32 %v2019_v45, 0.0  ;;  %v2260_v20 = vpop.permute.xlu1 %2259 }
 0x550   :  { %v6699_v0 = vadd.f32 %v2270_v35, %v2265_v47  ;;  %v2278_v4 = vsel %vm317_vm2, %v6697_v39, 0.0  ;;  %v2268_v59 = vadd.f32 %v2260_v20, %v2235_v48  ;;  %v2298_v14 = vmul.f32 %v6697_v39, %v6697_v39 }
 0x551   :  { %v2258_v61 = vpop.permute.xlu0 %2257  ;;  %5386 = vst.msk [vmem:[%s8444_s5 + $0xa0] sm:$0xff] %vm317_vm2, %v2020_v57  ;;  %5387 = vst.msk [vmem:[%s8444_s5 + $0xa8] sm:$0xff] %vm317_vm2, %v2021_v11  ;;  %2279 = vadd.xlane.f32.xlu1 %v2278_v4  ;;  %v2389_v31 = vmul.f32 %v6611_v7, %v2388_v8  ;;  %v2440_v10 = vmul.f32 %v6611_v7, %v2439_v28  ;;  %v2443_v42 = vmul.f32 %v6617_v2, %v2439_v28 }
 0x552   :  { %5388 = vst.msk [vmem:[%s8444_s5 + $0xb0] sm:$0xff] %vm317_vm2, %v2022_v40  ;;  %v2267_v37 = vadd.f32 %v2258_v61, %v2234_v21  ;;  %v2275_v41 = vsel %vm317_vm2, %v6699_v0, 0.0  ;;  %v2297_v51 = vmul.f32 %v6699_v0, %v6699_v0  ;;  %v6730_v1 = vadd.f32 %v2270_v35, %v2268_v59 }
 0x553   :  { %5389 = vst.msk [vmem:[%s8444_s5 + $0xb8] sm:$0x3] %vm327_vm3, %v2023_v19  ;;  %2276 = vadd.xlane.f32.xlu0 %v2275_v41  ;;  %v2304_v23 = vsel %vm317_vm2, %v2298_v14, 0.0  ;;  %v2452_v53 = vsel %vm137_vm0, %v2449_v62, %v2451_v3  ;;  %v2475_v27 = vmul.f32 %v6630_v33, %v2472_v15  ;;  %v2391_v22 = vmul.f32 %v6630_v33, %v2388_v8 }
 0x554   :  { %v6723_v49 = vadd.f32 %v2270_v35, %v2267_v37  ;;  %v2301_v9 = vsel %vm317_vm2, %v2297_v51, 0.0  ;;  %v2284_v18 = vsel %vm327_vm3, %v6730_v1, 0.0  ;;  %v2300_v26 = vmul.f32 %v6730_v1, %v6730_v1 }
 0x555   :  { %2302 = vadd.xlane.f32.xlu1 %v2301_v9  ;;  %v2474_v35 = vmul.f32 %v6624_v60, %v2472_v15  ;;  %v2448_v50 = vrot.slane %v2440_v10, 1  ;;  %v2453_v17 = vrot.slane %v2443_v42, 1  ;;  %v2484_v36 = vrot.slane %v2475_v27, 1 }
 0x556   :  { %v2281_v25 = vsel %vm317_vm2, %v6723_v49, 0.0  ;;  %v2299_v6 = vmul.f32 %v6723_v49, %v6723_v49  ;;  %v2310_v52 = vsel %vm327_vm3, %v2300_v26, 0.0  ;;  %v2530_v24 = vstv %s5413_s11  ;;  %s2997_s11 = sld [smem:[#allocation8]] }
 0x557   :  { %2282 = vadd.xlane.f32.xlu0 %v2281_v25  ;;  %v2482_v38 = vrot.slane %v2474_v35, 1  ;;  %v2450_v44 = vsel %vm137_vm0, %v2448_v50, %v2449_v62  ;;  %v2473_v56 = vmul.f32 %v6611_v7, %v2472_v15  ;;  %v2476_v43 = vmul.f32 %v6617_v2, %v2472_v15 }
 0x558   :  { %v2307_v46 = vsel %vm317_vm2, %v2299_v6, 0.0  ;;  %v2532_v55 = vmul.f32 %v6624_v60, %v2530_v24  ;;  %v2533_v45 = vmul.f32 %v6630_v33, %v2530_v24  ;;  %v2454_v16 = vsel %vm137_vm0, %v2451_v3, %v2453_v17 }
 0x559   :  { %2308 = vadd.xlane.f32.xlu1 %v2307_v46  ;;  %v2485_v34 = vsel %vm137_vm0, %v2482_v38, %v2484_v36  ;;  %v2481_v21 = vrot.slane %v2473_v56, 1  ;;  %v2486_v47 = vrot.slane %v2476_v43, 1  ;;  %v2563_v40 = vstv %s5414_s3  ;;  %s5432_s3 = sld [smem:[#allocation2 + $0x7]] }
 0x55a   :  { %v2540_v57 = vrot.slane %v2532_v55, 2  ;;  %v2542_v11 = vrot.slane %v2533_v45, 2  ;;  %v2531_v20 = vmul.f32 %v6611_v7, %v2530_v24  ;;  %v2534_v48 = vmul.f32 %v6617_v2, %v2530_v24 }
 0x55b   :  { %2285 = vadd.xlane.f32.xlu0 %v2284_v18  ;;  %v2483_v19 = vsel %vm137_vm0, %v2481_v21, %v2482_v38  ;;  %v2565_v61 = vmul.f32 %v6624_v60, %v2563_v40  ;;  %v2566_v37 = vmul.f32 %v6630_v33, %v2563_v40  ;;  %v2487_v59 = vsel %vm137_vm0, %v2484_v36, %v2486_v47 }
 0x55c   :  { %v2543_v4 = vsel %vm229_vm1, %v2540_v57, %v2542_v11  ;;  %v2539_v41 = vrot.slane %v2531_v20, 2  ;;  %v2544_v51 = vrot.slane %v2534_v48, 2  ;;  %v2564_v46 = vmul.f32 %v6611_v7, %v2563_v40 }
 0x55d   :  { %v2573_v9 = vrot.slane %v2565_v61, 2  ;;  %v2575_v25 = vrot.slane %v2566_v37, 2  ;;  %v2567_v18 = vmul.f32 %v6617_v2, %v2563_v40  ;;  %v2356_v48 = vstv %s5406_s4  ;;  %s5428_s4 = sld [smem:[#allocation2 + $0x3]] }
 0x55e   :  { %v2541_v6 = vsel %vm229_vm1, %v2539_v41, %v2540_v57  ;;  %v2572_v26 = vrot.slane %v2564_v46, 2  ;;  %v2358_v61 = vmul.f32 %v6624_v60, %v2356_v48 }
 0x55f   :  { %2305 = vadd.xlane.f32.xlu0 %v2304_v23  ;;  %v2576_v14 = vsel %vm229_vm1, %v2573_v9, %v2575_v25  ;;  %v2545_v23 = vsel %vm229_vm1, %v2542_v11, %v2544_v51 }
 0x560   :  { %v2574_v54 = vsel %vm229_vm1, %v2572_v26, %v2573_v9 }
 0x563   :  { %2311 = vadd.xlane.f32.xlu0 %v2310_v52  ;;  %v2577_v52 = vrot.slane %v2567_v18, 2  ;;  %v2357_v18 = vmul.f32 %v6611_v7, %v2356_v48 }
 0x56a   :  { %2371 = vrot.lane.b32.xlu1 %v2363_v12, %s5664_s16  ;;  %v2578_v12 = vsel %vm229_vm1, %v2575_v25, %v2577_v52 }
 0x56e   :  { %2375 = vrot.lane.b32.xlu1 %v2365_v13, %s5664_s16 }
 0x572   :  { %2377 = vrot.lane.b32.xlu1 %v2366_v32, %s5664_s16 }
 0x576   :  { %2399 = vrot.lane.b32.xlu1 %v2390_v5, %s5665_s18 }
 0x579   :  { %2373 = vrot.lane.b32.xlu0 %v2364_v29, %s5664_s16 }
 0x57a   :  { %2403 = vrot.lane.b32.xlu1 %v2392_v63, %s5665_s18 }
 0x57d   :  { %2397 = vrot.lane.b32.xlu0 %v2389_v31, %s5665_s18 }
 0x57e   :  { %2457 = vrot.lane.b32.xlu1 %v2452_v53, %s5664_s16 }
 0x581   :  { %2401 = vrot.lane.b32.xlu0 %v2391_v22, %s5665_s18 }
 0x582   :  { %2461 = vrot.lane.b32.xlu1 %v2453_v17, %s5664_s16 }
 0x585   :  { %2455 = vrot.lane.b32.xlu0 %v2450_v44, %s5664_s16 }
 0x586   :  { %2490 = vrot.lane.b32.xlu1 %v2485_v34, %s5665_s18 }
 0x589   :  { %2459 = vrot.lane.b32.xlu0 %v2454_v16, %s5664_s16 }
 0x58a   :  { %2494 = vrot.lane.b32.xlu1 %v2486_v47, %s5665_s18 }
 0x58d   :  { %2488 = vrot.lane.b32.xlu0 %v2483_v19, %s5665_s18  ;;  %v2414_v19 = vstv %s5409_s12  ;;  %s5433_s12 = sld [smem:[#allocation2 + $0x8]] }
 0x58e   :  { %2548 = vrot.lane.b32.xlu1 %v2543_v4, %s5664_s16  ;;  %v2417_v9 = vmul.f32 %v6630_v33, %v2414_v19  ;;  %v2415_v46 = vmul.f32 %v6611_v7, %v2414_v19 }
 0x591   :  { %2492 = vrot.lane.b32.xlu0 %v2487_v59, %s5665_s18 }
 0x592   :  { %2552 = vrot.lane.b32.xlu1 %v2544_v51, %s5664_s16  ;;  %v2416_v51 = vmul.f32 %v6624_v60, %v2414_v19 }
 0x595   :  { %2546 = vrot.lane.b32.xlu0 %v2541_v6, %s5664_s16 }
 0x596   :  { %2581 = vrot.lane.b32.xlu1 %v2576_v14, %s5665_s18 }
 0x599   :  { %2550 = vrot.lane.b32.xlu0 %v2545_v23, %s5664_s16 }
 0x59a   :  { %2585 = vrot.lane.b32.xlu1 %v2577_v52, %s5665_s18  ;;  %v2424_v52 = vrot.slane %v2416_v51, 1 }
 0x59d   :  { %2579 = vrot.lane.b32.xlu0 %v2574_v54, %s5665_s18  ;;  %v2426_v54 = vrot.slane %v2417_v9, 1 }
 0x5a1   :  { %2583 = vrot.lane.b32.xlu0 %v2578_v12, %s5665_s18  ;;  %v2418_v12 = vmul.f32 %v6617_v2, %v2414_v19 }
 0x5da   :  { %v2280_v13 = vpop.xlane.xlu1 %2279 }
 0x5dc   :  { %v2277_v32 = vpop.xlane.xlu0 %2276 }
 0x5dd   :  { %v2287_v5 = vadd.f32 %v2280_v13, %v2277_v32  ;;  %v2359_v13 = vmul.f32 %v6630_v33, %v2356_v48  ;;  %v2360_v32 = vmul.f32 %v6617_v2, %v2356_v48 }
 0x5de   :  { %v2303_v8 = vpop.xlane.xlu1 %2302 }
 0x5e0   :  { %v2283_v28 = vpop.xlane.xlu0 %2282 }
 0x5e1   :  { %v2288_v30 = vadd.f32 %v2287_v5, %v2283_v28  ;;  %v2505_v28 = vstv %s5412_s13  ;;  %v2423_v5 = vrot.slane %v2415_v46, 1  ;;  %s2686_s13 = sld [smem:[#allocation2]] }
 0x5e2   :  { %v2309_v58 = vpop.xlane.xlu1 %2308 }
 0x5e4   :  { %v2286_v29 = vpop.xlane.xlu0 %2285 }
 0x5e5   :  { %v2289_v63 = vsel %vm333_vm4, %v2286_v29, 0.0 }
 0x5e6   :  { %v2290_v62 = vadd.f32 %v2289_v63, %v2288_v30  ;;  %v2372_v3 = vpop.permute.xlu1 %2371  ;;  %v2427_v63 = vsel %vm137_vm0, %v2424_v52, %v2426_v54 }
 0x5e8   :  { %v2291_v15 = vrot.slane %v2290_v62, 4  ;;  %v2306_v31 = vpop.xlane.xlu0 %2305 }
 0x5e9   :  { %v2313_v10 = vadd.f32 %v2306_v31, %v2303_v8  ;;  %v2508_v31 = vmul.f32 %v6630_v33, %v2505_v28 }
 0x5ea   :  { %v2292_v42 = vadd.f32 %v2291_v15, %v2290_v62  ;;  %v2376_v53 = vpop.permute.xlu1 %2375  ;;  %v2428_v62 = vrot.slane %v2418_v12, 1  ;;  %v2507_v15 = vmul.f32 %v6624_v60, %v2505_v28  ;;  %v2596_v12 = vstv %s5415_s17  ;;  %s5417_s17 = sld [smem:[#allocation8 + $0x7]] }
 0x5eb   :  { %v2314_v35 = vadd.f32 %v2313_v10, %v2309_v58  ;;  %v2383_v58 = vadd.f32 %v2372_v3, %v2357_v18  ;;  %v2385_v10 = vadd.f32 %v2376_v53, %v2359_v13  ;;  %v2506_v3 = vmul.f32 %v6611_v7, %v2505_v28 }
 0x5ec   :  { %v2293_v27 = vrot.slane %v2292_v42, 2  ;;  %v2312_v22 = vpop.xlane.xlu0 %2311  ;;  %v2429_v60 = vsel %vm137_vm0, %v2426_v54, %v2428_v62  ;;  %v2515_v33 = vrot.slane %v2507_v15, 2  ;;  %v2517_v53 = vrot.slane %v2508_v31, 2 }
 0x5ed   :  { %v2315_v50 = vsel %vm333_vm4, %v2312_v22, 0.0  ;;  %v2425_v22 = vsel %vm137_vm0, %v2423_v5, %v2424_v52 }
 0x5ee   :  { %v2294_v17 = vadd.f32 %v2293_v27, %v2292_v42  ;;  %v2316_v38 = vadd.f32 %v2315_v50, %v2314_v35  ;;  %v2378_v36 = vpop.permute.xlu1 %2377  ;;  %v2509_v50 = vmul.f32 %v6617_v2, %v2505_v28  ;;  %v2518_v2 = vsel %vm229_vm1, %v2515_v33, %v2517_v53 }
 0x5ef   :  { %v2386_v42 = vadd.f32 %v2378_v36, %v2360_v32 }
 0x5f0   :  { %v2317_v24 = vrot.slane %v2316_v38, 4  ;;  %v2374_v44 = vpop.permute.xlu0 %2373  ;;  %v2295_v56 = vrot.slane %v2294_v17, 1 }
 0x5f1   :  { %v2384_v14 = vadd.f32 %v2374_v44, %v2358_v61  ;;  %v2341_v61 = vstv %s5401_s15  ;;  %s6977_s15 = sld [smem:[#allocation7 + $0x7]] }
 0x5f2   :  { %v2318_v43 = vadd.f32 %v2317_v24, %v2316_v38  ;;  %v2400_v34 = vpop.permute.xlu1 %2399  ;;  %v2296_v16 = vadd.f32 %v2295_v56, %v2294_v17 }
 0x5f3   :  { %v2410_v30 = vadd.f32 %v2400_v34, %v2384_v14  ;;  %v2514_v34 = vrot.slane %v2506_v3, 2 }
 0x5f4   :  { %v2319_v55 = vrot.slane %v2318_v43, 2  ;;  %v2398_v45 = vpop.permute.xlu0 %2397  ;;  %v6803_v11 = vmul.f32 0.00147929, %v2296_v16 }
 0x5f5   :  { %v2409_v35 = vadd.f32 %v2398_v45, %v2383_v58  ;;  %v2435_v38 = vadd.f32 %v2427_v63, %v2410_v30 }
 0x5f6   :  { %v2404_v21 = vpop.permute.xlu1 %2403  ;;  %v2320_v47 = vadd.f32 %v2319_v55, %v2318_v43  ;;  %v2325_v59 = vmul.f32 %v6803_v11, %v6803_v11  ;;  %v2519_v55 = vrot.slane %v2509_v50, 2  ;;  %v2330_v46 = vsub.f32 %v6697_v39, %v6803_v11 }
 0x5f7   :  { %v2412_v44 = vadd.f32 %v2404_v21, %v2386_v42  ;;  %v2434_v36 = vadd.f32 %v2425_v22, %v2409_v35  ;;  %v2516_v21 = vsel %vm229_vm1, %v2514_v34, %v2515_v33  ;;  %v2331_v18 = vsub.f32 %v6723_v49, %v6803_v11 }
 0x5f8   :  { %v2402_v57 = vpop.permute.xlu0 %2401  ;;  %v2321_v40 = vrot.slane %v2320_v47, 1  ;;  %v2332_v14 = vsub.f32 %v6730_v1, %v6803_v11 }
 0x5f9   :  { %v2411_v17 = vadd.f32 %v2402_v57, %v2385_v10  ;;  %v2334_v57 = vstv %s6818_s14  ;;  %s5431_s14 = sld [smem:[#allocation2 + $0x6]] }
 0x5fa   :  { %v2458_v20 = vpop.permute.xlu1 %2457  ;;  %v2322_v4 = vadd.f32 %v2321_v40, %v2320_v47  ;;  %v2437_v40 = vadd.f32 %v2428_v62, %v2412_v44 }
 0x5fb   :  { %v2468_v56 = vadd.f32 %v2458_v20, %v2435_v38  ;;  %v2436_v16 = vadd.f32 %v2429_v60, %v2411_v17  ;;  %v2520_v20 = vsel %vm229_vm1, %v2517_v53, %v2519_v55 }
 0x5fc   :  { %v2456_v37 = vpop.permute.xlu0 %2455  ;;  %v2324_v41 = vmul.f32 0.00147929, %v2322_v4 }
 0x5fd   :  { %v2467_v45 = vadd.f32 %v2456_v37, %v2434_v36 }
 0x5fe   :  { %v2462_v25 = vpop.permute.xlu1 %2461  ;;  %v2326_v6 = vsub.f32 %v2324_v41, %v2325_v59  ;;  %v2329_v41 = vsub.f32 %v6699_v0, %v6803_v11 }
 0x5ff   :  { %v2470_v37 = vadd.f32 %v2462_v25, %v2437_v40 }
 0x600   :  { %v2460_v23 = vpop.permute.xlu0 %2459  ;;  %v2327_v26 = vadd.f32 1e-05, %v2326_v6 }
 0x601   :  { %v2469_v19 = vadd.f32 %v2460_v23, %v2436_v16 }
 0x602   :  { %v2491_v8 = vpop.permute.xlu1 %2490  ;;  %5568 = vrsqrt.f32 %v2327_v26 }
 0x603   :  { %v2501_v7 = vadd.f32 %v2491_v8, %v2468_v56 }
 0x604   :  { %v2489_v29 = vpop.permute.xlu0 %2488 }
 0x605   :  { %v2500_v48 = vadd.f32 %v2489_v29, %v2467_v45  ;;  %v2526_v9 = vadd.f32 %v2518_v2, %v2501_v7  ;;  %v6883_v2 = vld [vmem:[%s8439_s0 + $0x20] sm:$0xff] }
 0x606   :  { %v2495_v27 = vpop.permute.xlu1 %2494 }
 0x607   :  { %v2503_v26 = vadd.f32 %v2495_v27, %v2470_v37  ;;  %v2525_v54 = vadd.f32 %v2516_v21, %v2500_v48  ;;  %v2719_v21 = vstv %s5427_s30  ;;  %s5445_s30 = sld [smem:[#allocation2 + $0x10]] }
 0x608   :  { %v2493_v24 = vpop.permute.xlu0 %2492 }
 0x609   :  { %v2502_v51 = vadd.f32 %v2493_v24, %v2469_v19  ;;  %v2528_v62 = vadd.f32 %v2519_v55, %v2503_v26  ;;  %v6889_v19 = vld [vmem:[%s8439_s0 + $0x30] sm:$0xff] }
 0x60a   :  { %v2549_v43 = vpop.permute.xlu1 %2548 }
 0x60b   :  { %v2559_v52 = vadd.f32 %v2549_v43, %v2526_v9  ;;  %v2527_v5 = vadd.f32 %v2520_v20, %v2502_v51  ;;  %v2770_v20 = vstv %s5429_s6  ;;  %s5446_s6 = sld [smem:[#allocation2 + $0x11]] }
 0x60c   :  { %v2547_v47 = vpop.permute.xlu0 %2546  ;;  %v2773_v51 = vmul.f32 %v6889_v19, %v2770_v20  ;;  %v2771_v26 = vmul.f32 %v6883_v2, %v2770_v20 }
 0x60d   :  { %v2558_v28 = vadd.f32 %v2547_v47, %v2525_v54 }
 0x60e   :  { %v2553_v4 = vpop.permute.xlu1 %2552 }
 0x60f   :  { %v5569_v59 = vpop.eup %5568  ;;  %v2561_v22 = vadd.f32 %v2553_v4, %v2528_v62  ;;  %v6896_v4 = vld [vmem:[%s8439_s0 + $0x38] sm:$0xf] }
 0x610   :  { %v2551_v6 = vpop.permute.xlu0 %2550  ;;  %v2335_v23 = vmul.f32 %v5569_v59, %v2334_v57  ;;  %v2693_v57 = vstv %s5426_s1  ;;  %v6903_v59 = vld [vmem:[%s8439_s0 + $0x28] sm:$0xff]  ;;  %s5478_s1 = sld [smem:[#allocation2 + $0x23]] }
 0x611   :  { %v2560_v1 = vadd.f32 %v2551_v6, %v2527_v5  ;;  %v2694_v40 = vmul.f32 %v6883_v2, %v2693_v57  ;;  %v2696_v48 = vmul.f32 %v6889_v19, %v2693_v57  ;;  %v2772_v37 = vmul.f32 %v6903_v59, %v2770_v20 }
 0x612   :  { %v2582_v13 = vpop.permute.xlu1 %2581  ;;  %v2336_v0 = vmul.f32 %v2335_v23, %v2329_v41  ;;  %v2337_v25 = vmul.f32 %v2335_v23, %v2330_v46  ;;  %v2338_v32 = vmul.f32 %v2335_v23, %v2331_v18  ;;  %v2339_v8 = vmul.f32 %v2335_v23, %v2332_v14 }
 0x613   :  { %v2592_v58 = vadd.f32 %v2582_v13, %v2559_v52  ;;  %v2721_v41 = vmul.f32 %v6903_v59, %v2719_v21  ;;  %v2695_v9 = vmul.f32 %v6903_v59, %v2693_v57  ;;  %v2723_v6 = vmul.f32 %v6896_v4, %v2719_v21 }
 0x614   :  { %v2580_v39 = vpop.permute.xlu0 %2579  ;;  %v2342_v30 = vadd.f32 %v2341_v61, %v2336_v0  ;;  %v2343_v29 = vadd.f32 %v2341_v61, %v2337_v25  ;;  %v2344_v49 = vadd.f32 %v2341_v61, %v2338_v32  ;;  %v2345_v63 = vadd.f32 %v2341_v61, %v2339_v8 }
 0x615   :  { %v6836_v11 = vadd.f32 %v2596_v12, %v2592_v58  ;;  %v2591_v15 = vadd.f32 %v2580_v39, %v2558_v28  ;;  %v2697_v61 = vmul.f32 %v6896_v4, %v2693_v57  ;;  %v2780_v46 = vrot.slane %v2772_v37, 1 }
 0x616   :  { %v2346_v31 = vmax.f32 %v2342_v30, 0.0  ;;  %v2347_v10 = vmax.f32 %v2343_v29, 0.0  ;;  %v2348_v42 = vmax.f32 %v2344_v49, 0.0  ;;  %v2349_v35 = vmax.f32 %v2345_v63, 0.0  ;;  %v2586_v27 = vpop.permute.xlu1 %2585 }
 0x617   :  { %v6838_v3 = vadd.f32 %v2596_v12, %v2591_v15  ;;  %v2604_v50 = vsel %vm317_vm2, %v6836_v11, 0.0  ;;  %v2594_v24 = vadd.f32 %v2586_v27, %v2561_v22  ;;  %v2624_v45 = vmul.f32 %v6836_v11, %v6836_v11 }
 0x618   :  { %v2584_v17 = vpop.permute.xlu0 %2583  ;;  %5402 = vst.msk [vmem:[%s8444_s5 + $0xc0] sm:$0xff] %vm317_vm2, %v2346_v31  ;;  %5403 = vst.msk [vmem:[%s8444_s5 + $0xc8] sm:$0xff] %vm317_vm2, %v2347_v10  ;;  %2605 = vadd.xlane.f32.xlu1 %v2604_v50  ;;  %v2782_v18 = vrot.slane %v2773_v51, 1  ;;  %v2803_v14 = vstv %s5430_s9  ;;  %v2720_v23 = vmul.f32 %v6883_v2, %v2719_v21  ;;  %v2774_v52 = vmul.f32 %v6896_v4, %v2770_v20  ;;  %s5444_s9 = sld [smem:[#allocation2 + $0xf]] }
 0x619   :  { %5404 = vst.msk [vmem:[%s8444_s5 + $0xd0] sm:$0xff] %vm317_vm2, %v2348_v42  ;;  %v2593_v38 = vadd.f32 %v2584_v17, %v2560_v1  ;;  %v2601_v60 = vsel %vm317_vm2, %v6838_v3, 0.0  ;;  %v2623_v33 = vmul.f32 %v6838_v3, %v6838_v3  ;;  %v6869_v43 = vadd.f32 %v2596_v12, %v2594_v24 }
 0x61a   :  { %5405 = vst.msk [vmem:[%s8444_s5 + $0xd8] sm:$0x3] %vm327_vm3, %v2349_v35  ;;  %2602 = vadd.xlane.f32.xlu0 %v2601_v60  ;;  %v2630_v16 = vsel %vm317_vm2, %v2624_v45, 0.0  ;;  %v2783_v54 = vsel %vm137_vm0, %v2780_v46, %v2782_v18  ;;  %v2806_v13 = vmul.f32 %v6889_v19, %v2803_v14  ;;  %v2722_v0 = vmul.f32 %v6889_v19, %v2719_v21 }
 0x61b   :  { %v6862_v53 = vadd.f32 %v2596_v12, %v2593_v38  ;;  %v2627_v44 = vsel %vm317_vm2, %v2623_v33, 0.0  ;;  %v2610_v55 = vsel %vm327_vm3, %v6869_v43, 0.0  ;;  %v2626_v7 = vmul.f32 %v6869_v43, %v6869_v43 }
 0x61c   :  { %2628 = vadd.xlane.f32.xlu1 %v2627_v44  ;;  %v2805_v12 = vmul.f32 %v6903_v59, %v2803_v14  ;;  %v2779_v25 = vrot.slane %v2771_v26, 1  ;;  %v2784_v32 = vrot.slane %v2774_v52, 1  ;;  %v2815_v28 = vrot.slane %v2806_v13, 1 }
 0x61d   :  { %v2607_v56 = vsel %vm317_vm2, %v6862_v53, 0.0  ;;  %v2625_v36 = vmul.f32 %v6862_v53, %v6862_v53  ;;  %v2636_v47 = vsel %vm327_vm3, %v2626_v7, 0.0  ;;  %v2861_v5 = vstv %s5432_s3  ;;  %s5447_s3 = sld [smem:[#allocation5 + $0x1]] }
 0x61e   :  { %2608 = vadd.xlane.f32.xlu0 %v2607_v56  ;;  %v2813_v8 = vrot.slane %v2805_v12, 1  ;;  %v2781_v58 = vsel %vm137_vm0, %v2779_v25, %v2780_v46  ;;  %v2804_v39 = vmul.f32 %v6883_v2, %v2803_v14  ;;  %v2807_v30 = vmul.f32 %v6896_v4, %v2803_v14 }
 0x61f   :  { %v2633_v34 = vsel %vm317_vm2, %v2625_v36, 0.0  ;;  %v2863_v49 = vmul.f32 %v6903_v59, %v2861_v5  ;;  %v2864_v63 = vmul.f32 %v6889_v19, %v2861_v5  ;;  %v2785_v62 = vsel %vm137_vm0, %v2782_v18, %v2784_v32 }
 0x620   :  { %2634 = vadd.xlane.f32.xlu1 %v2633_v34  ;;  %v2816_v29 = vsel %vm137_vm0, %v2813_v8, %v2815_v28  ;;  %v2812_v1 = vrot.slane %v2804_v39, 1  ;;  %v2817_v15 = vrot.slane %v2807_v30, 1  ;;  %v2894_v42 = vstv %s5433_s12  ;;  %s5463_s12 = sld [smem:[#allocation5 + $0x2]] }
 0x621   :  { %v2871_v31 = vrot.slane %v2863_v49, 2  ;;  %v2873_v10 = vrot.slane %v2864_v63, 2  ;;  %v2862_v27 = vmul.f32 %v6883_v2, %v2861_v5  ;;  %v2865_v22 = vmul.f32 %v6896_v4, %v2861_v5 }
 0x622   :  { %2611 = vadd.xlane.f32.xlu0 %v2610_v55  ;;  %v2814_v35 = vsel %vm137_vm0, %v2812_v1, %v2813_v8  ;;  %v2896_v17 = vmul.f32 %v6903_v59, %v2894_v42  ;;  %v2897_v38 = vmul.f32 %v6889_v19, %v2894_v42  ;;  %v2818_v24 = vsel %vm137_vm0, %v2815_v28, %v2817_v15 }
 0x623   :  { %v2874_v50 = vsel %vm229_vm1, %v2871_v31, %v2873_v10  ;;  %v2870_v60 = vrot.slane %v2862_v27, 2  ;;  %v2875_v33 = vrot.slane %v2865_v22, 2  ;;  %v2895_v34 = vmul.f32 %v6883_v2, %v2894_v42 }
 0x624   :  { %v2904_v44 = vrot.slane %v2896_v17, 2  ;;  %v2906_v56 = vrot.slane %v2897_v38, 2  ;;  %v2898_v55 = vmul.f32 %v6896_v4, %v2894_v42  ;;  %v2687_v22 = vstv %s2686_s13  ;;  %s5487_s13 = sld [smem:[#allocation2 + $0x25]] }
 0x625   :  { %v2872_v36 = vsel %vm229_vm1, %v2870_v60, %v2871_v31  ;;  %v2903_v7 = vrot.slane %v2895_v34, 2  ;;  %v2689_v17 = vmul.f32 %v6903_v59, %v2687_v22 }
 0x626   :  { %2631 = vadd.xlane.f32.xlu0 %v2630_v16  ;;  %v2907_v45 = vsel %vm229_vm1, %v2904_v44, %v2906_v56  ;;  %v2876_v16 = vsel %vm229_vm1, %v2873_v10, %v2875_v33 }
 0x627   :  { %v2905_v57 = vsel %vm229_vm1, %v2903_v7, %v2904_v44 }
 0x62a   :  { %2637 = vadd.xlane.f32.xlu0 %v2636_v47  ;;  %v2908_v47 = vrot.slane %v2898_v55, 2  ;;  %v2688_v55 = vmul.f32 %v6883_v2, %v2687_v22 }
 0x631   :  { %2702 = vrot.lane.b32.xlu1 %v2694_v40, %s5664_s16  ;;  %v2909_v40 = vsel %vm229_vm1, %v2906_v56, %v2908_v47 }
 0x635   :  { %2706 = vrot.lane.b32.xlu1 %v2696_v48, %s5664_s16 }
 0x639   :  { %2708 = vrot.lane.b32.xlu1 %v2697_v61, %s5664_s16 }
 0x63d   :  { %2730 = vrot.lane.b32.xlu1 %v2721_v41, %s5665_s18 }
 0x640   :  { %2704 = vrot.lane.b32.xlu0 %v2695_v9, %s5664_s16 }
 0x641   :  { %2734 = vrot.lane.b32.xlu1 %v2723_v6, %s5665_s18 }
 0x644   :  { %2728 = vrot.lane.b32.xlu0 %v2720_v23, %s5665_s18 }
 0x645   :  { %2788 = vrot.lane.b32.xlu1 %v2783_v54, %s5664_s16 }
 0x648   :  { %2732 = vrot.lane.b32.xlu0 %v2722_v0, %s5665_s18 }
 0x649   :  { %2792 = vrot.lane.b32.xlu1 %v2784_v32, %s5664_s16 }
 0x64c   :  { %2786 = vrot.lane.b32.xlu0 %v2781_v58, %s5664_s16 }
 0x64d   :  { %2821 = vrot.lane.b32.xlu1 %v2816_v29, %s5665_s18 }
 0x650   :  { %2790 = vrot.lane.b32.xlu0 %v2785_v62, %s5664_s16 }
 0x651   :  { %2825 = vrot.lane.b32.xlu1 %v2817_v15, %s5665_s18 }
 0x654   :  { %2819 = vrot.lane.b32.xlu0 %v2814_v35, %s5665_s18  ;;  %v2745_v35 = vstv %s5428_s4 }
 0x655   :  { %2879 = vrot.lane.b32.xlu1 %v2874_v50, %s5664_s16  ;;  %v2748_v44 = vmul.f32 %v6889_v19, %v2745_v35  ;;  %v2746_v34 = vmul.f32 %v6883_v2, %v2745_v35 }
 0x658   :  { %2823 = vrot.lane.b32.xlu0 %v2818_v24, %s5665_s18 }
 0x659   :  { %2883 = vrot.lane.b32.xlu1 %v2875_v33, %s5664_s16  ;;  %v2747_v33 = vmul.f32 %v6903_v59, %v2745_v35 }
 0x65c   :  { %2877 = vrot.lane.b32.xlu0 %v2872_v36, %s5664_s16 }
 0x65d   :  { %2912 = vrot.lane.b32.xlu1 %v2907_v45, %s5665_s18 }
 0x660   :  { %2881 = vrot.lane.b32.xlu0 %v2876_v16, %s5664_s16 }
 0x661   :  { %2916 = vrot.lane.b32.xlu1 %v2908_v47, %s5665_s18  ;;  %v2755_v47 = vrot.slane %v2747_v33, 1 }
 0x664   :  { %2910 = vrot.lane.b32.xlu0 %v2905_v57, %s5665_s18  ;;  %v2757_v57 = vrot.slane %v2748_v44, 1  ;;  %v2667_v44 = vstv %s5417_s17  ;;  %s5488_s17 = sld [smem:[#allocation2 + $0x26]] }
 0x668   :  { %2914 = vrot.lane.b32.xlu0 %v2909_v40, %s5665_s18  ;;  %v2749_v40 = vmul.f32 %v6896_v4, %v2745_v35 }
 0x6a1   :  { %v2606_v48 = vpop.xlane.xlu1 %2605 }
 0x6a3   :  { %v2603_v61 = vpop.xlane.xlu0 %2602 }
 0x6a4   :  { %v2613_v41 = vadd.f32 %v2606_v48, %v2603_v61  ;;  %v2690_v48 = vmul.f32 %v6889_v19, %v2687_v22  ;;  %v2691_v61 = vmul.f32 %v6896_v4, %v2687_v22 }
 0x6a5   :  { %v2629_v21 = vpop.xlane.xlu1 %2628 }
 0x6a7   :  { %v2609_v20 = vpop.xlane.xlu0 %2608 }
 0x6a8   :  { %v2614_v51 = vadd.f32 %v2613_v41, %v2609_v20  ;;  %v2836_v20 = vstv %s5431_s14  ;;  %v2754_v41 = vrot.slane %v2746_v34, 1  ;;  %s5503_s14 = sld [smem:[#allocation2 + $0x2e]] }
 0x6a9   :  { %v2635_v37 = vpop.xlane.xlu1 %2634 }
 0x6ab   :  { %v2612_v9 = vpop.xlane.xlu0 %2611 }
 0x6ac   :  { %v2615_v6 = vsel %vm333_vm4, %v2612_v9, 0.0 }
 0x6ad   :  { %v2616_v46 = vadd.f32 %v2615_v6, %v2614_v51  ;;  %v2703_v18 = vpop.permute.xlu1 %2702  ;;  %v2758_v6 = vsel %vm137_vm0, %v2755_v47, %v2757_v57 }
 0x6af   :  { %v2617_v14 = vrot.slane %v2616_v46, 4  ;;  %v2632_v23 = vpop.xlane.xlu0 %2631 }
 0x6b0   :  { %v2639_v26 = vadd.f32 %v2632_v23, %v2629_v21  ;;  %v2839_v23 = vmul.f32 %v6889_v19, %v2836_v20 }
 0x6b1   :  { %v2618_v52 = vadd.f32 %v2617_v14, %v2616_v46  ;;  %v2707_v54 = vpop.permute.xlu1 %2706  ;;  %v2759_v46 = vrot.slane %v2749_v40, 1  ;;  %v2838_v14 = vmul.f32 %v6903_v59, %v2836_v20 }
 0x6b2   :  { %v2640_v12 = vadd.f32 %v2639_v26, %v2635_v37  ;;  %v2714_v37 = vadd.f32 %v2703_v18, %v2688_v55  ;;  %v2716_v26 = vadd.f32 %v2707_v54, %v2690_v48  ;;  %v2837_v18 = vmul.f32 %v6883_v2, %v2836_v20 }
 0x6b3   :  { %v2619_v13 = vrot.slane %v2618_v52, 2  ;;  %v2638_v0 = vpop.xlane.xlu0 %2637  ;;  %v2848_v54 = vrot.slane %v2839_v23, 2 }
 0x6b4   :  { %v2641_v25 = vsel %vm333_vm4, %v2638_v0, 0.0  ;;  %v2756_v0 = vsel %vm137_vm0, %v2754_v41, %v2755_v47 }
 0x6b5   :  { %v2620_v32 = vadd.f32 %v2619_v13, %v2618_v52  ;;  %v2642_v8 = vadd.f32 %v2641_v25, %v2640_v12  ;;  %v2709_v28 = vpop.permute.xlu1 %2708  ;;  %v2840_v25 = vmul.f32 %v6896_v4, %v2836_v20  ;;  %v2927_v20 = vstv %s2926_s19  ;;  %s5490_s19 = sld [smem:[#allocation2 + $0x28]] }
 0x6b6   :  { %v2717_v52 = vadd.f32 %v2709_v28, %v2691_v61 }
 0x6b7   :  { %v2643_v5 = vrot.slane %v2642_v8, 4  ;;  %v2705_v58 = vpop.permute.xlu0 %2704  ;;  %v2621_v39 = vrot.slane %v2620_v32, 1 }
 0x6b8   :  { %v2715_v45 = vadd.f32 %v2705_v58, %v2689_v17  ;;  %v2760_v58 = vsel %vm137_vm0, %v2757_v57, %v2759_v46 }
 0x6b9   :  { %v2644_v30 = vadd.f32 %v2643_v5, %v2642_v8  ;;  %v2731_v29 = vpop.permute.xlu1 %2730  ;;  %v2622_v62 = vadd.f32 %v2621_v39, %v2620_v32  ;;  %v2846_v39 = vrot.slane %v2838_v14, 2 }
 0x6ba   :  { %v2741_v51 = vadd.f32 %v2731_v29, %v2715_v45 }
 0x6bb   :  { %v2645_v49 = vrot.slane %v2644_v30, 2  ;;  %v2729_v63 = vpop.permute.xlu0 %2728  ;;  %v6962_v10 = vmul.f32 0.00147929, %v2622_v62  ;;  %v2850_v62 = vrot.slane %v2840_v25, 2 }
 0x6bc   :  { %v2740_v12 = vadd.f32 %v2729_v63, %v2714_v37  ;;  %v2766_v8 = vadd.f32 %v2758_v6, %v2741_v51  ;;  %v2845_v63 = vrot.slane %v2837_v18, 2 }
 0x6bd   :  { %v2735_v1 = vpop.permute.xlu1 %2734  ;;  %v2646_v15 = vadd.f32 %v2645_v49, %v2644_v30  ;;  %v2651_v24 = vmul.f32 %v6962_v10, %v6962_v10  ;;  %v2655_v34 = vsub.f32 %v6838_v3, %v6962_v10  ;;  %v2656_v47 = vsub.f32 %v6836_v11, %v6962_v10 }
 0x6be   :  { %v2743_v30 = vadd.f32 %v2735_v1, %v2717_v52  ;;  %v2765_v28 = vadd.f32 %v2756_v0, %v2740_v12  ;;  %v2847_v1 = vsel %vm229_vm1, %v2845_v63, %v2846_v39  ;;  %v2658_v57 = vsub.f32 %v6869_v43, %v6962_v10 }
 0x6bf   :  { %v2733_v31 = vpop.permute.xlu0 %2732  ;;  %v2647_v42 = vrot.slane %v2646_v15, 1 }
 0x6c0   :  { %v2742_v32 = vadd.f32 %v2733_v31, %v2716_v26  ;;  %v2849_v31 = vsel %vm229_vm1, %v2846_v39, %v2848_v54  ;;  %v2768_v17 = vadd.f32 %v2759_v46, %v2743_v30 }
 0x6c1   :  { %v2789_v27 = vpop.permute.xlu1 %2788  ;;  %v2648_v50 = vadd.f32 %v2647_v42, %v2646_v15 }
 0x6c2   :  { %v2799_v29 = vadd.f32 %v2789_v27, %v2766_v8  ;;  %v2767_v42 = vadd.f32 %v2760_v58, %v2742_v32  ;;  %v2851_v27 = vsel %vm229_vm1, %v2848_v54, %v2850_v62 }
 0x6c3   :  { %v2787_v38 = vpop.permute.xlu0 %2786  ;;  %v2650_v60 = vmul.f32 0.00147929, %v2648_v50  ;;  %v2660_v50 = vstv %s6977_s15  ;;  %s5504_s15 = sld [smem:[#allocation2 + $0x2f]] }
 0x6c4   :  { %v2798_v15 = vadd.f32 %v2787_v38, %v2765_v28 }
 0x6c5   :  { %v2793_v56 = vpop.permute.xlu1 %2792  ;;  %v2652_v36 = vsub.f32 %v2650_v60, %v2651_v24 }
 0x6c6   :  { %v2801_v38 = vadd.f32 %v2793_v56, %v2768_v17 }
 0x6c7   :  { %v2791_v16 = vpop.permute.xlu0 %2790  ;;  %v2653_v7 = vadd.f32 1e-05, %v2652_v36 }
 0x6c8   :  { %v2800_v24 = vadd.f32 %v2791_v16, %v2767_v42  ;;  %v2657_v16 = vsub.f32 %v6862_v53, %v6962_v10 }
 0x6c9   :  { %v2822_v21 = vpop.permute.xlu1 %2821  ;;  %5570 = vrsqrt.f32 %v2653_v7 }
 0x6ca   :  { %v2832_v35 = vadd.f32 %v2822_v21, %v2799_v29 }
 0x6cb   :  { %v2820_v9 = vpop.permute.xlu0 %2819 }
 0x6cc   :  { %v2831_v60 = vadd.f32 %v2820_v9, %v2798_v15  ;;  %v2857_v45 = vadd.f32 %v2849_v31, %v2832_v35 }
 0x6cd   :  { %v2826_v13 = vpop.permute.xlu1 %2825 }
 0x6ce   :  { %v2834_v48 = vadd.f32 %v2826_v13, %v2801_v38  ;;  %v2856_v21 = vadd.f32 %v2847_v1, %v2831_v60  ;;  %v3019_v60 = vstv %s5439_s2  ;;  %s5473_s2 = sld [smem:[#allocation2 + $0x1e]] }
 0x6cf   :  { %v2824_v5 = vpop.permute.xlu0 %2823  ;;  %v3023_v1 = vmul.f32 %v6896_v4, %v3019_v60 }
 0x6d0   :  { %v2833_v55 = vadd.f32 %v2824_v5, %v2800_v24  ;;  %v2859_v52 = vadd.f32 %v2850_v62, %v2834_v48 }
 0x6d1   :  { %v2880_v49 = vpop.permute.xlu1 %2879 }
 0x6d2   :  { %v2890_v61 = vadd.f32 %v2880_v49, %v2857_v45  ;;  %v2858_v6 = vadd.f32 %v2851_v27, %v2833_v55  ;;  %v3045_v27 = vstv %s5440_s27  ;;  %v3021_v45 = vmul.f32 %v6903_v59, %v3019_v60  ;;  %s5470_s27 = sld [smem:[#allocation2 + $0x1b]] }
 0x6d3   :  { %v2878_v22 = vpop.permute.xlu0 %2877 }
 0x6d4   :  { %v2889_v9 = vadd.f32 %v2878_v22, %v2856_v21 }
 0x6d5   :  { %v2884_v33 = vpop.permute.xlu1 %2883 }
 0x6d6   :  { %v5571_v36 = vpop.eup %5570  ;;  %v2892_v8 = vadd.f32 %v2884_v33, %v2859_v52  ;;  %v3020_v33 = vmul.f32 %v6883_v2, %v3019_v60 }
 0x6d7   :  { %v2882_v7 = vpop.permute.xlu0 %2881  ;;  %v2661_v40 = vmul.f32 %v5571_v36, %v2660_v50  ;;  %v3096_v36 = vstv %s5442_s28  ;;  %s5459_s28 = sld [smem:[#allocation2 + $0x17]] }
 0x6d8   :  { %v2891_v43 = vadd.f32 %v2882_v7, %v2858_v6  ;;  %v3098_v38 = vmul.f32 %v6903_v59, %v3096_v36  ;;  %v3099_v55 = vmul.f32 %v6889_v19, %v3096_v36  ;;  %v3049_v7 = vmul.f32 %v6896_v4, %v3045_v27 }
 0x6d9   :  { %v2913_v41 = vpop.permute.xlu1 %2912  ;;  %v2662_v3 = vmul.f32 %v2661_v40, %v2655_v34  ;;  %v2663_v56 = vmul.f32 %v2661_v40, %v2656_v47  ;;  %v2664_v37 = vmul.f32 %v2661_v40, %v2657_v16  ;;  %v2665_v51 = vmul.f32 %v2661_v40, %v2658_v57 }
 0x6da   :  { %v2923_v46 = vadd.f32 %v2913_v41, %v2890_v61  ;;  %v3047_v34 = vmul.f32 %v6903_v59, %v3045_v27  ;;  %v3106_v47 = vrot.slane %v3098_v38, 1  ;;  %v3108_v16 = vrot.slane %v3099_v55, 1 }
 0x6db   :  { %v2911_v11 = vpop.permute.xlu0 %2910  ;;  %v2668_v14 = vadd.f32 %v2667_v44, %v2662_v3  ;;  %v2669_v23 = vadd.f32 %v2667_v44, %v2663_v56  ;;  %v2670_v53 = vadd.f32 %v2667_v44, %v2664_v37  ;;  %v2671_v26 = vadd.f32 %v2667_v44, %v2665_v51 }
 0x6dc   :  { %v6995_v10 = vadd.f32 %v2927_v20, %v2923_v46  ;;  %v2922_v12 = vadd.f32 %v2911_v11, %v2889_v9  ;;  %v3022_v44 = vmul.f32 %v6889_v19, %v3019_v60  ;;  %v3129_v57 = vstv %s5443_s29  ;;  %s7414_s29 = sld [smem:[#allocation7 + $0x2]] }
 0x6dd   :  { %v2672_v13 = vmax.f32 %v2668_v14, 0.0  ;;  %v2673_v0 = vmax.f32 %v2669_v23, 0.0  ;;  %v2674_v18 = vmax.f32 %v2670_v53, 0.0  ;;  %v2675_v25 = vmax.f32 %v2671_v26, 0.0  ;;  %v2917_v32 = vpop.permute.xlu1 %2916 }
 0x6de   :  { %v6997_v5 = vadd.f32 %v2927_v20, %v2922_v12  ;;  %v2935_v58 = vsel %vm317_vm2, %v6995_v10, 0.0  ;;  %v2925_v30 = vadd.f32 %v2917_v32, %v2892_v8  ;;  %v2955_v31 = vmul.f32 %v6995_v10, %v6995_v10 }
 0x6df   :  { %v2915_v39 = vpop.permute.xlu0 %2914  ;;  %5418 = vst.msk [vmem:[%s8444_s5 + $0xe0] sm:$0xff] %vm317_vm2, %v2672_v13  ;;  %5419 = vst.msk [vmem:[%s8444_s5 + $0xe8] sm:$0xff] %vm317_vm2, %v2673_v0  ;;  %2936 = vadd.xlane.f32.xlu1 %v2935_v58  ;;  %v3046_v40 = vmul.f32 %v6883_v2, %v3045_v27  ;;  %v3097_v48 = vmul.f32 %v6883_v2, %v3096_v36  ;;  %v3100_v61 = vmul.f32 %v6896_v4, %v3096_v36 }
 0x6e0   :  { %5420 = vst.msk [vmem:[%s8444_s5 + $0xf0] sm:$0xff] %vm317_vm2, %v2674_v18  ;;  %v2924_v54 = vadd.f32 %v2915_v39, %v2891_v43  ;;  %v2932_v29 = vsel %vm317_vm2, %v6997_v5, 0.0  ;;  %v2954_v28 = vmul.f32 %v6997_v5, %v6997_v5  ;;  %v7028_v42 = vadd.f32 %v2927_v20, %v2925_v30 }
 0x6e1   :  { %5421 = vst.msk [vmem:[%s8444_s5 + $0xf8] sm:$0x3] %vm327_vm3, %v2675_v25  ;;  %2933 = vadd.xlane.f32.xlu0 %v2932_v29  ;;  %v2961_v50 = vsel %vm317_vm2, %v2955_v31, 0.0  ;;  %v3109_v21 = vsel %vm137_vm0, %v3106_v47, %v3108_v16  ;;  %v3132_v41 = vmul.f32 %v6889_v19, %v3129_v57  ;;  %v3048_v3 = vmul.f32 %v6889_v19, %v3045_v27 }
 0x6e2   :  { %v7021_v49 = vadd.f32 %v2927_v20, %v2924_v54  ;;  %v2958_v63 = vsel %vm317_vm2, %v2954_v28, 0.0  ;;  %v2941_v22 = vsel %vm327_vm3, %v7028_v42, 0.0  ;;  %v2957_v17 = vmul.f32 %v7028_v42, %v7028_v42 }
 0x6e3   :  { %2959 = vadd.xlane.f32.xlu1 %v2958_v63  ;;  %v3131_v20 = vmul.f32 %v6903_v59, %v3129_v57  ;;  %v3105_v56 = vrot.slane %v3097_v48, 1  ;;  %v3110_v37 = vrot.slane %v3100_v61, 1  ;;  %v3141_v9 = vrot.slane %v3132_v41, 1 }
 0x6e4   :  { %v2938_v62 = vsel %vm317_vm2, %v7021_v49, 0.0  ;;  %v2956_v15 = vmul.f32 %v7021_v49, %v7021_v49  ;;  %v2967_v24 = vsel %vm327_vm3, %v2957_v17, 0.0  ;;  %v3187_v6 = vstv %s5445_s30  ;;  %s5465_s30 = sld [smem:[#allocation8 + $0x2]] }
 0x6e5   :  { %2939 = vadd.xlane.f32.xlu0 %v2938_v62  ;;  %v3139_v51 = vrot.slane %v3131_v20, 1  ;;  %v3107_v46 = vsel %vm137_vm0, %v3105_v56, %v3106_v47  ;;  %v3130_v11 = vmul.f32 %v6883_v2, %v3129_v57  ;;  %v3133_v14 = vmul.f32 %v6896_v4, %v3129_v57 }
 0x6e6   :  { %v2964_v35 = vsel %vm317_vm2, %v2956_v15, 0.0  ;;  %v3189_v53 = vmul.f32 %v6903_v59, %v3187_v6  ;;  %v3190_v26 = vmul.f32 %v6889_v19, %v3187_v6  ;;  %v3111_v52 = vsel %vm137_vm0, %v3108_v16, %v3110_v37 }
 0x6e7   :  { %2965 = vadd.xlane.f32.xlu1 %v2964_v35  ;;  %v3142_v23 = vsel %vm137_vm0, %v3139_v51, %v3141_v9  ;;  %v3138_v43 = vrot.slane %v3130_v11, 1  ;;  %v3143_v12 = vrot.slane %v3133_v14, 1  ;;  %v3220_v18 = vstv %s5446_s6  ;;  %s5461_s6 = sld [smem:[#allocation2 + $0x19]] }
 0x6e8   :  { %v3197_v13 = vrot.slane %v3189_v53, 2  ;;  %v3199_v0 = vrot.slane %v3190_v26, 2  ;;  %v3188_v32 = vmul.f32 %v6883_v2, %v3187_v6  ;;  %v3191_v8 = vmul.f32 %v6896_v4, %v3187_v6 }
 0x6e9   :  { %2942 = vadd.xlane.f32.xlu0 %v2941_v22  ;;  %v3140_v25 = vsel %vm137_vm0, %v3138_v43, %v3139_v51  ;;  %v3222_v39 = vmul.f32 %v6903_v59, %v3220_v18  ;;  %v3223_v54 = vmul.f32 %v6889_v19, %v3220_v18  ;;  %v3144_v30 = vsel %vm137_vm0, %v3141_v9, %v3143_v12 }
 0x6ea   :  { %v3200_v58 = vsel %vm229_vm1, %v3197_v13, %v3199_v0  ;;  %v3196_v29 = vrot.slane %v3188_v32, 2  ;;  %v3201_v28 = vrot.slane %v3191_v8, 2  ;;  %v3221_v35 = vmul.f32 %v6883_v2, %v3220_v18 }
 0x6eb   :  { %v3230_v63 = vrot.slane %v3222_v39, 2  ;;  %v3232_v62 = vrot.slane %v3223_v54, 2  ;;  %v3224_v22 = vmul.f32 %v6896_v4, %v3220_v18  ;;  %v3013_v8 = vstv %s5438_s8  ;;  %s5457_s8 = sld [smem:[#allocation2 + $0x15]] }
 0x6ec   :  { %v3198_v15 = vsel %vm229_vm1, %v3196_v29, %v3197_v13  ;;  %v3229_v17 = vrot.slane %v3221_v35, 2  ;;  %v3015_v39 = vmul.f32 %v6903_v59, %v3013_v8 }
 0x6ed   :  { %2962 = vadd.xlane.f32.xlu0 %v2961_v50  ;;  %v3233_v31 = vsel %vm229_vm1, %v3230_v63, %v3232_v62  ;;  %v3202_v50 = vsel %vm229_vm1, %v3199_v0, %v3201_v28 }
 0x6ee   :  { %v3231_v60 = vsel %vm229_vm1, %v3229_v17, %v3230_v63 }
 0x6f1   :  { %2968 = vadd.xlane.f32.xlu0 %v2967_v24  ;;  %v3234_v24 = vrot.slane %v3224_v22, 2  ;;  %v3014_v22 = vmul.f32 %v6883_v2, %v3013_v8 }
 0x6f8   :  { %3028 = vrot.lane.b32.xlu1 %v3020_v33, %s5664_s16  ;;  %v3235_v33 = vsel %vm229_vm1, %v3232_v62, %v3234_v24 }
 0x6fc   :  { %3032 = vrot.lane.b32.xlu1 %v3022_v44, %s5664_s16 }
 0x700   :  { %3034 = vrot.lane.b32.xlu1 %v3023_v1, %s5664_s16 }
 0x704   :  { %3056 = vrot.lane.b32.xlu1 %v3047_v34, %s5665_s18 }
 0x707   :  { %3030 = vrot.lane.b32.xlu0 %v3021_v45, %s5664_s16 }
 0x708   :  { %3060 = vrot.lane.b32.xlu1 %v3049_v7, %s5665_s18 }
 0x70b   :  { %3054 = vrot.lane.b32.xlu0 %v3046_v40, %s5665_s18 }
 0x70c   :  { %3114 = vrot.lane.b32.xlu1 %v3109_v21, %s5664_s16 }
 0x70f   :  { %3058 = vrot.lane.b32.xlu0 %v3048_v3, %s5665_s18 }
 0x710   :  { %3118 = vrot.lane.b32.xlu1 %v3110_v37, %s5664_s16 }
 0x713   :  { %3112 = vrot.lane.b32.xlu0 %v3107_v46, %s5664_s16 }
 0x714   :  { %3147 = vrot.lane.b32.xlu1 %v3142_v23, %s5665_s18 }
 0x717   :  { %3116 = vrot.lane.b32.xlu0 %v3111_v52, %s5664_s16 }
 0x718   :  { %3151 = vrot.lane.b32.xlu1 %v3143_v12, %s5665_s18 }
 0x71b   :  { %3145 = vrot.lane.b32.xlu0 %v3140_v25, %s5665_s18  ;;  %v3071_v25 = vstv %s5441_s7  ;;  %s5462_s7 = sld [smem:[#allocation2 + $0x1a]] }
 0x71c   :  { %3205 = vrot.lane.b32.xlu1 %v3200_v58, %s5664_s16  ;;  %v3074_v63 = vmul.f32 %v6889_v19, %v3071_v25  ;;  %v3072_v35 = vmul.f32 %v6883_v2, %v3071_v25 }
 0x71f   :  { %3149 = vrot.lane.b32.xlu0 %v3144_v30, %s5665_s18 }
 0x720   :  { %3209 = vrot.lane.b32.xlu1 %v3201_v28, %s5664_s16  ;;  %v3073_v28 = vmul.f32 %v6903_v59, %v3071_v25 }
 0x723   :  { %3203 = vrot.lane.b32.xlu0 %v3198_v15, %s5664_s16 }
 0x724   :  { %3238 = vrot.lane.b32.xlu1 %v3233_v31, %s5665_s18 }
 0x727   :  { %3207 = vrot.lane.b32.xlu0 %v3202_v50, %s5664_s16 }
 0x728   :  { %3242 = vrot.lane.b32.xlu1 %v3234_v24, %s5665_s18  ;;  %v3081_v24 = vrot.slane %v3073_v28, 1 }
 0x72b   :  { %3236 = vrot.lane.b32.xlu0 %v3231_v60, %s5665_s18  ;;  %v3083_v60 = vrot.slane %v3074_v63, 1 }
 0x72f   :  { %3240 = vrot.lane.b32.xlu0 %v3235_v33, %s5665_s18  ;;  %v3075_v33 = vmul.f32 %v6896_v4, %v3071_v25 }
 0x768   :  { %v2937_v44 = vpop.xlane.xlu1 %2936 }
 0x76a   :  { %v2934_v1 = vpop.xlane.xlu0 %2933 }
 0x76b   :  { %v2944_v34 = vadd.f32 %v2937_v44, %v2934_v1  ;;  %v3016_v44 = vmul.f32 %v6889_v19, %v3013_v8  ;;  %v3017_v1 = vmul.f32 %v6896_v4, %v3013_v8 }
 0x76c   :  { %v2960_v27 = vpop.xlane.xlu1 %2959 }
 0x76e   :  { %v2940_v36 = vpop.xlane.xlu0 %2939 }
 0x76f   :  { %v2945_v55 = vadd.f32 %v2944_v34, %v2940_v36  ;;  %v3162_v36 = vstv %s5444_s9  ;;  %v3080_v34 = vrot.slane %v3072_v35, 1  ;;  %s5454_s9 = sld [smem:[#allocation2 + $0x12]] }
 0x770   :  { %v2966_v38 = vpop.xlane.xlu1 %2965 }
 0x772   :  { %v2943_v45 = vpop.xlane.xlu0 %2942 }
 0x773   :  { %v2946_v7 = vsel %vm333_vm4, %v2943_v45, 0.0 }
 0x774   :  { %v2947_v47 = vadd.f32 %v2946_v7, %v2945_v55  ;;  %v3029_v16 = vpop.permute.xlu1 %3028  ;;  %v3084_v7 = vsel %vm137_vm0, %v3081_v24, %v3083_v60 }
 0x776   :  { %v2948_v57 = vrot.slane %v2947_v47, 4  ;;  %v2963_v40 = vpop.xlane.xlu0 %2962 }
 0x777   :  { %v2970_v48 = vadd.f32 %v2963_v40, %v2960_v27  ;;  %v3165_v40 = vmul.f32 %v6889_v19, %v3162_v36 }
 0x778   :  { %v2949_v61 = vadd.f32 %v2948_v57, %v2947_v47  ;;  %v3033_v21 = vpop.permute.xlu1 %3032  ;;  %v3085_v47 = vrot.slane %v3075_v33, 1  ;;  %v3164_v57 = vmul.f32 %v6903_v59, %v3162_v36  ;;  %v3253_v33 = vstv %s5447_s3  ;;  %s5449_s3 = sld [smem:[#allocation8 + $0x1]] }
 0x779   :  { %v2971_v20 = vadd.f32 %v2970_v48, %v2966_v38  ;;  %v3040_v38 = vadd.f32 %v3029_v16, %v3014_v22  ;;  %v3042_v48 = vadd.f32 %v3033_v21, %v3016_v44  ;;  %v3163_v16 = vmul.f32 %v6883_v2, %v3162_v36 }
 0x77a   :  { %v2950_v41 = vrot.slane %v2949_v61, 2  ;;  %v2969_v3 = vpop.xlane.xlu0 %2968  ;;  %v3086_v59 = vsel %vm137_vm0, %v3083_v60, %v3085_v47  ;;  %v3172_v19 = vrot.slane %v3164_v57, 2  ;;  %v3174_v21 = vrot.slane %v3165_v40, 2 }
 0x77b   :  { %v2972_v56 = vsel %vm333_vm4, %v2969_v3, 0.0  ;;  %v3082_v3 = vsel %vm137_vm0, %v3080_v34, %v3081_v24 }
 0x77c   :  { %v2951_v37 = vadd.f32 %v2950_v41, %v2949_v61  ;;  %v2973_v51 = vadd.f32 %v2972_v56, %v2971_v20  ;;  %v3035_v9 = vpop.permute.xlu1 %3034  ;;  %v3166_v56 = vmul.f32 %v6896_v4, %v3162_v36  ;;  %v3175_v4 = vsel %vm229_vm1, %v3172_v19, %v3174_v21 }
 0x77d   :  { %v3043_v61 = vadd.f32 %v3035_v9, %v3017_v1 }
 0x77e   :  { %v2974_v6 = vrot.slane %v2973_v51, 4  ;;  %v3031_v46 = vpop.permute.xlu0 %3030  ;;  %v2952_v11 = vrot.slane %v2951_v37, 1 }
 0x77f   :  { %v3041_v31 = vadd.f32 %v3031_v46, %v3015_v39  ;;  %v2998_v39 = vstv %s2997_s11  ;;  %s7275_s11 = sld [smem:[#allocation7 + $0x1]] }
 0x780   :  { %v2975_v14 = vadd.f32 %v2974_v6, %v2973_v51  ;;  %v3057_v23 = vpop.permute.xlu1 %3056  ;;  %v2953_v52 = vadd.f32 %v2952_v11, %v2951_v37 }
 0x781   :  { %v3067_v55 = vadd.f32 %v3057_v23, %v3041_v31  ;;  %v3171_v23 = vrot.slane %v3163_v16, 2 }
 0x782   :  { %v2976_v53 = vrot.slane %v2975_v14, 2  ;;  %v3055_v26 = vpop.permute.xlu0 %3054  ;;  %v7101_v0 = vmul.f32 0.00147929, %v2953_v52 }
 0x783   :  { %v3066_v20 = vadd.f32 %v3055_v26, %v3040_v38  ;;  %v3092_v51 = vadd.f32 %v3084_v7, %v3067_v55 }
 0x784   :  { %v3061_v43 = vpop.permute.xlu1 %3060  ;;  %v2977_v12 = vadd.f32 %v2976_v53, %v2975_v14  ;;  %v2982_v30 = vmul.f32 %v7101_v0, %v7101_v0  ;;  %v3176_v53 = vrot.slane %v3166_v56, 2  ;;  %v2987_v35 = vsub.f32 %v6995_v10, %v7101_v0 }
 0x785   :  { %v3069_v46 = vadd.f32 %v3061_v43, %v3043_v61  ;;  %v3091_v9 = vadd.f32 %v3082_v3, %v3066_v20  ;;  %v3173_v43 = vsel %vm229_vm1, %v3171_v23, %v3172_v19  ;;  %v2988_v22 = vsub.f32 %v7021_v49, %v7101_v0 }
 0x786   :  { %v3059_v13 = vpop.permute.xlu0 %3058  ;;  %v2978_v18 = vrot.slane %v2977_v12, 1  ;;  %v2989_v31 = vsub.f32 %v7028_v42, %v7101_v0 }
 0x787   :  { %v3068_v37 = vadd.f32 %v3059_v13, %v3042_v48  ;;  %v2991_v13 = vstv %s7116_s10  ;;  %s5460_s10 = sld [smem:[#allocation2 + $0x18]] }
 0x788   :  { %v3115_v32 = vpop.permute.xlu1 %3114  ;;  %v2979_v58 = vadd.f32 %v2978_v18, %v2977_v12  ;;  %v3094_v18 = vadd.f32 %v3085_v47, %v3069_v46 }
 0x789   :  { %v3125_v11 = vadd.f32 %v3115_v32, %v3092_v51  ;;  %v3093_v52 = vadd.f32 %v3086_v59, %v3068_v37  ;;  %v3177_v32 = vsel %vm229_vm1, %v3174_v21, %v3176_v53 }
 0x78a   :  { %v3113_v54 = vpop.permute.xlu0 %3112  ;;  %v2981_v29 = vmul.f32 0.00147929, %v2979_v58 }
 0x78b   :  { %v3124_v26 = vadd.f32 %v3113_v54, %v3091_v9 }
 0x78c   :  { %v3119_v62 = vpop.permute.xlu1 %3118  ;;  %v2983_v15 = vsub.f32 %v2981_v29, %v2982_v30  ;;  %v2986_v29 = vsub.f32 %v6997_v5, %v7101_v0 }
 0x78d   :  { %v3127_v54 = vadd.f32 %v3119_v62, %v3094_v18 }
 0x78e   :  { %v3117_v50 = vpop.permute.xlu0 %3116  ;;  %v2984_v17 = vadd.f32 1e-05, %v2983_v15 }
 0x78f   :  { %v3126_v25 = vadd.f32 %v3117_v50, %v3093_v52 }
 0x790   :  { %v3148_v27 = vpop.permute.xlu1 %3147  ;;  %5572 = vrsqrt.f32 %v2984_v17 }
 0x791   :  { %v3158_v2 = vadd.f32 %v3148_v27, %v3125_v11 }
 0x792   :  { %v3146_v45 = vpop.permute.xlu0 %3145 }
 0x793   :  { %v3157_v8 = vadd.f32 %v3146_v45, %v3124_v26  ;;  %v3183_v63 = vadd.f32 %v3175_v4, %v3158_v2  ;;  %v3345_v4 = vstv %s5455_s21  ;;  %s5509_s21 = sld [smem:[#allocation2 + $0x34]] }
 0x794   :  { %v3152_v41 = vpop.permute.xlu1 %3151 }
 0x795   :  { %v3160_v17 = vadd.f32 %v3152_v41, %v3127_v54  ;;  %v3182_v60 = vadd.f32 %v3173_v43, %v3157_v8  ;;  %v3371_v43 = vstv %s5456_s24  ;;  %s5474_s24 = sld [smem:[#allocation2 + $0x1f]] }
 0x796   :  { %v3150_v6 = vpop.permute.xlu0 %3149 }
 0x797   :  { %v3159_v28 = vadd.f32 %v3150_v6, %v3126_v25  ;;  %v3185_v47 = vadd.f32 %v3176_v53, %v3160_v17  ;;  %v7188_v25 = vld [vmem:[%s8439_s0 + $0x30] sm:$0xff] }
 0x798   :  { %v3206_v14 = vpop.permute.xlu1 %3205  ;;  %v3348_v8 = vmul.f32 %v7188_v25, %v3345_v4 }
 0x799   :  { %v3216_v24 = vadd.f32 %v3206_v14, %v3183_v63  ;;  %v3184_v34 = vadd.f32 %v3177_v32, %v3159_v28  ;;  %v3422_v32 = vstv %s5458_s25  ;;  %s5475_s25 = sld [smem:[#allocation2 + $0x20]] }
 0x79a   :  { %v3204_v12 = vpop.permute.xlu0 %3203  ;;  %v3425_v28 = vmul.f32 %v7188_v25, %v3422_v32 }
 0x79b   :  { %v3215_v36 = vadd.f32 %v3204_v12, %v3182_v60 }
 0x79c   :  { %v3210_v58 = vpop.permute.xlu1 %3209 }
 0x79d   :  { %v5573_v30 = vpop.eup %5572  ;;  %v3218_v3 = vadd.f32 %v3210_v58, %v3185_v47  ;;  %v7195_v58 = vld [vmem:[%s8439_s0 + $0x38] sm:$0xf] }
 0x79e   :  { %v3208_v15 = vpop.permute.xlu0 %3207  ;;  %v2992_v50 = vmul.f32 %v5573_v30, %v2991_v13  ;;  %v7181_v13 = vld [vmem:[%s8439_s0 + $0x20] sm:$0xff]  ;;  %v7202_v30 = vld [vmem:[%s8439_s0 + $0x28] sm:$0xff] }
 0x79f   :  { %v3217_v42 = vadd.f32 %v3208_v15, %v3184_v34  ;;  %v3346_v18 = vmul.f32 %v7181_v13, %v3345_v4  ;;  %v3424_v54 = vmul.f32 %v7202_v30, %v3422_v32  ;;  %v3347_v63 = vmul.f32 %v7202_v30, %v3345_v4 }
 0x7a0   :  { %v3239_v44 = vpop.permute.xlu1 %3238  ;;  %v2993_v5 = vmul.f32 %v2992_v50, %v2986_v29  ;;  %v2994_v62 = vmul.f32 %v2992_v50, %v2987_v35  ;;  %v2995_v1 = vmul.f32 %v2992_v50, %v2988_v22  ;;  %v2996_v27 = vmul.f32 %v2992_v50, %v2989_v31 }
 0x7a1   :  { %v3249_v38 = vadd.f32 %v3239_v44, %v3216_v24  ;;  %v3373_v29 = vmul.f32 %v7202_v30, %v3371_v43  ;;  %v3375_v15 = vmul.f32 %v7195_v58, %v3371_v43  ;;  %v3432_v35 = vrot.slane %v3424_v54, 1 }
 0x7a2   :  { %v3237_v10 = vpop.permute.xlu0 %3236  ;;  %v2999_v55 = vadd.f32 %v2998_v39, %v2993_v5  ;;  %v3000_v45 = vadd.f32 %v2998_v39, %v2994_v62  ;;  %v3001_v49 = vadd.f32 %v2998_v39, %v2995_v1  ;;  %v3002_v7 = vadd.f32 %v2998_v39, %v2996_v27 }
 0x7a3   :  { %v7134_v0 = vadd.f32 %v3253_v33, %v3249_v38  ;;  %v3248_v57 = vadd.f32 %v3237_v10, %v3215_v36  ;;  %v3349_v39 = vmul.f32 %v7195_v58, %v3345_v4  ;;  %v3434_v22 = vrot.slane %v3425_v28, 1 }
 0x7a4   :  { %v3003_v40 = vmax.f32 %v2999_v55, 0.0  ;;  %v3004_v48 = vmax.f32 %v3000_v45, 0.0  ;;  %v3005_v61 = vmax.f32 %v3001_v49, 0.0  ;;  %v3006_v20 = vmax.f32 %v3002_v7, 0.0  ;;  %v3243_v41 = vpop.permute.xlu1 %3242 }
 0x7a5   :  { %v7136_v16 = vadd.f32 %v3253_v33, %v3248_v57  ;;  %v3261_v56 = vsel %vm317_vm2, %v7134_v0, 0.0  ;;  %v3251_v6 = vadd.f32 %v3243_v41, %v3218_v3  ;;  %v3281_v26 = vmul.f32 %v7134_v0, %v7134_v0 }
 0x7a6   :  { %v3241_v37 = vpop.permute.xlu0 %3240  ;;  %5434 = vst.msk [vmem:[%s8444_s5 + $0x100] sm:$0xff] %vm317_vm2, %v3003_v40  ;;  %5435 = vst.msk [vmem:[%s8444_s5 + $0x108] sm:$0xff] %vm317_vm2, %v3004_v48  ;;  %3262 = vadd.xlane.f32.xlu1 %v3261_v56  ;;  %v3455_v31 = vstv %s5459_s28  ;;  %v3372_v50 = vmul.f32 %v7181_v13, %v3371_v43  ;;  %v3423_v17 = vmul.f32 %v7181_v13, %v3422_v32  ;;  %v3513_v34 = vstv %s5461_s6  ;;  %s5476_s28 = sld [smem:[#allocation2 + $0x21]] }
 0x7a7   :  { %5436 = vst.msk [vmem:[%s8444_s5 + $0x110] sm:$0xff] %vm317_vm2, %v3005_v61  ;;  %v3250_v51 = vadd.f32 %v3241_v37, %v3217_v42  ;;  %v3258_v59 = vsel %vm317_vm2, %v7136_v16, 0.0  ;;  %v3280_v19 = vmul.f32 %v7136_v16, %v7136_v16  ;;  %v7167_v14 = vadd.f32 %v3253_v33, %v3251_v6  ;;  %s5479_s6 = sld [smem:[#allocation5 + $0x3]] }
 0x7a8   :  { %5437 = vst.msk [vmem:[%s8444_s5 + $0x118] sm:$0x3] %vm327_vm3, %v3006_v20  ;;  %3259 = vadd.xlane.f32.xlu0 %v3258_v59  ;;  %v3287_v52 = vsel %vm317_vm2, %v3281_v26, 0.0  ;;  %v3426_v24 = vmul.f32 %v7195_v58, %v3422_v32  ;;  %v3435_v60 = vsel %vm137_vm0, %v3432_v35, %v3434_v22  ;;  %v3458_v44 = vmul.f32 %v7188_v25, %v3455_v31 }
 0x7a9   :  { %v7160_v21 = vadd.f32 %v3253_v33, %v3250_v51  ;;  %v3284_v46 = vsel %vm317_vm2, %v3280_v19, 0.0  ;;  %v3267_v53 = vsel %vm327_vm3, %v7167_v14, 0.0  ;;  %v3283_v2 = vmul.f32 %v7167_v14, %v7167_v14 }
 0x7aa   :  { %3285 = vadd.xlane.f32.xlu1 %v3284_v46  ;;  %v3457_v33 = vmul.f32 %v7202_v30, %v3455_v31  ;;  %v3374_v5 = vmul.f32 %v7188_v25, %v3371_v43  ;;  %v3431_v62 = vrot.slane %v3423_v17, 1  ;;  %v3436_v1 = vrot.slane %v3426_v24, 1 }
 0x7ab   :  { %v3264_v11 = vsel %vm317_vm2, %v7160_v21, 0.0  ;;  %v3282_v9 = vmul.f32 %v7160_v21, %v7160_v21  ;;  %v3293_v12 = vsel %vm327_vm3, %v3283_v2, 0.0  ;;  %v3467_v36 = vrot.slane %v3458_v44, 1 }
 0x7ac   :  { %3265 = vadd.xlane.f32.xlu0 %v3264_v11  ;;  %v3465_v27 = vrot.slane %v3457_v33, 1  ;;  %v3433_v38 = vsel %vm137_vm0, %v3431_v62, %v3432_v35  ;;  %v3456_v10 = vmul.f32 %v7181_v13, %v3455_v31  ;;  %v3459_v55 = vmul.f32 %v7195_v58, %v3455_v31 }
 0x7ad   :  { %v3290_v23 = vsel %vm317_vm2, %v3282_v9, 0.0  ;;  %v3515_v49 = vmul.f32 %v7202_v30, %v3513_v34  ;;  %v3516_v7 = vmul.f32 %v7188_v25, %v3513_v34  ;;  %v3437_v47 = vsel %vm137_vm0, %v3434_v22, %v3436_v1 }
 0x7ae   :  { %3291 = vadd.xlane.f32.xlu1 %v3290_v23  ;;  %v3468_v45 = vsel %vm137_vm0, %v3465_v27, %v3467_v36  ;;  %v3464_v42 = vrot.slane %v3456_v10, 1  ;;  %v3469_v57 = vrot.slane %v3459_v55, 1  ;;  %v3546_v61 = vstv %s5462_s7  ;;  %s5495_s7 = sld [smem:[#allocation5 + $0x4]] }
 0x7af   :  { %v3523_v40 = vrot.slane %v3515_v49, 2  ;;  %v3525_v48 = vrot.slane %v3516_v7, 2  ;;  %v3514_v41 = vmul.f32 %v7181_v13, %v3513_v34  ;;  %v3517_v3 = vmul.f32 %v7195_v58, %v3513_v34 }
 0x7b0   :  { %3268 = vadd.xlane.f32.xlu0 %v3267_v53  ;;  %v3466_v20 = vsel %vm137_vm0, %v3464_v42, %v3465_v27  ;;  %v3548_v37 = vmul.f32 %v7202_v30, %v3546_v61  ;;  %v3549_v51 = vmul.f32 %v7188_v25, %v3546_v61  ;;  %v3470_v6 = vsel %vm137_vm0, %v3467_v36, %v3469_v57 }
 0x7b1   :  { %v3526_v56 = vsel %vm229_vm1, %v3523_v40, %v3525_v48  ;;  %v3522_v59 = vrot.slane %v3514_v41, 2  ;;  %v3527_v19 = vrot.slane %v3517_v3, 2  ;;  %v3547_v23 = vmul.f32 %v7181_v13, %v3546_v61 }
 0x7b2   :  { %v3556_v46 = vrot.slane %v3548_v37, 2  ;;  %v3558_v11 = vrot.slane %v3549_v51, 2  ;;  %v3550_v53 = vmul.f32 %v7195_v58, %v3546_v61  ;;  %v3339_v3 = vstv %s5454_s9  ;;  %s5542_s9 = sld [smem:[#allocation2 + $0x47]] }
 0x7b3   :  { %v3524_v9 = vsel %vm229_vm1, %v3522_v59, %v3523_v40  ;;  %v3555_v2 = vrot.slane %v3547_v23, 2  ;;  %v3341_v37 = vmul.f32 %v7202_v30, %v3339_v3 }
 0x7b4   :  { %3288 = vadd.xlane.f32.xlu0 %v3287_v52  ;;  %v3559_v26 = vsel %vm229_vm1, %v3556_v46, %v3558_v11  ;;  %v3528_v52 = vsel %vm229_vm1, %v3525_v48, %v3527_v19 }
 0x7b5   :  { %v3557_v4 = vsel %vm229_vm1, %v3555_v2, %v3556_v46 }
 0x7b8   :  { %3294 = vadd.xlane.f32.xlu0 %v3293_v12  ;;  %v3560_v12 = vrot.slane %v3550_v53, 2  ;;  %v3340_v53 = vmul.f32 %v7181_v13, %v3339_v3 }
 0x7bf   :  { %3354 = vrot.lane.b32.xlu1 %v3346_v18, %s5664_s16  ;;  %v3561_v18 = vsel %vm229_vm1, %v3558_v11, %v3560_v12 }
 0x7c3   :  { %3358 = vrot.lane.b32.xlu1 %v3348_v8, %s5664_s16 }
 0x7c7   :  { %3360 = vrot.lane.b32.xlu1 %v3349_v39, %s5664_s16 }
 0x7cb   :  { %3382 = vrot.lane.b32.xlu1 %v3373_v29, %s5665_s18 }
 0x7ce   :  { %3356 = vrot.lane.b32.xlu0 %v3347_v63, %s5664_s16 }
 0x7cf   :  { %3386 = vrot.lane.b32.xlu1 %v3375_v15, %s5665_s18 }
 0x7d2   :  { %3380 = vrot.lane.b32.xlu0 %v3372_v50, %s5665_s18 }
 0x7d3   :  { %3440 = vrot.lane.b32.xlu1 %v3435_v60, %s5664_s16 }
 0x7d6   :  { %3384 = vrot.lane.b32.xlu0 %v3374_v5, %s5665_s18 }
 0x7d7   :  { %3444 = vrot.lane.b32.xlu1 %v3436_v1, %s5664_s16 }
 0x7da   :  { %3438 = vrot.lane.b32.xlu0 %v3433_v38, %s5664_s16 }
 0x7db   :  { %3473 = vrot.lane.b32.xlu1 %v3468_v45, %s5665_s18 }
 0x7de   :  { %3442 = vrot.lane.b32.xlu0 %v3437_v47, %s5664_s16 }
 0x7df   :  { %3477 = vrot.lane.b32.xlu1 %v3469_v57, %s5665_s18 }
 0x7e2   :  { %3471 = vrot.lane.b32.xlu0 %v3466_v20, %s5665_s18  ;;  %v3397_v20 = vstv %s5457_s8  ;;  %s5526_s8 = sld [smem:[#allocation2 + $0x3e]] }
 0x7e3   :  { %3531 = vrot.lane.b32.xlu1 %v3526_v56, %s5664_s16  ;;  %v3400_v46 = vmul.f32 %v7188_v25, %v3397_v20  ;;  %v3398_v23 = vmul.f32 %v7181_v13, %v3397_v20 }
 0x7e6   :  { %3475 = vrot.lane.b32.xlu0 %v3470_v6, %s5665_s18 }
 0x7e7   :  { %3535 = vrot.lane.b32.xlu1 %v3527_v19, %s5664_s16  ;;  %v3399_v19 = vmul.f32 %v7202_v30, %v3397_v20 }
 0x7ea   :  { %3529 = vrot.lane.b32.xlu0 %v3524_v9, %s5664_s16 }
 0x7eb   :  { %3564 = vrot.lane.b32.xlu1 %v3559_v26, %s5665_s18 }
 0x7ee   :  { %3533 = vrot.lane.b32.xlu0 %v3528_v52, %s5664_s16 }
 0x7ef   :  { %3568 = vrot.lane.b32.xlu1 %v3560_v12, %s5665_s18  ;;  %v3407_v12 = vrot.slane %v3399_v19, 1 }
 0x7f2   :  { %3562 = vrot.lane.b32.xlu0 %v3557_v4, %s5665_s18  ;;  %v3409_v4 = vrot.slane %v3400_v46, 1  ;;  %v3324_v46 = vstv %s5449_s3  ;;  %s5529_s3 = sld [smem:[#allocation8 + $0x6]] }
 0x7f6   :  { %3566 = vrot.lane.b32.xlu0 %v3561_v18, %s5665_s18  ;;  %v3401_v18 = vmul.f32 %v7195_v58, %v3397_v20 }
 0x82f   :  { %v3263_v8 = vpop.xlane.xlu1 %3262 }
 0x831   :  { %v3260_v39 = vpop.xlane.xlu0 %3259 }
 0x832   :  { %v3270_v29 = vadd.f32 %v3263_v8, %v3260_v39  ;;  %v3342_v8 = vmul.f32 %v7188_v25, %v3339_v3  ;;  %v3343_v39 = vmul.f32 %v7195_v58, %v3339_v3 }
 0x833   :  { %v3286_v43 = vpop.xlane.xlu1 %3285 }
 0x835   :  { %v3266_v32 = vpop.xlane.xlu0 %3265 }
 0x836   :  { %v3271_v28 = vadd.f32 %v3270_v29, %v3266_v32  ;;  %v3488_v32 = vstv %s5460_s10  ;;  %v3406_v29 = vrot.slane %v3398_v23, 1  ;;  %s8367_s10 = sld [smem:[#allocation7 + $0x6]] }
 0x837   :  { %v3292_v54 = vpop.xlane.xlu1 %3291 }
 0x839   :  { %v3269_v63 = vpop.xlane.xlu0 %3268 }
 0x83a   :  { %v3272_v15 = vsel %vm333_vm4, %v3269_v63, 0.0 }
 0x83b   :  { %v3273_v35 = vadd.f32 %v3272_v15, %v3271_v28  ;;  %v3355_v22 = vpop.permute.xlu1 %3354  ;;  %v3410_v15 = vsel %vm137_vm0, %v3407_v12, %v3409_v4 }
 0x83d   :  { %v3274_v31 = vrot.slane %v3273_v35, 4  ;;  %v3289_v50 = vpop.xlane.xlu0 %3288 }
 0x83e   :  { %v3296_v17 = vadd.f32 %v3289_v50, %v3286_v43  ;;  %v3491_v50 = vmul.f32 %v7188_v25, %v3488_v32 }
 0x83f   :  { %v3275_v24 = vadd.f32 %v3274_v31, %v3273_v35  ;;  %v3359_v60 = vpop.permute.xlu1 %3358  ;;  %v3411_v35 = vrot.slane %v3401_v18, 1  ;;  %v3490_v31 = vmul.f32 %v7202_v30, %v3488_v32 }
 0x840   :  { %v3297_v33 = vadd.f32 %v3296_v17, %v3292_v54  ;;  %v3366_v54 = vadd.f32 %v3355_v22, %v3340_v53  ;;  %v3368_v17 = vadd.f32 %v3359_v60, %v3342_v8  ;;  %v3489_v22 = vmul.f32 %v7181_v13, %v3488_v32 }
 0x841   :  { %v3276_v44 = vrot.slane %v3275_v24, 2  ;;  %v3295_v5 = vpop.xlane.xlu0 %3294  ;;  %v3500_v60 = vrot.slane %v3491_v50, 2 }
 0x842   :  { %v3298_v62 = vsel %vm333_vm4, %v3295_v5, 0.0  ;;  %v3408_v5 = vsel %vm137_vm0, %v3406_v29, %v3407_v12 }
 0x843   :  { %v3277_v1 = vadd.f32 %v3276_v44, %v3275_v24  ;;  %v3299_v27 = vadd.f32 %v3298_v62, %v3297_v33  ;;  %v3361_v36 = vpop.permute.xlu1 %3360  ;;  %v3492_v62 = vmul.f32 %v7195_v58, %v3488_v32  ;;  %v3579_v32 = vstv %s5463_s12 }
 0x844   :  { %v3369_v24 = vadd.f32 %v3361_v36, %v3343_v39 }
 0x845   :  { %v3300_v34 = vrot.slane %v3299_v27, 4  ;;  %v3357_v38 = vpop.permute.xlu0 %3356  ;;  %v3278_v10 = vrot.slane %v3277_v1, 1 }
 0x846   :  { %v3367_v26 = vadd.f32 %v3357_v38, %v3341_v37  ;;  %v3412_v38 = vsel %vm137_vm0, %v3409_v4, %v3411_v35 }
 0x847   :  { %v3301_v55 = vadd.f32 %v3300_v34, %v3299_v27  ;;  %v3383_v45 = vpop.permute.xlu1 %3382  ;;  %v3279_v47 = vadd.f32 %v3278_v10, %v3277_v1  ;;  %v3498_v10 = vrot.slane %v3490_v31, 2 }
 0x848   :  { %v3393_v28 = vadd.f32 %v3383_v45, %v3367_v26 }
 0x849   :  { %v3302_v49 = vrot.slane %v3301_v55, 2  ;;  %v3381_v7 = vpop.permute.xlu0 %3380  ;;  %v7260_v48 = vmul.f32 0.00147929, %v3279_v47  ;;  %v3502_v47 = vrot.slane %v3492_v62, 2 }
 0x84a   :  { %v3392_v33 = vadd.f32 %v3381_v7, %v3366_v54  ;;  %v3418_v27 = vadd.f32 %v3410_v15, %v3393_v28  ;;  %v3497_v7 = vrot.slane %v3489_v22, 2 }
 0x84b   :  { %v3387_v42 = vpop.permute.xlu1 %3386  ;;  %v3303_v57 = vadd.f32 %v3302_v49, %v3301_v55  ;;  %v3308_v6 = vmul.f32 %v7260_v48, %v7260_v48  ;;  %v3312_v23 = vsub.f32 %v7136_v16, %v7260_v48  ;;  %v3313_v12 = vsub.f32 %v7134_v0, %v7260_v48 }
 0x84c   :  { %v3395_v55 = vadd.f32 %v3387_v42, %v3369_v24  ;;  %v3417_v36 = vadd.f32 %v3408_v5, %v3392_v33  ;;  %v3499_v42 = vsel %vm229_vm1, %v3497_v7, %v3498_v10  ;;  %v3315_v4 = vsub.f32 %v7167_v14, %v7260_v48 }
 0x84d   :  { %v3385_v40 = vpop.permute.xlu0 %3384  ;;  %v3304_v61 = vrot.slane %v3303_v57, 1 }
 0x84e   :  { %v3394_v1 = vadd.f32 %v3385_v40, %v3368_v17  ;;  %v3501_v40 = vsel %vm229_vm1, %v3498_v10, %v3500_v60  ;;  %v3420_v37 = vadd.f32 %v3411_v35, %v3395_v55 }
 0x84f   :  { %v3441_v41 = vpop.permute.xlu1 %3440  ;;  %v3305_v56 = vadd.f32 %v3304_v61, %v3303_v57 }
 0x850   :  { %v3451_v45 = vadd.f32 %v3441_v41, %v3418_v27  ;;  %v3419_v61 = vadd.f32 %v3412_v38, %v3394_v1  ;;  %v3503_v41 = vsel %vm229_vm1, %v3500_v60, %v3502_v47 }
 0x851   :  { %v3439_v51 = vpop.permute.xlu0 %3438  ;;  %v3307_v59 = vmul.f32 0.00147929, %v3305_v56  ;;  %v3317_v56 = vstv %s7275_s11  ;;  %s5545_s11 = sld [smem:[#allocation8 + $0x7]] }
 0x852   :  { %v3450_v57 = vadd.f32 %v3439_v51, %v3417_v36 }
 0x853   :  { %v3445_v11 = vpop.permute.xlu1 %3444  ;;  %v3309_v9 = vsub.f32 %v3307_v59, %v3308_v6 }
 0x854   :  { %v3453_v51 = vadd.f32 %v3445_v11, %v3420_v37 }
 0x855   :  { %v3443_v52 = vpop.permute.xlu0 %3442  ;;  %v3310_v2 = vadd.f32 1e-05, %v3309_v9 }
 0x856   :  { %v3452_v6 = vadd.f32 %v3443_v52, %v3419_v61  ;;  %v3314_v52 = vsub.f32 %v7160_v21, %v7260_v48 }
 0x857   :  { %v3474_v43 = vpop.permute.xlu1 %3473  ;;  %5574 = vrsqrt.f32 %v3310_v2 }
 0x858   :  { %v3484_v20 = vadd.f32 %v3474_v43, %v3451_v45 }
 0x859   :  { %v3472_v63 = vpop.permute.xlu0 %3471 }
 0x85a   :  { %v3483_v59 = vadd.f32 %v3472_v63, %v3450_v57  ;;  %v3509_v26 = vadd.f32 %v3501_v40, %v3484_v20 }
 0x85b   :  { %v3478_v44 = vpop.permute.xlu1 %3477 }
 0x85c   :  { %v3486_v8 = vadd.f32 %v3478_v44, %v3453_v51  ;;  %v3508_v43 = vadd.f32 %v3499_v42, %v3483_v59  ;;  %v3671_v59 = vstv %s5471_s22  ;;  %s5508_s22 = sld [smem:[#allocation2 + $0x33]] }
 0x85d   :  { %v3476_v34 = vpop.permute.xlu0 %3475  ;;  %v3675_v42 = vmul.f32 %v7195_v58, %v3671_v59 }
 0x85e   :  { %v3485_v53 = vadd.f32 %v3476_v34, %v3452_v6  ;;  %v3511_v24 = vadd.f32 %v3502_v47, %v3486_v8 }
 0x85f   :  { %v3532_v49 = vpop.permute.xlu1 %3531 }
 0x860   :  { %v3542_v39 = vadd.f32 %v3532_v49, %v3509_v26  ;;  %v3510_v15 = vadd.f32 %v3503_v41, %v3485_v53  ;;  %v3697_v41 = vstv %s5472_s23  ;;  %v3673_v26 = vmul.f32 %v7202_v30, %v3671_v59  ;;  %s5510_s23 = sld [smem:[#allocation2 + $0x35]] }
 0x861   :  { %v3530_v3 = vpop.permute.xlu0 %3529 }
 0x862   :  { %v3541_v63 = vadd.f32 %v3530_v3, %v3508_v43 }
 0x863   :  { %v3536_v19 = vpop.permute.xlu1 %3535 }
 0x864   :  { %v5575_v9 = vpop.eup %5574  ;;  %v3544_v27 = vadd.f32 %v3536_v19, %v3511_v24  ;;  %v3672_v19 = vmul.f32 %v7181_v13, %v3671_v59 }
 0x865   :  { %v3534_v2 = vpop.permute.xlu0 %3533  ;;  %v3318_v18 = vmul.f32 %v5575_v9, %v3317_v56  ;;  %v3748_v9 = vstv %s5474_s24  ;;  %s5491_s24 = sld [smem:[#allocation2 + $0x29]] }
 0x866   :  { %v3543_v14 = vadd.f32 %v3534_v2, %v3510_v15  ;;  %v3750_v51 = vmul.f32 %v7202_v30, %v3748_v9  ;;  %v3751_v53 = vmul.f32 %v7188_v25, %v3748_v9  ;;  %v3701_v2 = vmul.f32 %v7195_v58, %v3697_v41 }
 0x867   :  { %v3565_v29 = vpop.permute.xlu1 %3564  ;;  %v3319_v16 = vmul.f32 %v3318_v18, %v3312_v23  ;;  %v3320_v11 = vmul.f32 %v3318_v18, %v3313_v12  ;;  %v3321_v54 = vmul.f32 %v3318_v18, %v3314_v52  ;;  %v3322_v28 = vmul.f32 %v3318_v18, %v3315_v4 }
 0x868   :  { %v3575_v35 = vadd.f32 %v3565_v29, %v3542_v39  ;;  %v3699_v23 = vmul.f32 %v7202_v30, %v3697_v41  ;;  %v3758_v12 = vrot.slane %v3750_v51, 1  ;;  %v3760_v52 = vrot.slane %v3751_v53, 1 }
 0x869   :  { %v3563_v0 = vpop.permute.xlu0 %3562  ;;  %v3325_v31 = vadd.f32 %v3324_v46, %v3319_v16  ;;  %v3326_v50 = vadd.f32 %v3324_v46, %v3320_v11  ;;  %v3327_v21 = vadd.f32 %v3324_v46, %v3321_v54  ;;  %v3328_v17 = vadd.f32 %v3324_v46, %v3322_v28 }
 0x86a   :  { %v7293_v48 = vadd.f32 %v3579_v32, %v3575_v35  ;;  %v3574_v33 = vadd.f32 %v3563_v0, %v3541_v63  ;;  %v3674_v46 = vmul.f32 %v7188_v25, %v3671_v59  ;;  %v3781_v4 = vstv %s5475_s25  ;;  %s5535_s25 = sld [smem:[#allocation2 + $0x40]] }
 0x86b   :  { %v3329_v44 = vmax.f32 %v3325_v31, 0.0  ;;  %v3330_v5 = vmax.f32 %v3326_v50, 0.0  ;;  %v3331_v22 = vmax.f32 %v3327_v21, 0.0  ;;  %v3332_v62 = vmax.f32 %v3328_v17, 0.0  ;;  %v3569_v1 = vpop.permute.xlu1 %3568 }
 0x86c   :  { %v7295_v34 = vadd.f32 %v3579_v32, %v3574_v33  ;;  %v3587_v38 = vsel %vm317_vm2, %v7293_v48, 0.0  ;;  %v3577_v55 = vadd.f32 %v3569_v1, %v3544_v27  ;;  %v3607_v40 = vmul.f32 %v7293_v48, %v7293_v48 }
 0x86d   :  { %v3567_v10 = vpop.permute.xlu0 %3566  ;;  %5450 = vst.msk [vmem:[%s8444_s5 + $0x120] sm:$0xff] %vm317_vm2, %v3329_v44  ;;  %5451 = vst.msk [vmem:[%s8444_s5 + $0x128] sm:$0xff] %vm317_vm2, %v3330_v5  ;;  %3588 = vadd.xlane.f32.xlu1 %v3587_v38  ;;  %v3698_v18 = vmul.f32 %v7181_v13, %v3697_v41  ;;  %v3749_v8 = vmul.f32 %v7181_v13, %v3748_v9  ;;  %v3752_v39 = vmul.f32 %v7195_v58, %v3748_v9 }
 0x86e   :  { %5452 = vst.msk [vmem:[%s8444_s5 + $0x130] sm:$0xff] %vm317_vm2, %v3331_v22  ;;  %v3576_v60 = vadd.f32 %v3567_v10, %v3543_v14  ;;  %v3584_v45 = vsel %vm317_vm2, %v7295_v34, 0.0  ;;  %v3606_v36 = vmul.f32 %v7295_v34, %v7295_v34  ;;  %v7326_v61 = vadd.f32 %v3579_v32, %v3577_v55 }
 0x86f   :  { %5453 = vst.msk [vmem:[%s8444_s5 + $0x138] sm:$0x3] %vm327_vm3, %v3332_v62  ;;  %3585 = vadd.xlane.f32.xlu0 %v3584_v45  ;;  %v3613_v56 = vsel %vm317_vm2, %v3607_v40, 0.0  ;;  %v3761_v43 = vsel %vm137_vm0, %v3758_v12, %v3760_v52  ;;  %v3784_v29 = vmul.f32 %v7188_v25, %v3781_v4  ;;  %v3700_v16 = vmul.f32 %v7188_v25, %v3697_v41 }
 0x870   :  { %v7319_v49 = vadd.f32 %v3579_v32, %v3576_v60  ;;  %v3610_v7 = vsel %vm317_vm2, %v3606_v36, 0.0  ;;  %v3593_v3 = vsel %vm327_vm3, %v7326_v61, 0.0  ;;  %v3609_v37 = vmul.f32 %v7326_v61, %v7326_v61 }
 0x871   :  { %3611 = vadd.xlane.f32.xlu1 %v3610_v7  ;;  %v3783_v32 = vmul.f32 %v7202_v30, %v3781_v4  ;;  %v3757_v11 = vrot.slane %v3749_v8, 1  ;;  %v3762_v54 = vrot.slane %v3752_v39, 1  ;;  %v3793_v63 = vrot.slane %v3784_v29, 1 }
 0x872   :  { %v3590_v47 = vsel %vm317_vm2, %v7319_v49, 0.0  ;;  %v3608_v57 = vmul.f32 %v7319_v49, %v7319_v49  ;;  %v3619_v6 = vsel %vm327_vm3, %v3609_v37, 0.0  ;;  %v3839_v15 = vstv %s5477_s26  ;;  %s5520_s26 = sld [smem:[#allocation2 + $0x38]] }
 0x873   :  { %3591 = vadd.xlane.f32.xlu0 %v3590_v47  ;;  %v3791_v28 = vrot.slane %v3783_v32, 1  ;;  %v3759_v35 = vsel %vm137_vm0, %v3757_v11, %v3758_v12  ;;  %v3782_v0 = vmul.f32 %v7181_v13, %v3781_v4  ;;  %v3785_v31 = vmul.f32 %v7195_v58, %v3781_v4 }
 0x874   :  { %v3616_v20 = vsel %vm317_vm2, %v3608_v57, 0.0  ;;  %v3841_v21 = vmul.f32 %v7202_v30, %v3839_v15  ;;  %v3842_v17 = vmul.f32 %v7188_v25, %v3839_v15  ;;  %v3763_v24 = vsel %vm137_vm0, %v3760_v52, %v3762_v54 }
 0x875   :  { %3617 = vadd.xlane.f32.xlu1 %v3616_v20  ;;  %v3794_v50 = vsel %vm137_vm0, %v3791_v28, %v3793_v63  ;;  %v3790_v14 = vrot.slane %v3782_v0, 1  ;;  %v3795_v33 = vrot.slane %v3785_v31, 1  ;;  %v3872_v22 = vstv %s5478_s1  ;;  %s5493_s1 = sld [smem:[#allocation2 + $0x2b]] }
 0x876   :  { %v3849_v44 = vrot.slane %v3841_v21, 2  ;;  %v3851_v5 = vrot.slane %v3842_v17, 2  ;;  %v3840_v1 = vmul.f32 %v7181_v13, %v3839_v15  ;;  %v3843_v27 = vmul.f32 %v7195_v58, %v3839_v15 }
 0x877   :  { %3594 = vadd.xlane.f32.xlu0 %v3593_v3  ;;  %v3792_v62 = vsel %vm137_vm0, %v3790_v14, %v3791_v28  ;;  %v3874_v10 = vmul.f32 %v7202_v30, %v3872_v22  ;;  %v3875_v60 = vmul.f32 %v7188_v25, %v3872_v22  ;;  %v3796_v55 = vsel %vm137_vm0, %v3793_v63, %v3795_v33 }
 0x878   :  { %v3852_v38 = vsel %vm229_vm1, %v3849_v44, %v3851_v5  ;;  %v3848_v45 = vrot.slane %v3840_v1, 2  ;;  %v3853_v36 = vrot.slane %v3843_v27, 2  ;;  %v3873_v20 = vmul.f32 %v7181_v13, %v3872_v22 }
 0x879   :  { %v3882_v7 = vrot.slane %v3874_v10, 2  ;;  %v3884_v47 = vrot.slane %v3875_v60, 2  ;;  %v3876_v3 = vmul.f32 %v7195_v58, %v3872_v22  ;;  %v3665_v27 = vstv %s5470_s27  ;;  %s5489_s27 = sld [smem:[#allocation2 + $0x27]] }
 0x87a   :  { %v3850_v57 = vsel %vm229_vm1, %v3848_v45, %v3849_v44  ;;  %v3881_v37 = vrot.slane %v3873_v20, 2  ;;  %v3667_v10 = vmul.f32 %v7202_v30, %v3665_v27 }
 0x87b   :  { %3614 = vadd.xlane.f32.xlu0 %v3613_v56  ;;  %v3885_v40 = vsel %vm229_vm1, %v3882_v7, %v3884_v47  ;;  %v3854_v56 = vsel %vm229_vm1, %v3851_v5, %v3853_v36 }
 0x87c   :  { %v3883_v59 = vsel %vm229_vm1, %v3881_v37, %v3882_v7 }
 0x87f   :  { %3620 = vadd.xlane.f32.xlu0 %v3619_v6  ;;  %v3886_v6 = vrot.slane %v3876_v3, 2  ;;  %v3666_v3 = vmul.f32 %v7181_v13, %v3665_v27 }
 0x886   :  { %3680 = vrot.lane.b32.xlu1 %v3672_v19, %s5664_s16  ;;  %v3887_v19 = vsel %vm229_vm1, %v3884_v47, %v3886_v6 }
 0x88a   :  { %3684 = vrot.lane.b32.xlu1 %v3674_v46, %s5664_s16 }
 0x88e   :  { %3686 = vrot.lane.b32.xlu1 %v3675_v42, %s5664_s16 }
 0x892   :  { %3708 = vrot.lane.b32.xlu1 %v3699_v23, %s5665_s18 }
 0x895   :  { %3682 = vrot.lane.b32.xlu0 %v3673_v26, %s5664_s16 }
 0x896   :  { %3712 = vrot.lane.b32.xlu1 %v3701_v2, %s5665_s18 }
 0x899   :  { %3706 = vrot.lane.b32.xlu0 %v3698_v18, %s5665_s18 }
 0x89a   :  { %3766 = vrot.lane.b32.xlu1 %v3761_v43, %s5664_s16 }
 0x89d   :  { %3710 = vrot.lane.b32.xlu0 %v3700_v16, %s5665_s18 }
 0x89e   :  { %3770 = vrot.lane.b32.xlu1 %v3762_v54, %s5664_s16 }
 0x8a1   :  { %3764 = vrot.lane.b32.xlu0 %v3759_v35, %s5664_s16 }
 0x8a2   :  { %3799 = vrot.lane.b32.xlu1 %v3794_v50, %s5665_s18 }
 0x8a5   :  { %3768 = vrot.lane.b32.xlu0 %v3763_v24, %s5664_s16 }
 0x8a6   :  { %3803 = vrot.lane.b32.xlu1 %v3795_v33, %s5665_s18 }
 0x8a9   :  { %3797 = vrot.lane.b32.xlu0 %v3792_v62, %s5665_s18  ;;  %v3723_v62 = vstv %s5473_s2  ;;  %s5494_s2 = sld [smem:[#allocation2 + $0x2c]] }
 0x8aa   :  { %3857 = vrot.lane.b32.xlu1 %v3852_v38, %s5664_s16  ;;  %v3726_v7 = vmul.f32 %v7188_v25, %v3723_v62  ;;  %v3724_v20 = vmul.f32 %v7181_v13, %v3723_v62 }
 0x8ad   :  { %3801 = vrot.lane.b32.xlu0 %v3796_v55, %s5665_s18 }
 0x8ae   :  { %3861 = vrot.lane.b32.xlu1 %v3853_v36, %s5664_s16  ;;  %v3725_v36 = vmul.f32 %v7202_v30, %v3723_v62 }
 0x8b1   :  { %3855 = vrot.lane.b32.xlu0 %v3850_v57, %s5664_s16 }
 0x8b2   :  { %3890 = vrot.lane.b32.xlu1 %v3885_v40, %s5665_s18 }
 0x8b5   :  { %3859 = vrot.lane.b32.xlu0 %v3854_v56, %s5664_s16 }
 0x8b6   :  { %3894 = vrot.lane.b32.xlu1 %v3886_v6, %s5665_s18  ;;  %v3733_v6 = vrot.slane %v3725_v36, 1 }
 0x8b9   :  { %3888 = vrot.lane.b32.xlu0 %v3883_v59, %s5665_s18  ;;  %v3735_v59 = vrot.slane %v3726_v7, 1 }
 0x8bd   :  { %3892 = vrot.lane.b32.xlu0 %v3887_v19, %s5665_s18  ;;  %v3727_v19 = vmul.f32 %v7195_v58, %v3723_v62 }
 0x8f6   :  { %v3589_v46 = vpop.xlane.xlu1 %3588 }
 0x8f8   :  { %v3586_v42 = vpop.xlane.xlu0 %3585 }
 0x8f9   :  { %v3596_v23 = vadd.f32 %v3589_v46, %v3586_v42  ;;  %v3668_v46 = vmul.f32 %v7188_v25, %v3665_v27  ;;  %v3669_v42 = vmul.f32 %v7195_v58, %v3665_v27 }
 0x8fa   :  { %v3612_v41 = vpop.xlane.xlu1 %3611 }
 0x8fc   :  { %v3592_v9 = vpop.xlane.xlu0 %3591 }
 0x8fd   :  { %v3597_v53 = vadd.f32 %v3596_v23, %v3592_v9  ;;  %v3814_v9 = vstv %s5476_s28  ;;  %v3732_v23 = vrot.slane %v3724_v20, 1  ;;  %s5486_s28 = sld [smem:[#allocation2 + $0x24]] }
 0x8fe   :  { %v3618_v51 = vpop.xlane.xlu1 %3617 }
 0x900   :  { %v3595_v26 = vpop.xlane.xlu0 %3594 }
 0x901   :  { %v3598_v2 = vsel %vm333_vm4, %v3595_v26, 0.0 }
 0x902   :  { %v3599_v12 = vadd.f32 %v3598_v2, %v3597_v53  ;;  %v3681_v52 = vpop.permute.xlu1 %3680  ;;  %v3736_v2 = vsel %vm137_vm0, %v3733_v6, %v3735_v59 }
 0x904   :  { %v3600_v4 = vrot.slane %v3599_v12, 4  ;;  %v3615_v18 = vpop.xlane.xlu0 %3614 }
 0x905   :  { %v3622_v8 = vadd.f32 %v3615_v18, %v3612_v41  ;;  %v3817_v18 = vmul.f32 %v7188_v25, %v3814_v9 }
 0x906   :  { %v3601_v39 = vadd.f32 %v3600_v4, %v3599_v12  ;;  %v3685_v43 = vpop.permute.xlu1 %3684  ;;  %v3737_v12 = vrot.slane %v3727_v19, 1  ;;  %v3816_v4 = vmul.f32 %v7202_v30, %v3814_v9  ;;  %v3905_v19 = vstv %s5479_s6  ;;  %s5481_s6 = sld [smem:[#allocation8 + $0x3]] }
 0x907   :  { %v3623_v32 = vadd.f32 %v3622_v8, %v3618_v51  ;;  %v3692_v51 = vadd.f32 %v3681_v52, %v3666_v3  ;;  %v3694_v8 = vadd.f32 %v3685_v43, %v3668_v46  ;;  %v3815_v52 = vmul.f32 %v7181_v13, %v3814_v9 }
 0x908   :  { %v3602_v29 = vrot.slane %v3601_v39, 2  ;;  %v3621_v16 = vpop.xlane.xlu0 %3620  ;;  %v3738_v30 = vsel %vm137_vm0, %v3735_v59, %v3737_v12  ;;  %v3824_v25 = vrot.slane %v3816_v4, 2  ;;  %v3826_v43 = vrot.slane %v3817_v18, 2 }
 0x909   :  { %v3624_v11 = vsel %vm333_vm4, %v3621_v16, 0.0  ;;  %v3734_v16 = vsel %vm137_vm0, %v3732_v23, %v3733_v6 }
 0x90a   :  { %v3603_v54 = vadd.f32 %v3602_v29, %v3601_v39  ;;  %v3625_v28 = vadd.f32 %v3624_v11, %v3623_v32  ;;  %v3687_v63 = vpop.permute.xlu1 %3686  ;;  %v3818_v11 = vmul.f32 %v7195_v58, %v3814_v9  ;;  %v3827_v58 = vsel %vm229_vm1, %v3824_v25, %v3826_v43 }
 0x90b   :  { %v3695_v39 = vadd.f32 %v3687_v63, %v3669_v42 }
 0x90c   :  { %v3626_v15 = vrot.slane %v3625_v28, 4  ;;  %v3683_v35 = vpop.permute.xlu0 %3682  ;;  %v3604_v0 = vrot.slane %v3603_v54, 1 }
 0x90d   :  { %v3693_v40 = vadd.f32 %v3683_v35, %v3667_v10  ;;  %v3650_v10 = vstv %s5465_s30  ;;  %s7573_s30 = sld [smem:[#allocation7 + $0x3]] }
 0x90e   :  { %v3627_v31 = vadd.f32 %v3626_v15, %v3625_v28  ;;  %v3709_v50 = vpop.permute.xlu1 %3708  ;;  %v3605_v24 = vadd.f32 %v3604_v0, %v3603_v54 }
 0x90f   :  { %v3719_v53 = vadd.f32 %v3709_v50, %v3693_v40  ;;  %v3823_v50 = vrot.slane %v3815_v52, 2 }
 0x910   :  { %v3628_v21 = vrot.slane %v3627_v31, 2  ;;  %v3707_v17 = vpop.permute.xlu0 %3706  ;;  %v7399_v5 = vmul.f32 0.00147929, %v3605_v24 }
 0x911   :  { %v3718_v32 = vadd.f32 %v3707_v17, %v3692_v51  ;;  %v3744_v28 = vadd.f32 %v3736_v2, %v3719_v53 }
 0x912   :  { %v3713_v14 = vpop.permute.xlu1 %3712  ;;  %v3629_v33 = vadd.f32 %v3628_v21, %v3627_v31  ;;  %v3634_v55 = vmul.f32 %v7399_v5, %v7399_v5  ;;  %v3828_v21 = vrot.slane %v3818_v11, 2  ;;  %v3639_v20 = vsub.f32 %v7293_v48, %v7399_v5 }
 0x913   :  { %v3721_v35 = vadd.f32 %v3713_v14, %v3695_v39  ;;  %v3743_v63 = vadd.f32 %v3734_v16, %v3718_v32  ;;  %v3825_v14 = vsel %vm229_vm1, %v3823_v50, %v3824_v25  ;;  %v3640_v3 = vsub.f32 %v7319_v49, %v7399_v5 }
 0x914   :  { %v3711_v44 = vpop.permute.xlu0 %3710  ;;  %v3630_v22 = vrot.slane %v3629_v33, 1  ;;  %v3641_v40 = vsub.f32 %v7326_v61, %v7399_v5 }
 0x915   :  { %v3720_v54 = vadd.f32 %v3711_v44, %v3694_v8  ;;  %v3643_v44 = vstv %s7414_s29  ;;  %s5492_s29 = sld [smem:[#allocation2 + $0x2a]] }
 0x916   :  { %v3767_v1 = vpop.permute.xlu1 %3766  ;;  %v3631_v38 = vadd.f32 %v3630_v22, %v3629_v33  ;;  %v3746_v22 = vadd.f32 %v3737_v12, %v3721_v35 }
 0x917   :  { %v3777_v0 = vadd.f32 %v3767_v1, %v3744_v28  ;;  %v3745_v24 = vadd.f32 %v3738_v30, %v3720_v54  ;;  %v3829_v1 = vsel %vm229_vm1, %v3826_v43, %v3828_v21 }
 0x918   :  { %v3765_v60 = vpop.permute.xlu0 %3764  ;;  %v3633_v45 = vmul.f32 0.00147929, %v3631_v38 }
 0x919   :  { %v3776_v17 = vadd.f32 %v3765_v60, %v3743_v63 }
 0x91a   :  { %v3771_v47 = vpop.permute.xlu1 %3770  ;;  %v3635_v57 = vsub.f32 %v3633_v45, %v3634_v55  ;;  %v3638_v45 = vsub.f32 %v7295_v34, %v7399_v5 }
 0x91b   :  { %v3779_v60 = vadd.f32 %v3771_v47, %v3746_v22 }
 0x91c   :  { %v3769_v56 = vpop.permute.xlu0 %3768  ;;  %v3636_v37 = vadd.f32 1e-05, %v3635_v57 }
 0x91d   :  { %v3778_v62 = vadd.f32 %v3769_v56, %v3745_v24 }
 0x91e   :  { %v3800_v41 = vpop.permute.xlu1 %3799  ;;  %5576 = vrsqrt.f32 %v3636_v37 }
 0x91f   :  { %v3810_v13 = vadd.f32 %v3800_v41, %v3777_v0 }
 0x920   :  { %v3798_v26 = vpop.permute.xlu0 %3797 }
 0x921   :  { %v3809_v27 = vadd.f32 %v3798_v26, %v3776_v17  ;;  %v3835_v7 = vadd.f32 %v3827_v58, %v3810_v13  ;;  %v3997_v58 = vstv %s5487_s13 }
 0x922   :  { %v3804_v29 = vpop.permute.xlu1 %3803 }
 0x923   :  { %v3812_v37 = vadd.f32 %v3804_v29, %v3779_v60  ;;  %v3834_v59 = vadd.f32 %v3825_v14, %v3809_v27  ;;  %v4023_v14 = vstv %s5488_s17  ;;  %s5506_s17 = sld [smem:[#allocation2 + $0x31]] }
 0x924   :  { %v3802_v15 = vpop.permute.xlu0 %3801 }
 0x925   :  { %v3811_v36 = vadd.f32 %v3802_v15, %v3778_v62  ;;  %v3837_v12 = vadd.f32 %v3828_v21, %v3812_v37  ;;  %v7486_v62 = vld [vmem:[%s8439_s0 + $0x30] sm:$0xff] }
 0x926   :  { %v3858_v31 = vpop.permute.xlu1 %3857  ;;  %v4000_v27 = vmul.f32 %v7486_v62, %v3997_v58 }
 0x927   :  { %v3868_v6 = vadd.f32 %v3858_v31, %v3835_v7  ;;  %v3836_v23 = vadd.f32 %v3829_v1, %v3811_v36  ;;  %v4074_v1 = vstv %s5490_s19  ;;  %s5505_s19 = sld [smem:[#allocation2 + $0x30]] }
 0x928   :  { %v3856_v33 = vpop.permute.xlu0 %3855  ;;  %v4077_v36 = vmul.f32 %v7486_v62, %v4074_v1 }
 0x929   :  { %v3867_v9 = vadd.f32 %v3856_v33, %v3834_v59 }
 0x92a   :  { %v3862_v38 = vpop.permute.xlu1 %3861 }
 0x92b   :  { %v5577_v55 = vpop.eup %5576  ;;  %v3870_v16 = vadd.f32 %v3862_v38, %v3837_v12  ;;  %v7493_v38 = vld [vmem:[%s8439_s0 + $0x38] sm:$0xf] }
 0x92c   :  { %v3860_v57 = vpop.permute.xlu0 %3859  ;;  %v3644_v56 = vmul.f32 %v5577_v55, %v3643_v44  ;;  %v7479_v44 = vld [vmem:[%s8439_s0 + $0x20] sm:$0xff]  ;;  %v7500_v55 = vld [vmem:[%s8439_s0 + $0x28] sm:$0xff] }
 0x92d   :  { %v3869_v61 = vadd.f32 %v3860_v57, %v3836_v23  ;;  %v3998_v22 = vmul.f32 %v7479_v44, %v3997_v58  ;;  %v4076_v60 = vmul.f32 %v7500_v55, %v4074_v1  ;;  %v3999_v7 = vmul.f32 %v7500_v55, %v3997_v58 }
 0x92e   :  { %v3891_v46 = vpop.permute.xlu1 %3890  ;;  %v3645_v34 = vmul.f32 %v3644_v56, %v3638_v45  ;;  %v3646_v47 = vmul.f32 %v3644_v56, %v3639_v20  ;;  %v3647_v42 = vmul.f32 %v3644_v56, %v3640_v3  ;;  %v3648_v41 = vmul.f32 %v3644_v56, %v3641_v40 }
 0x92f   :  { %v3901_v51 = vadd.f32 %v3891_v46, %v3868_v6  ;;  %v4025_v45 = vmul.f32 %v7500_v55, %v4023_v14  ;;  %v4027_v57 = vmul.f32 %v7493_v38, %v4023_v14  ;;  %v4084_v20 = vrot.slane %v4076_v60, 1 }
 0x930   :  { %v3889_v48 = vpop.permute.xlu0 %3888  ;;  %v3651_v53 = vadd.f32 %v3650_v10, %v3645_v34  ;;  %v3652_v26 = vadd.f32 %v3650_v10, %v3646_v47  ;;  %v3653_v49 = vadd.f32 %v3650_v10, %v3647_v42  ;;  %v3654_v2 = vadd.f32 %v3650_v10, %v3648_v41 }
 0x931   :  { %v7432_v5 = vadd.f32 %v3905_v19, %v3901_v51  ;;  %v3900_v4 = vadd.f32 %v3889_v48, %v3867_v9  ;;  %v4001_v10 = vmul.f32 %v7493_v38, %v3997_v58  ;;  %v4086_v3 = vrot.slane %v4077_v36, 1 }
 0x932   :  { %v3655_v18 = vmax.f32 %v3651_v53, 0.0  ;;  %v3656_v8 = vmax.f32 %v3652_v26, 0.0  ;;  %v3657_v39 = vmax.f32 %v3653_v49, 0.0  ;;  %v3658_v32 = vmax.f32 %v3654_v2, 0.0  ;;  %v3895_v29 = vpop.permute.xlu1 %3894 }
 0x933   :  { %v7434_v52 = vadd.f32 %v3905_v19, %v3900_v4  ;;  %v3913_v11 = vsel %vm317_vm2, %v7432_v5, 0.0  ;;  %v3903_v15 = vadd.f32 %v3895_v29, %v3870_v16  ;;  %v3933_v17 = vmul.f32 %v7432_v5, %v7432_v5 }
 0x934   :  { %v3893_v54 = vpop.permute.xlu0 %3892  ;;  %5466 = vst.msk [vmem:[%s8444_s5 + $0x140] sm:$0xff] %vm317_vm2, %v3655_v18  ;;  %5467 = vst.msk [vmem:[%s8444_s5 + $0x148] sm:$0xff] %vm317_vm2, %v3656_v8  ;;  %3914 = vadd.xlane.f32.xlu1 %v3913_v11  ;;  %v4107_v40 = vstv %s5491_s24  ;;  %v4024_v56 = vmul.f32 %v7479_v44, %v4023_v14  ;;  %v4075_v37 = vmul.f32 %v7479_v44, %v4074_v1  ;;  %v4165_v23 = vstv %s5493_s1  ;;  %s5519_s24 = sld [smem:[#allocation2 + $0x37]] }
 0x935   :  { %5468 = vst.msk [vmem:[%s8444_s5 + $0x150] sm:$0xff] %vm317_vm2, %v3657_v39  ;;  %v3902_v28 = vadd.f32 %v3893_v54, %v3869_v61  ;;  %v3910_v30 = vsel %vm317_vm2, %v7434_v52, 0.0  ;;  %v3932_v25 = vmul.f32 %v7434_v52, %v7434_v52  ;;  %v7465_v31 = vadd.f32 %v3905_v19, %v3903_v15  ;;  %s5536_s1 = sld [smem:[#allocation2 + $0x41]] }
 0x936   :  { %5469 = vst.msk [vmem:[%s8444_s5 + $0x158] sm:$0x3] %vm327_vm3, %v3658_v32  ;;  %3911 = vadd.xlane.f32.xlu0 %v3910_v30  ;;  %v3939_v24 = vsel %vm317_vm2, %v3933_v17, 0.0  ;;  %v4078_v6 = vmul.f32 %v7493_v38, %v4074_v1  ;;  %v4087_v59 = vsel %vm137_vm0, %v4084_v20, %v4086_v3  ;;  %v4110_v46 = vmul.f32 %v7486_v62, %v4107_v40 }
 0x937   :  { %v7458_v43 = vadd.f32 %v3905_v19, %v3902_v28  ;;  %v3936_v35 = vsel %vm317_vm2, %v3932_v25, 0.0  ;;  %v3919_v21 = vsel %vm327_vm3, %v7465_v31, 0.0  ;;  %v3935_v13 = vmul.f32 %v7465_v31, %v7465_v31 }
 0x938   :  { %3937 = vadd.xlane.f32.xlu1 %v3936_v35  ;;  %v4109_v19 = vmul.f32 %v7500_v55, %v4107_v40  ;;  %v4026_v34 = vmul.f32 %v7486_v62, %v4023_v14  ;;  %v4083_v47 = vrot.slane %v4075_v37, 1  ;;  %v4088_v42 = vrot.slane %v4078_v6, 1 }
 0x939   :  { %v3916_v0 = vsel %vm317_vm2, %v7458_v43, 0.0  ;;  %v3934_v63 = vmul.f32 %v7458_v43, %v7458_v43  ;;  %v3945_v33 = vsel %vm327_vm3, %v3935_v13, 0.0  ;;  %v4119_v9 = vrot.slane %v4110_v46, 1 }
 0x93a   :  { %3917 = vadd.xlane.f32.xlu0 %v3916_v0  ;;  %v4117_v41 = vrot.slane %v4109_v19, 1  ;;  %v4085_v51 = vsel %vm137_vm0, %v4083_v47, %v4084_v20  ;;  %v4108_v48 = vmul.f32 %v7479_v44, %v4107_v40  ;;  %v4111_v53 = vmul.f32 %v7493_v38, %v4107_v40 }
 0x93b   :  { %v3942_v50 = vsel %vm317_vm2, %v3934_v63, 0.0  ;;  %v4167_v49 = vmul.f32 %v7500_v55, %v4165_v23  ;;  %v4168_v2 = vmul.f32 %v7486_v62, %v4165_v23  ;;  %v4089_v12 = vsel %vm137_vm0, %v4086_v3, %v4088_v42 }
 0x93c   :  { %3943 = vadd.xlane.f32.xlu1 %v3942_v50  ;;  %v4120_v26 = vsel %vm137_vm0, %v4117_v41, %v4119_v9  ;;  %v4116_v61 = vrot.slane %v4108_v48, 1  ;;  %v4121_v4 = vrot.slane %v4111_v53, 1  ;;  %v4198_v39 = vstv %s5494_s2  ;;  %s5522_s2 = sld [smem:[#allocation2 + $0x3a]] }
 0x93d   :  { %v4175_v18 = vrot.slane %v4167_v49, 2  ;;  %v4177_v8 = vrot.slane %v4168_v2, 2  ;;  %v4166_v29 = vmul.f32 %v7479_v44, %v4165_v23  ;;  %v4169_v16 = vmul.f32 %v7493_v38, %v4165_v23 }
 0x93e   :  { %3920 = vadd.xlane.f32.xlu0 %v3919_v21  ;;  %v4118_v32 = vsel %vm137_vm0, %v4116_v61, %v4117_v41  ;;  %v4200_v54 = vmul.f32 %v7500_v55, %v4198_v39  ;;  %v4201_v28 = vmul.f32 %v7486_v62, %v4198_v39  ;;  %v4122_v15 = vsel %vm137_vm0, %v4119_v9, %v4121_v4 }
 0x93f   :  { %v4178_v11 = vsel %vm229_vm1, %v4175_v18, %v4177_v8  ;;  %v4174_v30 = vrot.slane %v4166_v29, 2  ;;  %v4179_v25 = vrot.slane %v4169_v16, 2  ;;  %v4199_v50 = vmul.f32 %v7479_v44, %v4198_v39 }
 0x940   :  { %v4208_v35 = vrot.slane %v4200_v54, 2  ;;  %v4210_v0 = vrot.slane %v4201_v28, 2  ;;  %v4202_v21 = vmul.f32 %v7493_v38, %v4198_v39  ;;  %v3991_v16 = vstv %s5486_s28  ;;  %s5523_s28 = sld [smem:[#allocation2 + $0x3b]] }
 0x941   :  { %v4176_v63 = vsel %vm229_vm1, %v4174_v30, %v4175_v18  ;;  %v4207_v13 = vrot.slane %v4199_v50, 2  ;;  %v3993_v54 = vmul.f32 %v7500_v55, %v3991_v16 }
 0x942   :  { %3940 = vadd.xlane.f32.xlu0 %v3939_v24  ;;  %v4211_v17 = vsel %vm229_vm1, %v4208_v35, %v4210_v0  ;;  %v4180_v24 = vsel %vm229_vm1, %v4177_v8, %v4179_v25 }
 0x943   :  { %v4209_v58 = vsel %vm229_vm1, %v4207_v13, %v4208_v35 }
 0x946   :  { %3946 = vadd.xlane.f32.xlu0 %v3945_v33  ;;  %v4212_v33 = vrot.slane %v4202_v21, 2  ;;  %v3992_v21 = vmul.f32 %v7479_v44, %v3991_v16 }
 0x94d   :  { %4006 = vrot.lane.b32.xlu1 %v3998_v22, %s5664_s16  ;;  %v4213_v22 = vsel %vm229_vm1, %v4210_v0, %v4212_v33 }
 0x951   :  { %4010 = vrot.lane.b32.xlu1 %v4000_v27, %s5664_s16 }
 0x955   :  { %4012 = vrot.lane.b32.xlu1 %v4001_v10, %s5664_s16 }
 0x959   :  { %4034 = vrot.lane.b32.xlu1 %v4025_v45, %s5665_s18 }
 0x95c   :  { %4008 = vrot.lane.b32.xlu0 %v3999_v7, %s5664_s16 }
 0x95d   :  { %4038 = vrot.lane.b32.xlu1 %v4027_v57, %s5665_s18 }
 0x960   :  { %4032 = vrot.lane.b32.xlu0 %v4024_v56, %s5665_s18 }
 0x961   :  { %4092 = vrot.lane.b32.xlu1 %v4087_v59, %s5664_s16 }
 0x964   :  { %4036 = vrot.lane.b32.xlu0 %v4026_v34, %s5665_s18 }
 0x965   :  { %4096 = vrot.lane.b32.xlu1 %v4088_v42, %s5664_s16 }
 0x968   :  { %4090 = vrot.lane.b32.xlu0 %v4085_v51, %s5664_s16 }
 0x969   :  { %4125 = vrot.lane.b32.xlu1 %v4120_v26, %s5665_s18 }
 0x96c   :  { %4094 = vrot.lane.b32.xlu0 %v4089_v12, %s5664_s16 }
 0x96d   :  { %4129 = vrot.lane.b32.xlu1 %v4121_v4, %s5665_s18 }
 0x970   :  { %4123 = vrot.lane.b32.xlu0 %v4118_v32, %s5665_s18  ;;  %v4049_v32 = vstv %s5489_s27  ;;  %s5538_s27 = sld [smem:[#allocation2 + $0x43]] }
 0x971   :  { %4183 = vrot.lane.b32.xlu1 %v4178_v11, %s5664_s16  ;;  %v4052_v35 = vmul.f32 %v7486_v62, %v4049_v32  ;;  %v4050_v50 = vmul.f32 %v7479_v44, %v4049_v32 }
 0x974   :  { %4127 = vrot.lane.b32.xlu0 %v4122_v15, %s5665_s18 }
 0x975   :  { %4187 = vrot.lane.b32.xlu1 %v4179_v25, %s5664_s16  ;;  %v4051_v25 = vmul.f32 %v7500_v55, %v4049_v32 }
 0x978   :  { %4181 = vrot.lane.b32.xlu0 %v4176_v63, %s5664_s16 }
 0x979   :  { %4216 = vrot.lane.b32.xlu1 %v4211_v17, %s5665_s18 }
 0x97c   :  { %4185 = vrot.lane.b32.xlu0 %v4180_v24, %s5664_s16 }
 0x97d   :  { %4220 = vrot.lane.b32.xlu1 %v4212_v33, %s5665_s18  ;;  %v4059_v33 = vrot.slane %v4051_v25, 1 }
 0x980   :  { %4214 = vrot.lane.b32.xlu0 %v4209_v58, %s5665_s18  ;;  %v4061_v58 = vrot.slane %v4052_v35, 1  ;;  %v3976_v35 = vstv %s5481_s6  ;;  %s5541_s6 = sld [smem:[#allocation2 + $0x46]] }
 0x984   :  { %4218 = vrot.lane.b32.xlu0 %v4213_v22, %s5665_s18  ;;  %v4053_v22 = vmul.f32 %v7493_v38, %v4049_v32 }
 0x9bd   :  { %v3915_v27 = vpop.xlane.xlu1 %3914 }
 0x9bf   :  { %v3912_v10 = vpop.xlane.xlu0 %3911 }
 0x9c0   :  { %v3922_v45 = vadd.f32 %v3915_v27, %v3912_v10  ;;  %v3994_v27 = vmul.f32 %v7486_v62, %v3991_v16  ;;  %v3995_v10 = vmul.f32 %v7493_v38, %v3991_v16 }
 0x9c1   :  { %v3938_v14 = vpop.xlane.xlu1 %3937 }
 0x9c3   :  { %v3918_v1 = vpop.xlane.xlu0 %3917 }
 0x9c4   :  { %v3923_v36 = vadd.f32 %v3922_v45, %v3918_v1  ;;  %v4140_v1 = vstv %s5492_s29  ;;  %v4058_v45 = vrot.slane %v4050_v50, 1  ;;  %s5539_s29 = sld [smem:[#allocation2 + $0x44]] }
 0x9c5   :  { %v3944_v60 = vpop.xlane.xlu1 %3943 }
 0x9c7   :  { %v3921_v7 = vpop.xlane.xlu0 %3920 }
 0x9c8   :  { %v3924_v57 = vsel %vm333_vm4, %v3921_v7, 0.0 }
 0x9c9   :  { %v3925_v20 = vadd.f32 %v3924_v57, %v3923_v36  ;;  %v4007_v3 = vpop.permute.xlu1 %4006  ;;  %v4062_v57 = vsel %vm137_vm0, %v4059_v33, %v4061_v58 }
 0x9cb   :  { %v3926_v40 = vrot.slane %v3925_v20, 4  ;;  %v3941_v56 = vpop.xlane.xlu0 %3940 }
 0x9cc   :  { %v3948_v37 = vadd.f32 %v3941_v56, %v3938_v14  ;;  %v4143_v56 = vmul.f32 %v7486_v62, %v4140_v1 }
 0x9cd   :  { %v3927_v6 = vadd.f32 %v3926_v40, %v3925_v20  ;;  %v4011_v59 = vpop.permute.xlu1 %4010  ;;  %v4063_v20 = vrot.slane %v4053_v22, 1  ;;  %v4142_v40 = vmul.f32 %v7500_v55, %v4140_v1 }
 0x9ce   :  { %v3949_v19 = vadd.f32 %v3948_v37, %v3944_v60  ;;  %v4018_v60 = vadd.f32 %v4007_v3, %v3992_v21  ;;  %v4020_v37 = vadd.f32 %v4011_v59, %v3994_v27  ;;  %v4141_v3 = vmul.f32 %v7479_v44, %v4140_v1 }
 0x9cf   :  { %v3928_v46 = vrot.slane %v3927_v6, 2  ;;  %v3947_v34 = vpop.xlane.xlu0 %3946  ;;  %v4152_v59 = vrot.slane %v4143_v56, 2 }
 0x9d0   :  { %v3950_v47 = vsel %vm333_vm4, %v3947_v34, 0.0  ;;  %v4060_v34 = vsel %vm137_vm0, %v4058_v45, %v4059_v33 }
 0x9d1   :  { %v3929_v42 = vadd.f32 %v3928_v46, %v3927_v6  ;;  %v3951_v41 = vadd.f32 %v3950_v47, %v3949_v19  ;;  %v4013_v9 = vpop.permute.xlu1 %4012  ;;  %v4144_v47 = vmul.f32 %v7493_v38, %v4140_v1  ;;  %v4231_v1 = vstv %s5495_s7  ;;  %s5502_s7 = sld [smem:[#allocation2 + $0x2d]] }
 0x9d2   :  { %v4021_v6 = vadd.f32 %v4013_v9, %v3995_v10 }
 0x9d3   :  { %v3952_v23 = vrot.slane %v3951_v41, 4  ;;  %v4009_v51 = vpop.permute.xlu0 %4008  ;;  %v3930_v48 = vrot.slane %v3929_v42, 1 }
 0x9d4   :  { %v4019_v17 = vadd.f32 %v4009_v51, %v3993_v54  ;;  %v4064_v51 = vsel %vm137_vm0, %v4061_v58, %v4063_v20 }
 0x9d5   :  { %v3953_v53 = vadd.f32 %v3952_v23, %v3951_v41  ;;  %v4035_v26 = vpop.permute.xlu1 %4034  ;;  %v3931_v12 = vadd.f32 %v3930_v48, %v3929_v42  ;;  %v4150_v48 = vrot.slane %v4142_v40, 2 }
 0x9d6   :  { %v4045_v36 = vadd.f32 %v4035_v26, %v4019_v17 }
 0x9d7   :  { %v3954_v49 = vrot.slane %v3953_v53, 2  ;;  %v4033_v2 = vpop.permute.xlu0 %4032  ;;  %v7558_v8 = vmul.f32 0.00147929, %v3931_v12  ;;  %v4154_v12 = vrot.slane %v4144_v47, 2 }
 0x9d8   :  { %v4044_v19 = vadd.f32 %v4033_v2, %v4018_v60  ;;  %v4070_v41 = vadd.f32 %v4062_v57, %v4045_v36  ;;  %v4149_v2 = vrot.slane %v4141_v3, 2 }
 0x9d9   :  { %v4039_v61 = vpop.permute.xlu1 %4038  ;;  %v3955_v4 = vadd.f32 %v3954_v49, %v3953_v53  ;;  %v3960_v15 = vmul.f32 %v7558_v8, %v7558_v8  ;;  %v3964_v50 = vsub.f32 %v7434_v52, %v7558_v8  ;;  %v3965_v33 = vsub.f32 %v7432_v5, %v7558_v8 }
 0x9da   :  { %v4047_v53 = vadd.f32 %v4039_v61, %v4021_v6  ;;  %v4069_v9 = vadd.f32 %v4060_v34, %v4044_v19  ;;  %v4151_v61 = vsel %vm229_vm1, %v4149_v2, %v4150_v48  ;;  %v3967_v58 = vsub.f32 %v7465_v31, %v7558_v8 }
 0x9db   :  { %v4037_v18 = vpop.permute.xlu0 %4036  ;;  %v3956_v39 = vrot.slane %v3955_v4, 1 }
 0x9dc   :  { %v4046_v42 = vadd.f32 %v4037_v18, %v4020_v37  ;;  %v4153_v18 = vsel %vm229_vm1, %v4150_v48, %v4152_v59  ;;  %v4072_v54 = vadd.f32 %v4063_v20, %v4047_v53 }
 0x9dd   :  { %v4093_v29 = vpop.permute.xlu1 %4092  ;;  %v3957_v11 = vadd.f32 %v3956_v39, %v3955_v4 }
 0x9de   :  { %v4103_v26 = vadd.f32 %v4093_v29, %v4070_v41  ;;  %v4071_v39 = vadd.f32 %v4064_v51, %v4046_v42  ;;  %v4155_v29 = vsel %vm229_vm1, %v4152_v59, %v4154_v12 }
 0x9df   :  { %v4091_v28 = vpop.permute.xlu0 %4090  ;;  %v3959_v30 = vmul.f32 0.00147929, %v3957_v11  ;;  %v3969_v11 = vstv %s7573_s30  ;;  %s5525_s30 = sld [smem:[#allocation2 + $0x3d]] }
 0x9e0   :  { %v4102_v4 = vadd.f32 %v4091_v28, %v4069_v9 }
 0x9e1   :  { %v4097_v0 = vpop.permute.xlu1 %4096  ;;  %v3961_v63 = vsub.f32 %v3959_v30, %v3960_v15 }
 0x9e2   :  { %v4105_v28 = vadd.f32 %v4097_v0, %v4072_v54 }
 0x9e3   :  { %v4095_v24 = vpop.permute.xlu0 %4094  ;;  %v3962_v13 = vadd.f32 1e-05, %v3961_v63 }
 0x9e4   :  { %v4104_v15 = vadd.f32 %v4095_v24, %v4071_v39  ;;  %v3966_v24 = vsub.f32 %v7458_v43, %v7558_v8 }
 0x9e5   :  { %v4126_v14 = vpop.permute.xlu1 %4125  ;;  %5578 = vrsqrt.f32 %v3962_v13 }
 0x9e6   :  { %v4136_v32 = vadd.f32 %v4126_v14, %v4103_v26 }
 0x9e7   :  { %v4124_v7 = vpop.permute.xlu0 %4123 }
 0x9e8   :  { %v4135_v30 = vadd.f32 %v4124_v7, %v4102_v4  ;;  %v4161_v17 = vadd.f32 %v4153_v18, %v4136_v32 }
 0x9e9   :  { %v4130_v46 = vpop.permute.xlu1 %4129 }
 0x9ea   :  { %v4138_v27 = vadd.f32 %v4130_v46, %v4105_v28  ;;  %v4160_v14 = vadd.f32 %v4151_v61, %v4135_v30  ;;  %v4323_v30 = vstv %s5503_s14  ;;  %v7642_v28 = vstv %s5505_s19  ;;  %s7944_s14 = sld [smem:[#allocation7 + $0x4]] }
 0x9eb   :  { %v4128_v23 = vpop.permute.xlu0 %4127  ;;  %v4327_v61 = vmul.f32 %v7493_v38, %v4323_v30 }
 0x9ec   :  { %v4137_v21 = vadd.f32 %v4128_v23, %v4104_v15  ;;  %v4163_v6 = vadd.f32 %v4154_v12, %v4138_v27  ;;  %v7655_v27 = vmul.f32 %v7493_v38, %v7642_v28 }
 0x9ed   :  { %v4184_v49 = vpop.permute.xlu1 %4183 }
 0x9ee   :  { %v4194_v10 = vadd.f32 %v4184_v49, %v4161_v17  ;;  %v4162_v57 = vadd.f32 %v4155_v29, %v4137_v21  ;;  %v4349_v29 = vstv %s5504_s15  ;;  %s5497_s15 = sld [smem:[#allocation8 + $0x4]] }
 0x9ef   :  { %v4182_v16 = vpop.permute.xlu0 %4181 }
 0x9f0   :  { %v4193_v7 = vadd.f32 %v4182_v16, %v4160_v14  ;;  %v4350_v14 = vmul.f32 %v7479_v44, %v4349_v29 }
 0x9f1   :  { %v4188_v25 = vpop.permute.xlu1 %4187 }
 0x9f2   :  { %v5579_v63 = vpop.eup %5578  ;;  %v4196_v41 = vadd.f32 %v4188_v25, %v4163_v6  ;;  %v4324_v25 = vmul.f32 %v7479_v44, %v4323_v30 }
 0x9f3   :  { %v4186_v13 = vpop.permute.xlu0 %4185  ;;  %v3970_v22 = vmul.f32 %v5579_v63, %v3969_v11  ;;  %v4400_v63 = vstv %s5506_s17  ;;  %s5511_s17 = sld [smem:[#allocation5 + $0x5]] }
 0x9f4   :  { %v4195_v31 = vadd.f32 %v4186_v13, %v4162_v57  ;;  %v4402_v21 = vmul.f32 %v7500_v55, %v4400_v63  ;;  %v4403_v17 = vmul.f32 %v7486_v62, %v4400_v63  ;;  %v4325_v13 = vmul.f32 %v7500_v55, %v4323_v30 }
 0x9f5   :  { %v4217_v45 = vpop.permute.xlu1 %4216  ;;  %v3971_v52 = vmul.f32 %v3970_v22, %v3964_v50  ;;  %v3972_v0 = vmul.f32 %v3970_v22, %v3965_v33  ;;  %v3973_v60 = vmul.f32 %v3970_v22, %v3966_v24  ;;  %v3974_v36 = vmul.f32 %v3970_v22, %v3967_v58 }
 0x9f6   :  { %v4227_v20 = vadd.f32 %v4217_v45, %v4194_v10  ;;  %v4351_v50 = vmul.f32 %v7500_v55, %v4349_v29  ;;  %v7649_v33 = vmul.f32 %v7486_v62, %v7642_v28  ;;  %v4353_v24 = vmul.f32 %v7493_v38, %v4349_v29 }
 0x9f7   :  { %v4215_v5 = vpop.permute.xlu0 %4214  ;;  %v3977_v40 = vadd.f32 %v3976_v35, %v3971_v52  ;;  %v3978_v56 = vadd.f32 %v3976_v35, %v3972_v0  ;;  %v3979_v43 = vadd.f32 %v3976_v35, %v3973_v60  ;;  %v3980_v37 = vadd.f32 %v3976_v35, %v3974_v36 }
 0x9f8   :  { %v7591_v8 = vadd.f32 %v4231_v1, %v4227_v20  ;;  %v4226_v19 = vadd.f32 %v4215_v5, %v4193_v7  ;;  %v4326_v35 = vmul.f32 %v7486_v62, %v4323_v30  ;;  %v4410_v58 = vrot.slane %v4402_v21, 1 }
 0x9f9   :  { %v3981_v46 = vmax.f32 %v3977_v40, 0.0  ;;  %v3982_v34 = vmax.f32 %v3978_v56, 0.0  ;;  %v3983_v3 = vmax.f32 %v3979_v43, 0.0  ;;  %v3984_v47 = vmax.f32 %v3980_v37, 0.0  ;;  %v4221_v42 = vpop.permute.xlu1 %4220 }
 0x9fa   :  { %v7593_v23 = vadd.f32 %v4231_v1, %v4226_v19  ;;  %v4239_v51 = vsel %vm317_vm2, %v7591_v8, 0.0  ;;  %v4229_v53 = vadd.f32 %v4221_v42, %v4196_v41  ;;  %v4259_v18 = vmul.f32 %v7591_v8, %v7591_v8 }
 0x9fb   :  { %v4219_v48 = vpop.permute.xlu0 %4218  ;;  %5482 = vst.msk [vmem:[%s8444_s5 + $0x160] sm:$0xff] %vm317_vm2, %v3981_v46  ;;  %5483 = vst.msk [vmem:[%s8444_s5 + $0x168] sm:$0xff] %vm317_vm2, %v3982_v34  ;;  %4240 = vadd.xlane.f32.xlu1 %v4239_v51  ;;  %v4412_v22 = vrot.slane %v4403_v17, 1  ;;  %v4433_v10 = vstv %s5507_s20  ;;  %v4389_v45 = vrot.slane %v7655_v27, 1  ;;  %v4404_v52 = vmul.f32 %v7493_v38, %v4400_v63  ;;  %v7901_v27 = vld [vmem:[%s8439_s0 + $0x20] sm:$0xff] }
 0x9fc   :  { %5484 = vst.msk [vmem:[%s8444_s5 + $0x170] sm:$0xff] %vm317_vm2, %v3983_v3  ;;  %v4228_v59 = vadd.f32 %v4219_v48, %v4195_v31  ;;  %v4236_v26 = vsel %vm317_vm2, %v7593_v23, 0.0  ;;  %v4258_v9 = vmul.f32 %v7593_v23, %v7593_v23  ;;  %v7624_v39 = vadd.f32 %v4231_v1, %v4229_v53 }
 0x9fd   :  { %5485 = vst.msk [vmem:[%s8444_s5 + $0x178] sm:$0x3] %vm327_vm3, %v3984_v47  ;;  %4237 = vadd.xlane.f32.xlu0 %v4236_v26  ;;  %v4265_v11 = vsel %vm317_vm2, %v4259_v18, 0.0  ;;  %v4401_v0 = vmul.f32 %v7479_v44, %v4400_v63  ;;  %v4413_v60 = vsel %vm137_vm0, %v4410_v58, %v4412_v22  ;;  %v4435_v36 = vmul.f32 %v7500_v55, %v4433_v10 }
 0x9fe   :  { %v7617_v49 = vadd.f32 %v4231_v1, %v4228_v59  ;;  %v4262_v2 = vsel %vm317_vm2, %v4258_v9, 0.0  ;;  %v4245_v16 = vsel %vm327_vm3, %v7624_v39, 0.0  ;;  %v4261_v54 = vmul.f32 %v7624_v39, %v7624_v39 }
 0x9ff   :  { %4263 = vadd.xlane.f32.xlu1 %v4262_v2  ;;  %v4387_v1 = vrot.slane %v7649_v33, 1  ;;  %v4436_v7 = vmul.f32 %v7486_v62, %v4433_v10  ;;  %v4352_v20 = vmul.f32 %v7486_v62, %v4349_v29  ;;  %v4414_v5 = vrot.slane %v4404_v52, 1 }
 0xa00   :  { %v4242_v12 = vsel %vm317_vm2, %v7617_v49, 0.0  ;;  %v4260_v4 = vmul.f32 %v7617_v49, %v7617_v49  ;;  %v4271_v15 = vsel %vm327_vm3, %v4261_v54, 0.0  ;;  %v4409_v40 = vrot.slane %v4401_v0, 1 }
 0xa01   :  { %4243 = vadd.xlane.f32.xlu0 %v4242_v12  ;;  %v7672_v57 = vsel %vm137_vm0, %v4387_v1, %v4389_v45  ;;  %v4443_v56 = vrot.slane %v4435_v36, 1  ;;  %v4445_v43 = vrot.slane %v4436_v7, 1  ;;  %v4491_v37 = vstv %s5509_s21 }
 0xa02   :  { %v4268_v32 = vsel %vm317_vm2, %v4260_v4, 0.0  ;;  %v4437_v6 = vmul.f32 %v7493_v38, %v4433_v10  ;;  %v4411_v31 = vsel %vm137_vm0, %v4409_v40, %v4410_v58  ;;  %v4434_v19 = vmul.f32 %v7479_v44, %v4433_v10 }
 0xa03   :  { %4269 = vadd.xlane.f32.xlu1 %v4268_v32  ;;  %v7682_v46 = vstv %s5508_s22  ;;  %v4446_v34 = vsel %vm137_vm0, %v4443_v56, %v4445_v43  ;;  %v4493_v3 = vmul.f32 %v7500_v55, %v4491_v37  ;;  %v4494_v47 = vmul.f32 %v7486_v62, %v4491_v37 }
 0xa04   :  { %v7690_v42 = vmul.f32 %v7486_v62, %v7682_v46  ;;  %v4447_v41 = vrot.slane %v4437_v6, 1  ;;  %v4415_v51 = vsel %vm137_vm0, %v4412_v22, %v4414_v5  ;;  %v4442_v48 = vrot.slane %v4434_v19, 1 }
 0xa05   :  { %4246 = vadd.xlane.f32.xlu0 %v4245_v16  ;;  %v4501_v59 = vrot.slane %v4493_v3, 2  ;;  %v4503_v53 = vrot.slane %v4494_v47, 2  ;;  %v7696_v26 = vmul.f32 %v7493_v38, %v7682_v46  ;;  %v4524_v9 = vstv %s5510_s23 }
 0xa06   :  { %v4478_v2 = vrot.slane %v7690_v42, 2  ;;  %v4495_v4 = vmul.f32 %v7493_v38, %v4491_v37  ;;  %v4444_v32 = vsel %vm137_vm0, %v4442_v48, %v4443_v56  ;;  %v4492_v16 = vmul.f32 %v7479_v44, %v4491_v37 }
 0xa07   :  { %v4480_v12 = vrot.slane %v7696_v26, 2  ;;  %v4504_v18 = vsel %vm229_vm1, %v4501_v59, %v4503_v53  ;;  %v4527_v54 = vmul.f32 %v7486_v62, %v4524_v9  ;;  %v4528_v63 = vmul.f32 %v7493_v38, %v4524_v9 }
 0xa08   :  { %v4505_v30 = vrot.slane %v4495_v4, 2  ;;  %v4525_v21 = vmul.f32 %v7479_v44, %v4524_v9  ;;  %v4649_v22 = vstv %s5519_s24  ;;  %v7748_v37 = vstv %s5536_s1  ;;  %s5518_s1 = sld [smem:[#allocation2 + $0x36]] }
 0xa09   :  { %4266 = vadd.xlane.f32.xlu0 %v4265_v11  ;;  %v4526_v11 = vmul.f32 %v7500_v55, %v4524_v9  ;;  %v4536_v29 = vrot.slane %v4527_v54, 2  ;;  %v4650_v10 = vmul.f32 %v7479_v44, %v4649_v22  ;;  %v4651_v52 = vmul.f32 %v7500_v55, %v4649_v22 }
 0xa0a   :  { %v4533_v58 = vrot.slane %v4525_v21, 2  ;;  %v5003_v6 = vmul.f32 %v7500_v55, %v7748_v37  ;;  %v4726_v3 = vstv %s5522_s2  ;;  %v5004_v47 = vmul.f32 %v7486_v62, %v7748_v37 }
 0xa0b   :  { %v7766_v48 = vstv %s5538_s27  ;;  %v7799_v21 = vstv %s5539_s29  ;;  %v5002_v42 = vmul.f32 %v7901_v27, %v7748_v37  ;;  %s5540_s29 = sld [smem:[#allocation2 + $0x45]] }
 0xa0c   :  { %v5053_v4 = vmul.f32 %v7479_v44, %v7766_v48 }
 0xa0d   :  { %4272 = vadd.xlane.f32.xlu0 %v4271_v15  ;;  %v7713_v15 = vsel %vm229_vm1, %v4478_v2, %v4480_v12 }
 0xa0e   :  { %v5061_v54 = vrot.slane %v5053_v4, 1 }
 0xa14   :  { %4332 = vrot.lane.b32.xlu1 %v4324_v25, %s5664_s16  ;;  %v4448_v25 = vsel %vm137_vm0, %v4445_v43, %v4447_v41 }
 0xa18   :  { %4336 = vrot.lane.b32.xlu1 %v4326_v35, %s5664_s16  ;;  %v4500_v35 = vrot.slane %v4492_v16, 2  ;;  %v7779_v16 = vmul.f32 %v7486_v62, %v4726_v3 }
 0xa1c   :  { %4338 = vrot.lane.b32.xlu1 %v4327_v61, %s5664_s16  ;;  %v4534_v61 = vrot.slane %v4526_v11, 2 }
 0xa1e   :  { %v4537_v17 = vsel %vm229_vm1, %v4534_v61, %v4536_v29 }
 0xa20   :  { %4360 = vrot.lane.b32.xlu1 %v4351_v50, %s5665_s18  ;;  %v4502_v50 = vsel %vm229_vm1, %v4500_v35, %v4501_v59  ;;  %v4738_v35 = vrot.slane %v7779_v16, 1 }
 0xa23   :  { %4334 = vrot.lane.b32.xlu0 %v4325_v13, %s5664_s16  ;;  %v4538_v13 = vrot.slane %v4528_v63, 2 }
 0xa24   :  { %4364 = vrot.lane.b32.xlu1 %v4353_v24, %s5665_s18  ;;  %v4506_v24 = vsel %vm229_vm1, %v4503_v53, %v4505_v30 }
 0xa25   :  { %v4539_v0 = vsel %vm229_vm1, %v4536_v29, %v4538_v13 }
 0xa27   :  { %4358 = vrot.lane.b32.xlu0 %v4350_v14, %s5665_s18  ;;  %v4535_v14 = vsel %vm229_vm1, %v4533_v58, %v4534_v61 }
 0xa28   :  { %4418 = vrot.lane.b32.xlu1 %v4413_v60, %s5664_s16  ;;  %v4975_v60 = vstv %s5535_s25 }
 0xa29   :  { %v4976_v36 = vmul.f32 %v7479_v44, %v4975_v60  ;;  %v4977_v7 = vmul.f32 %v7500_v55, %v4975_v60  ;;  %v4978_v43 = vmul.f32 %v7486_v62, %v4975_v60  ;;  %v4979_v19 = vmul.f32 %v7493_v38, %v4975_v60 }
 0xa2b   :  { %4362 = vrot.lane.b32.xlu0 %v4352_v20, %s5665_s18  ;;  %v4652_v20 = vmul.f32 %v7486_v62, %v4649_v22 }
 0xa2c   :  { %4422 = vrot.lane.b32.xlu1 %v4414_v5, %s5664_s16  ;;  %v4675_v5 = vstv %s5520_s26 }
 0xa2d   :  { %v4676_v40 = vmul.f32 %v7479_v44, %v4675_v5  ;;  %v4677_v56 = vmul.f32 %v7500_v55, %v4675_v5  ;;  %v4679_v59 = vmul.f32 %v7493_v38, %v4675_v5 }
 0xa2f   :  { %4416 = vrot.lane.b32.xlu0 %v4411_v31, %s5664_s16  ;;  %v4653_v31 = vmul.f32 %v7493_v38, %v4649_v22  ;;  %v5086_v22 = vmul.f32 %v7479_v44, %v7799_v21 }
 0xa30   :  { %4451 = vrot.lane.b32.xlu1 %v4446_v34, %s5665_s18  ;;  %v4678_v34 = vmul.f32 %v7486_v62, %v4675_v5 }
 0xa31   :  { %v5094_v60 = vrot.slane %v5086_v22, 1  ;;  %v7833_v22 = vstv %s5541_s6  ;;  %s5543_s6 = sld [smem:[#allocation5 + $0x7]] }
 0xa33   :  { %4420 = vrot.lane.b32.xlu0 %v4415_v51, %s5664_s16  ;;  %v7764_v51 = vmul.f32 %v7500_v55, %v4726_v3 }
 0xa34   :  { %4455 = vrot.lane.b32.xlu1 %v4447_v41, %s5665_s18  ;;  %v4727_v41 = vmul.f32 %v7479_v44, %v4726_v3 }
 0xa35   :  { %v8453_v9 = vrot.slane %v7764_v51, 1 }
 0xa36   :  { %v4735_v53 = vrot.slane %v4727_v41, 1 }
 0xa37   :  { %4449 = vrot.lane.b32.xlu0 %v4444_v32, %s5665_s18  ;;  %v7775_v32 = vmul.f32 %v7500_v55, %v7766_v48 }
 0xa38   :  { %4509 = vrot.lane.b32.xlu1 %v4504_v18, %s5664_s16  ;;  %v4730_v18 = vmul.f32 %v7493_v38, %v4726_v3  ;;  %v4737_v11 = vsel %vm137_vm0, %v4735_v53, %v8453_v9 }
 0xa3a   :  { %v4740_v61 = vrot.slane %v4730_v18, 1 }
 0xa3b   :  { %4453 = vrot.lane.b32.xlu0 %v4448_v25, %s5665_s18  ;;  %v7786_v25 = vstv %s5523_s28  ;;  %s5524_s28 = sld [smem:[#allocation2 + $0x3c]] }
 0xa3c   :  { %4513 = vrot.lane.b32.xlu1 %v4505_v30, %s5664_s16  ;;  %v8450_v30 = vrot.slane %v7775_v32, 1  ;;  %v7795_v63 = vmul.f32 %v7500_v55, %v7786_v25 }
 0xa3e   :  { %v5063_v29 = vsel %vm137_vm0, %v5061_v54, %v8450_v30  ;;  %v8456_v16 = vrot.slane %v7795_v63, 1 }
 0xa3f   :  { %4507 = vrot.lane.b32.xlu0 %v4502_v50, %s5664_s16  ;;  %v4762_v50 = vmul.f32 %v7486_v62, %v7786_v25 }
 0xa40   :  { %4542 = vrot.lane.b32.xlu1 %v4537_v17, %s5665_s18 }
 0xa41   :  { %v4771_v58 = vrot.slane %v4762_v50, 1 }
 0xa43   :  { %4511 = vrot.lane.b32.xlu0 %v4506_v24, %s5664_s16  ;;  %v8449_v24 = vrot.slane %v7795_v63, 1 }
 0xa44   :  { %4546 = vrot.lane.b32.xlu1 %v4538_v13, %s5665_s18  ;;  %v4741_v13 = vsel %vm137_vm0, %v4738_v35, %v4740_v61 }
 0xa47   :  { %4540 = vrot.lane.b32.xlu0 %v4535_v14, %s5665_s18 }
 0xa48   :  { %4658 = vrot.lane.b32.xlu1 %v4650_v10, %s5664_s16  ;;  %v7810_v10 = vmul.f32 %v7500_v55, %v7799_v21 }
 0xa4b   :  { %4544 = vrot.lane.b32.xlu0 %v4539_v0, %s5665_s18  ;;  %v4772_v0 = vsel %vm137_vm0, %v8449_v24, %v4771_v58 }
 0xa4c   :  { %4660 = vrot.lane.b32.xlu1 %v4651_v52, %s5664_s16 }
 0xa50   :  { %4984 = vrot.lane.b32.xlu1 %v4976_v36, %s5664_s16  ;;  %v8448_v36 = vrot.slane %v7810_v10, 1 }
 0xa54   :  { %4986 = vrot.lane.b32.xlu1 %v4977_v7, %s5664_s16 }
 0xa58   :  { %4662 = vrot.lane.b32.xlu1 %v4652_v20, %s5664_s16 }
 0xa5c   :  { %4684 = vrot.lane.b32.xlu1 %v4676_v40, %s5665_s18  ;;  %v5096_v40 = vsel %vm137_vm0, %v5094_v60, %v8448_v36  ;;  %v7923_v36 = vld [vmem:[%s8439_s0 + $0x28] sm:$0xff] }
 0xa60   :  { %4686 = vrot.lane.b32.xlu1 %v4677_v56, %s5665_s18  ;;  %v4763_v56 = vmul.f32 %v7493_v38, %v7786_v25 }
 0xa62   :  { %v4773_v3 = vrot.slane %v4763_v56, 1 }
 0xa64   :  { %4988 = vrot.lane.b32.xlu1 %v4978_v43, %s5664_s16  ;;  %v4774_v50 = vsel %vm137_vm0, %v4771_v58, %v4773_v3 }
 0xa68   :  { %5012 = vrot.lane.b32.xlu1 %v5003_v6, %s5665_s18 }
 0xa6c   :  { %4664 = vrot.lane.b32.xlu1 %v4653_v31, %s5664_s16 }
 0xa70   :  { %4990 = vrot.lane.b32.xlu1 %v4979_v19, %s5664_s16 }
 0xa74   :  { %4688 = vrot.lane.b32.xlu1 %v4678_v34, %s5665_s18 }
 0xa78   :  { %5014 = vrot.lane.b32.xlu1 %v5004_v47, %s5665_s18  ;;  %v4817_v47 = vstv %s5525_s30  ;;  %s5527_s30 = sld [smem:[#allocation5 + $0x6]] }
 0xa79   :  { %v7830_v54 = vmul.f32 %v7500_v55, %v4817_v47 }
 0xa7c   :  { %4690 = vrot.lane.b32.xlu1 %v4679_v59, %s5665_s18 }
 0xa80   :  { %4742 = vrot.lane.b32.xlu1 %v4737_v11, %s5664_s16  ;;  %v4818_v11 = vmul.f32 %v7479_v44, %v4817_v47 }
 0xa84   :  { %v4241_v17 = vpop.xlane.xlu1 %4240  ;;  %5068 = vrot.lane.b32.xlu1 %v5063_v29, %s5664_s16 }
 0xa86   :  { %v4238_v14 = vpop.xlane.xlu0 %4237 }
 0xa87   :  { %v4248_v20 = vadd.f32 %v4241_v17, %v4238_v14  ;;  %v7835_v14 = vstv %s5502_s7  ;;  %s5512_s7 = sld [smem:[#allocation7 + $0x5]] }
 0xa88   :  { %v4264_v52 = vpop.xlane.xlu1 %4263  ;;  %4746 = vrot.lane.b32.xlu1 %v4741_v13, %s5664_s16  ;;  %v4321_v58 = vmul.f32 %v7493_v38, %v7835_v14 }
 0xa8a   :  { %v4244_v7 = vpop.xlane.xlu0 %4243 }
 0xa8b   :  { %v4249_v43 = vadd.f32 %v4248_v20, %v4244_v7  ;;  %v4826_v7 = vrot.slane %v4818_v11, 2  ;;  %v8445_v20 = vrot.slane %v7830_v54, 2 }
 0xa8c   :  { %4777 = vrot.lane.b32.xlu1 %v4772_v0, %s5665_s18  ;;  %v4270_v5 = vpop.xlane.xlu1 %4269 }
 0xa8e   :  { %v4247_v6 = vpop.xlane.xlu0 %4246 }
 0xa8f   :  { %v4250_v31 = vsel %vm333_vm4, %v4247_v6, 0.0 }
 0xa90   :  { %v4251_v19 = vadd.f32 %v4250_v31, %v4249_v43  ;;  %5101 = vrot.lane.b32.xlu1 %v5096_v40, %s5665_s18  ;;  %v7825_v34 = vpop.permute.xlu1 %4332  ;;  %v7846_v40 = vmul.f32 %v7500_v55, %v7833_v22  ;;  %v4320_v31 = vmul.f32 %v7486_v62, %v7835_v14 }
 0xa92   :  { %v4252_v41 = vrot.slane %v4251_v19, 4  ;;  %v4267_v59 = vpop.xlane.xlu0 %4266 }
 0xa93   :  { %v4274_v53 = vadd.f32 %v4267_v59, %v4264_v52  ;;  %v7859_v59 = vmul.f32 %v7486_v62, %v4817_v47 }
 0xa94   :  { %v4253_v4 = vadd.f32 %v4252_v41, %v4251_v19  ;;  %4748 = vrot.lane.b32.xlu1 %v4740_v61, %s5664_s16  ;;  %v4337_v18 = vpop.permute.xlu1 %4336 }
 0xa95   :  { %v4275_v29 = vadd.f32 %v4274_v53, %v4270_v5  ;;  %v5144_v5 = vmul.f32 %v7479_v44, %v7833_v22  ;;  %v4828_v44 = vsel %vm229_vm1, %v4826_v7, %v8445_v20  ;;  %v7862_v53 = vmul.f32 %v7493_v38, %v4817_v47 }
 0xa96   :  { %v4254_v17 = vrot.slane %v4253_v4, 2  ;;  %v4273_v13 = vpop.xlane.xlu0 %4272  ;;  %v8447_v7 = vrot.slane %v7859_v59, 2 }
 0xa97   :  { %v4276_v52 = vsel %vm333_vm4, %v4273_v13, 0.0  ;;  %v5152_v11 = vrot.slane %v5144_v5, 2  ;;  %v7881_v5 = vstv %s5542_s9  ;;  %s8365_s9 = sld [smem:[#allocation7 + $0x7]] }
 0xa98   :  { %v4255_v0 = vadd.f32 %v4254_v17, %v4253_v4  ;;  %v4277_v61 = vadd.f32 %v4276_v52, %v4275_v29  ;;  %4779 = vrot.lane.b32.xlu1 %v4774_v50, %s5665_s18  ;;  %v4339_v60 = vpop.permute.xlu1 %4338  ;;  %v8446_v29 = vrot.slane %v7846_v40, 2  ;;  %v7865_v50 = vstv %s5526_s8  ;;  %s5513_s8 = sld [smem:[#allocation8 + $0x5]] }
 0xa99   :  { %v4347_v4 = vadd.f32 %v4339_v60, %v4321_v58  ;;  %v4346_v52 = vadd.f32 %v4337_v18, %v4320_v31  ;;  %v7872_v38 = vmul.f32 %v7500_v55, %v7865_v50  ;;  %v7876_v47 = vmul.f32 %v7486_v62, %v7865_v50 }
 0xa9a   :  { %v4278_v56 = vrot.slane %v4277_v61, 4  ;;  %v7848_v43 = vpop.permute.xlu0 %4334  ;;  %v4256_v6 = vrot.slane %v4255_v0, 1  ;;  %v5154_v18 = vsel %vm229_vm1, %v5152_v11, %v8446_v29 }
 0xa9b   :  { %v4862_v11 = vrot.slane %v7876_v47, 2 }
 0xa9c   :  { %v4279_v19 = vadd.f32 %v4278_v56, %v4277_v61  ;;  %4781 = vrot.lane.b32.xlu1 %v4773_v3, %s5665_s18  ;;  %v7853_v41 = vpop.permute.xlu1 %4360  ;;  %v4257_v13 = vadd.f32 %v4256_v6, %v4255_v0  ;;  %v4831_v56 = vrot.slane %v7862_v53, 2 }
 0xa9e   :  { %v4280_v17 = vrot.slane %v4279_v19, 2  ;;  %v4359_v3 = vpop.permute.xlu0 %4358  ;;  %v7883_v6 = vmul.f32 0.00147929, %v4257_v13 }
 0xaa0   :  { %4833 = vrot.lane.b32.xlu1 %v4828_v44, %s5664_s16  ;;  %v4365_v61 = vpop.permute.xlu1 %4364  ;;  %v4281_v60 = vadd.f32 %v4280_v17, %v4279_v19  ;;  %v4832_v19 = vsel %vm229_vm1, %v8447_v7, %v4831_v56 }
 0xaa1   :  { %v4373_v58 = vadd.f32 %v4365_v61, %v4347_v4  ;;  %v8452_v4 = vrot.slane %v7872_v38, 2 }
 0xaa2   :  { %v4363_v0 = vpop.permute.xlu0 %4362  ;;  %v4282_v31 = vrot.slane %v4281_v60, 1 }
 0xaa3   :  { %v4372_v44 = vadd.f32 %v4363_v0, %v4346_v52  ;;  %v4398_v20 = vadd.f32 %v4389_v45, %v4373_v58  ;;  %v5177_v45 = vmul.f32 %v7901_v27, %v7881_v5  ;;  %v7907_v52 = vmul.f32 %v7500_v55, %v7881_v5 }
 0xaa4   :  { %5159 = vrot.lane.b32.xlu1 %v5154_v18, %s5664_s16  ;;  %v7888_v62 = vpop.permute.xlu1 %4418  ;;  %v4283_v17 = vadd.f32 %v4282_v31, %v4281_v60  ;;  %v4286_v58 = vmul.f32 %v7883_v6, %v7883_v6  ;;  %v4376_v60 = vmul.f32 %v7901_v27, %v7642_v28  ;;  %v4863_v0 = vsel %vm229_vm1, %v8452_v4, %v4862_v11 }
 0xaa5   :  { %v4397_v13 = vadd.f32 %v7672_v57, %v4372_v44  ;;  %v4318_v57 = vmul.f32 %v7901_v27, %v7835_v14  ;;  %v5185_v44 = vrot.slane %v5177_v45, 2  ;;  %v8451_v29 = vrot.slane %v7907_v52, 2 }
 0xaa6   :  { %v4417_v61 = vpop.permute.xlu0 %4416  ;;  %v4285_v47 = vmul.f32 0.00147929, %v4283_v17  ;;  %v4384_v45 = vrot.slane %v4376_v60, 1 }
 0xaa7   :  { %v4344_v30 = vadd.f32 %v7825_v34, %v4318_v57 }
 0xaa8   :  { %4837 = vrot.lane.b32.xlu1 %v4832_v19, %s5664_s16  ;;  %v4423_v18 = vpop.permute.xlu1 %4422  ;;  %v4287_v55 = vsub.f32 %v4285_v47, %v4286_v58  ;;  %v7927_v19 = vmul.f32 %v7923_v36, %v7642_v28  ;;  %v5187_v58 = vsel %vm229_vm1, %v5185_v44, %v8451_v29  ;;  %v7939_v47 = vld [vmem:[%s8439_s0 + $0x38] sm:$0xf]  ;;  %v7954_v29 = vmul.f32 %v7923_v36, %v7682_v46 }
 0xaa9   :  { %v4431_v31 = vadd.f32 %v4423_v18, %v4398_v20  ;;  %v4854_v28 = vmul.f32 %v7939_v47, %v7865_v50 }
 0xaaa   :  { %v4421_v7 = vpop.permute.xlu0 %4420  ;;  %v4288_v17 = vadd.f32 1e-05, %v4287_v55  ;;  %v4385_v34 = vrot.slane %v7927_v19, 1 }
 0xaab   :  { %v4430_v24 = vadd.f32 %v4421_v7, %v4397_v13  ;;  %v4370_v13 = vadd.f32 %v4359_v3, %v4344_v30  ;;  %v4864_v55 = vrot.slane %v4854_v28, 2 }
 0xaac   :  { %4868 = vrot.lane.b32.xlu1 %v4863_v0, %s5665_s18  ;;  %v7931_v20 = vpop.permute.xlu1 %4451  ;;  %5580 = vrsqrt.f32 %v4288_v17  ;;  %v4386_v60 = vsel %vm137_vm0, %v4384_v45, %v4385_v34  ;;  %v4467_v0 = vmul.f32 %v7901_v27, %v7682_v46  ;;  %v4476_v46 = vrot.slane %v7954_v29, 2 }
 0xaad   :  { %v4395_v3 = vadd.f32 %v4386_v60, %v4370_v13  ;;  %v4290_v60 = vsub.f32 %v7593_v23, %v7883_v6  ;;  %v4292_v29 = vsub.f32 %v7617_v49, %v7883_v6 }
 0xaae   :  { %v4450_v7 = vpop.permute.xlu0 %4449  ;;  %v4475_v45 = vrot.slane %v4467_v0, 2  ;;  %v4302_v0 = vstv %s5497_s15 }
 0xaaf   :  { %v4428_v28 = vadd.f32 %v4417_v61, %v4395_v3  ;;  %v4293_v61 = vsub.f32 %v7624_v39, %v7883_v6 }
 0xab0   :  { %5192 = vrot.lane.b32.xlu1 %v5187_v58, %s5665_s18  ;;  %v4456_v57 = vpop.permute.xlu1 %4455  ;;  %v4865_v58 = vsel %vm229_vm1, %v4862_v11, %v4864_v55  ;;  %v4477_v53 = vsel %vm229_vm1, %v4475_v45, %v4476_v46 }
 0xab1   :  { %v4464_v18 = vadd.f32 %v4456_v57, %v4431_v31  ;;  %v4461_v26 = vadd.f32 %v4450_v7, %v4428_v28 }
 0xab2   :  { %v4454_v44 = vpop.permute.xlu0 %4453 }
 0xab3   :  { %v4463_v17 = vadd.f32 %v4454_v44, %v4430_v24  ;;  %v4489_v30 = vadd.f32 %v4480_v12, %v4464_v18  ;;  %v4295_v44 = vstv %s7944_s14 }
 0xab4   :  { %4839 = vrot.lane.b32.xlu1 %v4831_v56, %s5664_s16  ;;  %v7961_v31 = vpop.permute.xlu1 %4509 }
 0xab5   :  { %v4488_v24 = vadd.f32 %v7713_v15, %v4463_v17  ;;  %v4291_v15 = vsub.f32 %v7591_v8, %v7883_v6  ;;  %v4486_v17 = vadd.f32 %v4477_v53, %v4461_v26  ;;  %v4319_v8 = vmul.f32 %v7923_v36, %v7835_v14 }
 0xab6   :  { %v4508_v57 = vpop.permute.xlu0 %4507  ;;  %v4557_v6 = vstv %s5511_s17 }
 0xab7   :  { %v4519_v28 = vadd.f32 %v4508_v57, %v4486_v17 }
 0xab8   :  { %4870 = vrot.lane.b32.xlu1 %v4865_v58, %s5665_s18  ;;  %v4514_v12 = vpop.permute.xlu1 %4513 }
 0xab9   :  { %v4522_v56 = vadd.f32 %v4514_v12, %v4489_v30  ;;  %v5581_v13 = vpop.eup %5580 }
 0xaba   :  { %v4512_v11 = vpop.permute.xlu0 %4511  ;;  %v4296_v7 = vmul.f32 %v5581_v13, %v4295_v44 }
 0xabb   :  { %v4521_v18 = vadd.f32 %v4512_v11, %v4488_v24 }
 0xabc   :  { %4872 = vrot.lane.b32.xlu1 %v4864_v55, %s5665_s18  ;;  %v4543_v30 = vpop.permute.xlu1 %4542  ;;  %v4297_v3 = vmul.f32 %v4296_v7, %v4290_v60  ;;  %v4298_v45 = vmul.f32 %v4296_v7, %v4291_v15  ;;  %v4299_v23 = vmul.f32 %v4296_v7, %v4292_v29  ;;  %v4300_v58 = vmul.f32 %v4296_v7, %v4293_v61 }
 0xabd   :  { %v4388_v7 = vsel %vm137_vm0, %v4385_v34, %v4387_v1 }
 0xabe   :  { %v4541_v12 = vpop.permute.xlu0 %4540  ;;  %v4303_v49 = vadd.f32 %v4302_v0, %v4297_v3  ;;  %v4304_v4 = vadd.f32 %v4302_v0, %v4298_v45  ;;  %v4305_v9 = vadd.f32 %v4302_v0, %v4299_v23  ;;  %v4306_v39 = vadd.f32 %v4302_v0, %v4300_v58 }
 0xabf   :  { %v4552_v24 = vadd.f32 %v4541_v12, %v4519_v28  ;;  %v8014_v3 = vstv %s5518_s1  ;;  %v5005_v12 = vmul.f32 %v7939_v47, %v7748_v37  ;;  %v8454_v37 = vrot.slane %v7764_v51, 1 }
 0xac0   :  { %v4547_v44 = vpop.permute.xlu1 %4546  ;;  %v4307_v26 = vmax.f32 %v4303_v49, 0.0  ;;  %v4308_v53 = vmax.f32 %v4304_v4, 0.0  ;;  %v4309_v55 = vmax.f32 %v4305_v9, 0.0  ;;  %v4310_v13 = vmax.f32 %v4306_v39, 0.0  ;;  %v8041_v49 = vld [vmem:[%s8439_s0 + $0x30] sm:$0xff]  ;;  %s5534_s0 = sld [smem:[#allocation2 + $0x3f]] }
 0xac1   :  { %v7980_v60 = vadd.f32 %v4557_v6, %v4552_v24  ;;  %v4555_v11 = vadd.f32 %v4547_v44, %v4522_v56  ;;  %v4345_v9 = vadd.f32 %v7848_v43, %v4319_v8  ;;  %v4644_v33 = vmul.f32 %v7901_v27, %v8014_v3 }
 0xac2   :  { %v4545_v15 = vpop.permute.xlu0 %4544  ;;  %5498 = vst.msk [vmem:[%s8444_s5 + $0x180] sm:$0xff] %vm317_vm2, %v4307_v26  ;;  %5499 = vst.msk [vmem:[%s8444_s5 + $0x188] sm:$0xff] %vm317_vm2, %v4308_v53  ;;  %v4739_v24 = vsel %vm137_vm0, %v8454_v37, %v4738_v35  ;;  %v4760_v53 = vmul.f32 %v7901_v27, %v7786_v25  ;;  %v5056_v51 = vmul.f32 %v7939_v47, %v7766_v48 }
 0xac3   :  { %5500 = vst.msk [vmem:[%s8444_s5 + $0x190] sm:$0xff] %vm317_vm2, %v4309_v55  ;;  %v4554_v14 = vadd.f32 %v4545_v15, %v4521_v18  ;;  %v4562_v4 = vsel %vm317_vm2, %v7980_v60, 0.0  ;;  %v8001_v57 = vadd.f32 %v4557_v6, %v4555_v11  ;;  %v4371_v61 = vadd.f32 %v7853_v41, %v4345_v9 }
 0xac4   :  { %5501 = vst.msk [vmem:[%s8444_s5 + $0x198] sm:$0x3] %vm327_vm3, %v4310_v13  ;;  %v4659_v56 = vpop.permute.xlu1 %4658  ;;  %4563 = vadd.xlane.f32.xlu0 %v4562_v4  ;;  %v4479_v41 = vsel %vm229_vm1, %v4476_v46, %v4478_v2  ;;  %v8455_v55 = vrot.slane %v7775_v32, 1  ;;  %v4768_v11 = vrot.slane %v4760_v53, 1  ;;  %v5066_v25 = vrot.slane %v5056_v51, 1 }
 0xac5   :  { %v8003_v29 = vadd.f32 %v4557_v6, %v4554_v14  ;;  %v4396_v18 = vadd.f32 %v4388_v7, %v4371_v61  ;;  %v4670_v58 = vadd.f32 %v4659_v56, %v4644_v33  ;;  %v5088_v14 = vmul.f32 %v8041_v49, %v7799_v21 }
 0xac6   :  { %v4770_v35 = vsel %vm137_vm0, %v4768_v11, %v8456_v16  ;;  %v5089_v7 = vmul.f32 %v7939_v47, %v7799_v21  ;;  %v5146_v21 = vmul.f32 %v8041_v49, %v7833_v22  ;;  %v8140_v11 = vstv %s5534_s0 }
 0xac7   :  { %v4429_v17 = vadd.f32 %v7888_v62, %v4396_v18  ;;  %v4645_v62 = vmul.f32 %v7923_v36, %v8014_v3  ;;  %v5097_v56 = vrot.slane %v5088_v14, 1  ;;  %v4973_v51 = vmul.f32 %v7939_v47, %v8140_v11 }
 0xac8   :  { %v4661_v43 = vpop.permute.xlu1 %4660 }
 0xac9   :  { %v4462_v45 = vadd.f32 %v7931_v20, %v4429_v17  ;;  %v4671_v2 = vadd.f32 %v4661_v43, %v4645_v62  ;;  %v4647_v43 = vmul.f32 %v7939_v47, %v8014_v3  ;;  %v5099_v17 = vrot.slane %v5089_v7, 1 }
 0xaca   :  { %v5155_v62 = vrot.slane %v5146_v21, 2 }
 0xacb   :  { %v4487_v1 = vadd.f32 %v4479_v41, %v4462_v45 }
 0xacc   :  { %v8011_v0 = vpop.permute.xlu1 %4984 }
 0xacd   :  { %v4520_v34 = vadd.f32 %v7961_v31, %v4487_v1  ;;  %v8458_v1 = vrot.slane %v7859_v59, 2 }
 0xacf   :  { %v4553_v8 = vadd.f32 %v4543_v30, %v4520_v34  ;;  %v5055_v30 = vmul.f32 %v8041_v49, %v7766_v48  ;;  %v8457_v48 = vrot.slane %v7810_v10, 1  ;;  %v5100_v10 = vsel %vm137_vm0, %v5097_v56, %v5099_v17 }
 0xad0   :  { %v8020_v23 = vpop.permute.xlu1 %4986  ;;  %v8459_v34 = vrot.slane %v7830_v54, 2  ;;  %v8461_v54 = vrot.slane %v7872_v38, 2  ;;  %v5180_v38 = vmul.f32 %v7939_v47, %v7881_v5 }
 0xad1   :  { %v8033_v28 = vadd.f32 %v4557_v6, %v4553_v8  ;;  %v5064_v26 = vrot.slane %v5055_v30, 1  ;;  %v5098_v61 = vsel %vm137_vm0, %v8457_v48, %v5097_v56  ;;  %v4851_v8 = vmul.f32 %v7901_v27, %v7865_v50 }
 0xad2   :  { %v5179_v50 = vmul.f32 %v8041_v49, %v7881_v5  ;;  %v5190_v37 = vrot.slane %v5180_v38, 2 }
 0xad3   :  { %v4565_v6 = vsel %vm317_vm2, %v8033_v28, 0.0  ;;  %v5065_v13 = vsel %vm137_vm0, %v8455_v55, %v5064_v26  ;;  %v5067_v32 = vsel %vm137_vm0, %v5064_v26, %v5066_v25 }
 0xad4   :  { %v8024_v19 = vpop.permute.xlu1 %4662  ;;  %v5188_v30 = vrot.slane %v5179_v50, 2 }
 0xad8   :  { %v4685_v20 = vpop.permute.xlu1 %4684 }
 0xad9   :  { %v8031_v46 = vadd.f32 %v4685_v20, %v4670_v58  ;;  %v4830_v58 = vsel %vm229_vm1, %v8459_v34, %v8458_v1  ;;  %v4970_v34 = vmul.f32 %v7901_v27, %v8140_v11 }
 0xada   :  { %5010 = vrot.lane.b32.xlu0 %v5002_v42, %s5665_s18  ;;  %v8460_v42 = vrot.slane %v7846_v40, 2 }
 0xadc   :  { %v4687_v31 = vpop.permute.xlu1 %4686  ;;  %v5156_v20 = vsel %vm229_vm1, %v8460_v42, %v5155_v62 }
 0xadd   :  { %v8045_v39 = vadd.f32 %v4687_v31, %v4671_v2  ;;  %v4859_v2 = vrot.slane %v4851_v8, 2 }
 0xade   :  { %5016 = vrot.lane.b32.xlu0 %v5005_v12, %s5665_s18  ;;  %v5147_v12 = vmul.f32 %v7939_v47, %v7833_v22 }
 0xadf   :  { %v4861_v59 = vsel %vm229_vm1, %v4859_v2, %v8461_v54 }
 0xae0   :  { %4566 = vadd.xlane.f32.xlu1 %v4565_v6  ;;  %v8055_v44 = vpop.permute.xlu1 %4988  ;;  %v5157_v31 = vrot.slane %v5147_v12, 2  ;;  %v8462_v6 = vrot.slane %v7907_v52, 2  ;;  %v4996_v12 = vadd.f32 %v8011_v0, %v4970_v34  ;;  %v8184_v0 = vstv %s5540_s29 }
 0xae1   :  { %v5119_v34 = vmul.f32 %v7901_v27, %v8184_v0 }
 0xae2   :  { %4744 = vrot.lane.b32.xlu0 %v4739_v24, %s5664_s16  ;;  %v5158_v40 = vsel %vm229_vm1, %v5155_v62, %v5157_v31  ;;  %v5189_v22 = vsel %vm229_vm1, %v8462_v6, %v5188_v30  ;;  %v5191_v24 = vsel %vm229_vm1, %v5188_v30, %v5190_v37 }
 0xae4   :  { %v8063_v15 = vpop.permute.xlu1 %5012 }
 0xae6   :  { %5070 = vrot.lane.b32.xlu0 %v5065_v13, %s5664_s16 }
 0xae8   :  { %v4665_v9 = vpop.permute.xlu1 %4664 }
 0xae9   :  { %v4673_v45 = vadd.f32 %v4665_v9, %v4647_v43 }
 0xaea   :  { %4775 = vrot.lane.b32.xlu0 %v4770_v35, %s5665_s18 }
 0xaec   :  { %v4991_v4 = vpop.permute.xlu1 %4990 }
 0xaed   :  { %v4999_v35 = vadd.f32 %v4991_v4, %v4973_v51 }
 0xaee   :  { %5072 = vrot.lane.b32.xlu0 %v5067_v32, %s5664_s16 }
 0xaf0   :  { %v8079_v63 = vpop.permute.xlu1 %4688 }
 0xaf2   :  { %5103 = vrot.lane.b32.xlu0 %v5098_v61, %s5665_s18 }
 0xaf4   :  { %v8086_v18 = vpop.permute.xlu1 %5014 }
 0xaf6   :  { %5074 = vrot.lane.b32.xlu0 %v5066_v25, %s5664_s16 }
 0xaf8   :  { %v4691_v41 = vpop.permute.xlu1 %4690 }
 0xaf9   :  { %v8090_v33 = vadd.f32 %v4691_v41, %v4673_v45 }
 0xafa   :  { %5105 = vrot.lane.b32.xlu0 %v5100_v10, %s5665_s18 }
 0xafc   :  { %v8128_v26 = vpop.permute.xlu1 %4742 }
 0xafe   :  { %5107 = vrot.lane.b32.xlu0 %v5099_v17, %s5665_s18 }
 0xb00   :  { %v8130_v53 = vpop.permute.xlu1 %5068 }
 0xb02   :  { %4835 = vrot.lane.b32.xlu0 %v4830_v58, %s5664_s16 }
 0xb04   :  { %v8132_v52 = vpop.permute.xlu1 %4746 }
 0xb06   :  { %5161 = vrot.lane.b32.xlu0 %v5156_v20, %s5664_s16 }
 0xb08   :  { %v8134_v55 = vpop.permute.xlu1 %4777 }
 0xb0a   :  { %4866 = vrot.lane.b32.xlu0 %v4861_v59, %s5665_s18  ;;  %v4646_v59 = vmul.f32 %v8041_v49, %v8014_v3 }
 0xb0c   :  { %v8138_v13 = vpop.permute.xlu1 %5101  ;;  %v4672_v3 = vadd.f32 %v8024_v19, %v4646_v59 }
 0xb0e   :  { %5163 = vrot.lane.b32.xlu0 %v5158_v40, %s5664_s16 }
 0xb10   :  { %v8144_v9 = vpop.permute.xlu1 %4748 }
 0xb12   :  { %5194 = vrot.lane.b32.xlu0 %v5189_v22, %s5665_s18 }
 0xb14   :  { %v8148_v56 = vpop.permute.xlu1 %4779 }
 0xb16   :  { %5165 = vrot.lane.b32.xlu0 %v5157_v31, %s5664_s16  ;;  %s5521_s16 = sld [smem:[#allocation2 + $0x39]] }
 0xb18   :  { %v8152_v61 = vpop.permute.xlu1 %4781 }
 0xb1a   :  { %5196 = vrot.lane.b32.xlu0 %v5191_v24, %s5665_s18  ;;  %v4971_v24 = vmul.f32 %v7923_v36, %v8140_v11 }
 0xb1c   :  { %v4701_v43 = vstv %s5521_s16  ;;  %v8156_v45 = vpop.permute.xlu1 %4833 }
 0xb1d   :  { %v4702_v10 = vmul.f32 %v7901_v27, %v4701_v43  ;;  %v4703_v41 = vmul.f32 %v7923_v36, %v4701_v43  ;;  %v4704_v21 = vmul.f32 %v8041_v49, %v4701_v43  ;;  %v8179_v40 = vmul.f32 %v7939_v47, %v4701_v43 }
 0xb1e   :  { %5198 = vrot.lane.b32.xlu0 %v5190_v37, %s5665_s18  ;;  %s5537_s18 = sld [smem:[#allocation2 + $0x42]]  ;;  %v4792_v37 = vstv %s5524_s28 }
 0xb1f   :  { %v4710_v8 = vrot.slane %v4702_v10, 1  ;;  %v4711_v42 = vrot.slane %v4703_v41, 1  ;;  %v4713_v20 = vrot.slane %v4704_v21, 1  ;;  %v4793_v51 = vmul.f32 %v7901_v27, %v4792_v37 }
 0xb20   :  { %v8172_v54 = vpop.permute.xlu1 %5159  ;;  %v4715_v43 = vrot.slane %v8179_v40, 1 }
 0xb21   :  { %v4712_v6 = vsel %vm137_vm0, %v4710_v8, %v4711_v42  ;;  %v4714_v38 = vsel %vm137_vm0, %v4711_v42, %v4713_v20  ;;  %v4698_v8 = vadd.f32 %v8079_v63, %v4672_v3  ;;  %v4801_v42 = vrot.slane %v4793_v51, 2 }
 0xb22   :  { %v4722_v21 = vadd.f32 %v4714_v38, %v8045_v39  ;;  %v4997_v39 = vadd.f32 %v8020_v23, %v4971_v24  ;;  %v8219_v23 = vmul.f32 %v7939_v47, %v4792_v37 }
 0xb24   :  { %v8158_v4 = vstv %s5537_s18  ;;  %v8195_v10 = vpop.permute.xlu1 %4837 }
 0xb25   :  { %v5028_v1 = vmul.f32 %v7901_v27, %v8158_v4  ;;  %v5029_v58 = vmul.f32 %v7923_v36, %v8158_v4  ;;  %v8201_v19 = vmul.f32 %v8041_v49, %v8158_v4 }
 0xb27   :  { %v5036_v2 = vrot.slane %v5028_v1, 1  ;;  %v5037_v31 = vrot.slane %v5029_v58, 1  ;;  %v4795_v1 = vmul.f32 %v8041_v49, %v4792_v37  ;;  %v5120_v58 = vmul.f32 %v7923_v36, %v8184_v0 }
 0xb28   :  { %v4869_v63 = vpop.permute.xlu1 %4868 }
 0xb29   :  { %v5038_v22 = vsel %vm137_vm0, %v5036_v2, %v5037_v31 }
 0xb4d   :  { %v8136_v5 = vpop.xlane.xlu0 %4563 }
 0xb51   :  { %v5011_v16 = vpop.permute.xlu0 %5010 }
 0xb52   :  { %v5022_v30 = vadd.f32 %v5011_v16, %v4996_v12  ;;  %v4721_v16 = vadd.f32 %v4712_v6, %v8031_v46  ;;  %v4804_v6 = vrot.slane %v4795_v1, 2 }
 0xb54   :  { %v5047_v41 = vadd.f32 %v5038_v22, %v5022_v30  ;;  %v4754_v59 = vadd.f32 %v8128_v26, %v4721_v16  ;;  %v4716_v30 = vsel %vm137_vm0, %v4713_v20, %v4715_v43  ;;  %v5128_v22 = vrot.slane %v5120_v58, 2 }
 0xb55   :  { %v5017_v25 = vpop.permute.xlu0 %5016  ;;  %v4723_v51 = vadd.f32 %v4716_v30, %v4698_v8 }
 0xb56   :  { %v8146_v14 = vadd.f32 %v5017_v25, %v4999_v35  ;;  %v4794_v35 = vmul.f32 %v7923_v36, %v4792_v37  ;;  %v5080_v27 = vadd.f32 %v8130_v53, %v5047_v41  ;;  %v5039_v36 = vrot.slane %v8201_v19, 1 }
 0xb57   :  { %v5023_v53 = vadd.f32 %v8063_v15, %v4997_v39  ;;  %v4756_v1 = vadd.f32 %v8132_v52, %v4723_v51  ;;  %v4806_v15 = vrot.slane %v8219_v23, 2 }
 0xb58   :  { %v4802_v2 = vrot.slane %v4794_v35, 2  ;;  %v5113_v35 = vadd.f32 %v8138_v13, %v5080_v27  ;;  %v5040_v16 = vsel %vm137_vm0, %v5037_v31, %v5039_v36  ;;  %v5193_v13 = vpop.permute.xlu1 %5192 }
 0xb59   :  { %v4745_v32 = vpop.permute.xlu0 %4744  ;;  %v4789_v52 = vadd.f32 %v8148_v56, %v4756_v1 }
 0xb5a   :  { %v4755_v46 = vadd.f32 %v4745_v32, %v4722_v21  ;;  %v5127_v32 = vrot.slane %v5119_v34, 2  ;;  %v4803_v26 = vsel %vm229_vm1, %v4801_v42, %v4802_v2  ;;  %v4805_v24 = vsel %vm229_vm1, %v4802_v2, %v4804_v6 }
 0xb5b   :  { %v4972_v21 = vmul.f32 %v8041_v49, %v8140_v11  ;;  %v5048_v34 = vadd.f32 %v5040_v16, %v5023_v53  ;;  %v4807_v11 = vsel %vm229_vm1, %v4804_v6, %v4806_v15 }
 0xb5c   :  { %v4788_v38 = vadd.f32 %v8134_v55, %v4755_v46  ;;  %v8228_v55 = vmul.f32 %v8041_v49, %v8184_v0  ;;  %v5031_v46 = vmul.f32 %v7939_v47, %v8158_v4 }
 0xb5d   :  { %v8150_v48 = vpop.permute.xlu0 %5070  ;;  %v4998_v49 = vadd.f32 %v8055_v44, %v4972_v21 }
 0xb5e   :  { %v4813_v41 = vadd.f32 %v4805_v24, %v4788_v38  ;;  %v5130_v8 = vrot.slane %v8228_v55, 2  ;;  %v5081_v42 = vadd.f32 %v8150_v48, %v5048_v34  ;;  %v5041_v48 = vrot.slane %v5031_v46, 1  ;;  %v4840_v38 = vpop.permute.xlu1 %4839 }
 0xb5f   :  { %v5024_v56 = vadd.f32 %v8086_v18, %v4998_v49  ;;  %v8262_v24 = vstv %s5543_s6  ;;  %v4724_v18 = vadd.f32 %v4715_v43, %v8090_v33 }
 0xb60   :  { %v5050_v34 = vadd.f32 %v5041_v48, %v8146_v14 }
 0xb61   :  { %v4776_v7 = vpop.permute.xlu0 %4775  ;;  %v4757_v33 = vadd.f32 %v8144_v9, %v4724_v18 }
 0xb62   :  { %v4787_v3 = vadd.f32 %v4776_v7, %v4754_v59  ;;  %v5129_v7 = vsel %vm229_vm1, %v5127_v32, %v5128_v22  ;;  %v8247_v32 = vstv %s5527_s30  ;;  %v4871_v16 = vpop.permute.xlu1 %4870 }
 0xb63   :  { %v5138_v31 = vadd.f32 %v5129_v7, %v5113_v35 }
 0xb64   :  { %v4812_v37 = vadd.f32 %v4803_v26, %v4787_v3  ;;  %v4814_v3 = vadd.f32 %v4807_v11, %v4789_v52  ;;  %v5042_v26 = vsel %vm137_vm0, %v5039_v36, %v5041_v48 }
 0xb65   :  { %v8154_v17 = vpop.permute.xlu0 %5072  ;;  %v5171_v27 = vadd.f32 %v8172_v54, %v5138_v31  ;;  %v5049_v55 = vadd.f32 %v5042_v26, %v5024_v56  ;;  %v4568_v31 = vsel %vm317_vm2, %v8003_v29, 0.0  ;;  %v4571_v26 = vsel %vm327_vm3, %v8001_v57, 0.0 }
 0xb66   :  { %v4845_v2 = vadd.f32 %v8156_v45, %v4812_v37  ;;  %v5131_v45 = vsel %vm229_vm1, %v5128_v22, %v5130_v8  ;;  %v5122_v22 = vmul.f32 %v7939_v47, %v8184_v0  ;;  %v4847_v53 = vadd.f32 %v8195_v10, %v4814_v3 }
 0xb67   :  { %v5082_v0 = vadd.f32 %v8154_v17, %v5049_v55  ;;  %v4587_v55 = vmul.f32 %v8001_v57, %v8001_v57 }
 0xb68   :  { %v5132_v47 = vrot.slane %v5122_v22, 2  ;;  %v4880_v40 = vadd.f32 %v4871_v16, %v4847_v53 }
 0xb69   :  { %v8169_v62 = vpop.permute.xlu0 %5103 }
 0xb6a   :  { %v5114_v59 = vadd.f32 %v8169_v62, %v5081_v42  ;;  %v5133_v17 = vsel %vm229_vm1, %v5130_v8, %v5132_v47  ;;  %v8288_v9 = vadd.f32 %v8247_v32, %v4880_v40 }
 0xb6c   :  { %v5139_v62 = vadd.f32 %v5131_v45, %v5114_v59  ;;  %v4894_v14 = vsel %vm317_vm2, %v8288_v9, 0.0 }
 0xb6d   :  { %v8176_v50 = vpop.permute.xlu0 %5074 }
 0xb6e   :  { %v5083_v8 = vadd.f32 %v8176_v50, %v5050_v34 }
 0xb71   :  { %v8191_v25 = vpop.permute.xlu0 %5105 }
 0xb72   :  { %v5115_v10 = vadd.f32 %v8191_v25, %v5082_v0  ;;  %v4585_v25 = vmul.f32 %v8033_v28, %v8033_v28 }
 0xb74   :  { %v4591_v49 = vsel %vm317_vm2, %v4585_v25, 0.0 }
 0xb75   :  { %v8208_v12 = vpop.permute.xlu0 %5107 }
 0xb76   :  { %v5116_v52 = vadd.f32 %v8208_v12, %v5083_v8 }
 0xb79   :  { %v4836_v20 = vpop.permute.xlu0 %4835 }
 0xb7a   :  { %v4846_v58 = vadd.f32 %v4836_v20, %v4813_v41 }
 0xb7c   :  { %v4879_v30 = vadd.f32 %v4869_v63, %v4846_v58  ;;  %v5204_v63 = vadd.f32 %v5193_v13, %v5171_v27  ;;  %v4790_v13 = vadd.f32 %v8152_v61, %v4757_v33  ;;  %v5140_v58 = vadd.f32 %v5133_v17, %v5115_v10 }
 0xb7d   :  { %v5162_v19 = vpop.permute.xlu0 %5161 }
 0xb7e   :  { %v8255_v51 = vadd.f32 %v8247_v32, %v4879_v30  ;;  %v5172_v20 = vadd.f32 %v5162_v19, %v5139_v62  ;;  %v8271_v37 = vadd.f32 %v8262_v24, %v5204_v63  ;;  %v4584_v19 = vmul.f32 %v7980_v60, %v7980_v60 }
 0xb7f   :  { %v5141_v30 = vadd.f32 %v5132_v47, %v5116_v52 }
 0xb80   :  { %v4891_v36 = vsel %vm317_vm2, %v8255_v51, 0.0  ;;  %v5214_v21 = vsel %vm317_vm2, %v8271_v37, 0.0  ;;  %v4588_v46 = vsel %vm317_vm2, %v4584_v19, 0.0  ;;  %v4911_v59 = vmul.f32 %v8255_v51, %v8255_v51 }
 0xb81   :  { %v4867_v39 = vpop.permute.xlu0 %4866  ;;  %v5236_v23 = vmul.f32 %v8271_v37, %v8271_v37 }
 0xb82   :  { %v4878_v4 = vadd.f32 %v4867_v39, %v4845_v2  ;;  %v4815_v2 = vadd.f32 %v4806_v15, %v4790_v13  ;;  %v4873_v15 = vpop.permute.xlu1 %4872  ;;  %v4917_v27 = vsel %vm317_vm2, %v4911_v59, 0.0 }
 0xb84   :  { %v8251_v44 = vadd.f32 %v8247_v32, %v4878_v4  ;;  %v4848_v50 = vadd.f32 %v4840_v38, %v4815_v2  ;;  %v5240_v38 = vsel %vm317_vm2, %v5236_v23, 0.0 }
 0xb85   :  { %v5164_v6 = vpop.permute.xlu0 %5163 }
 0xb86   :  { %v4888_v54 = vsel %vm317_vm2, %v8251_v44, 0.0  ;;  %v5173_v61 = vadd.f32 %v5164_v6, %v5140_v58  ;;  %v4910_v39 = vmul.f32 %v8251_v44, %v8251_v44  ;;  %v4881_v56 = vadd.f32 %v4873_v15, %v4848_v50  ;;  %v4567_v10 = vpop.xlane.xlu1 %4566 }
 0xb87   :  { %4889 = vadd.xlane.f32.xlu0 %v4888_v54  ;;  %v4574_v8 = vadd.f32 %v4567_v10, %v8136_v5 }
 0xb88   :  { %v4914_v12 = vsel %vm317_vm2, %v4910_v39, 0.0  ;;  %v8320_v54 = vadd.f32 %v8247_v32, %v4881_v56  ;;  %v4586_v32 = vmul.f32 %v8003_v29, %v8003_v29 }
 0xb89   :  { %v5195_v35 = vpop.permute.xlu0 %5194 }
 0xb8a   :  { %v5205_v7 = vadd.f32 %v5195_v35, %v5172_v20  ;;  %v4897_v20 = vsel %vm327_vm3, %v8320_v54, 0.0  ;;  %v4594_v53 = vsel %vm317_vm2, %v4586_v32, 0.0  ;;  %v4913_v47 = vmul.f32 %v8320_v54, %v8320_v54 }
 0xb8b   :  { %4892 = vadd.xlane.f32.xlu0 %v4891_v36  ;;  %v4597_v36 = vsel %vm327_vm3, %v4587_v55, 0.0 }
 0xb8c   :  { %v8275_v41 = vadd.f32 %v8262_v24, %v5205_v7  ;;  %v4923_v33 = vsel %vm327_vm3, %v4913_v47, 0.0 }
 0xb8d   :  { %v5166_v43 = vpop.permute.xlu0 %5165 }
 0xb8e   :  { %v5217_v1 = vsel %vm317_vm2, %v8275_v41, 0.0  ;;  %v5174_v45 = vadd.f32 %v5166_v43, %v5141_v30  ;;  %v5237_v62 = vmul.f32 %v8275_v41, %v8275_v41 }
 0xb8f   :  { %5215 = vadd.xlane.f32.xlu0 %v5214_v21  ;;  %5218 = vadd.xlane.f32.xlu1 %v5217_v1 }
 0xb90   :  { %v5243_v22 = vsel %vm317_vm2, %v5237_v62, 0.0 }
 0xb91   :  { %v5197_v42 = vpop.permute.xlu0 %5196 }
 0xb92   :  { %v5206_v11 = vadd.f32 %v5197_v42, %v5173_v61 }
 0xb93   :  { %4569 = vadd.xlane.f32.xlu0 %v4568_v31  ;;  %4589 = vadd.xlane.f32.xlu1 %v4588_v46 }
 0xb94   :  { %v8310_v4 = vadd.f32 %v8262_v24, %v5206_v11 }
 0xb95   :  { %v5199_v48 = vpop.permute.xlu0 %5198 }
 0xb96   :  { %v5207_v3 = vadd.f32 %v5199_v48, %v5174_v45  ;;  %v5220_v6 = vsel %vm317_vm2, %v8310_v4, 0.0  ;;  %v5238_v16 = vmul.f32 %v8310_v4, %v8310_v4 }
 0xb97   :  { %4592 = vadd.xlane.f32.xlu0 %v4591_v49  ;;  %4895 = vadd.xlane.f32.xlu1 %v4894_v14 }
 0xb98   :  { %v8323_v63 = vadd.f32 %v8262_v24, %v5207_v3  ;;  %v4912_v24 = vmul.f32 %v8288_v9, %v8288_v9  ;;  %v5246_v7 = vsel %vm317_vm2, %v5238_v16, 0.0 }
 0xb9a   :  { %v5223_v18 = vsel %vm327_vm3, %v8323_v63, 0.0  ;;  %v4920_v35 = vsel %vm317_vm2, %v4912_v24, 0.0  ;;  %v5239_v0 = vmul.f32 %v8323_v63, %v8323_v63 }
 0xb9b   :  { %4915 = vadd.xlane.f32.xlu0 %v4914_v12  ;;  %4918 = vadd.xlane.f32.xlu1 %v4917_v27 }
 0xb9c   :  { %v5249_v40 = vsel %vm327_vm3, %v5239_v0, 0.0 }
 0xb9f   :  { %5241 = vadd.xlane.f32.xlu1 %v5240_v38  ;;  %5221 = vadd.xlane.f32.xlu0 %v5220_v6 }
 0xba3   :  { %4572 = vadd.xlane.f32.xlu1 %v4571_v26  ;;  %5244 = vadd.xlane.f32.xlu0 %v5243_v22 }
 0xba7   :  { %4898 = vadd.xlane.f32.xlu0 %v4897_v20  ;;  %5224 = vadd.xlane.f32.xlu1 %v5223_v18 }
 0xbab   :  { %4595 = vadd.xlane.f32.xlu0 %v4594_v53  ;;  %4921 = vadd.xlane.f32.xlu1 %v4920_v35 }
 0xbaf   :  { %5247 = vadd.xlane.f32.xlu0 %v5246_v7  ;;  %4598 = vadd.xlane.f32.xlu1 %v4597_v36 }
 0xbb3   :  { %4924 = vadd.xlane.f32.xlu0 %v4923_v33  ;;  %5250 = vadd.xlane.f32.xlu1 %v5249_v40 }
 0xc10   :  { %v4890_v43 = vpop.xlane.xlu0 %4889 }
 0xc14   :  { %v4893_v21 = vpop.xlane.xlu0 %4892 }
 0xc15   :  { %v4900_v52 = vadd.f32 %v4893_v21, %v4890_v43 }
 0xc18   :  { %v5219_v1 = vpop.xlane.xlu1 %5218  ;;  %v5216_v19 = vpop.xlane.xlu0 %5215 }
 0xc19   :  { %v5226_v11 = vadd.f32 %v5219_v1, %v5216_v19 }
 0xc1c   :  { %v4590_v17 = vpop.xlane.xlu1 %4589  ;;  %v4570_v13 = vpop.xlane.xlu0 %4569 }
 0xc1d   :  { %v4575_v61 = vadd.f32 %v4574_v8, %v4570_v13 }
 0xc20   :  { %v4896_v25 = vpop.xlane.xlu1 %4895  ;;  %v4593_v34 = vpop.xlane.xlu0 %4592 }
 0xc21   :  { %v4901_v59 = vadd.f32 %v4900_v52, %v4896_v25  ;;  %v4600_v62 = vadd.f32 %v4593_v34, %v4590_v17 }
 0xc24   :  { %v4919_v58 = vpop.xlane.xlu1 %4918  ;;  %v4916_v31 = vpop.xlane.xlu0 %4915 }
 0xc25   :  { %v4926_v7 = vadd.f32 %v4919_v58, %v4916_v31 }
 0xc28   :  { %v5242_v46 = vpop.xlane.xlu1 %5241  ;;  %v5222_v42 = vpop.xlane.xlu0 %5221 }
 0xc29   :  { %v5227_v50 = vadd.f32 %v5226_v11, %v5222_v42 }
 0xc2c   :  { %v4573_v2 = vpop.xlane.xlu1 %4572  ;;  %v5245_v49 = vpop.xlane.xlu0 %5244 }
 0xc2d   :  { %v4576_v14 = vsel %vm333_vm4, %v4573_v2, 0.0  ;;  %v5252_v36 = vadd.f32 %v5245_v49, %v5242_v46 }
 0xc2e   :  { %v4577_v39 = vadd.f32 %v4576_v14, %v4575_v61 }
 0xc30   :  { %v4578_v23 = vrot.slane %v4577_v39, 4  ;;  %v5225_v15 = vpop.xlane.xlu1 %5224  ;;  %v4899_v30 = vpop.xlane.xlu0 %4898 }
 0xc31   :  { %v5228_v12 = vsel %vm333_vm4, %v5225_v15, 0.0  ;;  %v4902_v27 = vsel %vm333_vm4, %v4899_v30, 0.0 }
 0xc32   :  { %v5229_v48 = vadd.f32 %v5228_v12, %v5227_v50  ;;  %v4903_v45 = vadd.f32 %v4902_v27, %v4901_v59  ;;  %v4579_v5 = vadd.f32 %v4578_v23, %v4577_v39 }
 0xc34   :  { %v5230_v56 = vrot.slane %v5229_v48, 4  ;;  %v4904_v3 = vrot.slane %v4903_v45, 4  ;;  %v4922_v38 = vpop.xlane.xlu1 %4921  ;;  %v4596_v6 = vpop.xlane.xlu0 %4595  ;;  %v4580_v26 = vrot.slane %v4579_v5, 2 }
 0xc35   :  { %v4601_v18 = vadd.f32 %v4600_v62, %v4596_v6  ;;  %v4927_v21 = vadd.f32 %v4926_v7, %v4922_v38  ;;  %v4621_v7 = vstv %s5512_s7 }
 0xc36   :  { %v5231_v22 = vadd.f32 %v5230_v56, %v5229_v48  ;;  %v4905_v20 = vadd.f32 %v4904_v3, %v4903_v45  ;;  %v4581_v16 = vadd.f32 %v4580_v26, %v4579_v5 }
 0xc38   :  { %v4599_v32 = vpop.xlane.xlu1 %4598  ;;  %v5248_v24 = vpop.xlane.xlu0 %5247  ;;  %v5232_v55 = vrot.slane %v5231_v22, 2  ;;  %v4906_v47 = vrot.slane %v4905_v20, 2  ;;  %v4582_v19 = vrot.slane %v4581_v16, 1 }
 0xc39   :  { %v4602_v53 = vsel %vm333_vm4, %v4599_v32, 0.0  ;;  %v5253_v1 = vadd.f32 %v5252_v36, %v5248_v24 }
 0xc3a   :  { %v4603_v35 = vadd.f32 %v4602_v53, %v4601_v18  ;;  %v5233_v17 = vadd.f32 %v5232_v55, %v5231_v22  ;;  %v4907_v25 = vadd.f32 %v4906_v47, %v4905_v20  ;;  %v4583_v31 = vadd.f32 %v4582_v19, %v4581_v16 }
 0xc3c   :  { %v4604_v0 = vrot.slane %v4603_v35, 4  ;;  %v5251_v33 = vpop.xlane.xlu1 %5250  ;;  %v4925_v40 = vpop.xlane.xlu0 %4924  ;;  %v5234_v46 = vrot.slane %v5233_v17, 1  ;;  %v4908_v2 = vrot.slane %v4907_v25, 1  ;;  %v4610_v11 = vmul.f32 0.00147929, %v4583_v31 }
 0xc3d   :  { %v5254_v43 = vsel %vm333_vm4, %v5251_v33, 0.0  ;;  %v4928_v10 = vsel %vm333_vm4, %v4925_v40, 0.0  ;;  %v5273_v33 = vstv %s8365_s9  ;;  %v4947_v40 = vstv %s8367_s10 }
 0xc3e   :  { %v4605_v13 = vadd.f32 %v4604_v0, %v4603_v35  ;;  %v5255_v34 = vadd.f32 %v5254_v43, %v5253_v1  ;;  %v4929_v42 = vadd.f32 %v4928_v10, %v4927_v21  ;;  %v5235_v39 = vadd.f32 %v5234_v46, %v5233_v17 }
 0xc3f   :  { %v4909_v23 = vadd.f32 %v4908_v2, %v4907_v25  ;;  %v4612_v5 = vmul.f32 %v4610_v11, %v4610_v11  ;;  %v4616_v47 = vsub.f32 %v7980_v60, %v4610_v11  ;;  %v4628_v0 = vstv %s5513_s8 }
 0xc40   :  { %v4606_v8 = vrot.slane %v4605_v13, 2  ;;  %v5256_v61 = vrot.slane %v5255_v34, 4  ;;  %v4930_v58 = vrot.slane %v4929_v42, 4  ;;  %v8357_v48 = vmul.f32 0.00147929, %v5235_v39 }
 0xc41   :  { %v8359_v3 = vmul.f32 0.00147929, %v4909_v23  ;;  %v4617_v43 = vsub.f32 %v8033_v28, %v4610_v11  ;;  %v4618_v10 = vsub.f32 %v8003_v29, %v4610_v11  ;;  %v4619_v21 = vsub.f32 %v8001_v57, %v4610_v11 }
 0xc42   :  { %v4607_v49 = vadd.f32 %v4606_v8, %v4605_v13  ;;  %v5257_v14 = vadd.f32 %v5256_v61, %v5255_v34  ;;  %v4931_v52 = vadd.f32 %v4930_v58, %v4929_v42  ;;  %v5264_v18 = vmul.f32 %v8357_v48, %v8357_v48 }
 0xc43   :  { %v4938_v32 = vmul.f32 %v8359_v3, %v8359_v3  ;;  %v5268_v19 = vsub.f32 %v8271_v37, %v8357_v48  ;;  %v5269_v17 = vsub.f32 %v8275_v41, %v8357_v48  ;;  %v5280_v13 = vstv %s5545_s11 }
 0xc44   :  { %v4608_v59 = vrot.slane %v4607_v49, 1  ;;  %v5258_v50 = vrot.slane %v5257_v14, 2  ;;  %v4932_v15 = vrot.slane %v4931_v52, 2  ;;  %v4954_v25 = vstv %s5529_s3 }
 0xc45   :  { %v5270_v28 = vsub.f32 %v8310_v4, %v8357_v48  ;;  %v5271_v57 = vsub.f32 %v8323_v63, %v8357_v48  ;;  %v4942_v29 = vsub.f32 %v8251_v44, %v8359_v3  ;;  %v4943_v37 = vsub.f32 %v8255_v51, %v8359_v3 }
 0xc46   :  { %v4609_v30 = vadd.f32 %v4608_v59, %v4607_v49  ;;  %v5259_v12 = vadd.f32 %v5258_v50, %v5257_v14  ;;  %v4933_v27 = vadd.f32 %v4932_v15, %v4931_v52  ;;  %v4944_v49 = vsub.f32 %v8288_v9, %v8359_v3 }
 0xc47   :  { %v4945_v4 = vsub.f32 %v8320_v54, %v8359_v3 }
 0xc48   :  { %v4611_v45 = vmul.f32 0.00147929, %v4609_v30  ;;  %v5260_v56 = vrot.slane %v5259_v12, 1  ;;  %v4934_v38 = vrot.slane %v4933_v27, 1 }
 0xc4a   :  { %v4613_v6 = vsub.f32 %v4611_v45, %v4612_v5  ;;  %v5261_v62 = vadd.f32 %v5260_v56, %v5259_v12  ;;  %v4935_v26 = vadd.f32 %v4934_v38, %v4933_v27 }
 0xc4c   :  { %v4614_v22 = vadd.f32 1e-05, %v4613_v6  ;;  %v5263_v20 = vmul.f32 0.00147929, %v5261_v62  ;;  %v4937_v24 = vmul.f32 0.00147929, %v4935_v26 }
 0xc4e   :  { %5582 = vrsqrt.f32 %v4614_v22  ;;  %v5265_v53 = vsub.f32 %v5263_v20, %v5264_v18  ;;  %v4939_v35 = vsub.f32 %v4937_v24, %v4938_v32 }
 0xc50   :  { %v5266_v16 = vadd.f32 1e-05, %v5265_v53  ;;  %v4940_v55 = vadd.f32 1e-05, %v4939_v35 }
 0xc52   :  { %5584 = vrsqrt.f32 %v5266_v16 }
 0xc53   :  { %5586 = vrsqrt.f32 %v4940_v55 }
 0xc5b   :  { %v5583_v36 = vpop.eup %5582 }
 0xc5c   :  { %v4622_v1 = vmul.f32 %v5583_v36, %v4621_v7 }
 0xc5e   :  { %v4623_v34 = vmul.f32 %v4622_v1, %v4616_v47  ;;  %v4624_v60 = vmul.f32 %v4622_v1, %v4617_v43  ;;  %v4625_v42 = vmul.f32 %v4622_v1, %v4618_v10  ;;  %v4626_v8 = vmul.f32 %v4622_v1, %v4619_v21 }
 0xc5f   :  { %v5585_v61 = vpop.eup %5584 }
 0xc60   :  { %v5587_v41 = vpop.eup %5586  ;;  %v4629_v58 = vadd.f32 %v4628_v0, %v4623_v34  ;;  %v4630_v31 = vadd.f32 %v4628_v0, %v4624_v60  ;;  %v4631_v46 = vadd.f32 %v4628_v0, %v4625_v42  ;;  %v4632_v2 = vadd.f32 %v4628_v0, %v4626_v8 }
 0xc61   :  { %v5274_v14 = vmul.f32 %v5585_v61, %v5273_v33  ;;  %v4948_v52 = vmul.f32 %v5587_v41, %v4947_v40 }
 0xc62   :  { %v4633_v63 = vmax.f32 %v4629_v58, 0.0  ;;  %v4634_v11 = vmax.f32 %v4630_v31, 0.0  ;;  %v4635_v39 = vmax.f32 %v4631_v46, 0.0  ;;  %v4636_v44 = vmax.f32 %v4632_v2, 0.0 }
 0xc63   :  { %v5275_v59 = vmul.f32 %v5274_v14, %v5268_v19  ;;  %v5276_v50 = vmul.f32 %v5274_v14, %v5269_v17  ;;  %v5277_v51 = vmul.f32 %v5274_v14, %v5270_v28  ;;  %v5278_v23 = vmul.f32 %v5274_v14, %v5271_v57 }
 0xc64   :  { %5514 = vst.msk [vmem:[%s8444_s5 + $0x1a0] sm:$0xff] %vm317_vm2, %v4633_v63  ;;  %5515 = vst.msk [vmem:[%s8444_s5 + $0x1a8] sm:$0xff] %vm317_vm2, %v4634_v11  ;;  %v4949_v9 = vmul.f32 %v4948_v52, %v4942_v29  ;;  %v4950_v54 = vmul.f32 %v4948_v52, %v4943_v37  ;;  %v4951_v15 = vmul.f32 %v4948_v52, %v4944_v49 }
 0xc65   :  { %5516 = vst.msk [vmem:[%s8444_s5 + $0x1b0] sm:$0xff] %vm317_vm2, %v4635_v39  ;;  %v4952_v30 = vmul.f32 %v4948_v52, %v4945_v4  ;;  %v5281_v12 = vadd.f32 %v5280_v13, %v5275_v59  ;;  %v5282_v27 = vadd.f32 %v5280_v13, %v5276_v50  ;;  %v5283_v48 = vadd.f32 %v5280_v13, %v5277_v51 }
 0xc66   :  { %5517 = vst.msk [vmem:[%s8444_s5 + $0x1b8] sm:$0x3] %vm327_vm3, %v4636_v44  ;;  %v5284_v45 = vadd.f32 %v5280_v13, %v5278_v23  ;;  %v4955_v5 = vadd.f32 %v4954_v25, %v4949_v9  ;;  %v4956_v56 = vadd.f32 %v4954_v25, %v4950_v54  ;;  %v4957_v3 = vadd.f32 %v4954_v25, %v4951_v15 }
 0xc67   :  { %v4958_v38 = vadd.f32 %v4954_v25, %v4952_v30  ;;  %v5285_v6 = vmax.f32 %v5281_v12, 0.0  ;;  %v5286_v62 = vmax.f32 %v5282_v27, 0.0  ;;  %v5287_v26 = vmax.f32 %v5283_v48, 0.0 }
 0xc68   :  { %v5288_v22 = vmax.f32 %v5284_v45, 0.0  ;;  %v4959_v20 = vmax.f32 %v4955_v5, 0.0  ;;  %v4960_v18 = vmax.f32 %v4956_v56, 0.0  ;;  %v4961_v32 = vmax.f32 %v4957_v3, 0.0 }
 0xc69   :  { %v4962_v24 = vmax.f32 %v4958_v38, 0.0  ;;  %5546 = vst.msk [vmem:[%s8444_s5 + $0x1e0] sm:$0xff] %vm317_vm2, %v5285_v6  ;;  %5547 = vst.msk [vmem:[%s8444_s5 + $0x1e8] sm:$0xff] %vm317_vm2, %v5286_v62 }
 0xc6a   :  { %5548 = vst.msk [vmem:[%s8444_s5 + $0x1f0] sm:$0xff] %vm317_vm2, %v5287_v26  ;;  %5530 = vst.msk [vmem:[%s8444_s5 + $0x1c0] sm:$0xff] %vm317_vm2, %v4959_v20 }
 0xc6b   :  { %5549 = vst.msk [vmem:[%s8444_s5 + $0x1f8] sm:$0x3] %vm327_vm3, %v5288_v22  ;;  %5533 = vst.msk [vmem:[%s8444_s5 + $0x1d8] sm:$0x3] %vm327_vm3, %v4962_v24 }
 0xc6c   :  { %5531 = vst.msk [vmem:[%s8444_s5 + $0x1c8] sm:$0xff] %vm317_vm2, %v4960_v18  ;;  %5532 = vst.msk [vmem:[%s8444_s5 + $0x1d0] sm:$0xff] %vm317_vm2, %v4961_v32 }
 0xc6d   :  { %5298 = vsyncpa [#allocation3], 1 }
 0xc6e   :  { %5299 = vsyncpa [#allocation9], 1 }
 0xc6f   :  { %5300 = vsyncpa [#allocation4], 1 }
 0xc70   :  { %5301 = vsyncpa [#allocation6], 1 }

// kernel: odenet_mnist_forward.3
= control target key start
LH: loop header
LB: loop body
LE: loop exit
PB: predicated region body
PF: predicated region fallthrough
CT: control target
= control target key end

     0   :  { %s2331_s0 = inlined_call_operand.vmem [shape: f32[2,169,128], index: 0, kind: input, shape index: {}]   ;;  %s2332_s1 = inlined_call_operand.vmem [shape: f32[128,8], index: 1, kind: input, shape index: {}]   ;;  %s2333_s2 = inlined_call_operand.vmem [shape: f32[1,8], index: 2, kind: input, shape index: {}]   ;;  %s2334_s3 = inlined_call_operand.vmem [shape: f32[8,8], index: 3, kind: input, shape index: {}]   ;;  %s2335_s4 = inlined_call_operand.vmem [shape: f32[1,8], index: 4, kind: input, shape index: {}]   ;;  %s2336_s5 = inlined_call_operand.vmem [shape: f32[1,8], index: 5, kind: input, shape index: {}]   ;;  %s2337_s6 = inlined_call_operand.vmem [shape: f32[8,10], index: 6, kind: input, shape index: {}]   ;;  %s2338_s7 = inlined_call_operand.vmem [shape: f32[1,10], index: 7, kind: input, shape index: {}]   ;;  %s2339_s8 = inlined_call_operand.hbm [shape: f32[2,10], index: 8, kind: output, shape index: {}]  }
   0x1   :  { %v1481_v0 = vld [vmem:[%s2332_s1 + $0x78] sm:$0xff]  ;;  %v1486_v1 = vld [vmem:[%s2332_s1 + $0x70] sm:$0xff]  ;;  %v1493_v2 = vld [vmem:[%s2332_s1 + $0x68] sm:$0xff] }
   0x2   :  { %1260 = vmatprep.subr.mxu0 %v1481_v0  ;;  %v1500_v3 = vld [vmem:[%s2332_s1 + $0x60] sm:$0xff]  ;;  %v1510_v5 = vld [vmem:[%s2332_s1 + $0x58] sm:$0xff]  ;;  %v1517_v6 = vld [vmem:[%s2332_s1 + $0x50] sm:$0xff] }
   0x3   :  { %1261 = vmatpush3.msra.mxu0 %v1481_v0  ;;  %v30_v4 = vld [vmem:[%s2331_s0] sm:$0xff]  ;;  %v1524_v7 = vld [vmem:[%s2332_s1 + $0x48] sm:$0xff] }
   0x4   :  { %1262 = vmatprep.subr.mxu0 %v1486_v1  ;;  %1292 = vmatprep.mubr.f32.mxu0 %v30_v4  ;;  %v1531_v8 = vld [vmem:[%s2332_s1 + $0x40] sm:$0xff] }
   0x5   :  { %1263 = vmatpush3.msra.mxu0 %v1486_v1 }
   0x6   :  { %1264 = vmatprep.subr.mxu0 %v1493_v2 }
   0x7   :  { %1265 = vmatpush3.msra.mxu0 %v1493_v2 }
   0x8   :  { %1266 = vmatprep.subr.mxu0 %v1500_v3 }
   0x9   :  { %1267 = vmatpush3.msra.mxu0 %v1500_v3 }
   0xa   :  { %1268 = vmatprep.subr.mxu0 %v1510_v5 }
   0xb   :  { %1269 = vmatpush3.msra.mxu0 %v1510_v5 }
   0xc   :  { %1270 = vmatprep.subr.mxu0 %v1517_v6 }
   0xd   :  { %1271 = vmatpush3.msra.mxu0 %v1517_v6 }
   0xe   :  { %13 = vsyncpa [#allocation3], 0  ;;  %1272 = vmatprep.subr.mxu0 %v1524_v7  ;;  %v1538_v9 = vld [vmem:[%s2332_s1 + $0x38] sm:$0xff]  ;;  %v1545_v10 = vld [vmem:[%s2332_s1 + $0x30] sm:$0xff]  ;;  %vm250_vm0 = vcmask 64512   ;;  %vm1431_vm1 = vmmov 0  }
   0xf   :  { %1273 = vmatpush3.msra.mxu0 %v1524_v7  ;;  %v1552_v11 = vld [vmem:[%s2332_s1 + $0x28] sm:$0xff]  ;;  %v1559_v12 = vld [vmem:[%s2332_s1 + $0x20] sm:$0xff]  ;;  %v1566_v13 = vld [vmem:[%s2332_s1 + $0x18] sm:$0xff]  ;;  %vm292_vm2 = vcmask 57344   ;;  %vm584_vm3 = vcmask 73728   ;;  %s1432_s16 = smov [#allocation2]  }
  0x10   :  { %1274 = vmatprep.subr.mxu0 %v1531_v8  ;;  %v1573_v14 = vld [vmem:[%s2332_s1 + $0x10] sm:$0xff]  ;;  %v1580_v15 = vld [vmem:[%s2332_s1 + $0x8] sm:$0xff]  ;;  %v1587_v16 = vld [vmem:[%s2332_s1] sm:$0xff]  ;;  %s1146_s17 = sshll.u32 %s1432_s16, 4  ;;  %s1147_s17 = int_to_ptr.vmem [resolvable:$true] %s1146_s17 }
  0x11   :  { %1275 = vmatpush3.msra.mxu0 %v1531_v8  ;;  %v31_v17 = vld [vmem:[%s2331_s0 + $0x8] sm:$0xff]  ;;  %v32_v18 = vld [vmem:[%s2331_s0 + $0x10] sm:$0xff]  ;;  %v33_v19 = vld [vmem:[%s2331_s0 + $0x18] sm:$0xff]  ;;  %s1408_s18 = scalar_lea.vmem %s1147_s17, 32  ;;  %p1413_p1 = scmp.lt.s32.totalorder %s1147_s17, %s1147_s17 }
  0x12   :  { %1276 = vmatprep.subr.mxu0 %v1538_v9  ;;  %v34_v20 = vld [vmem:[%s2331_s0 + $0x20] sm:$0xff]  ;;  %v35_v21 = vld [vmem:[%s2331_s0 + $0x28] sm:$0xff]  ;;  %v36_v22 = vld [vmem:[%s2331_s0 + $0x30] sm:$0xff]  ;;  %p1409_p0 = scmp.ne.s32.totalorder %s1147_s17, %s1408_s18  ;;  %p1414_p2 = scmp.lt.s32.totalorder %s1408_s18, %s1408_s18 }
  0x13   :  { %1277 = vmatpush3.msra.mxu0 %v1538_v9  ;;  %v37_v23 = vld [vmem:[%s2331_s0 + $0x38] sm:$0xff]  ;;  %v38_v24 = vld [vmem:[%s2331_s0 + $0x40] sm:$0xff]  ;;  %v39_v25 = vld [vmem:[%s2331_s0 + $0x48] sm:$0xff] }
  0x14   :  { %1278 = vmatprep.subr.mxu0 %v1545_v10  ;;  %v40_v26 = vld [vmem:[%s2331_s0 + $0x50] sm:$0xff]  ;;  %v41_v27 = vld [vmem:[%s2331_s0 + $0x58] sm:$0xff]  ;;  %v42_v28 = vld [vmem:[%s2331_s0 + $0x60] sm:$0xff]  ;;  %p1415_p3 = por %p1414_p2, %p1413_p1 }
  0x15   :  { %1279 = vmatpush3.msra.mxu0 %v1545_v10  ;;  %v43_v29 = vld [vmem:[%s2331_s0 + $0x68] sm:$0xff]  ;;  %v44_v30 = vld [vmem:[%s2331_s0 + $0x70] sm:$0xff]  ;;  %v45_v31 = vld [vmem:[%s2331_s0 + $0x78] sm:$0xff] }
  0x16   :  { %1280 = vmatprep.subr.mxu0 %v1552_v11  ;;  %v46_v32 = vld [vmem:[%s2331_s0 + $0x80] sm:$0xff]  ;;  %v47_v33 = vld [vmem:[%s2331_s0 + $0x88] sm:$0xff]  ;;  %v48_v34 = vld [vmem:[%s2331_s0 + $0x90] sm:$0xff]  ;;  %p1416_p4 = pnand %p1415_p3, %p1409_p0 }
  0x17   :  { %1281 = vmatpush3.msra.mxu0 %v1552_v11  ;;  %v49_v35 = vld [vmem:[%s2331_s0 + $0x98] sm:$0xff]  ;;  %v50_v36 = vld [vmem:[%s2331_s0 + $0xa0] sm:$0xff]  ;;  %v51_v37 = vld [vmem:[%s2331_s0 + $0xa8] sm:$0x1] }
  0x18   :  { %1282 = vmatprep.subr.mxu0 %v1559_v12  ;;  %v1659_v38 = vld [vmem:[%s2333_s2] ss:$0 sm:$0xff] }
  0x19   :  { %1283 = vmatpush3.msra.mxu0 %v1559_v12 }
  0x1a   :  { %1284 = vmatprep.subr.mxu0 %v1566_v13 }
  0x1b   :  { %1285 = vmatpush3.msra.mxu0 %v1566_v13 }
  0x1c   :  { %1286 = vmatprep.subr.mxu0 %v1573_v14 }
  0x1d   :  { %1287 = vmatpush3.msra.mxu0 %v1573_v14 }
  0x1e   :  { %1288 = vmatprep.subr.mxu0 %v1580_v15 }
  0x1f   :  { %1289 = vmatpush3.msra.mxu0 %v1580_v15 }
  0x20   :  { %1290 = vmatprep.subr.mxu0 %v1587_v16 }
  0x21   :  { %1291 = vmatpush3.msra.mxu0 %v1587_v16 }
  0x22   :  { %1293 = vmatmul.mubr.f32.vlgmr.msra.gmra.mxu0 %v31_v17 }
  0x23   :  { %1295 = vmatprep.mubr.f32.mxu0 %v32_v18 }
  0x26   :  { %1296 = vmatmul.mubr.f32.gmra.mxu0 %v33_v19 }
  0x27   :  { %1298 = vmatprep.mubr.f32.mxu0 %v34_v20 }
  0x2a   :  { %1299 = vmatmul.mubr.f32.gmra.mxu0 %v35_v21 }
  0x2b   :  { %1301 = vmatprep.mubr.f32.mxu0 %v36_v22 }
  0x2e   :  { %1302 = vmatmul.mubr.f32.gmra.mxu0 %v37_v23 }
  0x2f   :  { %1304 = vmatprep.mubr.f32.mxu0 %v38_v24 }
  0x32   :  { %1305 = vmatmul.mubr.f32.gmra.mxu0 %v39_v25 }
  0x33   :  { %1307 = vmatprep.mubr.f32.mxu0 %v40_v26 }
  0x36   :  { %1308 = vmatmul.mubr.f32.gmra.mxu0 %v41_v27 }
  0x37   :  { %1310 = vmatprep.mubr.f32.mxu0 %v42_v28 }
  0x3a   :  { %1311 = vmatmul.mubr.f32.gmra.mxu0 %v43_v29 }
  0x3b   :  { %1313 = vmatprep.mubr.f32.mxu0 %v44_v30 }
  0x3e   :  { %1314 = vmatmul.mubr.f32.gmra.mxu0 %v45_v31 }
  0x3f   :  { %1316 = vmatprep.mubr.f32.mxu0 %v46_v32 }
  0x42   :  { %1317 = vmatmul.mubr.f32.gmra.mxu0 %v47_v33 }
  0x43   :  { %1319 = vmatprep.mubr.f32.mxu0 %v48_v34 }
  0x46   :  { %1320 = vmatmul.mubr.f32.gmra.mxu0 %v49_v35 }
  0x47   :  { %1322 = vmatprep.mubr.f32.mxu0 %v50_v36 }
  0x4a   :  { %1323 = vmatmul.mubr.f32.gmra.mxu0 %v51_v37 }
  0xe2   :  { %v1294_v39 = vpop.f32.mrf.mxu0 }
  0xe3   :  { %v1662_v40 = vadd.f32 %v1294_v39, %v1659_v38 }
  0xe4   :  { %v141_v41 = vpop.f32.mrf.mxu0 }
  0xe5   :  { %v1665_v42 = vadd.f32 %v1659_v38, %v141_v41  ;;  %v302_v43 = vmul.f32 %v1662_v40, %v1662_v40  ;;  %v252_v49 = vsel %vm250_vm0, %v1662_v40, 0.0 }
  0xe6   :  { %v1297_v44 = vpop.f32.mrf.mxu0 }
  0xe7   :  { %v251_v45 = vsel %vm250_vm0, %v1665_v42, 0.0  ;;  %v301_v46 = vmul.f32 %v1665_v42, %v1665_v42  ;;  %v1674_v47 = vadd.f32 %v1297_v44, %v1659_v38  ;;  %v324_v52 = vsel %vm250_vm0, %v302_v43, 0.0 }
  0xe8   :  { %v151_v48 = vpop.f32.mrf.mxu0  ;;  %v253_v53 = vadd.f32 %v252_v49, %v251_v45 }
  0xe9   :  { %v323_v50 = vsel %vm250_vm0, %v301_v46, 0.0  ;;  %v1680_v51 = vadd.f32 %v1659_v38, %v151_v48  ;;  %v304_v55 = vmul.f32 %v1674_v47, %v1674_v47  ;;  %v256_v62 = vsel %vm250_vm0, %v1674_v47, 0.0 }
  0xea   :  { %v1300_v54 = vpop.f32.mrf.mxu0  ;;  %v325_v59 = vadd.f32 %v324_v52, %v323_v50  ;;  %v509_v50 = vld [vmem:[%s2337_s6] sm:$0xff] }
  0xeb   :  { %v254_v56 = vsel %vm250_vm0, %v1680_v51, 0.0  ;;  %v303_v57 = vmul.f32 %v1680_v51, %v1680_v51  ;;  %v1690_v58 = vadd.f32 %v1300_v54, %v1659_v38  ;;  %v328_v21 = vsel %vm250_vm0, %v304_v55, 0.0 }
  0xec   :  { %v255_v60 = vadd.f32 %v254_v56, %v253_v53  ;;  %v161_v61 = vpop.f32.mrf.mxu0 }
  0xed   :  { %v326_v63 = vsel %vm250_vm0, %v303_v57, 0.0  ;;  %v1696_v4 = vadd.f32 %v1659_v38, %v161_v61  ;;  %v306_v18 = vmul.f32 %v1690_v58, %v1690_v58  ;;  %v260_v28 = vsel %vm250_vm0, %v1690_v58, 0.0 }
  0xee   :  { %v327_v17 = vadd.f32 %v326_v63, %v325_v59  ;;  %v257_v19 = vadd.f32 %v256_v62, %v255_v60  ;;  %v1303_v20 = vpop.f32.mrf.mxu0  ;;  %v1430_v60 = vmov 0.0  }
  0xef   :  { %v258_v22 = vsel %vm250_vm0, %v1696_v4, 0.0  ;;  %v305_v23 = vmul.f32 %v1696_v4, %v1696_v4  ;;  %v1706_v24 = vadd.f32 %v1303_v20, %v1659_v38  ;;  %v332_v31 = vsel %vm250_vm0, %v306_v18, 0.0  ;;  %1325 = vmatprep.subr.mxu1 %v1430_v60  ;;  %1327 = vmatprep.mubr.msk.f32.mxu1 %vm1431_vm1, %v1430_v60 }
  0xf0   :  { %v259_v25 = vadd.f32 %v258_v22, %v257_v19  ;;  %v329_v26 = vadd.f32 %v328_v21, %v327_v17  ;;  %v171_v27 = vpop.f32.mrf.mxu0  ;;  %1326 = vmatpush3.msra.mxu1 %v509_v50  ;;  %1395 = vmatprep.subr.mxu0 %v1430_v60 }
  0xf1   :  { %v330_v29 = vsel %vm250_vm0, %v305_v23, 0.0  ;;  %v1712_v30 = vadd.f32 %v1659_v38, %v171_v27  ;;  %v308_v35 = vmul.f32 %v1706_v24, %v1706_v24  ;;  %v264_v45 = vsel %vm250_vm0, %v1706_v24, 0.0  ;;  %1330 = vmatprep.subr.mxu1 %v1481_v0  ;;  %1396 = vmatpush3.msra.mxu0 %v509_v50 }
  0xf2   :  { %v331_v32 = vadd.f32 %v330_v29, %v329_v26  ;;  %v261_v33 = vadd.f32 %v260_v28, %v259_v25  ;;  %v1306_v34 = vpop.f32.mrf.mxu0  ;;  %1397 = vmatprep.mubr.msk.f32.mxu0 %vm1431_vm1, %v1430_v60 }
  0xf3   :  { %v262_v36 = vsel %vm250_vm0, %v1712_v30, 0.0  ;;  %v307_v37 = vmul.f32 %v1712_v30, %v1712_v30  ;;  %v1722_v39 = vadd.f32 %v1306_v34, %v1659_v38  ;;  %v336_v55 = vsel %vm250_vm0, %v308_v35, 0.0 }
  0xf4   :  { %v263_v41 = vadd.f32 %v262_v36, %v261_v33  ;;  %v333_v43 = vadd.f32 %v332_v31, %v331_v32  ;;  %v181_v44 = vpop.f32.mrf.mxu0 }
  0xf5   :  { %v334_v46 = vsel %vm250_vm0, %v307_v37, 0.0  ;;  %v310_v48 = vmul.f32 %v1722_v39, %v1722_v39  ;;  %v1730_v49 = vadd.f32 %v1659_v38, %v181_v44  ;;  %v268_v17 = vsel %vm250_vm0, %v1722_v39, 0.0 }
  0xf6   :  { %v335_v52 = vadd.f32 %v334_v46, %v333_v43  ;;  %v265_v53 = vadd.f32 %v264_v45, %v263_v41  ;;  %v1309_v54 = vpop.f32.mrf.mxu0 }
  0xf7   :  { %v266_v56 = vsel %vm250_vm0, %v1730_v49, 0.0  ;;  %v309_v57 = vmul.f32 %v1730_v49, %v1730_v49  ;;  %v1741_v59 = vadd.f32 %v1309_v54, %v1659_v38  ;;  %v340_v20 = vsel %vm250_vm0, %v310_v48, 0.0 }
  0xf8   :  { %v267_v61 = vadd.f32 %v266_v56, %v265_v53  ;;  %v337_v62 = vadd.f32 %v336_v55, %v335_v52  ;;  %v191_v63 = vpop.f32.mrf.mxu0 }
  0xf9   :  { %v338_v18 = vsel %vm250_vm0, %v309_v57, 0.0  ;;  %v1748_v19 = vadd.f32 %v1659_v38, %v191_v63  ;;  %v312_v25 = vmul.f32 %v1741_v59, %v1741_v59  ;;  %v272_v33 = vsel %vm250_vm0, %v1741_v59, 0.0 }
  0xfa   :  { %v339_v21 = vadd.f32 %v338_v18, %v337_v62  ;;  %v269_v22 = vadd.f32 %v268_v17, %v267_v61  ;;  %v1312_v23 = vpop.f32.mrf.mxu0 }
  0xfb   :  { %v270_v26 = vsel %vm250_vm0, %v1748_v19, 0.0  ;;  %v311_v27 = vmul.f32 %v1748_v19, %v1748_v19  ;;  %v1760_v28 = vadd.f32 %v1312_v23, %v1659_v38  ;;  %v344_v44 = vsel %vm250_vm0, %v312_v25, 0.0 }
  0xfc   :  { %v271_v29 = vadd.f32 %v270_v26, %v269_v22  ;;  %v341_v31 = vadd.f32 %v340_v20, %v339_v21  ;;  %v201_v32 = vpop.f32.mrf.mxu0 }
  0xfd   :  { %v342_v34 = vsel %vm250_vm0, %v311_v27, 0.0  ;;  %v1766_v35 = vadd.f32 %v1659_v38, %v201_v32  ;;  %v314_v37 = vmul.f32 %v1760_v28, %v1760_v28  ;;  %v276_v54 = vsel %vm250_vm0, %v1760_v28, 0.0 }
  0xfe   :  { %v343_v36 = vadd.f32 %v342_v34, %v341_v31  ;;  %v273_v41 = vadd.f32 %v272_v33, %v271_v29  ;;  %v1315_v43 = vpop.f32.mrf.mxu0 }
  0xff   :  { %v274_v45 = vsel %vm250_vm0, %v1766_v35, 0.0  ;;  %v313_v46 = vmul.f32 %v1766_v35, %v1766_v35  ;;  %v1776_v48 = vadd.f32 %v1315_v43, %v1659_v38  ;;  %v348_v57 = vsel %vm250_vm0, %v314_v37, 0.0 }
 0x100   :  { %v275_v50 = vadd.f32 %v274_v45, %v273_v41  ;;  %v345_v52 = vadd.f32 %v344_v44, %v343_v36  ;;  %v211_v53 = vpop.f32.mrf.mxu0 }
 0x101   :  { %v346_v55 = vsel %vm250_vm0, %v313_v46, 0.0  ;;  %v1782_v56 = vadd.f32 %v1659_v38, %v211_v53  ;;  %v316_v63 = vmul.f32 %v1776_v48, %v1776_v48  ;;  %v280_v25 = vsel %vm250_vm0, %v1776_v48, 0.0 }
 0x102   :  { %v347_v60 = vadd.f32 %v346_v55, %v345_v52  ;;  %v277_v61 = vadd.f32 %v276_v54, %v275_v50  ;;  %v1318_v62 = vpop.f32.mrf.mxu0 }
 0x103   :  { %v278_v17 = vsel %vm250_vm0, %v1782_v56, 0.0  ;;  %v315_v18 = vmul.f32 %v1782_v56, %v1782_v56  ;;  %v1792_v20 = vadd.f32 %v1318_v62, %v1659_v38  ;;  %v352_v34 = vsel %vm250_vm0, %v316_v63, 0.0 }
 0x104   :  { %v279_v21 = vadd.f32 %v278_v17, %v277_v61  ;;  %v349_v22 = vadd.f32 %v348_v57, %v347_v60  ;;  %v221_v23 = vpop.f32.mrf.mxu0 }
 0x105   :  { %v350_v26 = vsel %vm250_vm0, %v315_v18, 0.0  ;;  %v1798_v27 = vadd.f32 %v1659_v38, %v221_v23  ;;  %v318_v31 = vmul.f32 %v1792_v20, %v1792_v20  ;;  %v284_v46 = vsel %vm250_vm0, %v1792_v20, 0.0 }
 0x106   :  { %v351_v29 = vadd.f32 %v350_v26, %v349_v22  ;;  %v281_v32 = vadd.f32 %v280_v25, %v279_v21  ;;  %v1321_v33 = vpop.f32.mrf.mxu0 }
 0x107   :  { %v282_v36 = vsel %vm250_vm0, %v1798_v27, 0.0  ;;  %v317_v37 = vmul.f32 %v1798_v27, %v1798_v27  ;;  %v1808_v41 = vadd.f32 %v1321_v33, %v1659_v38  ;;  %v356_v53 = vsel %vm250_vm0, %v318_v31, 0.0 }
 0x108   :  { %v283_v43 = vadd.f32 %v282_v36, %v281_v32  ;;  %v353_v44 = vadd.f32 %v352_v34, %v351_v29  ;;  %v231_v45 = vpop.f32.mrf.mxu0 }
 0x109   :  { %v354_v50 = vsel %vm250_vm0, %v317_v37, 0.0  ;;  %v1814_v52 = vadd.f32 %v1659_v38, %v231_v45  ;;  %v320_v60 = vmul.f32 %v1808_v41, %v1808_v41  ;;  %v288_v22 = vsel %vm250_vm0, %v1808_v41, 0.0 }
 0x10a   :  { %v355_v54 = vadd.f32 %v354_v50, %v353_v44  ;;  %v285_v55 = vadd.f32 %v284_v46, %v283_v43  ;;  %v1324_v57 = vpop.f32.mrf.mxu0 }
 0x10b   :  { %v286_v61 = vsel %vm250_vm0, %v1814_v52, 0.0  ;;  %v319_v62 = vmul.f32 %v1814_v52, %v1814_v52  ;;  %v1824_v63 = vadd.f32 %v1324_v57, %v1659_v38  ;;  %v360_v31 = vsel %vm250_vm0, %v320_v60, 0.0 }
 0x10c   :  { %v287_v17 = vadd.f32 %v286_v61, %v285_v55  ;;  %v357_v18 = vadd.f32 %v356_v53, %v355_v54  ;;  %v241_v21 = vpop.f32.mrf.mxu0 }
 0x10d   :  { %v358_v23 = vsel %vm250_vm0, %v319_v62, 0.0  ;;  %v1830_v25 = vadd.f32 %v1659_v38, %v241_v21  ;;  %v322_v32 = vmul.f32 %v1824_v63, %v1824_v63  ;;  %v293_v43 = vsel %vm292_vm2, %v1824_v63, 0.0 }
 0x10e   :  { %v359_v26 = vadd.f32 %v358_v23, %v357_v18  ;;  %v289_v29 = vadd.f32 %v288_v22, %v287_v17 }
 0x10f   :  { %v290_v33 = vsel %vm250_vm0, %v1830_v25, 0.0  ;;  %v321_v34 = vmul.f32 %v1830_v25, %v1830_v25  ;;  %v364_v50 = vsel %vm292_vm2, %v322_v32, 0.0  ;;  %v383_v32 = vlaneseq }
 0x110   :  { %v291_v36 = vadd.f32 %v290_v33, %v289_v29  ;;  %v361_v37 = vadd.f32 %v360_v31, %v359_v26 }
 0x111   :  { %v362_v44 = vsel %vm250_vm0, %v321_v34, 0.0 }
 0x112   :  { %v294_v45 = vadd.f32 %v293_v43, %v291_v36  ;;  %v363_v46 = vadd.f32 %v362_v44, %v361_v37  ;;  %v378_v37 = vld [vmem:[%s2335_s4] sm:$0x1] }
 0x114   :  { %v295_v53 = vrot.slane %v294_v45, 4  ;;  %v365_v54 = vadd.f32 %v364_v50, %v363_v46  ;;  %v380_v50 = vld [vmem:[%s2336_s5] sm:$0x1] }
 0x116   :  { %v296_v55 = vadd.f32 %v295_v53, %v294_v45  ;;  %v366_v57 = vrot.slane %v365_v54, 4  ;;  %v384_v45 = vshrl.u32 %v383_v32, 7 }
 0x118   :  { %v297_v60 = vrot.slane %v296_v55, 2  ;;  %v367_v61 = vadd.f32 %v366_v57, %v365_v54  ;;  %v1849_v53 = vsub.s32 0, %v384_v45 }
 0x11a   :  { %v298_v62 = vadd.f32 %v297_v60, %v296_v55  ;;  %v368_v17 = vrot.slane %v367_v61, 2 }
 0x11c   :  { %v299_v18 = vrot.slane %v298_v62, 1  ;;  %v369_v21 = vadd.f32 %v368_v17, %v367_v61 }
 0x11e   :  { %v300_v22 = vadd.f32 %v299_v18, %v298_v62  ;;  %v370_v23 = vrot.slane %v369_v21, 1 }
 0x120   :  { %v371_v26 = vadd.f32 %v370_v23, %v369_v21  ;;  %v372_v29 = vmul.f32 0.00591716, %v300_v22 }
 0x122   :  { %v373_v31 = vmul.f32 0.00591716, %v371_v26  ;;  %v374_v33 = vmul.f32 %v372_v29, %v372_v29 }
 0x124   :  { %v375_v34 = vsub.f32 %v373_v31, %v374_v33 }
 0x126   :  { %v376_v36 = vadd.f32 1e-05, %v375_v34 }
 0x128   :  { %1403 = vrsqrt.f32 %v376_v36 }
 0x135   :  { %v1404_v43 = vpop.eup %1403 }
 0x136   :  { %v379_v44 = vmul.f32 %v1404_v43, %v378_v37 }
 0x138   :  { %v381_v46 = vmul.f32 %v379_v44, %v372_v29  ;;  %v1852_v55 = vrot.slane %v379_v44, %v1849_v53 }
 0x13a   :  { %v382_v54 = vsub.f32 %v380_v50, %v381_v46  ;;  %v387_v60 = vmul.f32 %v1852_v55, %v1665_v42  ;;  %v388_v61 = vmul.f32 %v1852_v55, %v1662_v40  ;;  %v389_v62 = vmul.f32 %v1852_v55, %v1680_v51 }
 0x13b   :  { %v390_v21 = vmul.f32 %v1852_v55, %v1674_v47  ;;  %v391_v23 = vmul.f32 %v1852_v55, %v1696_v4  ;;  %v392_v40 = vmul.f32 %v1852_v55, %v1690_v58  ;;  %v393_v33 = vmul.f32 %v1852_v55, %v1712_v30 }
 0x13c   :  { %v1855_v57 = vrot.slane %v382_v54, %v1849_v53  ;;  %v394_v37 = vmul.f32 %v1852_v55, %v1706_v24  ;;  %v395_v30 = vmul.f32 %v1852_v55, %v1730_v49 }
 0x13e   :  { %v415_v17 = vadd.f32 %v1855_v57, %v387_v60  ;;  %v416_v18 = vadd.f32 %v1855_v57, %v388_v61  ;;  %v417_v22 = vadd.f32 %v1855_v57, %v389_v62  ;;  %v418_v42 = vadd.f32 %v1855_v57, %v390_v21 }
 0x13f   :  { %v419_v51 = vadd.f32 %v1855_v57, %v391_v23  ;;  %v420_v47 = vadd.f32 %v1855_v57, %v392_v40  ;;  %v421_v43 = vadd.f32 %v1855_v57, %v393_v33  ;;  %v422_v46 = vadd.f32 %v1855_v57, %v394_v37 }
 0x140   :  { %v437_v26 = vmax.f32 %v415_v17, 0.0  ;;  %v438_v29 = vmax.f32 %v416_v18, 0.0  ;;  %v439_v31 = vmax.f32 %v417_v22, 0.0  ;;  %v440_v34 = vmax.f32 %v418_v42, 0.0 }
 0x141   :  { %v441_v58 = vmax.f32 %v419_v51, 0.0  ;;  %v442_v50 = vmax.f32 %v420_v47, 0.0  ;;  %v396_v61 = vmul.f32 %v1852_v55, %v1722_v39  ;;  %v423_v24 = vadd.f32 %v1855_v57, %v395_v30 }
 0x142   :  { %v459_v36 = vsel %vm250_vm0, %v437_v26, 0.0  ;;  %v460_v4 = vsel %vm250_vm0, %v438_v29, 0.0  ;;  %v462_v44 = vsel %vm250_vm0, %v439_v31, 0.0  ;;  %v464_v54 = vsel %vm250_vm0, %v440_v34, 0.0 }
 0x143   :  { %v461_v32 = vadd.f32 %v460_v4, %v459_v36  ;;  %v443_v62 = vmax.f32 %v421_v43, 0.0  ;;  %v466_v17 = vsel %vm250_vm0, %v441_v58, 0.0  ;;  %v397_v21 = vmul.f32 %v1852_v55, %v1748_v19 }
 0x144   :  { %v424_v49 = vadd.f32 %v1855_v57, %v396_v61  ;;  %v444_v22 = vmax.f32 %v422_v46, 0.0  ;;  %v468_v23 = vsel %vm250_vm0, %v442_v50, 0.0  ;;  %v398_v26 = vmul.f32 %v1852_v55, %v1741_v59 }
 0x145   :  { %v463_v45 = vadd.f32 %v462_v44, %v461_v32  ;;  %v425_v39 = vadd.f32 %v1855_v57, %v397_v21  ;;  %v445_v29 = vmax.f32 %v423_v24, 0.0  ;;  %v470_v40 = vsel %vm250_vm0, %v443_v62, 0.0 }
 0x146   :  { %v399_v31 = vmul.f32 %v1852_v55, %v1766_v35  ;;  %v426_v19 = vadd.f32 %v1855_v57, %v398_v26  ;;  %v446_v33 = vmax.f32 %v424_v49, 0.0  ;;  %v472_v47 = vsel %vm250_vm0, %v444_v22, 0.0 }
 0x147   :  { %v465_v60 = vadd.f32 %v464_v54, %v463_v45  ;;  %v400_v36 = vmul.f32 %v1852_v55, %v1760_v28  ;;  %v447_v4 = vmax.f32 %v425_v39, 0.0  ;;  %v474_v32 = vsel %vm250_vm0, %v445_v29, 0.0 }
 0x148   :  { %v427_v59 = vadd.f32 %v1855_v57, %v399_v31  ;;  %v401_v43 = vmul.f32 %v1852_v55, %v1782_v56  ;;  %v448_v58 = vmax.f32 %v426_v19, 0.0  ;;  %v476_v44 = vsel %vm250_vm0, %v446_v33, 0.0 }
 0x149   :  { %v467_v18 = vadd.f32 %v466_v17, %v465_v60  ;;  %v428_v35 = vadd.f32 %v1855_v57, %v400_v36  ;;  %v402_v30 = vmul.f32 %v1852_v55, %v1776_v48  ;;  %v478_v50 = vsel %vm250_vm0, %v447_v4, 0.0 }
 0x14a   :  { %v429_v28 = vadd.f32 %v1855_v57, %v401_v43  ;;  %v449_v46 = vmax.f32 %v427_v59, 0.0  ;;  %v403_v60 = vmul.f32 %v1852_v55, %v1798_v27  ;;  %v480_v24 = vsel %vm250_vm0, %v448_v58, 0.0 }
 0x14b   :  { %v469_v42 = vadd.f32 %v468_v23, %v467_v18  ;;  %v430_v56 = vadd.f32 %v1855_v57, %v402_v30  ;;  %v450_v61 = vmax.f32 %v428_v35, 0.0  ;;  %v404_v17 = vmul.f32 %v1852_v55, %v1792_v20 }
 0x14c   :  { %v431_v48 = vadd.f32 %v1855_v57, %v403_v60  ;;  %v451_v18 = vmax.f32 %v429_v28, 0.0  ;;  %v482_v21 = vsel %vm250_vm0, %v449_v46, 0.0  ;;  %v405_v22 = vmul.f32 %v1852_v55, %v1814_v52 }
 0x14d   :  { %v471_v51 = vadd.f32 %v470_v40, %v469_v42  ;;  %v432_v27 = vadd.f32 %v1855_v57, %v404_v17  ;;  %v452_v23 = vmax.f32 %v430_v56, 0.0  ;;  %v484_v42 = vsel %vm250_vm0, %v450_v61, 0.0  ;;  %v1156_v17 = vld [vmem:[%s2331_s0 + $0xb0] sm:$0xff] }
 0x14e   :  { %v406_v39 = vmul.f32 %v1852_v55, %v1808_v41  ;;  %v433_v20 = vadd.f32 %v1855_v57, %v405_v22  ;;  %v453_v29 = vmax.f32 %v431_v48, 0.0  ;;  %v486_v40 = vsel %vm250_vm0, %v451_v18, 0.0  ;;  %v1173_v48 = vld [vmem:[%s2331_s0 + $0x138] sm:$0xff]  ;;  %v1174_v18 = vld [vmem:[%s2331_s0 + $0x140] sm:$0xff] }
 0x14f   :  { %v473_v34 = vadd.f32 %v472_v47, %v471_v51  ;;  %v407_v31 = vmul.f32 %v1852_v55, %v1830_v25  ;;  %v454_v19 = vmax.f32 %v432_v27, 0.0  ;;  %v488_v33 = vsel %vm250_vm0, %v452_v23, 0.0  ;;  %v1177_v22 = vld [vmem:[%s2331_s0 + $0x158] sm:$0x1]  ;;  %v510_v27 = vld [vmem:[%s2338_s7] sm:$0x1] }
 0x150   :  { %v434_v52 = vadd.f32 %v1855_v57, %v406_v39  ;;  %v455_v36 = vmax.f32 %v433_v20, 0.0  ;;  %v490_v59 = vsel %vm250_vm0, %v453_v29, 0.0 }
 0x151   :  { %v475_v37 = vadd.f32 %v474_v32, %v473_v34  ;;  %v408_v34 = vmul.f32 %v1852_v55, %v1824_v63  ;;  %v435_v41 = vadd.f32 %v1855_v57, %v407_v31  ;;  %v492_v25 = vsel %vm250_vm0, %v454_v19, 0.0 }
 0x152   :  { %v494_v58 = vsel %vm250_vm0, %v455_v36, 0.0 }
 0x153   :  { %v477_v45 = vadd.f32 %v476_v44, %v475_v37  ;;  %v436_v32 = vadd.f32 %v1855_v57, %v408_v34  ;;  %v456_v37 = vmax.f32 %v434_v52, 0.0  ;;  %v457_v35 = vmax.f32 %v435_v41, 0.0 }
 0x155   :  { %v479_v54 = vadd.f32 %v478_v50, %v477_v45  ;;  %v458_v45 = vmax.f32 %v436_v32, 0.0  ;;  %v496_v30 = vsel %vm250_vm0, %v456_v37, 0.0  ;;  %v498_v55 = vsel %vm250_vm0, %v457_v35, 0.0 }
 0x157   :  { %v481_v62 = vadd.f32 %v480_v24, %v479_v54  ;;  %v500_v46 = vsel %vm292_vm2, %v458_v45, 0.0 }
 0x159   :  { %v483_v49 = vadd.f32 %v482_v21, %v481_v62  ;;  %v1175_v21 = vld [vmem:[%s2331_s0 + $0x148] sm:$0xff] }
 0x15b   :  { %v485_v26 = vadd.f32 %v484_v42, %v483_v49  ;;  %v1176_v49 = vld [vmem:[%s2331_s0 + $0x150] sm:$0xff] }
 0x15d   :  { %v487_v51 = vadd.f32 %v486_v40, %v485_v26 }
 0x15f   :  { %v489_v47 = vadd.f32 %v488_v33, %v487_v51 }
 0x161   :  { %v491_v4 = vadd.f32 %v490_v59, %v489_v47 }
 0x163   :  { %v493_v43 = vadd.f32 %v492_v25, %v491_v4 }
 0x165   :  { %v495_v44 = vadd.f32 %v494_v58, %v493_v43 }
 0x167   :  { %v497_v63 = vadd.f32 %v496_v30, %v495_v44 }
 0x169   :  { %v499_v28 = vadd.f32 %v498_v55, %v497_v63 }
 0x16b   :  { %v501_v50 = vadd.f32 %v500_v46, %v499_v28 }
 0x16d   :  { %v502_v54 = vrot.slane %v501_v50, 4 }
 0x16f   :  { %v503_v57 = vadd.f32 %v502_v54, %v501_v50 }
 0x171   :  { %v504_v60 = vrot.slane %v503_v57, 2 }
 0x173   :  { %v505_v56 = vadd.f32 %v504_v60, %v503_v57 }
 0x175   :  { %v506_v61 = vrot.slane %v505_v56, 1 }
 0x177   :  { %v507_v24 = vadd.f32 %v506_v61, %v505_v56 }
 0x179   :  { %v508_v62 = vmul.f32 0.00591716, %v507_v24 }
 0x17b   :  { %1328 = vmatmul.mubr.msk.f32.vlgmr.msra.gmra.mxu1 %vm250_vm0, %v508_v62 }
 0x17c   :  { %1331 = vmatpush3.msra.mxu1 %v1481_v0  ;;  %1362 = vmatprep.mubr.f32.mxu1 %v1156_v17  ;;  %v1157_v0 = vld [vmem:[%s2331_s0 + $0xb8] sm:$0xff] }
 0x17d   :  { %1332 = vmatprep.subr.mxu1 %v1486_v1 }
 0x17e   :  { %1333 = vmatpush3.msra.mxu1 %v1486_v1  ;;  %v1158_v1 = vld [vmem:[%s2331_s0 + $0xc0] sm:$0xff] }
 0x17f   :  { %1334 = vmatprep.subr.mxu1 %v1493_v2 }
 0x180   :  { %1335 = vmatpush3.msra.mxu1 %v1493_v2  ;;  %v1159_v2 = vld [vmem:[%s2331_s0 + $0xc8] sm:$0xff] }
 0x181   :  { %1336 = vmatprep.subr.mxu1 %v1500_v3 }
 0x182   :  { %1337 = vmatpush3.msra.mxu1 %v1500_v3  ;;  %v1160_v3 = vld [vmem:[%s2331_s0 + $0xd0] sm:$0xff] }
 0x183   :  { %1338 = vmatprep.subr.mxu1 %v1510_v5 }
 0x184   :  { %1339 = vmatpush3.msra.mxu1 %v1510_v5  ;;  %v1161_v5 = vld [vmem:[%s2331_s0 + $0xd8] sm:$0xff] }
 0x185   :  { %1340 = vmatprep.subr.mxu1 %v1517_v6 }
 0x186   :  { %1341 = vmatpush3.msra.mxu1 %v1517_v6  ;;  %v1162_v6 = vld [vmem:[%s2331_s0 + $0xe0] sm:$0xff] }
 0x187   :  { %1342 = vmatprep.subr.mxu1 %v1524_v7 }
 0x188   :  { %1343 = vmatpush3.msra.mxu1 %v1524_v7  ;;  %v1163_v7 = vld [vmem:[%s2331_s0 + $0xe8] sm:$0xff] }
 0x189   :  { %1344 = vmatprep.subr.mxu1 %v1531_v8 }
 0x18a   :  { %1345 = vmatpush3.msra.mxu1 %v1531_v8  ;;  %v1164_v8 = vld [vmem:[%s2331_s0 + $0xf0] sm:$0xff] }
 0x18b   :  { %1346 = vmatprep.subr.mxu1 %v1538_v9 }
 0x18c   :  { %1347 = vmatpush3.msra.mxu1 %v1538_v9  ;;  %v1165_v9 = vld [vmem:[%s2331_s0 + $0xf8] sm:$0xff] }
 0x18d   :  { %1348 = vmatprep.subr.mxu1 %v1545_v10 }
 0x18e   :  { %1349 = vmatpush3.msra.mxu1 %v1545_v10  ;;  %v1166_v10 = vld [vmem:[%s2331_s0 + $0x100] sm:$0xff] }
 0x18f   :  { %1350 = vmatprep.subr.mxu1 %v1552_v11 }
 0x190   :  { %1351 = vmatpush3.msra.mxu1 %v1552_v11  ;;  %v1167_v11 = vld [vmem:[%s2331_s0 + $0x108] sm:$0xff] }
 0x191   :  { %1352 = vmatprep.subr.mxu1 %v1559_v12 }
 0x192   :  { %1353 = vmatpush3.msra.mxu1 %v1559_v12  ;;  %v1168_v12 = vld [vmem:[%s2331_s0 + $0x110] sm:$0xff] }
 0x193   :  { %1354 = vmatprep.subr.mxu1 %v1566_v13 }
 0x194   :  { %1355 = vmatpush3.msra.mxu1 %v1566_v13  ;;  %v1169_v13 = vld [vmem:[%s2331_s0 + $0x118] sm:$0xff] }
 0x195   :  { %1356 = vmatprep.subr.mxu1 %v1573_v14 }
 0x196   :  { %1357 = vmatpush3.msra.mxu1 %v1573_v14  ;;  %v1170_v14 = vld [vmem:[%s2331_s0 + $0x120] sm:$0xff] }
 0x197   :  { %1358 = vmatprep.subr.mxu1 %v1580_v15 }
 0x198   :  { %1359 = vmatpush3.msra.mxu1 %v1580_v15  ;;  %v1171_v15 = vld [vmem:[%s2331_s0 + $0x128] sm:$0xff] }
 0x199   :  { %1360 = vmatprep.subr.mxu1 %v1587_v16 }
 0x19a   :  { %1361 = vmatpush3.msra.mxu1 %v1587_v16  ;;  %v1172_v16 = vld [vmem:[%s2331_s0 + $0x130] sm:$0xff] }
 0x19b   :  { %1363 = vmatmul.mubr.f32.vlgmr.msra.gmra.mxu1 %v1157_v0 }
 0x19c   :  { %1365 = vmatprep.mubr.f32.mxu1 %v1158_v1 }
 0x19f   :  { %1366 = vmatmul.mubr.f32.gmra.mxu1 %v1159_v2 }
 0x1a0   :  { %1368 = vmatprep.mubr.f32.mxu1 %v1160_v3 }
 0x1a3   :  { %1369 = vmatmul.mubr.f32.gmra.mxu1 %v1161_v5 }
 0x1a4   :  { %1371 = vmatprep.mubr.f32.mxu1 %v1162_v6 }
 0x1a7   :  { %1372 = vmatmul.mubr.f32.gmra.mxu1 %v1163_v7 }
 0x1a8   :  { %1374 = vmatprep.mubr.f32.mxu1 %v1164_v8 }
 0x1ab   :  { %1375 = vmatmul.mubr.f32.gmra.mxu1 %v1165_v9 }
 0x1ac   :  { %1377 = vmatprep.mubr.f32.mxu1 %v1166_v10 }
 0x1af   :  { %1378 = vmatmul.mubr.f32.gmra.mxu1 %v1167_v11 }
 0x1b0   :  { %1380 = vmatprep.mubr.f32.mxu1 %v1168_v12 }
 0x1b3   :  { %1381 = vmatmul.mubr.f32.gmra.mxu1 %v1169_v13 }
 0x1b4   :  { %1383 = vmatprep.mubr.f32.mxu1 %v1170_v14 }
 0x1b7   :  { %1384 = vmatmul.mubr.f32.gmra.mxu1 %v1171_v15 }
 0x1b8   :  { %1386 = vmatprep.mubr.f32.mxu1 %v1172_v16 }
 0x1bb   :  { %1387 = vmatmul.mubr.f32.gmra.mxu1 %v1173_v48 }
 0x1bc   :  { %1389 = vmatprep.mubr.f32.mxu1 %v1174_v18 }
 0x1bf   :  { %1390 = vmatmul.mubr.f32.gmra.mxu1 %v1175_v21 }
 0x1c0   :  { %1392 = vmatprep.mubr.f32.mxu1 %v1176_v49 }
 0x1c3   :  { %1393 = vmatmul.mubr.f32.gmra.mxu1 %v1177_v22 }
 0x23b   :  { %v580_v23 = vpop.f32.mrf.mxu1 }
 0x23c   :  { %v581_v42 = vadd.f32 %v580_v23, %v510_v27 }
 0x23d   :  { %v1329_v26 = vpop.f32.mrf.mxu1 }
 0x23e   :  { %585 = vst.msk [vmem:[#allocation2] sm:$0x1] %vm584_vm3, %v581_v42 }
 0x25b   :  { %v1364_v39 = vpop.f32.mrf.mxu1 }
 0x25c   :  { %v2048_v20 = vadd.f32 %v1364_v39, %v1659_v38 }
 0x25d   :  { %v698_v29 = vpop.f32.mrf.mxu1 }
 0x25e   :  { %v2051_v40 = vadd.f32 %v1659_v38, %v698_v29  ;;  %v857_v51 = vmul.f32 %v2048_v20, %v2048_v20  ;;  %v808_v34 = vsel %vm250_vm0, %v2048_v20, 0.0 }
 0x25f   :  { %v1367_v31 = vpop.f32.mrf.mxu1 }
 0x260   :  { %v807_v52 = vsel %vm250_vm0, %v2051_v40, 0.0  ;;  %v856_v19 = vmul.f32 %v2051_v40, %v2051_v40  ;;  %v2060_v33 = vadd.f32 %v1367_v31, %v1659_v38  ;;  %v879_v59 = vsel %vm250_vm0, %v857_v51, 0.0 }
 0x261   :  { %v708_v47 = vpop.f32.mrf.mxu1  ;;  %v809_v4 = vadd.f32 %v808_v34, %v807_v52 }
 0x262   :  { %v878_v41 = vsel %vm250_vm0, %v856_v19, 0.0  ;;  %v2066_v36 = vadd.f32 %v1659_v38, %v708_v47  ;;  %v859_v37 = vmul.f32 %v2060_v33, %v2060_v33  ;;  %v812_v30 = vsel %vm250_vm0, %v2060_v33, 0.0 }
 0x263   :  { %v1370_v32 = vpop.f32.mrf.mxu1  ;;  %v880_v58 = vadd.f32 %v879_v59, %v878_v41 }
 0x264   :  { %v810_v25 = vsel %vm250_vm0, %v2066_v36, 0.0  ;;  %v858_v43 = vmul.f32 %v2066_v36, %v2066_v36  ;;  %v2076_v35 = vadd.f32 %v1370_v32, %v1659_v38  ;;  %v883_v57 = vsel %vm250_vm0, %v859_v37, 0.0 }
 0x265   :  { %v811_v44 = vadd.f32 %v810_v25, %v809_v4  ;;  %v718_v45 = vpop.f32.mrf.mxu1 }
 0x266   :  { %v881_v63 = vsel %vm250_vm0, %v858_v43, 0.0  ;;  %v2082_v55 = vadd.f32 %v1659_v38, %v718_v45  ;;  %v861_v46 = vmul.f32 %v2076_v35, %v2076_v35  ;;  %v816_v0 = vsel %vm250_vm0, %v2076_v35, 0.0 }
 0x267   :  { %v882_v28 = vadd.f32 %v881_v63, %v880_v58  ;;  %v813_v50 = vadd.f32 %v812_v30, %v811_v44  ;;  %v1373_v54 = vpop.f32.mrf.mxu1 }
 0x268   :  { %v814_v60 = vsel %vm250_vm0, %v2082_v55, 0.0  ;;  %v860_v56 = vmul.f32 %v2082_v55, %v2082_v55  ;;  %v2092_v61 = vadd.f32 %v1373_v54, %v1659_v38  ;;  %v887_v3 = vsel %vm250_vm0, %v861_v46, 0.0 }
 0x269   :  { %v815_v24 = vadd.f32 %v814_v60, %v813_v50  ;;  %v884_v62 = vadd.f32 %v883_v57, %v882_v28  ;;  %v728_v17 = vpop.f32.mrf.mxu1 }
 0x26a   :  { %v885_v1 = vsel %vm250_vm0, %v860_v56, 0.0  ;;  %v2098_v2 = vadd.f32 %v1659_v38, %v728_v17  ;;  %v863_v8 = vmul.f32 %v2092_v61, %v2092_v61  ;;  %v820_v15 = vsel %vm250_vm0, %v2092_v61, 0.0 }
 0x26b   :  { %v886_v5 = vadd.f32 %v885_v1, %v884_v62  ;;  %v817_v6 = vadd.f32 %v816_v0, %v815_v24  ;;  %v1376_v7 = vpop.f32.mrf.mxu1 }
 0x26c   :  { %v818_v9 = vsel %vm250_vm0, %v2098_v2, 0.0  ;;  %v862_v10 = vmul.f32 %v2098_v2, %v2098_v2  ;;  %v2108_v11 = vadd.f32 %v1376_v7, %v1659_v38  ;;  %v891_v27 = vsel %vm250_vm0, %v863_v8, 0.0 }
 0x26d   :  { %v819_v12 = vadd.f32 %v818_v9, %v817_v6  ;;  %v888_v13 = vadd.f32 %v887_v3, %v886_v5  ;;  %v738_v14 = vpop.f32.mrf.mxu1 }
 0x26e   :  { %v889_v16 = vsel %vm250_vm0, %v862_v10, 0.0  ;;  %v2114_v48 = vadd.f32 %v1659_v38, %v738_v14  ;;  %v865_v21 = vmul.f32 %v2108_v11, %v2108_v11  ;;  %v824_v31 = vsel %vm250_vm0, %v2108_v11, 0.0 }
 0x26f   :  { %v890_v18 = vadd.f32 %v889_v16, %v888_v13  ;;  %v821_v49 = vadd.f32 %v820_v15, %v819_v12  ;;  %v1379_v22 = vpop.f32.mrf.mxu1 }
 0x270   :  { %v822_v23 = vsel %vm250_vm0, %v2114_v48, 0.0  ;;  %v864_v42 = vmul.f32 %v2114_v48, %v2114_v48  ;;  %v2124_v26 = vadd.f32 %v1379_v22, %v1659_v38  ;;  %v895_v47 = vsel %vm250_vm0, %v865_v21, 0.0 }
 0x271   :  { %v823_v39 = vadd.f32 %v822_v23, %v821_v49  ;;  %v892_v29 = vadd.f32 %v891_v27, %v890_v18  ;;  %v748_v51 = vpop.f32.mrf.mxu1 }
 0x272   :  { %v893_v52 = vsel %vm250_vm0, %v864_v42, 0.0  ;;  %v2130_v19 = vadd.f32 %v1659_v38, %v748_v51  ;;  %v867_v4 = vmul.f32 %v2124_v26, %v2124_v26  ;;  %v828_v45 = vsel %vm250_vm0, %v2124_v26, 0.0 }
 0x273   :  { %v894_v34 = vadd.f32 %v893_v52, %v892_v29  ;;  %v825_v41 = vadd.f32 %v824_v31, %v823_v39  ;;  %v1382_v59 = vpop.f32.mrf.mxu1 }
 0x274   :  { %v826_v32 = vsel %vm250_vm0, %v2130_v19, 0.0  ;;  %v866_v37 = vmul.f32 %v2130_v19, %v2130_v19  ;;  %v2140_v25 = vadd.f32 %v1382_v59, %v1659_v38  ;;  %v899_v57 = vsel %vm250_vm0, %v867_v4, 0.0 }
 0x275   :  { %v827_v43 = vadd.f32 %v826_v32, %v825_v41  ;;  %v896_v58 = vadd.f32 %v895_v47, %v894_v34  ;;  %v758_v44 = vpop.f32.mrf.mxu1  ;;  %v1407_v32 = vld [vmem:[%s2333_s2] ss:$0 sm:$0xff] }
 0x276   :  { %v897_v30 = vsel %vm250_vm0, %v866_v37, 0.0  ;;  %v2146_v63 = vadd.f32 %v1659_v38, %v758_v44  ;;  %v869_v46 = vmul.f32 %v2140_v25, %v2140_v25  ;;  %v832_v1 = vsel %vm250_vm0, %v2140_v25, 0.0 }
 0x277   :  { %v898_v28 = vadd.f32 %v897_v30, %v896_v58  ;;  %v829_v50 = vadd.f32 %v828_v45, %v827_v43  ;;  %v1385_v54 = vpop.f32.mrf.mxu1 }
 0x278   :  { %v830_v60 = vsel %vm250_vm0, %v2146_v63, 0.0  ;;  %v868_v56 = vmul.f32 %v2146_v63, %v2146_v63  ;;  %v2156_v24 = vadd.f32 %v1385_v54, %v1659_v38  ;;  %v903_v6 = vsel %vm250_vm0, %v869_v46, 0.0 }
 0x279   :  { %v831_v62 = vadd.f32 %v830_v60, %v829_v50  ;;  %v900_v17 = vadd.f32 %v899_v57, %v898_v28  ;;  %v768_v0 = vpop.f32.mrf.mxu1 }
 0x27a   :  { %v901_v3 = vsel %vm250_vm0, %v868_v56, 0.0  ;;  %v2162_v5 = vadd.f32 %v1659_v38, %v768_v0  ;;  %v871_v10 = vmul.f32 %v2156_v24, %v2156_v24  ;;  %v836_v21 = vsel %vm250_vm0, %v2156_v24, 0.0 }
 0x27b   :  { %v902_v7 = vadd.f32 %v901_v3, %v900_v17  ;;  %v833_v8 = vadd.f32 %v832_v1, %v831_v62  ;;  %v1388_v9 = vpop.f32.mrf.mxu1 }
 0x27c   :  { %v834_v12 = vsel %vm250_vm0, %v2162_v5, 0.0  ;;  %v870_v13 = vmul.f32 %v2162_v5, %v2162_v5  ;;  %v2172_v14 = vadd.f32 %v1388_v9, %v1659_v38  ;;  %v907_v29 = vsel %vm250_vm0, %v871_v10, 0.0 }
 0x27d   :  { %v835_v15 = vadd.f32 %v834_v12, %v833_v8  ;;  %v904_v16 = vadd.f32 %v903_v6, %v902_v7  ;;  %v778_v18 = vpop.f32.mrf.mxu1 }
 0x27e   :  { %v905_v49 = vsel %vm250_vm0, %v870_v13, 0.0  ;;  %v2178_v22 = vadd.f32 %v1659_v38, %v778_v18  ;;  %v873_v23 = vmul.f32 %v2172_v14, %v2172_v14  ;;  %v840_v59 = vsel %vm250_vm0, %v2172_v14, 0.0 }
 0x27f   :  { %v906_v27 = vadd.f32 %v905_v49, %v904_v16  ;;  %v837_v42 = vadd.f32 %v836_v21, %v835_v15  ;;  %v1391_v39 = vpop.f32.mrf.mxu1 }
 0x280   :  { %v838_v51 = vsel %vm250_vm0, %v2178_v22, 0.0  ;;  %v872_v31 = vmul.f32 %v2178_v22, %v2178_v22  ;;  %v2188_v52 = vadd.f32 %v1391_v39, %v1659_v38  ;;  %v911_v43 = vsel %vm250_vm0, %v873_v23, 0.0 }
 0x281   :  { %v839_v47 = vadd.f32 %v838_v51, %v837_v42  ;;  %v908_v34 = vadd.f32 %v907_v29, %v906_v27  ;;  %v788_v41 = vpop.f32.mrf.mxu1 }
 0x282   :  { %v909_v4 = vsel %vm250_vm0, %v872_v31, 0.0  ;;  %v2196_v37 = vadd.f32 %v1407_v32, %v788_v41  ;;  %v875_v45 = vmul.f32 %v2188_v52, %v2188_v52  ;;  %v844_v60 = vsel %vm250_vm0, %v2188_v52, 0.0 }
 0x283   :  { %v910_v58 = vadd.f32 %v909_v4, %v908_v34  ;;  %v841_v44 = vadd.f32 %v840_v59, %v839_v47  ;;  %v1394_v38 = vpop.f32.mrf.mxu1 }
 0x284   :  { %v842_v30 = vsel %vm250_vm0, %v2196_v37, 0.0  ;;  %v874_v28 = vmul.f32 %v2196_v37, %v2196_v37  ;;  %v2205_v46 = vadd.f32 %v1407_v32, %v1394_v38  ;;  %v915_v1 = vsel %vm250_vm0, %v875_v45, 0.0 }
 0x285   :  { %v843_v50 = vadd.f32 %v842_v30, %v841_v44  ;;  %v912_v54 = vadd.f32 %v911_v43, %v910_v58  ;;  %v798_v57 = vpop.f32.mrf.mxu1  ;;  %v933_v44 = vld [vmem:[%s2335_s4] sm:$0x1] }
 0x286   :  { %v913_v56 = vsel %vm250_vm0, %v874_v28, 0.0  ;;  %v2210_v62 = vadd.f32 %v1407_v32, %v798_v57  ;;  %v877_v3 = vmul.f32 %v2205_v46, %v2205_v46  ;;  %v848_v10 = vsel %vm292_vm2, %v2205_v46, 0.0  ;;  %v935_v28 = vld [vmem:[%s2336_s5] sm:$0x1] }
 0x287   :  { %v914_v17 = vadd.f32 %v913_v56, %v912_v54  ;;  %v845_v0 = vadd.f32 %v844_v60, %v843_v50 }
 0x288   :  { %v846_v6 = vsel %vm250_vm0, %v2210_v62, 0.0  ;;  %v876_v7 = vmul.f32 %v2210_v62, %v2210_v62  ;;  %v919_v16 = vsel %vm292_vm2, %v877_v3, 0.0 }
 0x289   :  { %v847_v8 = vadd.f32 %v846_v6, %v845_v0  ;;  %v916_v9 = vadd.f32 %v915_v1, %v914_v17 }
 0x28a   :  { %v917_v12 = vsel %vm250_vm0, %v876_v7, 0.0 }
 0x28b   :  { %v849_v13 = vadd.f32 %v848_v10, %v847_v8  ;;  %v918_v15 = vadd.f32 %v917_v12, %v916_v9 }
 0x28d   :  { %v850_v18 = vrot.slane %v849_v13, 4  ;;  %v920_v21 = vadd.f32 %v919_v16, %v918_v15 }
 0x28f   :  { %v851_v49 = vadd.f32 %v850_v18, %v849_v13  ;;  %v921_v27 = vrot.slane %v920_v21, 4 }
 0x291   :  { %v852_v23 = vrot.slane %v851_v49, 2  ;;  %v922_v42 = vadd.f32 %v921_v27, %v920_v21 }
 0x293   :  { %v853_v39 = vadd.f32 %v852_v23, %v851_v49  ;;  %v923_v29 = vrot.slane %v922_v42, 2 }
 0x295   :  { %v854_v51 = vrot.slane %v853_v39, 1  ;;  %v924_v31 = vadd.f32 %v923_v29, %v922_v42 }
 0x297   :  { %v855_v47 = vadd.f32 %v854_v51, %v853_v39  ;;  %v925_v34 = vrot.slane %v924_v31, 1 }
 0x299   :  { %v926_v41 = vadd.f32 %v925_v34, %v924_v31  ;;  %v927_v59 = vmul.f32 0.00591716, %v855_v47 }
 0x29b   :  { %v928_v4 = vmul.f32 0.00591716, %v926_v41  ;;  %v929_v32 = vmul.f32 %v927_v59, %v927_v59 }
 0x29d   :  { %v930_v43 = vsub.f32 %v928_v4, %v929_v32 }
 0x29f   :  { %v931_v58 = vadd.f32 1e-05, %v930_v43 }
 0x2a1   :  { %1405 = vrsqrt.f32 %v931_v58 }
 0x2ae   :  { %v1406_v38 = vpop.eup %1405 }
 0x2af   :  { %v934_v45 = vmul.f32 %v1406_v38, %v933_v44 }
 0x2b1   :  { %v936_v30 = vmul.f32 %v934_v45, %v927_v59  ;;  %v2230_v54 = vrot.slane %v934_v45, %v1849_v53 }
 0x2b3   :  { %v937_v50 = vsub.f32 %v935_v28, %v936_v30  ;;  %v942_v60 = vmul.f32 %v2230_v54, %v2051_v40  ;;  %v943_v56 = vmul.f32 %v2230_v54, %v2048_v20  ;;  %v944_v17 = vmul.f32 %v2230_v54, %v2066_v36 }
 0x2b4   :  { %v945_v3 = vmul.f32 %v2230_v54, %v2060_v33  ;;  %v947_v20 = vmul.f32 %v2230_v54, %v2076_v35  ;;  %v948_v10 = vmul.f32 %v2230_v54, %v2098_v2  ;;  %v949_v16 = vmul.f32 %v2230_v54, %v2092_v61 }
 0x2b5   :  { %v2233_v57 = vrot.slane %v937_v50, %v1849_v53  ;;  %v946_v53 = vmul.f32 %v2230_v54, %v2082_v55  ;;  %v950_v2 = vmul.f32 %v2230_v54, %v2114_v48  ;;  %v951_v29 = vmul.f32 %v2230_v54, %v2108_v11 }
 0x2b6   :  { %v952_v34 = vmul.f32 %v2230_v54, %v2130_v19  ;;  %v953_v32 = vmul.f32 %v2230_v54, %v2124_v26  ;;  %v954_v38 = vmul.f32 %v2230_v54, %v2146_v63  ;;  %v955_v50 = vmul.f32 %v2230_v54, %v2140_v25 }
 0x2b7   :  { %v970_v0 = vadd.f32 %v2233_v57, %v942_v60  ;;  %v971_v1 = vadd.f32 %v2233_v57, %v943_v56  ;;  %v972_v6 = vadd.f32 %v2233_v57, %v944_v17  ;;  %v973_v40 = vadd.f32 %v2233_v57, %v945_v3 }
 0x2b8   :  { %v974_v36 = vadd.f32 %v2233_v57, %v946_v53  ;;  %v975_v33 = vadd.f32 %v2233_v57, %v947_v20  ;;  %v976_v18 = vadd.f32 %v2233_v57, %v948_v10  ;;  %v977_v27 = vadd.f32 %v2233_v57, %v949_v16 }
 0x2b9   :  { %v992_v7 = vmax.f32 %v970_v0, 0.0  ;;  %v993_v8 = vmax.f32 %v971_v1, 0.0  ;;  %v994_v9 = vmax.f32 %v972_v6, 0.0  ;;  %v995_v12 = vmax.f32 %v973_v40, 0.0 }
 0x2ba   :  { %v996_v35 = vmax.f32 %v974_v36, 0.0  ;;  %v997_v23 = vmax.f32 %v975_v33, 0.0  ;;  %v978_v61 = vadd.f32 %v2233_v57, %v950_v2  ;;  %v998_v51 = vmax.f32 %v976_v18, 0.0 }
 0x2bb   :  { %v1014_v13 = vsel %vm250_vm0, %v992_v7, 0.0  ;;  %v1015_v55 = vsel %vm250_vm0, %v993_v8, 0.0  ;;  %v1017_v21 = vsel %vm250_vm0, %v994_v9, 0.0  ;;  %v1019_v42 = vsel %vm250_vm0, %v995_v12, 0.0 }
 0x2bc   :  { %v1016_v15 = vadd.f32 %v1015_v55, %v1014_v13  ;;  %v1021_v31 = vsel %vm250_vm0, %v996_v35, 0.0  ;;  %v979_v48 = vadd.f32 %v2233_v57, %v951_v29  ;;  %v999_v41 = vmax.f32 %v977_v27, 0.0 }
 0x2bd   :  { %v1023_v59 = vsel %vm250_vm0, %v997_v23, 0.0  ;;  %v980_v11 = vadd.f32 %v2233_v57, %v952_v34  ;;  %v1000_v43 = vmax.f32 %v978_v61, 0.0  ;;  %v1025_v58 = vsel %vm250_vm0, %v998_v51, 0.0 }
 0x2be   :  { %v1018_v49 = vadd.f32 %v1017_v21, %v1016_v15  ;;  %v981_v19 = vadd.f32 %v2233_v57, %v953_v32  ;;  %v1001_v45 = vmax.f32 %v979_v48, 0.0  ;;  %v1027_v30 = vsel %vm250_vm0, %v999_v41, 0.0 }
 0x2bf   :  { %v982_v26 = vadd.f32 %v2233_v57, %v954_v38  ;;  %v1002_v60 = vmax.f32 %v980_v11, 0.0  ;;  %v1029_v56 = vsel %vm250_vm0, %v1000_v43, 0.0  ;;  %v956_v0 = vmul.f32 %v2230_v54, %v2162_v5 }
 0x2c0   :  { %v1020_v39 = vadd.f32 %v1019_v42, %v1018_v49  ;;  %v983_v63 = vadd.f32 %v2233_v57, %v955_v50  ;;  %v1003_v1 = vmax.f32 %v981_v19, 0.0  ;;  %v1031_v3 = vsel %vm250_vm0, %v1001_v45, 0.0 }
 0x2c1   :  { %v957_v53 = vmul.f32 %v2230_v54, %v2156_v24  ;;  %v984_v25 = vadd.f32 %v2233_v57, %v956_v0  ;;  %v1004_v40 = vmax.f32 %v982_v26, 0.0  ;;  %v1033_v7 = vsel %vm250_vm0, %v1002_v60, 0.0  ;;  %v1065_v60 = vld [vmem:[%s2338_s7] sm:$0x1] }
 0x2c2   :  { %v1022_v47 = vadd.f32 %v1021_v31, %v1020_v39  ;;  %v958_v20 = vmul.f32 %v2230_v54, %v2178_v22  ;;  %v1005_v36 = vmax.f32 %v983_v63, 0.0  ;;  %v1035_v9 = vsel %vm250_vm0, %v1003_v1, 0.0 }
 0x2c3   :  { %v985_v5 = vadd.f32 %v2233_v57, %v957_v53  ;;  %v959_v33 = vmul.f32 %v2230_v54, %v2172_v14  ;;  %v1006_v12 = vmax.f32 %v984_v25, 0.0  ;;  %v1037_v13 = vsel %vm250_vm0, %v1004_v40, 0.0 }
 0x2c4   :  { %v1024_v4 = vadd.f32 %v1023_v59, %v1022_v47  ;;  %v986_v24 = vadd.f32 %v2233_v57, %v958_v20  ;;  %v960_v15 = vmul.f32 %v2230_v54, %v2196_v37  ;;  %v1039_v18 = vsel %vm250_vm0, %v1005_v36, 0.0 }
 0x2c5   :  { %v987_v22 = vadd.f32 %v2233_v57, %v959_v33  ;;  %v1007_v16 = vmax.f32 %v985_v5, 0.0  ;;  %v961_v21 = vmul.f32 %v2230_v54, %v2188_v52  ;;  %v1041_v2 = vsel %vm250_vm0, %v1006_v12, 0.0 }
 0x2c6   :  { %v1026_v44 = vadd.f32 %v1025_v58, %v1024_v4  ;;  %v988_v14 = vadd.f32 %v2233_v57, %v960_v15  ;;  %v1008_v49 = vmax.f32 %v986_v24, 0.0  ;;  %v962_v23 = vmul.f32 %v2230_v54, %v2210_v62 }
 0x2c7   :  { %v989_v37 = vadd.f32 %v2233_v57, %v961_v21  ;;  %v1009_v42 = vmax.f32 %v987_v22, 0.0  ;;  %v1043_v39 = vsel %vm250_vm0, %v1007_v16, 0.0  ;;  %v963_v61 = vmul.f32 %v2230_v54, %v2205_v46 }
 0x2c8   :  { %v1028_v28 = vadd.f32 %v1027_v30, %v1026_v44  ;;  %v990_v52 = vadd.f32 %v2233_v57, %v962_v23  ;;  %v1010_v51 = vmax.f32 %v988_v14, 0.0  ;;  %v1045_v31 = vsel %vm250_vm0, %v1008_v49, 0.0 }
 0x2c9   :  { %v991_v34 = vadd.f32 %v2233_v57, %v963_v61  ;;  %v1011_v48 = vmax.f32 %v989_v37, 0.0  ;;  %v1047_v62 = vsel %vm250_vm0, %v1009_v42, 0.0 }
 0x2ca   :  { %v1030_v17 = vadd.f32 %v1029_v56, %v1028_v28  ;;  %v1012_v59 = vmax.f32 %v990_v52, 0.0  ;;  %v1049_v4 = vsel %vm250_vm0, %v1010_v51, 0.0 }
 0x2cb   :  { %v1013_v11 = vmax.f32 %v991_v34, 0.0  ;;  %v1051_v43 = vsel %vm250_vm0, %v1011_v48, 0.0 }
 0x2cc   :  { %v1032_v6 = vadd.f32 %v1031_v3, %v1030_v17  ;;  %v1053_v54 = vsel %vm250_vm0, %v1012_v59, 0.0 }
 0x2cd   :  { %v1055_v44 = vsel %vm292_vm2, %v1013_v11, 0.0 }
 0x2ce   :  { %v1034_v8 = vadd.f32 %v1033_v7, %v1032_v6 }
 0x2d0   :  { %v1036_v10 = vadd.f32 %v1035_v9, %v1034_v8 }
 0x2d2   :  { %v1038_v55 = vadd.f32 %v1037_v13, %v1036_v10 }
 0x2d4   :  { %v1040_v35 = vadd.f32 %v1039_v18, %v1038_v55 }
 0x2d6   :  { %v1042_v27 = vadd.f32 %v1041_v2, %v1040_v35 }
 0x2d8   :  { %v1044_v29 = vadd.f32 %v1043_v39, %v1042_v27 }
 0x2da   :  { %v1046_v47 = vadd.f32 %v1045_v31, %v1044_v29 }
 0x2dc   :  { %v1048_v41 = vadd.f32 %v1047_v62, %v1046_v47 }
 0x2de   :  { %v1050_v32 = vadd.f32 %v1049_v4, %v1048_v41 }
 0x2e0   :  { %v1052_v46 = vadd.f32 %v1051_v43, %v1050_v32 }
 0x2e2   :  { %v1054_v58 = vadd.f32 %v1053_v54, %v1052_v46 }
 0x2e4   :  { %v1056_v38 = vadd.f32 %v1055_v44, %v1054_v58 }
 0x2e6   :  { %v1057_v19 = vrot.slane %v1056_v38, 4 }
 0x2e8   :  { %v1058_v57 = vadd.f32 %v1057_v19, %v1056_v38 }
 0x2ea   :  { %v1059_v45 = vrot.slane %v1058_v57, 2 }
 0x2ec   :  { %v1060_v30 = vadd.f32 %v1059_v45, %v1058_v57 }
 0x2ee   :  { %v1061_v28 = vrot.slane %v1060_v30, 1 }
 0x2f0   :  { %v1062_v50 = vadd.f32 %v1061_v28, %v1060_v30 }
 0x2f2   :  { %v1063_v26 = vmul.f32 0.00591716, %v1062_v50 }
 0x2f4   :  { %1398 = vmatmul.mubr.msk.f32.vlgmr.msra.gmra.mxu0 %vm250_vm0, %v1063_v26 }
 0x3b4   :  { %v1135_v56 = vpop.f32.mrf.mxu0 }
 0x3b5   :  { %v1136_v17 = vadd.f32 %v1135_v56, %v1065_v60 }
 0x3b6   :  { %v1399_v0 = vpop.f32.mrf.mxu0 }
 0x3b7   :  { %1139 = vst.msk [vmem:[#allocation2 + $0x1] sm:$0x1] %vm584_vm3, %v1136_v17 }
 0x3b8   :  { %1419 = shalt.err (!%p1416_p4)
}
 0x3b9   :  { %1149 = dma.vmem_to_hbm [thread:$0]  %s1147_s17, 32, %s2339_s8, [#allocation3]  }
 0x3ba   :  { %1428 = dma.done.wait [#allocation3], 32  }
 0x3bb   :  { %1429 = vsyncadd [#allocation3], 4294967264 }
 0x3bc   :  { %1153 = vsyncpa [#allocation3], 1 }

</bundles_post_ra>
